<compile_context>
chip_gen: v5e
topology: v5e:2x2
jax: 0.10.0
libtpu: 0.0.40
codegen_flags: <defaults>
</compile_context>

<pallas_src>
import numpy as np
import jax
import jax.numpy as jnp
from jax.experimental import pallas as pl

FEATURE_OUTPUT = 288  # 32 channels * 3 * 3 final spatial


# ---------------------------------------------------------------------------
# Pallas kernels
# ---------------------------------------------------------------------------
def _conv_matmul_elu_kernel(p_ref, w_ref, b_ref, o_ref):
    """out = ELU(patches @ W + b) for one conv layer (both branches batched)."""
    y = jnp.dot(p_ref[...], w_ref[...], preferred_element_type=jnp.float32)
    y = y + b_ref[...]                       # (1, N) broadcasts over rows
    # ELU(alpha=1): x if x > 0 else exp(x) - 1 (clamp exp arg for safety)
    o_ref[...] = jnp.where(y > 0.0, y, jnp.exp(jnp.minimum(y, 0.0)) - 1.0)


def _fused_conv_layer(patches, w, b):
    """patches (M, K) f32, w (K, N) f32, b (1, N) f32 -> (M, N) f32."""
    M, _ = patches.shape
    N = w.shape[1]
    return pl.pallas_call(
        _conv_matmul_elu_kernel,
        out_shape=jax.ShapeDtypeStruct((M, N), jnp.float32),
    )(patches, w, b)


def _fc_heads_kernel(fp_ref, ft_ref,
                     wp1_ref, bp1_ref, wp2_ref, bp2_ref, wp3_ref, bp3_ref,
                     wt_ref, bt_ref,
                     pred_ref, tgt_ref):
    """All four Linear layers of both heads fused into one kernel.

    target:    tgt  = ft @ Wt + bt
    predictor: h1 = relu(fp @ Wp1 + bp1); h2 = relu(h1 @ Wp2 + bp2)
               pred = h2 @ Wp3 + bp3
    Weights are bf16; every matmul accumulates in f32 on the MXU.
    """
    ft = ft_ref[...].astype(jnp.bfloat16)
    tgt_ref[...] = (jnp.dot(ft, wt_ref[...], preferred_element_type=jnp.float32)
                    + bt_ref[...])

    h = fp_ref[...].astype(jnp.bfloat16)
    h = jnp.dot(h, wp1_ref[...], preferred_element_type=jnp.float32) + bp1_ref[...]
    h = jnp.maximum(h, 0.0).astype(jnp.bfloat16)
    h = jnp.dot(h, wp2_ref[...], preferred_element_type=jnp.float32) + bp2_ref[...]
    h = jnp.maximum(h, 0.0).astype(jnp.bfloat16)
    pred_ref[...] = (jnp.dot(h, wp3_ref[...], preferred_element_type=jnp.float32)
                     + bp3_ref[...])


def _fused_fc_heads(fp, ft, fc):
    B = fp.shape[0]
    out_shape = (jax.ShapeDtypeStruct((B, 512), jnp.float32),
                 jax.ShapeDtypeStruct((B, 512), jnp.float32))
    return pl.pallas_call(
        _fc_heads_kernel,
        out_shape=out_shape,
    )(fp, ft,
      fc["wp1"], fc["bp1"], fc["wp2"], fc["bp2"], fc["wp3"], fc["bp3"],
      fc["wt"], fc["bt"])


# ---------------------------------------------------------------------------
# im2col glue for Conv2d(k=3, s=2, p=1) — thin, static strided slices only.
# ---------------------------------------------------------------------------
def _im2col_s2_p1_k3(x):
    """x: (B, H, W, C) NHWC -> (B*OH*OW, 9*C) patches, (kh, kw, c) ordering."""
    B, H, W, C = x.shape
    xp = jnp.pad(x, ((0, 0), (1, 1), (1, 1), (0, 0)))
    OH = (H - 1) // 2 + 1
    OW = (W - 1) // 2 + 1
    cols = [xp[:, kh:kh + 2 * OH:2, kw:kw + 2 * OW:2, :]
            for kh in range(3) for kw in range(3)]
    patches = jnp.concatenate(cols, axis=-1)            # (B, OH, OW, 9*C)
    return patches.reshape(B * OH * OW, 9 * C), (B, OH, OW)


# ---------------------------------------------------------------------------
# Parameter init (orthogonal gain=sqrt(2), zero bias — like the torch module)
# and packing into the fused/batched kernel layout.
# ---------------------------------------------------------------------------
def _orthogonal(rng, shape, gain):
    rows = shape[0]
    cols = int(np.prod(shape[1:]))
    a = rng.standard_normal((rows, cols)).astype(np.float32)
    if rows < cols:
        a = a.T
    q, r = np.linalg.qr(a)
    q = q * np.sign(np.diag(r))
    if rows < cols:
        q = q.T
    return (gain * q.reshape(shape)).astype(np.float32)


def init_params(input_size, seed=0):
    rng = np.random.default_rng(seed)
    gain = float(np.sqrt(2.0))

    def conv_stack():
        ws, c_in = [], input_size
        for _ in range(4):
            ws.append(_orthogonal(rng, (32, c_in, 3, 3), gain))
            c_in = 32
        return ws

    pred_conv = conv_stack()
    pred_fc = [_orthogonal(rng, (512, FEATURE_OUTPUT), gain),
               _orthogonal(rng, (512, 512), gain),
               _orthogonal(rng, (512, 512), gain)]
    tgt_conv = conv_stack()
    tgt_fc = [_orthogonal(rng, (512, FEATURE_OUTPUT), gain)]
    # all biases are zero in the torch module

    def conv_mat(w_oihw):
        # (O, I, kh, kw) -> (kh, kw, I, O) -> (9*I, O), matching im2col ordering
        return np.transpose(w_oihw, (2, 3, 1, 0)).reshape(-1, w_oihw.shape[0])

    # Layer 1: both branches see the same input -> concat along output channels.
    w1 = np.concatenate([conv_mat(pred_conv[0]), conv_mat(tgt_conv[0])], axis=1)
    conv_w = [jnp.asarray(w1, jnp.float32)]                       # (9*Cin, 64)
    # Layers 2-4: block-diagonal so one matmul advances both branches.
    for layer in range(1, 4):
        wp = np.transpose(pred_conv[layer], (2, 3, 1, 0))         # (3,3,32,32)
        wt = np.transpose(tgt_conv[layer], (2, 3, 1, 0))
        blk = np.zeros((3, 3, 64, 64), np.float32)
        blk[:, :, :32, :32] = wp
        blk[:, :, 32:, 32:] = wt
        conv_w.append(jnp.asarray(blk.reshape(9 * 64, 64), jnp.float32))
    conv_b = [jnp.zeros((1, w.shape[1]), jnp.float32) for w in conv_w]

    fc = {
        "wp1": jnp.asarray(pred_fc[0].T, jnp.bfloat16),   # (288, 512)
        "wp2": jnp.asarray(pred_fc[1].T, jnp.bfloat16),   # (512, 512)
        "wp3": jnp.asarray(pred_fc[2].T, jnp.bfloat16),   # (512, 512)
        "wt":  jnp.asarray(tgt_fc[0].T, jnp.bfloat16),    # (288, 512)
        "bp1": jnp.zeros((1, 512), jnp.float32),
        "bp2": jnp.zeros((1, 512), jnp.float32),
        "bp3": jnp.zeros((1, 512), jnp.float32),
        "bt":  jnp.zeros((1, 512), jnp.float32),
    }
    return {"conv_w": conv_w, "conv_b": conv_b, "fc": fc}


# ---------------------------------------------------------------------------
# Forward
# ---------------------------------------------------------------------------
def rnd_forward(params, next_obs_nchw):
    x = jnp.transpose(next_obs_nchw, (0, 2, 3, 1)).astype(jnp.float32)  # NHWC
    for w, b in zip(params["conv_w"], params["conv_b"]):
        patches, (B, OH, OW) = _im2col_s2_p1_k3(x)
        y = _fused_conv_layer(patches, w, b)          # (B*OH*OW, 64)
        x = y.reshape(B, OH, OW, y.shape[-1])
    # Flatten exactly like torch's view(B, -1) on an NCHW tensor, per branch.
    B = x.shape[0]
    fp = jnp.transpose(x[..., :32], (0, 3, 1, 2)).reshape(B, FEATURE_OUTPUT)
    ft = jnp.transpose(x[..., 32:], (0, 3, 1, 2)).reshape(B, FEATURE_OUTPUT)
    predict_feature, target_feature = _fused_fc_heads(fp, ft, params["fc"])
    return predict_feature, target_feature


if __name__ == "__main__":
    # Spatial size must reduce to 3x3 after four stride-2 convs so the flatten
    # yields feature_output = 32*3*3 = 288  ->  H = W = 36.
    B, C_IN, H, W = 2, 4, 36, 36
    key = jax.random.PRNGKey(0)
    next_obs = jax.random.normal(key, (B, C_IN, H, W), dtype=jnp.float32)

    params = init_params(input_size=C_IN, seed=0)

    fwd = jax.jit(lambda x: rnd_forward(params, x))
    predict_feature, target_feature = fwd(next_obs)
    jax.block_until_ready((predict_feature, target_feature))

    assert predict_feature.shape == (B, 512)
    assert target_feature.shape == (B, 512)
    assert bool(jnp.all(jnp.isfinite(predict_feature)))
    assert bool(jnp.all(jnp.isfinite(target_feature)))
    print("KERNEL_OK")
</pallas_src>

<mosaic_0001>
module attributes {stable_mosaic.version = 11 : i64} {
  func.func @_conv_matmul_elu_kernel(%arg0: memref<648x36xf32, #tpu.memory_space<vmem>>, %arg1: memref<36x64xf32, #tpu.memory_space<vmem>>, %arg2: memref<1x64xf32, #tpu.memory_space<vmem>>, %arg3: memref<648x64xf32, #tpu.memory_space<vmem>>) attributes {dimension_semantics = [], scalar_prefetch = 0 : i64, scratch_operands = 0 : i64, tpu.core_type = #tpu.core_type<tc>} {
    %c0 = arith.constant 0 : index
    %c0_0 = arith.constant 0 : index
    %0 = vector.load %arg0[%c0, %c0_0] : memref<648x36xf32, #tpu.memory_space<vmem>>, vector<648x36xf32>
    %c0_1 = arith.constant 0 : index
    %c0_2 = arith.constant 0 : index
    %1 = vector.load %arg1[%c0_1, %c0_2] : memref<36x64xf32, #tpu.memory_space<vmem>>, vector<36x64xf32>
    %cst = arith.constant dense<0.000000e+00> : vector<648x64xf32>
    %2 = tpu.matmul %0, %1, %cst {dimension_numbers = #tpu.dot_dimension_numbers<[1], [0], [0], [1], [0, 0, 1, 1], [], []>} : vector<648x36xf32>, vector<36x64xf32>, vector<648x64xf32> -> vector<648x64xf32>
    %c0_3 = arith.constant 0 : index
    %c0_4 = arith.constant 0 : index
    %3 = vector.load %arg2[%c0_3, %c0_4] : memref<1x64xf32, #tpu.memory_space<vmem>>, vector<1x64xf32>
    %4 = vector.broadcast %3 : vector<1x64xf32> to vector<648x64xf32>
    %5 = arith.addf %2, %4 : vector<648x64xf32>
    %cst_5 = arith.constant 0.000000e+00 : f32
    %6 = vector.broadcast %cst_5 : f32 to vector<648x64xf32>
    %7 = arith.cmpf ogt, %5, %6 : vector<648x64xf32>
    %cst_6 = arith.constant 0.000000e+00 : f32
    %8 = vector.broadcast %cst_6 : f32 to vector<648x64xf32>
    %9 = arith.minimumf %5, %8 : vector<648x64xf32>
    %10 = math.exp %9 : vector<648x64xf32>
    %cst_7 = arith.constant 1.000000e+00 : f32
    %11 = vector.broadcast %cst_7 : f32 to vector<648x64xf32>
    %12 = arith.subf %10, %11 : vector<648x64xf32>
    %13 = arith.select %7, %5, %12 : vector<648x64xi1>, vector<648x64xf32>
    %c0_8 = arith.constant 0 : index
    %c0_9 = arith.constant 0 : index
    %14 = vector.load %arg3[%c0_8, %c0_9] : memref<648x64xf32, #tpu.memory_space<vmem>>, vector<648x64xf32>
    tpu.vector_store %arg3[%c0_8, %c0_9], %13 {strides = array<i32>} : memref<648x64xf32, #tpu.memory_space<vmem>>, vector<648x64xf32>,
    return
  }
}

module attributes {stable_mosaic.version = 11 : i64} {
  func.func @_conv_matmul_elu_kernel(%arg0: memref<162x576xf32, #tpu.memory_space<vmem>>, %arg1: memref<576x64xf32, #tpu.memory_space<vmem>>, %arg2: memref<1x64xf32, #tpu.memory_space<vmem>>, %arg3: memref<162x64xf32, #tpu.memory_space<vmem>>) attributes {dimension_semantics = [], scalar_prefetch = 0 : i64, scratch_operands = 0 : i64, tpu.core_type = #tpu.core_type<tc>} {
    %c0 = arith.constant 0 : index
    %c0_0 = arith.constant 0 : index
    %0 = vector.load %arg0[%c0, %c0_0] : memref<162x576xf32, #tpu.memory_space<vmem>>, vector<162x576xf32>
    %c0_1 = arith.constant 0 : index
    %c0_2 = arith.constant 0 : index
    %1 = vector.load %arg1[%c0_1, %c0_2] : memref<576x64xf32, #tpu.memory_space<vmem>>, vector<576x64xf32>
    %cst = arith.constant dense<0.000000e+00> : vector<162x64xf32>
    %2 = tpu.matmul %0, %1, %cst {dimension_numbers = #tpu.dot_dimension_numbers<[1], [0], [0], [1], [0, 0, 1, 1], [], []>} : vector<162x576xf32>, vector<576x64xf32>, vector<162x64xf32> -> vector<162x64xf32>
    %c0_3 = arith.constant 0 : index
    %c0_4 = arith.constant 0 : index
    %3 = vector.load %arg2[%c0_3, %c0_4] : memref<1x64xf32, #tpu.memory_space<vmem>>, vector<1x64xf32>
    %4 = vector.broadcast %3 : vector<1x64xf32> to vector<162x64xf32>
    %5 = arith.addf %2, %4 : vector<162x64xf32>
    %cst_5 = arith.constant 0.000000e+00 : f32
    %6 = vector.broadcast %cst_5 : f32 to vector<162x64xf32>
    %7 = arith.cmpf ogt, %5, %6 : vector<162x64xf32>
    %cst_6 = arith.constant 0.000000e+00 : f32
    %8 = vector.broadcast %cst_6 : f32 to vector<162x64xf32>
    %9 = arith.minimumf %5, %8 : vector<162x64xf32>
    %10 = math.exp %9 : vector<162x64xf32>
    %cst_7 = arith.constant 1.000000e+00 : f32
    %11 = vector.broadcast %cst_7 : f32 to vector<162x64xf32>
    %12 = arith.subf %10, %11 : vector<162x64xf32>
    %13 = arith.select %7, %5, %12 : vector<162x64xi1>, vector<162x64xf32>
    %c0_8 = arith.constant 0 : index
    %c0_9 = arith.constant 0 : index
    %14 = vector.load %arg3[%c0_8, %c0_9] : memref<162x64xf32, #tpu.memory_space<vmem>>, vector<162x64xf32>
    tpu.vector_store %arg3[%c0_8, %c0_9], %13 {strides = array<i32>} : memref<162x64xf32, #tpu.memory_space<vmem>>, vector<162x64xf32>,
    return
  }
}

module attributes {stable_mosaic.version = 11 : i64} {
  func.func @_conv_matmul_elu_kernel(%arg0: memref<50x576xf32, #tpu.memory_space<vmem>>, %arg1: memref<576x64xf32, #tpu.memory_space<vmem>>, %arg2: memref<1x64xf32, #tpu.memory_space<vmem>>, %arg3: memref<50x64xf32, #tpu.memory_space<vmem>>) attributes {dimension_semantics = [], scalar_prefetch = 0 : i64, scratch_operands = 0 : i64, tpu.core_type = #tpu.core_type<tc>} {
    %c0 = arith.constant 0 : index
    %c0_0 = arith.constant 0 : index
    %0 = vector.load %arg0[%c0, %c0_0] : memref<50x576xf32, #tpu.memory_space<vmem>>, vector<50x576xf32>
    %c0_1 = arith.constant 0 : index
    %c0_2 = arith.constant 0 : index
    %1 = vector.load %arg1[%c0_1, %c0_2] : memref<576x64xf32, #tpu.memory_space<vmem>>, vector<576x64xf32>
    %cst = arith.constant dense<0.000000e+00> : vector<50x64xf32>
    %2 = tpu.matmul %0, %1, %cst {dimension_numbers = #tpu.dot_dimension_numbers<[1], [0], [0], [1], [0, 0, 1, 1], [], []>} : vector<50x576xf32>, vector<576x64xf32>, vector<50x64xf32> -> vector<50x64xf32>
    %c0_3 = arith.constant 0 : index
    %c0_4 = arith.constant 0 : index
    %3 = vector.load %arg2[%c0_3, %c0_4] : memref<1x64xf32, #tpu.memory_space<vmem>>, vector<1x64xf32>
    %4 = vector.broadcast %3 : vector<1x64xf32> to vector<50x64xf32>
    %5 = arith.addf %2, %4 : vector<50x64xf32>
    %cst_5 = arith.constant 0.000000e+00 : f32
    %6 = vector.broadcast %cst_5 : f32 to vector<50x64xf32>
    %7 = arith.cmpf ogt, %5, %6 : vector<50x64xf32>
    %cst_6 = arith.constant 0.000000e+00 : f32
    %8 = vector.broadcast %cst_6 : f32 to vector<50x64xf32>
    %9 = arith.minimumf %5, %8 : vector<50x64xf32>
    %10 = math.exp %9 : vector<50x64xf32>
    %cst_7 = arith.constant 1.000000e+00 : f32
    %11 = vector.broadcast %cst_7 : f32 to vector<50x64xf32>
    %12 = arith.subf %10, %11 : vector<50x64xf32>
    %13 = arith.select %7, %5, %12 : vector<50x64xi1>, vector<50x64xf32>
    %c0_8 = arith.constant 0 : index
    %c0_9 = arith.constant 0 : index
    %14 = vector.load %arg3[%c0_8, %c0_9] : memref<50x64xf32, #tpu.memory_space<vmem>>, vector<50x64xf32>
    tpu.vector_store %arg3[%c0_8, %c0_9], %13 {strides = array<i32>} : memref<50x64xf32, #tpu.memory_space<vmem>>, vector<50x64xf32>,
    return
  }
}

module attributes {stable_mosaic.version = 11 : i64} {
  func.func @_fc_heads_kernel(%arg0: memref<2x288xf32, #tpu.memory_space<vmem>>, %arg1: memref<2x288xf32, #tpu.memory_space<vmem>>, %arg2: memref<288x512xbf16, #tpu.memory_space<vmem>>, %arg3: memref<1x512xf32, #tpu.memory_space<vmem>>, %arg4: memref<512x512xbf16, #tpu.memory_space<vmem>>, %arg5: memref<1x512xf32, #tpu.memory_space<vmem>>, %arg6: memref<512x512xbf16, #tpu.memory_space<vmem>>, %arg7: memref<1x512xf32, #tpu.memory_space<vmem>>, %arg8: memref<288x512xbf16, #tpu.memory_space<vmem>>, %arg9: memref<1x512xf32, #tpu.memory_space<vmem>>, %arg10: memref<2x512xf32, #tpu.memory_space<vmem>>, %arg11: memref<2x512xf32, #tpu.memory_space<vmem>>) attributes {dimension_semantics = [], scalar_prefetch = 0 : i64, scratch_operands = 0 : i64, tpu.core_type = #tpu.core_type<tc>} {
    %c0 = arith.constant 0 : index
    %c0_0 = arith.constant 0 : index
    %0 = vector.load %arg1[%c0, %c0_0] : memref<2x288xf32, #tpu.memory_space<vmem>>, vector<2x288xf32>
    %1 = arith.truncf %0 : vector<2x288xf32> to vector<2x288xbf16>
    %c0_1 = arith.constant 0 : index
    %c0_2 = arith.constant 0 : index
    %2 = vector.load %arg8[%c0_1, %c0_2] : memref<288x512xbf16, #tpu.memory_space<vmem>>, vector<288x512xbf16>
    %cst = arith.constant dense<0.000000e+00> : vector<2x512xf32>
    %3 = tpu.matmul %1, %2, %cst {dimension_numbers = #tpu.dot_dimension_numbers<[1], [0], [0], [1], [0, 0, 1, 1], [], []>} : vector<2x288xbf16>, vector<288x512xbf16>, vector<2x512xf32> -> vector<2x512xf32>
    %c0_3 = arith.constant 0 : index
    %c0_4 = arith.constant 0 : index
    %4 = vector.load %arg9[%c0_3, %c0_4] : memref<1x512xf32, #tpu.memory_space<vmem>>, vector<1x512xf32>
    %5 = vector.broadcast %4 : vector<1x512xf32> to vector<2x512xf32>
    %6 = arith.addf %3, %5 : vector<2x512xf32>
    %c0_5 = arith.constant 0 : index
    %c0_6 = arith.constant 0 : index
    %7 = vector.load %arg11[%c0_5, %c0_6] : memref<2x512xf32, #tpu.memory_space<vmem>>, vector<2x512xf32>
    tpu.vector_store %arg11[%c0_5, %c0_6], %6 {strides = array<i32>} : memref<2x512xf32, #tpu.memory_space<vmem>>, vector<2x512xf32>,
    %c0_7 = arith.constant 0 : index
    %c0_8 = arith.constant 0 : index
    %8 = vector.load %arg0[%c0_7, %c0_8] : memref<2x288xf32, #tpu.memory_space<vmem>>, vector<2x288xf32>
    %9 = arith.truncf %8 : vector<2x288xf32> to vector<2x288xbf16>
    %c0_9 = arith.constant 0 : index
    %c0_10 = arith.constant 0 : index
    %10 = vector.load %arg2[%c0_9, %c0_10] : memref<288x512xbf16, #tpu.memory_space<vmem>>, vector<288x512xbf16>
    %cst_11 = arith.constant dense<0.000000e+00> : vector<2x512xf32>
    %11 = tpu.matmul %9, %10, %cst_11 {dimension_numbers = #tpu.dot_dimension_numbers<[1], [0], [0], [1], [0, 0, 1, 1], [], []>} : vector<2x288xbf16>, vector<288x512xbf16>, vector<2x512xf32> -> vector<2x512xf32>
    %c0_12 = arith.constant 0 : index
    %c0_13 = arith.constant 0 : index
    %12 = vector.load %arg3[%c0_12, %c0_13] : memref<1x512xf32, #tpu.memory_space<vmem>>, vector<1x512xf32>
    %13 = vector.broadcast %12 : vector<1x512xf32> to vector<2x512xf32>
    %14 = arith.addf %11, %13 : vector<2x512xf32>
    %cst_14 = arith.constant 0.000000e+00 : f32
    %15 = vector.broadcast %cst_14 : f32 to vector<2x512xf32>
    %16 = arith.maximumf %14, %15 : vector<2x512xf32>
    %17 = arith.truncf %16 : vector<2x512xf32> to vector<2x512xbf16>
    %c0_15 = arith.constant 0 : index
    %c0_16 = arith.constant 0 : index
    %18 = vector.load %arg4[%c0_15, %c0_16] : memref<512x512xbf16, #tpu.memory_space<vmem>>, vector<512x512xbf16>
    %cst_17 = arith.constant dense<0.000000e+00> : vector<2x512xf32>
    %19 = tpu.matmul %17, %18, %cst_17 {dimension_numbers = #tpu.dot_dimension_numbers<[1], [0], [0], [1], [0, 0, 1, 1], [], []>} : vector<2x512xbf16>, vector<512x512xbf16>, vector<2x512xf32> -> vector<2x512xf32>
    %c0_18 = arith.constant 0 : index
    %c0_19 = arith.constant 0 : index
    %20 = vector.load %arg5[%c0_18, %c0_19] : memref<1x512xf32, #tpu.memory_space<vmem>>, vector<1x512xf32>
    %21 = vector.broadcast %20 : vector<1x512xf32> to vector<2x512xf32>
    %22 = arith.addf %19, %21 : vector<2x512xf32>
    %cst_20 = arith.constant 0.000000e+00 : f32
    %23 = vector.broadcast %cst_20 : f32 to vector<2x512xf32>
    %24 = arith.maximumf %22, %23 : vector<2x512xf32>
    %25 = arith.truncf %24 : vector<2x512xf32> to vector<2x512xbf16>
    %c0_21 = arith.constant 0 : index
    %c0_22 = arith.constant 0 : index
    %26 = vector.load %arg6[%c0_21, %c0_22] : memref<512x512xbf16, #tpu.memory_space<vmem>>, vector<512x512xbf16>
    %cst_23 = arith.constant dense<0.000000e+00> : vector<2x512xf32>
    %27 = tpu.matmul %25, %26, %cst_23 {dimension_numbers = #tpu.dot_dimension_numbers<[1], [0], [0], [1], [0, 0, 1, 1], [], []>} : vector<2x512xbf16>, vector<512x512xbf16>, vector<2x512xf32> -> vector<2x512xf32>
    %c0_24 = arith.constant 0 : index
    %c0_25 = arith.constant 0 : index
    %28 = vector.load %arg7[%c0_24, %c0_25] : memref<1x512xf32, #tpu.memory_space<vmem>>, vector<1x512xf32>
    %29 = vector.broadcast %28 : vector<1x512xf32> to vector<2x512xf32>
    %30 = arith.addf %27, %29 : vector<2x512xf32>
    %c0_26 = arith.constant 0 : index
    %c0_27 = arith.constant 0 : index
    %31 = vector.load %arg10[%c0_26, %c0_27] : memref<2x512xf32, #tpu.memory_space<vmem>>, vector<2x512xf32>
    tpu.vector_store %arg10[%c0_26, %c0_27], %30 {strides = array<i32>} : memref<2x512xf32, #tpu.memory_space<vmem>>, vector<2x512xf32>,
    return
  }
}

module attributes {stable_mosaic.version = 11 : i64} {
  func.func @_conv_matmul_elu_kernel(%arg0: memref<18x576xf32, #tpu.memory_space<vmem>>, %arg1: memref<576x64xf32, #tpu.memory_space<vmem>>, %arg2: memref<1x64xf32, #tpu.memory_space<vmem>>, %arg3: memref<18x64xf32, #tpu.memory_space<vmem>>) attributes {dimension_semantics = [], scalar_prefetch = 0 : i64, scratch_operands = 0 : i64, tpu.core_type = #tpu.core_type<tc>} {
    %c0 = arith.constant 0 : index
    %c0_0 = arith.constant 0 : index
    %0 = vector.load %arg0[%c0, %c0_0] : memref<18x576xf32, #tpu.memory_space<vmem>>, vector<18x576xf32>
    %c0_1 = arith.constant 0 : index
    %c0_2 = arith.constant 0 : index
    %1 = vector.load %arg1[%c0_1, %c0_2] : memref<576x64xf32, #tpu.memory_space<vmem>>, vector<576x64xf32>
    %cst = arith.constant dense<0.000000e+00> : vector<18x64xf32>
    %2 = tpu.matmul %0, %1, %cst {dimension_numbers = #tpu.dot_dimension_numbers<[1], [0], [0], [1], [0, 0, 1, 1], [], []>} : vector<18x576xf32>, vector<576x64xf32>, vector<18x64xf32> -> vector<18x64xf32>
    %c0_3 = arith.constant 0 : index
    %c0_4 = arith.constant 0 : index
    %3 = vector.load %arg2[%c0_3, %c0_4] : memref<1x64xf32, #tpu.memory_space<vmem>>, vector<1x64xf32>
    %4 = vector.broadcast %3 : vector<1x64xf32> to vector<18x64xf32>
    %5 = arith.addf %2, %4 : vector<18x64xf32>
    %cst_5 = arith.constant 0.000000e+00 : f32
    %6 = vector.broadcast %cst_5 : f32 to vector<18x64xf32>
    %7 = arith.cmpf ogt, %5, %6 : vector<18x64xf32>
    %cst_6 = arith.constant 0.000000e+00 : f32
    %8 = vector.broadcast %cst_6 : f32 to vector<18x64xf32>
    %9 = arith.minimumf %5, %8 : vector<18x64xf32>
    %10 = math.exp %9 : vector<18x64xf32>
    %cst_7 = arith.constant 1.000000e+00 : f32
    %11 = vector.broadcast %cst_7 : f32 to vector<18x64xf32>
    %12 = arith.subf %10, %11 : vector<18x64xf32>
    %13 = arith.select %7, %5, %12 : vector<18x64xi1>, vector<18x64xf32>
    %c0_8 = arith.constant 0 : index
    %c0_9 = arith.constant 0 : index
    %14 = vector.load %arg3[%c0_8, %c0_9] : memref<18x64xf32, #tpu.memory_space<vmem>>, vector<18x64xf32>
    tpu.vector_store %arg3[%c0_8, %c0_9], %13 {strides = array<i32>} : memref<18x64xf32, #tpu.memory_space<vmem>>, vector<18x64xf32>,
    return
  }
}

</mosaic_0001>

<bundles_post_ra>
// kernel: _lambda_.5
= control target key start
LH: loop header
LB: loop body
LE: loop exit
PB: predicated region body
PF: predicated region fallthrough
CT: control target
= control target key end

     0   :  { %vm348_vm0 = vcmask 1043456   ;;  %vm104_vm1 = vcmask 293888   ;;  %vm1098_vm2 = vcmask 523264   ;;  %s2779_s1 = inlined_call_operand.vmem [shape: f32[36,64], index: 1, kind: input, shape index: {}]   ;;  %s2780_s0 = inlined_call_operand.vmem [shape: f32[648,36], index: 0, kind: input, shape index: {}]   ;;  %s2781_s2 = inlined_call_operand.vmem [shape: f32[1,64], index: 2, kind: input, shape index: {}]   ;;  %s2782_s3 = inlined_call_operand.vmem [shape: f32[648,64], index: 3, kind: output, shape index: {}]  }
   0x1   :  { %v99_v0 = vld [vmem:[%s2779_s1 + $0x20] sm:$0xf]  ;;  %v98_v1 = vld [vmem:[%s2779_s1 + $0x18] sm:$0xff]  ;;  %v97_v2 = vld [vmem:[%s2779_s1 + $0x10] sm:$0xff] }
   0x2   :  { %1348 = vmatpush.msk.msra.mxu2 %vm348_vm0, %v99_v0  ;;  %1349 = vmatpush.msk.msra.mxu3 %vm348_vm0, %v99_v0  ;;  %v96_v3 = vld [vmem:[%s2779_s1 + $0x8] sm:$0xff]  ;;  %v95_v4 = vld [vmem:[%s2779_s1] sm:$0xff]  ;;  %v76_v10 = vld [vmem:[%s2780_s0 + $0x1f0] sm:$0xff] }
   0x3   :  { %1184 = vmatpush.msk.msra.mxu0 %vm348_vm0, %v99_v0  ;;  %1347 = vmatpush.msk.msra.mxu1 %vm348_vm0, %v99_v0  ;;  %v54_v5 = vld [vmem:[%s2780_s0 + $0x140] sm:$0xff]  ;;  %v75_v6 = vld [vmem:[%s2780_s0 + $0x1e8] sm:$0xff]  ;;  %v56_v13 = vld [vmem:[%s2780_s0 + $0x150] sm:$0xff] }
   0x4   :  { %1351 = vmatpush.msra.mxu2 %v98_v1  ;;  %1352 = vmatpush.msra.mxu3 %v98_v1  ;;  %v14_v7 = vld [vmem:[%s2780_s0] sm:$0xff]  ;;  %v55_v9 = vld [vmem:[%s2780_s0 + $0x148] sm:$0xff]  ;;  %v77_v14 = vld [vmem:[%s2780_s0 + $0x1f8] sm:$0xff] }
   0x5   :  { %364 = vmatpush.msra.mxu0 %v98_v1  ;;  %1350 = vmatpush.msra.mxu1 %v98_v1  ;;  %v34_v8 = vld [vmem:[%s2780_s0 + $0xa0] sm:$0xff]  ;;  %v15_v11 = vld [vmem:[%s2780_s0 + $0x8] sm:$0xff]  ;;  %v16_v15 = vld [vmem:[%s2780_s0 + $0x10] sm:$0xff] }
   0x6   :  { %1354 = vmatpush.msra.mxu2 %v97_v2  ;;  %1355 = vmatpush.msra.mxu3 %v97_v2  ;;  %v35_v12 = vld [vmem:[%s2780_s0 + $0xa8] sm:$0xff]  ;;  %v36_v16 = vld [vmem:[%s2780_s0 + $0xb0] sm:$0xff]  ;;  %v57_v17 = vld [vmem:[%s2780_s0 + $0x158] sm:$0xff] }
   0x7   :  { %365 = vmatpush.msra.mxu0 %v97_v2  ;;  %1353 = vmatpush.msra.mxu1 %v97_v2  ;;  %v78_v18 = vld [vmem:[%s2780_s0 + $0x200] sm:$0xff]  ;;  %v17_v19 = vld [vmem:[%s2780_s0 + $0x18] sm:$0xff]  ;;  %v79_v22 = vld [vmem:[%s2780_s0 + $0x208] sm:$0xff] }
   0x8   :  { %1357 = vmatpush.msra.mxu2 %v96_v3  ;;  %1358 = vmatpush.msra.mxu3 %v96_v3  ;;  %v37_v20 = vld [vmem:[%s2780_s0 + $0xb8] sm:$0xff]  ;;  %v58_v21 = vld [vmem:[%s2780_s0 + $0x160] sm:$0xff]  ;;  %v59_v25 = vld [vmem:[%s2780_s0 + $0x168] sm:$0xff] }
   0x9   :  { %366 = vmatpush.msra.mxu0 %v96_v3  ;;  %1356 = vmatpush.msra.mxu1 %v96_v3  ;;  %v18_v23 = vld [vmem:[%s2780_s0 + $0x20] sm:$0xff]  ;;  %v80_v26 = vld [vmem:[%s2780_s0 + $0x210] sm:$0xff]  ;;  %v19_v27 = vld [vmem:[%s2780_s0 + $0x28] sm:$0xff] }
   0xa   :  { %1360 = vmatpush.msra.mxu2 %v95_v4  ;;  %1361 = vmatpush.msra.mxu3 %v95_v4  ;;  %v38_v24 = vld [vmem:[%s2780_s0 + $0xc0] sm:$0xff]  ;;  %v39_v28 = vld [vmem:[%s2780_s0 + $0xc8] sm:$0xff]  ;;  %v60_v29 = vld [vmem:[%s2780_s0 + $0x170] sm:$0xff] }
   0xb   :  { %367 = vmatpush.msra.mxu0 %v95_v4  ;;  %1359 = vmatpush.msra.mxu1 %v95_v4  ;;  %v81_v30 = vld [vmem:[%s2780_s0 + $0x218] sm:$0xff]  ;;  %v20_v31 = vld [vmem:[%s2780_s0 + $0x30] sm:$0xff]  ;;  %v82_v34 = vld [vmem:[%s2780_s0 + $0x220] sm:$0xff] }
   0xc   :  { %1225 = vmatmul.msk.f32.vlgmr.msra.gmra.mxu2 %vm104_vm1, %v54_v5  ;;  %1246 = vmatmul.msk.f32.vlgmr.msra.gmra.mxu3 %vm104_vm1, %v75_v6  ;;  %v40_v32 = vld [vmem:[%s2780_s0 + $0xd0] sm:$0xff]  ;;  %v61_v33 = vld [vmem:[%s2780_s0 + $0x178] sm:$0xff]  ;;  %v62_v37 = vld [vmem:[%s2780_s0 + $0x180] sm:$0xff] }
   0xd   :  { %1185 = vmatmul.msk.f32.vlgmr.msra.gmra.mxu0 %vm104_vm1, %v14_v7  ;;  %1205 = vmatmul.msk.f32.vlgmr.msra.gmra.mxu1 %vm104_vm1, %v34_v8  ;;  %v21_v35 = vld [vmem:[%s2780_s0 + $0x38] sm:$0xff]  ;;  %v83_v38 = vld [vmem:[%s2780_s0 + $0x228] sm:$0xff]  ;;  %v22_v39 = vld [vmem:[%s2780_s0 + $0x40] sm:$0xff] }
   0xe   :  { %v41_v36 = vld [vmem:[%s2780_s0 + $0xd8] sm:$0xff]  ;;  %v42_v40 = vld [vmem:[%s2780_s0 + $0xe0] sm:$0xff]  ;;  %v63_v41 = vld [vmem:[%s2780_s0 + $0x188] sm:$0xff] }
   0xf   :  { %v84_v42 = vld [vmem:[%s2780_s0 + $0x230] sm:$0xff]  ;;  %v23_v43 = vld [vmem:[%s2780_s0 + $0x48] sm:$0xff]  ;;  %v85_v46 = vld [vmem:[%s2780_s0 + $0x238] sm:$0xff] }
  0x10   :  { %v43_v44 = vld [vmem:[%s2780_s0 + $0xe8] sm:$0xff]  ;;  %v64_v45 = vld [vmem:[%s2780_s0 + $0x190] sm:$0xff]  ;;  %v65_v49 = vld [vmem:[%s2780_s0 + $0x198] sm:$0xff] }
  0x11   :  { %v24_v47 = vld [vmem:[%s2780_s0 + $0x50] sm:$0xff]  ;;  %v86_v50 = vld [vmem:[%s2780_s0 + $0x240] sm:$0xff]  ;;  %v25_v51 = vld [vmem:[%s2780_s0 + $0x58] sm:$0xff] }
  0x12   :  { %v44_v48 = vld [vmem:[%s2780_s0 + $0xf0] sm:$0xff]  ;;  %v45_v52 = vld [vmem:[%s2780_s0 + $0xf8] sm:$0xff]  ;;  %v66_v53 = vld [vmem:[%s2780_s0 + $0x1a0] sm:$0xff] }
  0x13   :  { %v87_v54 = vld [vmem:[%s2780_s0 + $0x248] sm:$0xff]  ;;  %v26_v55 = vld [vmem:[%s2780_s0 + $0x60] sm:$0xff]  ;;  %v88_v58 = vld [vmem:[%s2780_s0 + $0x250] sm:$0xff] }
  0x14   :  { %1226 = vmatmul.msk.f32.gmra.mxu2 %vm104_vm1, %v55_v9  ;;  %1247 = vmatmul.msk.f32.gmra.mxu3 %vm104_vm1, %v76_v10  ;;  %v46_v56 = vld [vmem:[%s2780_s0 + $0x100] sm:$0xff]  ;;  %v67_v57 = vld [vmem:[%s2780_s0 + $0x1a8] sm:$0xff]  ;;  %v68_v61 = vld [vmem:[%s2780_s0 + $0x1b0] sm:$0xff] }
  0x15   :  { %1186 = vmatmul.msk.f32.gmra.mxu0 %vm104_vm1, %v15_v11  ;;  %1206 = vmatmul.msk.f32.gmra.mxu1 %vm104_vm1, %v35_v12  ;;  %v27_v59 = vld [vmem:[%s2780_s0 + $0x68] sm:$0xff]  ;;  %v89_v62 = vld [vmem:[%s2780_s0 + $0x258] sm:$0xff]  ;;  %v28_v63 = vld [vmem:[%s2780_s0 + $0x70] sm:$0xff] }
  0x16   :  { %v47_v60 = vld [vmem:[%s2780_s0 + $0x108] sm:$0xff]  ;;  %v48_v0 = vld [vmem:[%s2780_s0 + $0x110] sm:$0xff]  ;;  %v69_v1 = vld [vmem:[%s2780_s0 + $0x1b8] sm:$0xff] }
  0x17   :  { %v90_v2 = vld [vmem:[%s2780_s0 + $0x260] sm:$0xff]  ;;  %v29_v3 = vld [vmem:[%s2780_s0 + $0x78] sm:$0xff]  ;;  %v91_v7 = vld [vmem:[%s2780_s0 + $0x268] sm:$0xff] }
  0x18   :  { %v49_v4 = vld [vmem:[%s2780_s0 + $0x118] sm:$0xff]  ;;  %v1820_v5 = vld [vmem:[%s2781_s2] ss:$0 sm:$0xff] }
  0x19   :  { %v70_v6 = vld [vmem:[%s2780_s0 + $0x1c0] sm:$0xff] }
  0x1a   :  { %v30_v10 = vld [vmem:[%s2780_s0 + $0x80] sm:$0xff] }
  0x1b   :  { %v50_v11 = vld [vmem:[%s2780_s0 + $0x120] sm:$0xff] }
  0x1c   :  { %1227 = vmatmul.msk.f32.gmra.mxu2 %vm104_vm1, %v56_v13  ;;  %1248 = vmatmul.msk.f32.gmra.mxu3 %vm104_vm1, %v77_v14 }
  0x1d   :  { %1187 = vmatmul.msk.f32.gmra.mxu0 %vm104_vm1, %v16_v15  ;;  %1207 = vmatmul.msk.f32.gmra.mxu1 %vm104_vm1, %v36_v16 }
  0x24   :  { %1228 = vmatmul.msk.f32.gmra.mxu2 %vm104_vm1, %v57_v17  ;;  %1249 = vmatmul.msk.f32.gmra.mxu3 %vm104_vm1, %v78_v18 }
  0x25   :  { %1188 = vmatmul.msk.f32.gmra.mxu0 %vm104_vm1, %v17_v19  ;;  %1208 = vmatmul.msk.f32.gmra.mxu1 %vm104_vm1, %v37_v20 }
  0x2c   :  { %1229 = vmatmul.msk.f32.gmra.mxu2 %vm104_vm1, %v58_v21  ;;  %1250 = vmatmul.msk.f32.gmra.mxu3 %vm104_vm1, %v79_v22  ;;  %v71_v22 = vld [vmem:[%s2780_s0 + $0x1c8] sm:$0xff] }
  0x2d   :  { %1189 = vmatmul.msk.f32.gmra.mxu0 %vm104_vm1, %v18_v23  ;;  %1209 = vmatmul.msk.f32.gmra.mxu1 %vm104_vm1, %v38_v24  ;;  %v92_v23 = vld [vmem:[%s2780_s0 + $0x270] sm:$0xff] }
  0x34   :  { %1230 = vmatmul.msk.f32.gmra.mxu2 %vm104_vm1, %v59_v25  ;;  %1251 = vmatmul.msk.f32.gmra.mxu3 %vm104_vm1, %v80_v26 }
  0x35   :  { %1190 = vmatmul.msk.f32.gmra.mxu0 %vm104_vm1, %v19_v27  ;;  %1210 = vmatmul.msk.f32.gmra.mxu1 %vm104_vm1, %v39_v28  ;;  %v31_v27 = vld [vmem:[%s2780_s0 + $0x88] sm:$0xff] }
  0x36   :  { %v51_v28 = vld [vmem:[%s2780_s0 + $0x128] sm:$0xff] }
  0x3c   :  { %1231 = vmatmul.msk.f32.gmra.mxu2 %vm104_vm1, %v60_v29  ;;  %1252 = vmatmul.msk.f32.gmra.mxu3 %vm104_vm1, %v81_v30 }
  0x3d   :  { %1191 = vmatmul.msk.f32.gmra.mxu0 %vm104_vm1, %v20_v31  ;;  %1211 = vmatmul.msk.f32.gmra.mxu1 %vm104_vm1, %v40_v32 }
  0x44   :  { %1232 = vmatmul.msk.f32.gmra.mxu2 %vm104_vm1, %v61_v33  ;;  %1253 = vmatmul.msk.f32.gmra.mxu3 %vm104_vm1, %v82_v34 }
  0x45   :  { %1192 = vmatmul.msk.f32.gmra.mxu0 %vm104_vm1, %v21_v35  ;;  %1212 = vmatmul.msk.f32.gmra.mxu1 %vm104_vm1, %v41_v36 }
  0x4c   :  { %1233 = vmatmul.msk.f32.gmra.mxu2 %vm104_vm1, %v62_v37  ;;  %1254 = vmatmul.msk.f32.gmra.mxu3 %vm104_vm1, %v83_v38 }
  0x4d   :  { %1193 = vmatmul.msk.f32.gmra.mxu0 %vm104_vm1, %v22_v39  ;;  %1213 = vmatmul.msk.f32.gmra.mxu1 %vm104_vm1, %v42_v40 }
  0x54   :  { %1234 = vmatmul.msk.f32.gmra.mxu2 %vm104_vm1, %v63_v41  ;;  %1255 = vmatmul.msk.f32.gmra.mxu3 %vm104_vm1, %v84_v42 }
  0x55   :  { %1194 = vmatmul.msk.f32.gmra.mxu0 %vm104_vm1, %v23_v43  ;;  %1214 = vmatmul.msk.f32.gmra.mxu1 %vm104_vm1, %v43_v44 }
  0x5c   :  { %1235 = vmatmul.msk.f32.gmra.mxu2 %vm104_vm1, %v64_v45  ;;  %1256 = vmatmul.msk.f32.gmra.mxu3 %vm104_vm1, %v85_v46  ;;  %v72_v46 = vld [vmem:[%s2780_s0 + $0x1d0] sm:$0xff] }
  0x5d   :  { %1195 = vmatmul.msk.f32.gmra.mxu0 %vm104_vm1, %v24_v47  ;;  %1215 = vmatmul.msk.f32.gmra.mxu1 %vm104_vm1, %v44_v48  ;;  %v93_v47 = vld [vmem:[%s2780_s0 + $0x278] sm:$0xff] }
  0x64   :  { %1236 = vmatmul.msk.f32.gmra.mxu2 %vm104_vm1, %v65_v49  ;;  %1257 = vmatmul.msk.f32.gmra.mxu3 %vm104_vm1, %v86_v50 }
  0x65   :  { %1196 = vmatmul.msk.f32.gmra.mxu0 %vm104_vm1, %v25_v51  ;;  %1216 = vmatmul.msk.f32.gmra.mxu1 %vm104_vm1, %v45_v52  ;;  %v32_v52 = vld [vmem:[%s2780_s0 + $0x90] sm:$0xff] }
  0x6c   :  { %1237 = vmatmul.msk.f32.gmra.mxu2 %vm104_vm1, %v66_v53  ;;  %1258 = vmatmul.msk.f32.gmra.mxu3 %vm104_vm1, %v87_v54  ;;  %v52_v53 = vld [vmem:[%s2780_s0 + $0x130] sm:$0xff] }
  0x6d   :  { %1197 = vmatmul.msk.f32.gmra.mxu0 %vm104_vm1, %v26_v55  ;;  %1217 = vmatmul.msk.f32.gmra.mxu1 %vm104_vm1, %v46_v56 }
  0x74   :  { %1238 = vmatmul.msk.f32.gmra.mxu2 %vm104_vm1, %v67_v57  ;;  %1259 = vmatmul.msk.f32.gmra.mxu3 %vm104_vm1, %v88_v58 }
  0x75   :  { %1198 = vmatmul.msk.f32.gmra.mxu0 %vm104_vm1, %v27_v59  ;;  %1218 = vmatmul.msk.f32.gmra.mxu1 %vm104_vm1, %v47_v60 }
  0x7c   :  { %1239 = vmatmul.msk.f32.gmra.mxu2 %vm104_vm1, %v68_v61  ;;  %1260 = vmatmul.msk.f32.gmra.mxu3 %vm104_vm1, %v89_v62 }
  0x7d   :  { %1199 = vmatmul.msk.f32.gmra.mxu0 %vm104_vm1, %v28_v63  ;;  %1219 = vmatmul.msk.f32.gmra.mxu1 %vm104_vm1, %v48_v0 }
  0x84   :  { %1240 = vmatmul.msk.f32.gmra.mxu2 %vm104_vm1, %v69_v1  ;;  %1261 = vmatmul.msk.f32.gmra.mxu3 %vm104_vm1, %v90_v2 }
  0x85   :  { %1200 = vmatmul.msk.f32.gmra.mxu0 %vm104_vm1, %v29_v3  ;;  %1220 = vmatmul.msk.f32.gmra.mxu1 %vm104_vm1, %v49_v4 }
  0x8a   :  { %v369_v8 = vpop.f32.mrf.mxu0  ;;  %v429_v9 = vpop.f32.mrf.mxu1 }
  0x8b   :  { %v370_v12 = vadd.f32 %v1820_v5, %v369_v8  ;;  %v430_v13 = vadd.f32 %v1820_v5, %v429_v9 }
  0x8c   :  { %1241 = vmatmul.msk.f32.gmra.mxu2 %vm104_vm1, %v70_v6  ;;  %1262 = vmatmul.msk.f32.gmra.mxu3 %vm104_vm1, %v91_v7 }
  0x8d   :  { %v693_v14 = vmin.f32 %v370_v12, 0.0  ;;  %v713_v15 = vmin.f32 %v430_v13, 0.0  ;;  %1201 = vmatmul.msk.f32.gmra.mxu0 %vm104_vm1, %v30_v10  ;;  %1221 = vmatmul.msk.f32.gmra.mxu1 %vm104_vm1, %v50_v11  ;;  %vm612_vm3 = vcmp.gt.f32.partialorder %v370_v12, 0.0  ;;  %vm632_vm4 = vcmp.gt.f32.partialorder %v430_v13, 0.0 }
  0x8f   :  { %v774_v16 = vmul.f32 1.442695, %v693_v14  ;;  %v814_v17 = vmul.f32 1.442695, %v713_v15  ;;  %v489_v18 = vpop.f32.mrf.mxu2  ;;  %v552_v19 = vpop.f32.mrf.mxu3  ;;  %v73_v15 = vld [vmem:[%s2780_s0 + $0x1d8] sm:$0xff] }
  0x90   :  { %v1841_v20 = vadd.f32 %v1820_v5, %v489_v18  ;;  %v1844_v21 = vadd.f32 %v1820_v5, %v552_v19 }
  0x91   :  { %1363 = vpow2.f32 %v774_v16  ;;  %v94_v16 = vld [vmem:[%s2780_s0 + $0x280] sm:$0xff] }
  0x92   :  { %1365 = vpow2.f32 %v814_v17  ;;  %v733_v24 = vmin.f32 %v1841_v20, 0.0  ;;  %v372_v25 = vpop.f32.mrf.mxu0  ;;  %v432_v26 = vpop.f32.mrf.mxu1  ;;  %v754_v29 = vmin.f32 %v1844_v21, 0.0  ;;  %vm652_vm5 = vcmp.gt.f32.partialorder %v1841_v20, 0.0 }
  0x93   :  { %v1861_v30 = vadd.f32 %v1820_v5, %v372_v25  ;;  %v1864_v31 = vadd.f32 %v1820_v5, %v432_v26  ;;  %vm673_vm6 = vcmp.gt.f32.partialorder %v1844_v21, 0.0 }
  0x94   :  { %v854_v32 = vmul.f32 1.442695, %v733_v24  ;;  %1242 = vmatmul.msk.f32.gmra.mxu2 %vm104_vm1, %v71_v22  ;;  %1263 = vmatmul.msk.f32.gmra.mxu3 %vm104_vm1, %v92_v23  ;;  %v896_v33 = vmul.f32 1.442695, %v754_v29  ;;  %v53_v22 = vld [vmem:[%s2780_s0 + $0x138] sm:$0xff] }
  0x95   :  { %v694_v34 = vmin.f32 %v1861_v30, 0.0  ;;  %1202 = vmatmul.msk.f32.gmra.mxu0 %vm104_vm1, %v31_v27  ;;  %1222 = vmatmul.msk.f32.gmra.mxu1 %vm104_vm1, %v51_v28  ;;  %v714_v35 = vmin.f32 %v1864_v31, 0.0  ;;  %vm613_vm7 = vcmp.gt.f32.partialorder %v1861_v30, 0.0  ;;  %vm633_vm8 = vcmp.gt.f32.partialorder %v1864_v31, 0.0 }
  0x96   :  { %1367 = vpow2.f32 %v854_v32 }
  0x97   :  { %v1364_v36 = vpop.eup %1363  ;;  %1369 = vpow2.f32 %v896_v33  ;;  %v776_v37 = vmul.f32 1.442695, %v694_v34  ;;  %v492_v38 = vpop.f32.mrf.mxu2  ;;  %v816_v42 = vmul.f32 1.442695, %v714_v35 }
  0x98   :  { %v555_v39 = vpop.f32.mrf.mxu3  ;;  %v1366_v40 = vpop.eup %1365  ;;  %v1266_v41 = vadd.f32 -1.0, %v1364_v36  ;;  %v1873_v43 = vadd.f32 %v1820_v5, %v492_v38 }
  0x99   :  { %v1876_v44 = vadd.f32 %v1820_v5, %v555_v39  ;;  %v1286_v45 = vadd.f32 -1.0, %v1366_v40  ;;  %1371 = vpow2.f32 %v776_v37 }
  0x9a   :  { %v1017_v48 = vsel %vm612_vm3, %v370_v12, %v1266_v41  ;;  %1373 = vpow2.f32 %v816_v42  ;;  %v734_v49 = vmin.f32 %v1873_v43, 0.0  ;;  %v375_v50 = vpop.f32.mrf.mxu0  ;;  %v435_v51 = vpop.f32.mrf.mxu1  ;;  %vm653_vm9 = vcmp.gt.f32.partialorder %v1873_v43, 0.0 }
  0x9b   :  { %1099 = vst.msk [vmem:[%s2782_s3] sm:$0xff] %vm1098_vm2, %v1017_v48  ;;  %v1037_v54 = vsel %vm632_vm4, %v430_v13, %v1286_v45  ;;  %v755_v55 = vmin.f32 %v1876_v44, 0.0  ;;  %v1899_v56 = vadd.f32 %v1820_v5, %v375_v50  ;;  %v1907_v59 = vadd.f32 %v1820_v5, %v435_v51  ;;  %v74_v48 = vld [vmem:[%s2780_s0 + $0x1e0] sm:$0xff] }
  0x9c   :  { %v1368_v57 = vpop.eup %1367  ;;  %1119 = vst.msk [vmem:[%s2782_s3 + $0xa0] sm:$0xff] %vm1098_vm2, %v1037_v54  ;;  %v856_v58 = vmul.f32 1.442695, %v734_v49  ;;  %1243 = vmatmul.msk.f32.gmra.mxu2 %vm104_vm1, %v72_v46  ;;  %1264 = vmatmul.msk.f32.gmra.mxu3 %vm104_vm1, %v93_v47  ;;  %vm674_vm10 = vcmp.gt.f32.partialorder %v1876_v44, 0.0 }
  0x9d   :  { %v1370_v60 = vpop.eup %1369  ;;  %v1306_v61 = vadd.f32 -1.0, %v1368_v57  ;;  %v898_v62 = vmul.f32 1.442695, %v755_v55  ;;  %v695_v63 = vmin.f32 %v1899_v56, 0.0  ;;  %1203 = vmatmul.msk.f32.gmra.mxu0 %vm104_vm1, %v32_v52  ;;  %1223 = vmatmul.msk.f32.gmra.mxu1 %vm104_vm1, %v52_v53  ;;  %v715_v1 = vmin.f32 %v1907_v59, 0.0 }
  0x9e   :  { %v1327_v0 = vadd.f32 -1.0, %v1370_v60  ;;  %1375 = vpow2.f32 %v856_v58  ;;  %vm614_vm11 = vcmp.gt.f32.partialorder %v1899_v56, 0.0  ;;  %vm634_vm12 = vcmp.gt.f32.partialorder %v1907_v59, 0.0 }
  0x9f   :  { %v1372_v2 = vpop.eup %1371  ;;  %v1057_v3 = vsel %vm652_vm5, %v1841_v20, %v1306_v61  ;;  %1377 = vpow2.f32 %v898_v62  ;;  %v778_v4 = vmul.f32 1.442695, %v695_v63  ;;  %v495_v6 = vpop.f32.mrf.mxu2  ;;  %v818_v11 = vmul.f32 1.442695, %v715_v1 }
  0xa0   :  { %v558_v7 = vpop.f32.mrf.mxu3  ;;  %v1374_v8 = vpop.eup %1373  ;;  %1139 = vst.msk [vmem:[%s2782_s3 + $0x140] sm:$0xff] %vm1098_vm2, %v1057_v3  ;;  %v1078_v9 = vsel %vm673_vm6, %v1844_v21, %v1327_v0  ;;  %v1267_v10 = vadd.f32 -1.0, %v1372_v2  ;;  %v1929_v12 = vadd.f32 %v1820_v5, %v495_v6  ;;  %v33_v21 = vld [vmem:[%s2780_s0 + $0x98] sm:$0xff] }
  0xa1   :  { %1160 = vst.msk [vmem:[%s2782_s3 + $0x1e8] sm:$0xff] %vm1098_vm2, %v1078_v9  ;;  %v1287_v13 = vadd.f32 -1.0, %v1374_v8  ;;  %1379 = vpow2.f32 %v778_v4  ;;  %v1936_v14 = vadd.f32 %v1820_v5, %v558_v7 }
  0xa2   :  { %v1018_v17 = vsel %vm613_vm7, %v1861_v30, %v1267_v10  ;;  %1381 = vpow2.f32 %v818_v11  ;;  %v735_v18 = vmin.f32 %v1929_v12, 0.0  ;;  %v378_v19 = vpop.f32.mrf.mxu0  ;;  %v438_v20 = vpop.f32.mrf.mxu1  ;;  %vm654_vm13 = vcmp.gt.f32.partialorder %v1929_v12, 0.0 }
  0xa3   :  { %1100 = vst.msk [vmem:[%s2782_s3 + $0x8] sm:$0xff] %vm1098_vm2, %v1018_v17  ;;  %v1038_v23 = vsel %vm633_vm8, %v1864_v31, %v1287_v13  ;;  %v756_v24 = vmin.f32 %v1936_v14, 0.0  ;;  %v1963_v25 = vadd.f32 %v1820_v5, %v378_v19  ;;  %v1971_v28 = vadd.f32 %v1820_v5, %v438_v20 }
  0xa4   :  { %v1376_v26 = vpop.eup %1375  ;;  %1120 = vst.msk [vmem:[%s2782_s3 + $0xa8] sm:$0xff] %vm1098_vm2, %v1038_v23  ;;  %v858_v27 = vmul.f32 1.442695, %v735_v18  ;;  %1244 = vmatmul.msk.f32.gmra.mxu2 %vm104_vm1, %v73_v15  ;;  %1265 = vmatmul.msk.f32.gmra.mxu3 %vm104_vm1, %v94_v16  ;;  %vm675_vm14 = vcmp.gt.f32.partialorder %v1936_v14, 0.0 }
  0xa5   :  { %v1378_v29 = vpop.eup %1377  ;;  %v1307_v30 = vadd.f32 -1.0, %v1376_v26  ;;  %v900_v31 = vmul.f32 1.442695, %v756_v24  ;;  %v696_v32 = vmin.f32 %v1963_v25, 0.0  ;;  %1204 = vmatmul.msk.f32.gmra.mxu0 %vm104_vm1, %v33_v21  ;;  %1224 = vmatmul.msk.f32.gmra.mxu1 %vm104_vm1, %v53_v22  ;;  %v716_v34 = vmin.f32 %v1971_v28, 0.0 }
  0xa6   :  { %v1328_v33 = vadd.f32 -1.0, %v1378_v29  ;;  %1383 = vpow2.f32 %v858_v27  ;;  %vm615_vm15 = vcmp.gt.f32.partialorder %v1963_v25, 0.0  ;;  %vm635_vm0 = vcmp.gt.f32.partialorder %v1971_v28, 0.0 }
  0xa7   :  { %v1380_v35 = vpop.eup %1379  ;;  %v1058_v36 = vsel %vm653_vm9, %v1873_v43, %v1307_v30  ;;  %1385 = vpow2.f32 %v900_v31  ;;  %v780_v37 = vmul.f32 1.442695, %v696_v32  ;;  %v498_v38 = vpop.f32.mrf.mxu2  ;;  %v820_v45 = vmul.f32 1.442695, %v716_v34 }
  0xa8   :  { %v561_v39 = vpop.f32.mrf.mxu3  ;;  %v1382_v40 = vpop.eup %1381  ;;  %1140 = vst.msk [vmem:[%s2782_s3 + $0x148] sm:$0xff] %vm1098_vm2, %v1058_v36  ;;  %v1079_v41 = vsel %vm674_vm10, %v1876_v44, %v1328_v33  ;;  %v1268_v42 = vadd.f32 -1.0, %v1380_v35  ;;  %v1993_v43 = vadd.f32 %v1820_v5, %v498_v38 }
  0xa9   :  { %1161 = vst.msk [vmem:[%s2782_s3 + $0x1f0] sm:$0xff] %vm1098_vm2, %v1079_v41  ;;  %v1288_v46 = vadd.f32 -1.0, %v1382_v40  ;;  %1387 = vpow2.f32 %v780_v37  ;;  %v2000_v47 = vadd.f32 %v1820_v5, %v561_v39 }
  0xaa   :  { %v1019_v44 = vsel %vm614_vm11, %v1899_v56, %v1268_v42  ;;  %1389 = vpow2.f32 %v820_v45  ;;  %v736_v49 = vmin.f32 %v1993_v43, 0.0  ;;  %v381_v50 = vpop.f32.mrf.mxu0  ;;  %v441_v51 = vpop.f32.mrf.mxu1 }
  0xab   :  { %1101 = vst.msk [vmem:[%s2782_s3 + $0x10] sm:$0xff] %vm1098_vm2, %v1019_v44  ;;  %v1039_v52 = vsel %vm634_vm12, %v1907_v59, %v1288_v46  ;;  %v757_v53 = vmin.f32 %v2000_v47, 0.0  ;;  %v2018_v54 = vadd.f32 %v1820_v5, %v381_v50  ;;  %v2026_v57 = vadd.f32 %v1820_v5, %v441_v51 }
  0xac   :  { %v1384_v55 = vpop.eup %1383  ;;  %1121 = vst.msk [vmem:[%s2782_s3 + $0xb0] sm:$0xff] %vm1098_vm2, %v1039_v52  ;;  %v860_v56 = vmul.f32 1.442695, %v736_v49  ;;  %1245 = vmatmul.msk.f32.gmra.mxu2 %vm104_vm1, %v74_v48  ;;  %vm655_vm1 = vcmp.gt.f32.partialorder %v1993_v43, 0.0  ;;  %vm676_vm3 = vcmp.gt.f32.partialorder %v2000_v47, 0.0 }
  0xad   :  { %v1386_v58 = vpop.eup %1385  ;;  %v1308_v59 = vadd.f32 -1.0, %v1384_v55  ;;  %v902_v60 = vmul.f32 1.442695, %v757_v53  ;;  %v697_v61 = vmin.f32 %v2018_v54, 0.0  ;;  %v717_v63 = vmin.f32 %v2026_v57, 0.0 }
  0xae   :  { %v1329_v62 = vadd.f32 -1.0, %v1386_v58  ;;  %1391 = vpow2.f32 %v860_v56  ;;  %vm616_vm4 = vcmp.gt.f32.partialorder %v2018_v54, 0.0  ;;  %vm636_vm5 = vcmp.gt.f32.partialorder %v2026_v57, 0.0 }
  0xaf   :  { %v1388_v0 = vpop.eup %1387  ;;  %v1059_v1 = vsel %vm654_vm13, %v1929_v12, %v1308_v59  ;;  %1393 = vpow2.f32 %v902_v60  ;;  %v782_v2 = vmul.f32 1.442695, %v697_v61  ;;  %v501_v3 = vpop.f32.mrf.mxu2  ;;  %v822_v9 = vmul.f32 1.442695, %v717_v63 }
  0xb0   :  { %v564_v4 = vpop.f32.mrf.mxu3  ;;  %v1390_v6 = vpop.eup %1389  ;;  %1141 = vst.msk [vmem:[%s2782_s3 + $0x150] sm:$0xff] %vm1098_vm2, %v1059_v1  ;;  %v1080_v7 = vsel %vm675_vm14, %v1936_v14, %v1329_v62  ;;  %v1269_v8 = vadd.f32 -1.0, %v1388_v0  ;;  %v2043_v10 = vadd.f32 %v1820_v5, %v501_v3 }
  0xb1   :  { %1162 = vst.msk [vmem:[%s2782_s3 + $0x1f8] sm:$0xff] %vm1098_vm2, %v1080_v7  ;;  %v1289_v11 = vadd.f32 -1.0, %v1390_v6  ;;  %1395 = vpow2.f32 %v782_v2  ;;  %v2050_v12 = vadd.f32 %v1820_v5, %v564_v4 }
  0xb2   :  { %v1020_v13 = vsel %vm615_vm15, %v1963_v25, %v1269_v8  ;;  %1397 = vpow2.f32 %v822_v9  ;;  %v737_v14 = vmin.f32 %v2043_v10, 0.0  ;;  %v384_v15 = vpop.f32.mrf.mxu0  ;;  %v444_v16 = vpop.f32.mrf.mxu1  ;;  %vm656_vm6 = vcmp.gt.f32.partialorder %v2043_v10, 0.0 }
  0xb3   :  { %1102 = vst.msk [vmem:[%s2782_s3 + $0x18] sm:$0xff] %vm1098_vm2, %v1020_v13  ;;  %v1040_v17 = vsel %vm635_vm0, %v1971_v28, %v1289_v11  ;;  %v758_v18 = vmin.f32 %v2050_v12, 0.0  ;;  %v2065_v19 = vadd.f32 %v1820_v5, %v384_v15  ;;  %v2073_v22 = vadd.f32 %v1820_v5, %v444_v16 }
  0xb4   :  { %v1392_v20 = vpop.eup %1391  ;;  %1122 = vst.msk [vmem:[%s2782_s3 + $0xb8] sm:$0xff] %vm1098_vm2, %v1040_v17  ;;  %v862_v21 = vmul.f32 1.442695, %v737_v14  ;;  %vm677_vm7 = vcmp.gt.f32.partialorder %v2050_v12, 0.0 }
  0xb5   :  { %v1394_v23 = vpop.eup %1393  ;;  %v1309_v24 = vadd.f32 -1.0, %v1392_v20  ;;  %v904_v25 = vmul.f32 1.442695, %v758_v18  ;;  %v698_v26 = vmin.f32 %v2065_v19, 0.0  ;;  %v718_v28 = vmin.f32 %v2073_v22, 0.0 }
  0xb6   :  { %v1330_v27 = vadd.f32 -1.0, %v1394_v23  ;;  %1399 = vpow2.f32 %v862_v21  ;;  %vm617_vm8 = vcmp.gt.f32.partialorder %v2065_v19, 0.0  ;;  %vm637_vm9 = vcmp.gt.f32.partialorder %v2073_v22, 0.0 }
  0xb7   :  { %v1396_v29 = vpop.eup %1395  ;;  %v1060_v30 = vsel %vm655_vm1, %v1993_v43, %v1309_v24  ;;  %1401 = vpow2.f32 %v904_v25  ;;  %v784_v31 = vmul.f32 1.442695, %v698_v26  ;;  %v504_v32 = vpop.f32.mrf.mxu2  ;;  %v824_v37 = vmul.f32 1.442695, %v718_v28 }
  0xb8   :  { %v567_v33 = vpop.f32.mrf.mxu3  ;;  %v1398_v34 = vpop.eup %1397  ;;  %1142 = vst.msk [vmem:[%s2782_s3 + $0x158] sm:$0xff] %vm1098_vm2, %v1060_v30  ;;  %v1081_v35 = vsel %vm676_vm3, %v2000_v47, %v1330_v27  ;;  %v1270_v36 = vadd.f32 -1.0, %v1396_v29  ;;  %v2089_v38 = vadd.f32 %v1820_v5, %v504_v32 }
  0xb9   :  { %1163 = vst.msk [vmem:[%s2782_s3 + $0x200] sm:$0xff] %vm1098_vm2, %v1081_v35  ;;  %v1290_v39 = vadd.f32 -1.0, %v1398_v34  ;;  %1403 = vpow2.f32 %v784_v31  ;;  %v2096_v40 = vadd.f32 %v1820_v5, %v567_v33 }
  0xba   :  { %v1021_v41 = vsel %vm616_vm4, %v2018_v54, %v1270_v36  ;;  %1405 = vpow2.f32 %v824_v37  ;;  %v738_v42 = vmin.f32 %v2089_v38, 0.0  ;;  %v387_v45 = vpop.f32.mrf.mxu0  ;;  %v447_v43 = vpop.f32.mrf.mxu1  ;;  %vm657_vm10 = vcmp.gt.f32.partialorder %v2089_v38, 0.0 }
  0xbb   :  { %1103 = vst.msk [vmem:[%s2782_s3 + $0x20] sm:$0xff] %vm1098_vm2, %v1021_v41  ;;  %v1041_v46 = vsel %vm636_vm5, %v2026_v57, %v1290_v39  ;;  %v759_v47 = vmin.f32 %v2096_v40, 0.0  ;;  %v2111_v48 = vadd.f32 %v1820_v5, %v387_v45  ;;  %v2119_v50 = vadd.f32 %v1820_v5, %v447_v43 }
  0xbc   :  { %v1400_v44 = vpop.eup %1399  ;;  %1123 = vst.msk [vmem:[%s2782_s3 + $0xc0] sm:$0xff] %vm1098_vm2, %v1041_v46  ;;  %v864_v49 = vmul.f32 1.442695, %v738_v42  ;;  %vm678_vm11 = vcmp.gt.f32.partialorder %v2096_v40, 0.0 }
  0xbd   :  { %v1402_v51 = vpop.eup %1401  ;;  %v1310_v52 = vadd.f32 -1.0, %v1400_v44  ;;  %v906_v53 = vmul.f32 1.442695, %v759_v47  ;;  %v699_v54 = vmin.f32 %v2111_v48, 0.0  ;;  %v719_v56 = vmin.f32 %v2119_v50, 0.0 }
  0xbe   :  { %v1331_v55 = vadd.f32 -1.0, %v1402_v51  ;;  %1407 = vpow2.f32 %v864_v49  ;;  %vm618_vm12 = vcmp.gt.f32.partialorder %v2111_v48, 0.0  ;;  %vm638_vm13 = vcmp.gt.f32.partialorder %v2119_v50, 0.0 }
  0xbf   :  { %v1404_v57 = vpop.eup %1403  ;;  %v1061_v58 = vsel %vm656_vm6, %v2043_v10, %v1310_v52  ;;  %1409 = vpow2.f32 %v906_v53  ;;  %v786_v59 = vmul.f32 1.442695, %v699_v54  ;;  %v507_v60 = vpop.f32.mrf.mxu2  ;;  %v826_v1 = vmul.f32 1.442695, %v719_v56 }
  0xc0   :  { %v570_v61 = vpop.f32.mrf.mxu3  ;;  %v1406_v62 = vpop.eup %1405  ;;  %1143 = vst.msk [vmem:[%s2782_s3 + $0x160] sm:$0xff] %vm1098_vm2, %v1061_v58  ;;  %v1082_v63 = vsel %vm677_vm7, %v2050_v12, %v1331_v55  ;;  %v1271_v0 = vadd.f32 -1.0, %v1404_v57  ;;  %v2135_v2 = vadd.f32 %v1820_v5, %v507_v60 }
  0xc1   :  { %1164 = vst.msk [vmem:[%s2782_s3 + $0x208] sm:$0xff] %vm1098_vm2, %v1082_v63  ;;  %v1291_v3 = vadd.f32 -1.0, %v1406_v62  ;;  %1411 = vpow2.f32 %v786_v59  ;;  %v2142_v4 = vadd.f32 %v1820_v5, %v570_v61 }
  0xc2   :  { %v1022_v6 = vsel %vm617_vm8, %v2065_v19, %v1271_v0  ;;  %1413 = vpow2.f32 %v826_v1  ;;  %v739_v7 = vmin.f32 %v2135_v2, 0.0  ;;  %v390_v8 = vpop.f32.mrf.mxu0  ;;  %v450_v9 = vpop.f32.mrf.mxu1  ;;  %vm658_vm14 = vcmp.gt.f32.partialorder %v2135_v2, 0.0 }
  0xc3   :  { %1104 = vst.msk [vmem:[%s2782_s3 + $0x28] sm:$0xff] %vm1098_vm2, %v1022_v6  ;;  %v1042_v10 = vsel %vm637_vm9, %v2073_v22, %v1291_v3  ;;  %v760_v11 = vmin.f32 %v2142_v4, 0.0  ;;  %v2157_v12 = vadd.f32 %v1820_v5, %v390_v8  ;;  %v2165_v15 = vadd.f32 %v1820_v5, %v450_v9 }
  0xc4   :  { %v1408_v13 = vpop.eup %1407  ;;  %1124 = vst.msk [vmem:[%s2782_s3 + $0xc8] sm:$0xff] %vm1098_vm2, %v1042_v10  ;;  %v866_v14 = vmul.f32 1.442695, %v739_v7  ;;  %vm679_vm15 = vcmp.gt.f32.partialorder %v2142_v4, 0.0 }
  0xc5   :  { %v1410_v16 = vpop.eup %1409  ;;  %v1311_v17 = vadd.f32 -1.0, %v1408_v13  ;;  %v908_v18 = vmul.f32 1.442695, %v760_v11  ;;  %v700_v19 = vmin.f32 %v2157_v12, 0.0  ;;  %v720_v21 = vmin.f32 %v2165_v15, 0.0 }
  0xc6   :  { %v1332_v20 = vadd.f32 -1.0, %v1410_v16  ;;  %1415 = vpow2.f32 %v866_v14  ;;  %vm619_vm0 = vcmp.gt.f32.partialorder %v2157_v12, 0.0  ;;  %vm639_vm1 = vcmp.gt.f32.partialorder %v2165_v15, 0.0 }
  0xc7   :  { %v1412_v22 = vpop.eup %1411  ;;  %v1062_v23 = vsel %vm657_vm10, %v2089_v38, %v1311_v17  ;;  %1417 = vpow2.f32 %v908_v18  ;;  %v788_v24 = vmul.f32 1.442695, %v700_v19  ;;  %v510_v25 = vpop.f32.mrf.mxu2  ;;  %v828_v30 = vmul.f32 1.442695, %v720_v21 }
  0xc8   :  { %v573_v26 = vpop.f32.mrf.mxu3  ;;  %v1414_v27 = vpop.eup %1413  ;;  %1144 = vst.msk [vmem:[%s2782_s3 + $0x168] sm:$0xff] %vm1098_vm2, %v1062_v23  ;;  %v1083_v28 = vsel %vm678_vm11, %v2096_v40, %v1332_v20  ;;  %v1272_v29 = vadd.f32 -1.0, %v1412_v22  ;;  %v2181_v31 = vadd.f32 %v1820_v5, %v510_v25 }
  0xc9   :  { %1165 = vst.msk [vmem:[%s2782_s3 + $0x210] sm:$0xff] %vm1098_vm2, %v1083_v28  ;;  %v1292_v32 = vadd.f32 -1.0, %v1414_v27  ;;  %1419 = vpow2.f32 %v788_v24  ;;  %v2188_v33 = vadd.f32 %v1820_v5, %v573_v26 }
  0xca   :  { %v1023_v34 = vsel %vm618_vm12, %v2111_v48, %v1272_v29  ;;  %1421 = vpow2.f32 %v828_v30  ;;  %v740_v35 = vmin.f32 %v2181_v31, 0.0  ;;  %v393_v36 = vpop.f32.mrf.mxu0  ;;  %v453_v37 = vpop.f32.mrf.mxu1  ;;  %vm659_vm3 = vcmp.gt.f32.partialorder %v2181_v31, 0.0 }
  0xcb   :  { %1105 = vst.msk [vmem:[%s2782_s3 + $0x30] sm:$0xff] %vm1098_vm2, %v1023_v34  ;;  %v1043_v38 = vsel %vm638_vm13, %v2119_v50, %v1292_v32  ;;  %v761_v39 = vmin.f32 %v2188_v33, 0.0  ;;  %v2203_v40 = vadd.f32 %v1820_v5, %v393_v36  ;;  %v2211_v45 = vadd.f32 %v1820_v5, %v453_v37 }
  0xcc   :  { %v1416_v41 = vpop.eup %1415  ;;  %1125 = vst.msk [vmem:[%s2782_s3 + $0xd0] sm:$0xff] %vm1098_vm2, %v1043_v38  ;;  %v868_v42 = vmul.f32 1.442695, %v740_v35  ;;  %vm680_vm4 = vcmp.gt.f32.partialorder %v2188_v33, 0.0 }
  0xcd   :  { %v1418_v43 = vpop.eup %1417  ;;  %v1312_v46 = vadd.f32 -1.0, %v1416_v41  ;;  %v910_v47 = vmul.f32 1.442695, %v761_v39  ;;  %v701_v48 = vmin.f32 %v2203_v40, 0.0  ;;  %v721_v49 = vmin.f32 %v2211_v45, 0.0 }
  0xce   :  { %v1333_v44 = vadd.f32 -1.0, %v1418_v43  ;;  %1423 = vpow2.f32 %v868_v42  ;;  %vm620_vm5 = vcmp.gt.f32.partialorder %v2203_v40, 0.0  ;;  %vm640_vm6 = vcmp.gt.f32.partialorder %v2211_v45, 0.0 }
  0xcf   :  { %v1420_v50 = vpop.eup %1419  ;;  %v1063_v51 = vsel %vm658_vm14, %v2135_v2, %v1312_v46  ;;  %1425 = vpow2.f32 %v910_v47  ;;  %v790_v52 = vmul.f32 1.442695, %v701_v48  ;;  %v513_v53 = vpop.f32.mrf.mxu2  ;;  %v830_v58 = vmul.f32 1.442695, %v721_v49 }
  0xd0   :  { %v576_v54 = vpop.f32.mrf.mxu3  ;;  %v1422_v55 = vpop.eup %1421  ;;  %1145 = vst.msk [vmem:[%s2782_s3 + $0x170] sm:$0xff] %vm1098_vm2, %v1063_v51  ;;  %v1084_v56 = vsel %vm679_vm15, %v2142_v4, %v1333_v44  ;;  %v1273_v57 = vadd.f32 -1.0, %v1420_v50  ;;  %v2227_v59 = vadd.f32 %v1820_v5, %v513_v53 }
  0xd1   :  { %1166 = vst.msk [vmem:[%s2782_s3 + $0x218] sm:$0xff] %vm1098_vm2, %v1084_v56  ;;  %v1293_v60 = vadd.f32 -1.0, %v1422_v55  ;;  %1427 = vpow2.f32 %v790_v52  ;;  %v2234_v61 = vadd.f32 %v1820_v5, %v576_v54 }
  0xd2   :  { %v1024_v62 = vsel %vm619_vm0, %v2157_v12, %v1273_v57  ;;  %1429 = vpow2.f32 %v830_v58  ;;  %v741_v63 = vmin.f32 %v2227_v59, 0.0  ;;  %v396_v0 = vpop.f32.mrf.mxu0  ;;  %v456_v1 = vpop.f32.mrf.mxu1  ;;  %vm660_vm7 = vcmp.gt.f32.partialorder %v2227_v59, 0.0 }
  0xd3   :  { %1106 = vst.msk [vmem:[%s2782_s3 + $0x38] sm:$0xff] %vm1098_vm2, %v1024_v62  ;;  %v1044_v2 = vsel %vm639_vm1, %v2165_v15, %v1293_v60  ;;  %v762_v3 = vmin.f32 %v2234_v61, 0.0  ;;  %v2249_v4 = vadd.f32 %v1820_v5, %v396_v0  ;;  %v2257_v8 = vadd.f32 %v1820_v5, %v456_v1 }
  0xd4   :  { %v1424_v6 = vpop.eup %1423  ;;  %1126 = vst.msk [vmem:[%s2782_s3 + $0xd8] sm:$0xff] %vm1098_vm2, %v1044_v2  ;;  %v870_v7 = vmul.f32 1.442695, %v741_v63  ;;  %vm681_vm8 = vcmp.gt.f32.partialorder %v2234_v61, 0.0 }
  0xd5   :  { %v1426_v9 = vpop.eup %1425  ;;  %v1313_v10 = vadd.f32 -1.0, %v1424_v6  ;;  %v912_v11 = vmul.f32 1.442695, %v762_v3  ;;  %v702_v12 = vmin.f32 %v2249_v4, 0.0  ;;  %v722_v14 = vmin.f32 %v2257_v8, 0.0 }
  0xd6   :  { %v1334_v13 = vadd.f32 -1.0, %v1426_v9  ;;  %1431 = vpow2.f32 %v870_v7  ;;  %vm621_vm9 = vcmp.gt.f32.partialorder %v2249_v4, 0.0  ;;  %vm641_vm10 = vcmp.gt.f32.partialorder %v2257_v8, 0.0 }
  0xd7   :  { %v1428_v15 = vpop.eup %1427  ;;  %v1064_v16 = vsel %vm659_vm3, %v2181_v31, %v1313_v10  ;;  %1433 = vpow2.f32 %v912_v11  ;;  %v792_v17 = vmul.f32 1.442695, %v702_v12  ;;  %v516_v18 = vpop.f32.mrf.mxu2  ;;  %v832_v23 = vmul.f32 1.442695, %v722_v14 }
  0xd8   :  { %v579_v19 = vpop.f32.mrf.mxu3  ;;  %v1430_v20 = vpop.eup %1429  ;;  %1146 = vst.msk [vmem:[%s2782_s3 + $0x178] sm:$0xff] %vm1098_vm2, %v1064_v16  ;;  %v1085_v21 = vsel %vm680_vm4, %v2188_v33, %v1334_v13  ;;  %v1274_v22 = vadd.f32 -1.0, %v1428_v15  ;;  %v2273_v24 = vadd.f32 %v1820_v5, %v516_v18 }
  0xd9   :  { %1167 = vst.msk [vmem:[%s2782_s3 + $0x220] sm:$0xff] %vm1098_vm2, %v1085_v21  ;;  %v1294_v25 = vadd.f32 -1.0, %v1430_v20  ;;  %1435 = vpow2.f32 %v792_v17  ;;  %v2280_v26 = vadd.f32 %v1820_v5, %v579_v19 }
  0xda   :  { %v1025_v27 = vsel %vm620_vm5, %v2203_v40, %v1274_v22  ;;  %1437 = vpow2.f32 %v832_v23  ;;  %v742_v28 = vmin.f32 %v2273_v24, 0.0  ;;  %v399_v29 = vpop.f32.mrf.mxu0  ;;  %v459_v30 = vpop.f32.mrf.mxu1  ;;  %vm661_vm11 = vcmp.gt.f32.partialorder %v2273_v24, 0.0 }
  0xdb   :  { %1107 = vst.msk [vmem:[%s2782_s3 + $0x40] sm:$0xff] %vm1098_vm2, %v1025_v27  ;;  %v1045_v31 = vsel %vm640_vm6, %v2211_v45, %v1294_v25  ;;  %v763_v32 = vmin.f32 %v2280_v26, 0.0  ;;  %v2295_v33 = vadd.f32 %v1820_v5, %v399_v29  ;;  %v2303_v36 = vadd.f32 %v1820_v5, %v459_v30 }
  0xdc   :  { %v1432_v34 = vpop.eup %1431  ;;  %1127 = vst.msk [vmem:[%s2782_s3 + $0xe0] sm:$0xff] %vm1098_vm2, %v1045_v31  ;;  %v872_v35 = vmul.f32 1.442695, %v742_v28  ;;  %vm682_vm12 = vcmp.gt.f32.partialorder %v2280_v26, 0.0 }
  0xdd   :  { %v1434_v37 = vpop.eup %1433  ;;  %v1314_v38 = vadd.f32 -1.0, %v1432_v34  ;;  %v914_v39 = vmul.f32 1.442695, %v763_v32  ;;  %v703_v40 = vmin.f32 %v2295_v33, 0.0  ;;  %v723_v42 = vmin.f32 %v2303_v36, 0.0 }
  0xde   :  { %v1335_v41 = vadd.f32 -1.0, %v1434_v37  ;;  %1439 = vpow2.f32 %v872_v35  ;;  %vm622_vm13 = vcmp.gt.f32.partialorder %v2295_v33, 0.0  ;;  %vm642_vm14 = vcmp.gt.f32.partialorder %v2303_v36, 0.0 }
  0xdf   :  { %v1436_v45 = vpop.eup %1435  ;;  %v1065_v43 = vsel %vm660_vm7, %v2227_v59, %v1314_v38  ;;  %1441 = vpow2.f32 %v914_v39  ;;  %v794_v46 = vmul.f32 1.442695, %v703_v40  ;;  %v519_v47 = vpop.f32.mrf.mxu2  ;;  %v834_v51 = vmul.f32 1.442695, %v723_v42 }
  0xe0   :  { %v582_v48 = vpop.f32.mrf.mxu3  ;;  %v1438_v44 = vpop.eup %1437  ;;  %1147 = vst.msk [vmem:[%s2782_s3 + $0x180] sm:$0xff] %vm1098_vm2, %v1065_v43  ;;  %v1086_v49 = vsel %vm681_vm8, %v2234_v61, %v1335_v41  ;;  %v1275_v50 = vadd.f32 -1.0, %v1436_v45  ;;  %v2319_v52 = vadd.f32 %v1820_v5, %v519_v47 }
  0xe1   :  { %1168 = vst.msk [vmem:[%s2782_s3 + $0x228] sm:$0xff] %vm1098_vm2, %v1086_v49  ;;  %v1295_v53 = vadd.f32 -1.0, %v1438_v44  ;;  %1443 = vpow2.f32 %v794_v46  ;;  %v2326_v54 = vadd.f32 %v1820_v5, %v582_v48  ;;  %v2420_v48 = vld [vmem:[%s2781_s2] ss:$0 sm:$0xff] }
  0xe2   :  { %v1026_v55 = vsel %vm621_vm9, %v2249_v4, %v1275_v50  ;;  %1445 = vpow2.f32 %v834_v51  ;;  %v743_v56 = vmin.f32 %v2319_v52, 0.0  ;;  %v402_v57 = vpop.f32.mrf.mxu0  ;;  %v462_v58 = vpop.f32.mrf.mxu1  ;;  %vm662_vm15 = vcmp.gt.f32.partialorder %v2319_v52, 0.0 }
  0xe3   :  { %1108 = vst.msk [vmem:[%s2782_s3 + $0x48] sm:$0xff] %vm1098_vm2, %v1026_v55  ;;  %v1046_v59 = vsel %vm641_vm10, %v2257_v8, %v1295_v53  ;;  %v764_v60 = vmin.f32 %v2326_v54, 0.0  ;;  %v2341_v61 = vadd.f32 %v1820_v5, %v402_v57  ;;  %v2349_v0 = vadd.f32 %v1820_v5, %v462_v58 }
  0xe4   :  { %v1440_v62 = vpop.eup %1439  ;;  %1128 = vst.msk [vmem:[%s2782_s3 + $0xe8] sm:$0xff] %vm1098_vm2, %v1046_v59  ;;  %v874_v63 = vmul.f32 1.442695, %v743_v56  ;;  %vm683_vm0 = vcmp.gt.f32.partialorder %v2326_v54, 0.0 }
  0xe5   :  { %v1442_v1 = vpop.eup %1441  ;;  %v1315_v2 = vadd.f32 -1.0, %v1440_v62  ;;  %v916_v3 = vmul.f32 1.442695, %v764_v60  ;;  %v704_v4 = vmin.f32 %v2341_v61, 0.0  ;;  %v724_v7 = vmin.f32 %v2349_v0, 0.0 }
  0xe6   :  { %v1336_v6 = vadd.f32 -1.0, %v1442_v1  ;;  %1447 = vpow2.f32 %v874_v63  ;;  %vm623_vm1 = vcmp.gt.f32.partialorder %v2341_v61, 0.0  ;;  %vm643_vm3 = vcmp.gt.f32.partialorder %v2349_v0, 0.0 }
  0xe7   :  { %v1444_v8 = vpop.eup %1443  ;;  %v1066_v9 = vsel %vm661_vm11, %v2273_v24, %v1315_v2  ;;  %1449 = vpow2.f32 %v916_v3  ;;  %v796_v10 = vmul.f32 1.442695, %v704_v4  ;;  %v522_v11 = vpop.f32.mrf.mxu2  ;;  %v836_v16 = vmul.f32 1.442695, %v724_v7 }
  0xe8   :  { %v585_v12 = vpop.f32.mrf.mxu3  ;;  %v1446_v13 = vpop.eup %1445  ;;  %1148 = vst.msk [vmem:[%s2782_s3 + $0x188] sm:$0xff] %vm1098_vm2, %v1066_v9  ;;  %v1087_v14 = vsel %vm682_vm12, %v2280_v26, %v1336_v6  ;;  %v1276_v15 = vadd.f32 -1.0, %v1444_v8  ;;  %v2365_v17 = vadd.f32 %v1820_v5, %v522_v11 }
  0xe9   :  { %1169 = vst.msk [vmem:[%s2782_s3 + $0x230] sm:$0xff] %vm1098_vm2, %v1087_v14  ;;  %v1296_v18 = vadd.f32 -1.0, %v1446_v13  ;;  %1451 = vpow2.f32 %v796_v10  ;;  %v2372_v19 = vadd.f32 %v1820_v5, %v585_v12 }
  0xea   :  { %v1027_v20 = vsel %vm622_vm13, %v2295_v33, %v1276_v15  ;;  %1453 = vpow2.f32 %v836_v16  ;;  %v744_v21 = vmin.f32 %v2365_v17, 0.0  ;;  %v405_v22 = vpop.f32.mrf.mxu0  ;;  %v465_v23 = vpop.f32.mrf.mxu1  ;;  %vm663_vm4 = vcmp.gt.f32.partialorder %v2365_v17, 0.0 }
  0xeb   :  { %1109 = vst.msk [vmem:[%s2782_s3 + $0x50] sm:$0xff] %vm1098_vm2, %v1027_v20  ;;  %v1047_v24 = vsel %vm642_vm14, %v2303_v36, %v1296_v18  ;;  %v765_v25 = vmin.f32 %v2372_v19, 0.0  ;;  %v2387_v26 = vadd.f32 %v1820_v5, %v405_v22  ;;  %v2395_v29 = vadd.f32 %v1820_v5, %v465_v23 }
  0xec   :  { %v1448_v27 = vpop.eup %1447  ;;  %1129 = vst.msk [vmem:[%s2782_s3 + $0xf0] sm:$0xff] %vm1098_vm2, %v1047_v24  ;;  %v876_v28 = vmul.f32 1.442695, %v744_v21  ;;  %vm684_vm5 = vcmp.gt.f32.partialorder %v2372_v19, 0.0 }
  0xed   :  { %v1450_v30 = vpop.eup %1449  ;;  %v1316_v31 = vadd.f32 -1.0, %v1448_v27  ;;  %v918_v32 = vmul.f32 1.442695, %v765_v25  ;;  %v705_v33 = vmin.f32 %v2387_v26, 0.0  ;;  %v725_v35 = vmin.f32 %v2395_v29, 0.0 }
  0xee   :  { %v1337_v34 = vadd.f32 -1.0, %v1450_v30  ;;  %1455 = vpow2.f32 %v876_v28  ;;  %vm624_vm6 = vcmp.gt.f32.partialorder %v2387_v26, 0.0  ;;  %vm644_vm7 = vcmp.gt.f32.partialorder %v2395_v29, 0.0 }
  0xef   :  { %v1452_v36 = vpop.eup %1451  ;;  %v1067_v37 = vsel %vm662_vm15, %v2319_v52, %v1316_v31  ;;  %1457 = vpow2.f32 %v918_v32  ;;  %v798_v38 = vmul.f32 1.442695, %v705_v33  ;;  %v525_v39 = vpop.f32.mrf.mxu2  ;;  %v838_v43 = vmul.f32 1.442695, %v725_v35 }
  0xf0   :  { %v588_v40 = vpop.f32.mrf.mxu3  ;;  %v1454_v41 = vpop.eup %1453  ;;  %1149 = vst.msk [vmem:[%s2782_s3 + $0x190] sm:$0xff] %vm1098_vm2, %v1067_v37  ;;  %v1088_v42 = vsel %vm683_vm0, %v2326_v54, %v1337_v34  ;;  %v1277_v45 = vadd.f32 -1.0, %v1452_v36  ;;  %v2411_v46 = vadd.f32 %v1820_v5, %v525_v39 }
  0xf1   :  { %1170 = vst.msk [vmem:[%s2782_s3 + $0x238] sm:$0xff] %vm1098_vm2, %v1088_v42  ;;  %v1297_v47 = vadd.f32 -1.0, %v1454_v41  ;;  %1459 = vpow2.f32 %v798_v38  ;;  %v2423_v44 = vadd.f32 %v2420_v48, %v588_v40 }
  0xf2   :  { %v1028_v5 = vsel %vm623_vm1, %v2341_v61, %v1277_v45  ;;  %1461 = vpow2.f32 %v838_v43  ;;  %v745_v49 = vmin.f32 %v2411_v46, 0.0  ;;  %v408_v50 = vpop.f32.mrf.mxu0  ;;  %v468_v51 = vpop.f32.mrf.mxu1  ;;  %vm664_vm8 = vcmp.gt.f32.partialorder %v2411_v46, 0.0 }
  0xf3   :  { %1110 = vst.msk [vmem:[%s2782_s3 + $0x58] sm:$0xff] %vm1098_vm2, %v1028_v5  ;;  %v1048_v52 = vsel %vm643_vm3, %v2349_v0, %v1297_v47  ;;  %v766_v53 = vmin.f32 %v2423_v44, 0.0  ;;  %v2438_v54 = vadd.f32 %v2420_v48, %v408_v50  ;;  %v2446_v57 = vadd.f32 %v2420_v48, %v468_v51 }
  0xf4   :  { %v1456_v55 = vpop.eup %1455  ;;  %1130 = vst.msk [vmem:[%s2782_s3 + $0xf8] sm:$0xff] %vm1098_vm2, %v1048_v52  ;;  %v878_v56 = vmul.f32 1.442695, %v745_v49  ;;  %vm685_vm9 = vcmp.gt.f32.partialorder %v2423_v44, 0.0 }
  0xf5   :  { %v1458_v58 = vpop.eup %1457  ;;  %v1317_v59 = vadd.f32 -1.0, %v1456_v55  ;;  %v920_v60 = vmul.f32 1.442695, %v766_v53  ;;  %v706_v61 = vmin.f32 %v2438_v54, 0.0  ;;  %v726_v63 = vmin.f32 %v2446_v57, 0.0 }
  0xf6   :  { %v1338_v62 = vadd.f32 -1.0, %v1458_v58  ;;  %1463 = vpow2.f32 %v878_v56  ;;  %vm625_vm10 = vcmp.gt.f32.partialorder %v2438_v54, 0.0  ;;  %vm645_vm11 = vcmp.gt.f32.partialorder %v2446_v57, 0.0 }
  0xf7   :  { %v1460_v0 = vpop.eup %1459  ;;  %v1068_v1 = vsel %vm663_vm4, %v2365_v17, %v1317_v59  ;;  %1465 = vpow2.f32 %v920_v60  ;;  %v800_v2 = vmul.f32 1.442695, %v706_v61  ;;  %v528_v3 = vpop.f32.mrf.mxu2  ;;  %v840_v9 = vmul.f32 1.442695, %v726_v63 }
  0xf8   :  { %v591_v4 = vpop.f32.mrf.mxu3  ;;  %v1462_v6 = vpop.eup %1461  ;;  %1150 = vst.msk [vmem:[%s2782_s3 + $0x198] sm:$0xff] %vm1098_vm2, %v1068_v1  ;;  %v1089_v7 = vsel %vm684_vm5, %v2372_v19, %v1338_v62  ;;  %v1278_v8 = vadd.f32 -1.0, %v1460_v0  ;;  %v2462_v10 = vadd.f32 %v2420_v48, %v528_v3 }
  0xf9   :  { %1171 = vst.msk [vmem:[%s2782_s3 + $0x240] sm:$0xff] %vm1098_vm2, %v1089_v7  ;;  %v1298_v11 = vadd.f32 -1.0, %v1462_v6  ;;  %1467 = vpow2.f32 %v800_v2  ;;  %v2469_v12 = vadd.f32 %v2420_v48, %v591_v4 }
  0xfa   :  { %v1029_v13 = vsel %vm624_vm6, %v2387_v26, %v1278_v8  ;;  %1469 = vpow2.f32 %v840_v9  ;;  %v746_v14 = vmin.f32 %v2462_v10, 0.0  ;;  %v411_v15 = vpop.f32.mrf.mxu0  ;;  %v471_v16 = vpop.f32.mrf.mxu1  ;;  %vm665_vm12 = vcmp.gt.f32.partialorder %v2462_v10, 0.0 }
  0xfb   :  { %1111 = vst.msk [vmem:[%s2782_s3 + $0x60] sm:$0xff] %vm1098_vm2, %v1029_v13  ;;  %v1049_v17 = vsel %vm644_vm7, %v2395_v29, %v1298_v11  ;;  %v767_v18 = vmin.f32 %v2469_v12, 0.0  ;;  %v2484_v19 = vadd.f32 %v2420_v48, %v411_v15  ;;  %v2492_v22 = vadd.f32 %v2420_v48, %v471_v16 }
  0xfc   :  { %v1464_v20 = vpop.eup %1463  ;;  %1131 = vst.msk [vmem:[%s2782_s3 + $0x100] sm:$0xff] %vm1098_vm2, %v1049_v17  ;;  %v880_v21 = vmul.f32 1.442695, %v746_v14  ;;  %vm686_vm13 = vcmp.gt.f32.partialorder %v2469_v12, 0.0 }
  0xfd   :  { %v1466_v23 = vpop.eup %1465  ;;  %v1318_v24 = vadd.f32 -1.0, %v1464_v20  ;;  %v922_v25 = vmul.f32 1.442695, %v767_v18  ;;  %v707_v26 = vmin.f32 %v2484_v19, 0.0  ;;  %v727_v28 = vmin.f32 %v2492_v22, 0.0 }
  0xfe   :  { %v1339_v27 = vadd.f32 -1.0, %v1466_v23  ;;  %1471 = vpow2.f32 %v880_v21  ;;  %vm626_vm14 = vcmp.gt.f32.partialorder %v2484_v19, 0.0  ;;  %vm646_vm15 = vcmp.gt.f32.partialorder %v2492_v22, 0.0 }
  0xff   :  { %v1468_v29 = vpop.eup %1467  ;;  %v1069_v30 = vsel %vm664_vm8, %v2411_v46, %v1318_v24  ;;  %1473 = vpow2.f32 %v922_v25  ;;  %v802_v31 = vmul.f32 1.442695, %v707_v26  ;;  %v531_v32 = vpop.f32.mrf.mxu2  ;;  %v842_v37 = vmul.f32 1.442695, %v727_v28 }
 0x100   :  { %v594_v33 = vpop.f32.mrf.mxu3  ;;  %v1470_v34 = vpop.eup %1469  ;;  %1151 = vst.msk [vmem:[%s2782_s3 + $0x1a0] sm:$0xff] %vm1098_vm2, %v1069_v30  ;;  %v1090_v35 = vsel %vm685_vm9, %v2423_v44, %v1339_v27  ;;  %v1279_v36 = vadd.f32 -1.0, %v1468_v29  ;;  %v2508_v38 = vadd.f32 %v2420_v48, %v531_v32 }
 0x101   :  { %1172 = vst.msk [vmem:[%s2782_s3 + $0x248] sm:$0xff] %vm1098_vm2, %v1090_v35  ;;  %v1299_v39 = vadd.f32 -1.0, %v1470_v34  ;;  %1475 = vpow2.f32 %v802_v31  ;;  %v2515_v40 = vadd.f32 %v2420_v48, %v594_v33 }
 0x102   :  { %v1030_v41 = vsel %vm625_vm10, %v2438_v54, %v1279_v36  ;;  %1477 = vpow2.f32 %v842_v37  ;;  %v747_v42 = vmin.f32 %v2508_v38, 0.0  ;;  %v414_v45 = vpop.f32.mrf.mxu0  ;;  %v474_v43 = vpop.f32.mrf.mxu1  ;;  %vm666_vm0 = vcmp.gt.f32.partialorder %v2508_v38, 0.0 }
 0x103   :  { %1112 = vst.msk [vmem:[%s2782_s3 + $0x68] sm:$0xff] %vm1098_vm2, %v1030_v41  ;;  %v1050_v46 = vsel %vm645_vm11, %v2446_v57, %v1299_v39  ;;  %v768_v47 = vmin.f32 %v2515_v40, 0.0  ;;  %v2530_v44 = vadd.f32 %v2420_v48, %v414_v45  ;;  %v2538_v50 = vadd.f32 %v2420_v48, %v474_v43 }
 0x104   :  { %v1472_v5 = vpop.eup %1471  ;;  %1132 = vst.msk [vmem:[%s2782_s3 + $0x108] sm:$0xff] %vm1098_vm2, %v1050_v46  ;;  %v882_v49 = vmul.f32 1.442695, %v747_v42  ;;  %vm687_vm1 = vcmp.gt.f32.partialorder %v2515_v40, 0.0 }
 0x105   :  { %v1474_v51 = vpop.eup %1473  ;;  %v1319_v52 = vadd.f32 -1.0, %v1472_v5  ;;  %v924_v53 = vmul.f32 1.442695, %v768_v47  ;;  %v708_v54 = vmin.f32 %v2530_v44, 0.0  ;;  %v728_v56 = vmin.f32 %v2538_v50, 0.0 }
 0x106   :  { %v1340_v55 = vadd.f32 -1.0, %v1474_v51  ;;  %1479 = vpow2.f32 %v882_v49  ;;  %vm627_vm3 = vcmp.gt.f32.partialorder %v2530_v44, 0.0  ;;  %vm647_vm4 = vcmp.gt.f32.partialorder %v2538_v50, 0.0 }
 0x107   :  { %v1476_v57 = vpop.eup %1475  ;;  %v1070_v58 = vsel %vm665_vm12, %v2462_v10, %v1319_v52  ;;  %1481 = vpow2.f32 %v924_v53  ;;  %v804_v59 = vmul.f32 1.442695, %v708_v54  ;;  %v534_v60 = vpop.f32.mrf.mxu2  ;;  %v844_v1 = vmul.f32 1.442695, %v728_v56 }
 0x108   :  { %v597_v61 = vpop.f32.mrf.mxu3  ;;  %v1478_v62 = vpop.eup %1477  ;;  %1152 = vst.msk [vmem:[%s2782_s3 + $0x1a8] sm:$0xff] %vm1098_vm2, %v1070_v58  ;;  %v1091_v63 = vsel %vm686_vm13, %v2469_v12, %v1340_v55  ;;  %v1280_v0 = vadd.f32 -1.0, %v1476_v57  ;;  %v2554_v2 = vadd.f32 %v2420_v48, %v534_v60 }
 0x109   :  { %1173 = vst.msk [vmem:[%s2782_s3 + $0x250] sm:$0xff] %vm1098_vm2, %v1091_v63  ;;  %v1300_v3 = vadd.f32 -1.0, %v1478_v62  ;;  %1483 = vpow2.f32 %v804_v59  ;;  %v2561_v4 = vadd.f32 %v2420_v48, %v597_v61 }
 0x10a   :  { %v1031_v6 = vsel %vm626_vm14, %v2484_v19, %v1280_v0  ;;  %1485 = vpow2.f32 %v844_v1  ;;  %v748_v7 = vmin.f32 %v2554_v2, 0.0  ;;  %v417_v8 = vpop.f32.mrf.mxu0  ;;  %v477_v9 = vpop.f32.mrf.mxu1  ;;  %vm667_vm5 = vcmp.gt.f32.partialorder %v2554_v2, 0.0 }
 0x10b   :  { %1113 = vst.msk [vmem:[%s2782_s3 + $0x70] sm:$0xff] %vm1098_vm2, %v1031_v6  ;;  %v1051_v10 = vsel %vm646_vm15, %v2492_v22, %v1300_v3  ;;  %v769_v11 = vmin.f32 %v2561_v4, 0.0  ;;  %v2576_v12 = vadd.f32 %v2420_v48, %v417_v8  ;;  %v2584_v15 = vadd.f32 %v2420_v48, %v477_v9 }
 0x10c   :  { %v1480_v13 = vpop.eup %1479  ;;  %1133 = vst.msk [vmem:[%s2782_s3 + $0x110] sm:$0xff] %vm1098_vm2, %v1051_v10  ;;  %v884_v14 = vmul.f32 1.442695, %v748_v7  ;;  %vm688_vm6 = vcmp.gt.f32.partialorder %v2561_v4, 0.0 }
 0x10d   :  { %v1482_v16 = vpop.eup %1481  ;;  %v1320_v17 = vadd.f32 -1.0, %v1480_v13  ;;  %v926_v18 = vmul.f32 1.442695, %v769_v11  ;;  %v709_v19 = vmin.f32 %v2576_v12, 0.0  ;;  %v729_v21 = vmin.f32 %v2584_v15, 0.0 }
 0x10e   :  { %v1341_v20 = vadd.f32 -1.0, %v1482_v16  ;;  %1487 = vpow2.f32 %v884_v14  ;;  %vm628_vm7 = vcmp.gt.f32.partialorder %v2576_v12, 0.0  ;;  %vm648_vm8 = vcmp.gt.f32.partialorder %v2584_v15, 0.0 }
 0x10f   :  { %v1484_v22 = vpop.eup %1483  ;;  %v1071_v23 = vsel %vm666_vm0, %v2508_v38, %v1320_v17  ;;  %1489 = vpow2.f32 %v926_v18  ;;  %v806_v24 = vmul.f32 1.442695, %v709_v19  ;;  %v537_v25 = vpop.f32.mrf.mxu2  ;;  %v846_v30 = vmul.f32 1.442695, %v729_v21 }
 0x110   :  { %v600_v26 = vpop.f32.mrf.mxu3  ;;  %v1486_v27 = vpop.eup %1485  ;;  %1153 = vst.msk [vmem:[%s2782_s3 + $0x1b0] sm:$0xff] %vm1098_vm2, %v1071_v23  ;;  %v1092_v28 = vsel %vm687_vm1, %v2515_v40, %v1341_v20  ;;  %v1281_v29 = vadd.f32 -1.0, %v1484_v22  ;;  %v2600_v31 = vadd.f32 %v2420_v48, %v537_v25 }
 0x111   :  { %1174 = vst.msk [vmem:[%s2782_s3 + $0x258] sm:$0xff] %vm1098_vm2, %v1092_v28  ;;  %v1301_v32 = vadd.f32 -1.0, %v1486_v27  ;;  %1491 = vpow2.f32 %v806_v24  ;;  %v2607_v33 = vadd.f32 %v2420_v48, %v600_v26 }
 0x112   :  { %v1032_v34 = vsel %vm627_vm3, %v2530_v44, %v1281_v29  ;;  %1493 = vpow2.f32 %v846_v30  ;;  %v749_v35 = vmin.f32 %v2600_v31, 0.0  ;;  %v420_v36 = vpop.f32.mrf.mxu0  ;;  %v480_v37 = vpop.f32.mrf.mxu1  ;;  %vm668_vm9 = vcmp.gt.f32.partialorder %v2600_v31, 0.0 }
 0x113   :  { %1114 = vst.msk [vmem:[%s2782_s3 + $0x78] sm:$0xff] %vm1098_vm2, %v1032_v34  ;;  %v1052_v38 = vsel %vm647_vm4, %v2538_v50, %v1301_v32  ;;  %v770_v39 = vmin.f32 %v2607_v33, 0.0  ;;  %v2622_v40 = vadd.f32 %v2420_v48, %v420_v36  ;;  %v2630_v45 = vadd.f32 %v2420_v48, %v480_v37 }
 0x114   :  { %v1488_v41 = vpop.eup %1487  ;;  %1134 = vst.msk [vmem:[%s2782_s3 + $0x118] sm:$0xff] %vm1098_vm2, %v1052_v38  ;;  %v886_v42 = vmul.f32 1.442695, %v749_v35  ;;  %vm689_vm10 = vcmp.gt.f32.partialorder %v2607_v33, 0.0 }
 0x115   :  { %v1490_v43 = vpop.eup %1489  ;;  %v1321_v46 = vadd.f32 -1.0, %v1488_v41  ;;  %v928_v47 = vmul.f32 1.442695, %v770_v39  ;;  %v710_v44 = vmin.f32 %v2622_v40, 0.0  ;;  %v730_v49 = vmin.f32 %v2630_v45, 0.0 }
 0x116   :  { %v1342_v5 = vadd.f32 -1.0, %v1490_v43  ;;  %1495 = vpow2.f32 %v886_v42  ;;  %vm629_vm11 = vcmp.gt.f32.partialorder %v2622_v40, 0.0  ;;  %vm649_vm12 = vcmp.gt.f32.partialorder %v2630_v45, 0.0 }
 0x117   :  { %v1492_v50 = vpop.eup %1491  ;;  %v1072_v51 = vsel %vm667_vm5, %v2554_v2, %v1321_v46  ;;  %1497 = vpow2.f32 %v928_v47  ;;  %v808_v52 = vmul.f32 1.442695, %v710_v44  ;;  %v540_v53 = vpop.f32.mrf.mxu2  ;;  %v848_v58 = vmul.f32 1.442695, %v730_v49 }
 0x118   :  { %v603_v54 = vpop.f32.mrf.mxu3  ;;  %v1494_v55 = vpop.eup %1493  ;;  %1154 = vst.msk [vmem:[%s2782_s3 + $0x1b8] sm:$0xff] %vm1098_vm2, %v1072_v51  ;;  %v1093_v56 = vsel %vm688_vm6, %v2561_v4, %v1342_v5  ;;  %v1282_v57 = vadd.f32 -1.0, %v1492_v50  ;;  %v2646_v59 = vadd.f32 %v2420_v48, %v540_v53 }
 0x119   :  { %1175 = vst.msk [vmem:[%s2782_s3 + $0x260] sm:$0xff] %vm1098_vm2, %v1093_v56  ;;  %v1302_v60 = vadd.f32 -1.0, %v1494_v55  ;;  %1499 = vpow2.f32 %v808_v52  ;;  %v2653_v61 = vadd.f32 %v2420_v48, %v603_v54 }
 0x11a   :  { %v1033_v62 = vsel %vm628_vm7, %v2576_v12, %v1282_v57  ;;  %1501 = vpow2.f32 %v848_v58  ;;  %v750_v63 = vmin.f32 %v2646_v59, 0.0  ;;  %v423_v0 = vpop.f32.mrf.mxu0  ;;  %v483_v1 = vpop.f32.mrf.mxu1  ;;  %vm669_vm13 = vcmp.gt.f32.partialorder %v2646_v59, 0.0 }
 0x11b   :  { %1115 = vst.msk [vmem:[%s2782_s3 + $0x80] sm:$0xff] %vm1098_vm2, %v1033_v62  ;;  %v1053_v2 = vsel %vm648_vm8, %v2584_v15, %v1302_v60  ;;  %v771_v3 = vmin.f32 %v2653_v61, 0.0  ;;  %v2668_v4 = vadd.f32 %v2420_v48, %v423_v0  ;;  %v2676_v8 = vadd.f32 %v2420_v48, %v483_v1 }
 0x11c   :  { %v1496_v6 = vpop.eup %1495  ;;  %1135 = vst.msk [vmem:[%s2782_s3 + $0x120] sm:$0xff] %vm1098_vm2, %v1053_v2  ;;  %v888_v7 = vmul.f32 1.442695, %v750_v63  ;;  %vm690_vm14 = vcmp.gt.f32.partialorder %v2653_v61, 0.0 }
 0x11d   :  { %v1498_v9 = vpop.eup %1497  ;;  %v1322_v10 = vadd.f32 -1.0, %v1496_v6  ;;  %v930_v11 = vmul.f32 1.442695, %v771_v3  ;;  %v711_v12 = vmin.f32 %v2668_v4, 0.0  ;;  %v731_v14 = vmin.f32 %v2676_v8, 0.0 }
 0x11e   :  { %v1343_v13 = vadd.f32 -1.0, %v1498_v9  ;;  %1503 = vpow2.f32 %v888_v7  ;;  %vm630_vm15 = vcmp.gt.f32.partialorder %v2668_v4, 0.0  ;;  %vm650_vm0 = vcmp.gt.f32.partialorder %v2676_v8, 0.0 }
 0x11f   :  { %v1500_v15 = vpop.eup %1499  ;;  %v1073_v16 = vsel %vm668_vm9, %v2600_v31, %v1322_v10  ;;  %1505 = vpow2.f32 %v930_v11  ;;  %v810_v17 = vmul.f32 1.442695, %v711_v12  ;;  %v543_v18 = vpop.f32.mrf.mxu2  ;;  %v850_v23 = vmul.f32 1.442695, %v731_v14 }
 0x120   :  { %v606_v19 = vpop.f32.mrf.mxu3  ;;  %v1502_v20 = vpop.eup %1501  ;;  %1155 = vst.msk [vmem:[%s2782_s3 + $0x1c0] sm:$0xff] %vm1098_vm2, %v1073_v16  ;;  %v1094_v21 = vsel %vm689_vm10, %v2607_v33, %v1343_v13  ;;  %v1283_v22 = vadd.f32 -1.0, %v1500_v15  ;;  %v544_v24 = vadd.f32 %v2420_v48, %v543_v18 }
 0x121   :  { %1176 = vst.msk [vmem:[%s2782_s3 + $0x268] sm:$0xff] %vm1098_vm2, %v1094_v21  ;;  %v1303_v25 = vadd.f32 -1.0, %v1502_v20  ;;  %1507 = vpow2.f32 %v810_v17  ;;  %v2697_v26 = vadd.f32 %v2420_v48, %v606_v19 }
 0x122   :  { %v1034_v27 = vsel %vm629_vm11, %v2622_v40, %v1283_v22  ;;  %1509 = vpow2.f32 %v850_v23  ;;  %v751_v28 = vmin.f32 %v544_v24, 0.0  ;;  %v426_v29 = vpop.f32.mrf.mxu0  ;;  %v486_v30 = vpop.f32.mrf.mxu1  ;;  %vm670_vm1 = vcmp.gt.f32.partialorder %v544_v24, 0.0 }
 0x123   :  { %1116 = vst.msk [vmem:[%s2782_s3 + $0x88] sm:$0xff] %vm1098_vm2, %v1034_v27  ;;  %v1054_v31 = vsel %vm649_vm12, %v2630_v45, %v1303_v25  ;;  %v772_v32 = vmin.f32 %v2697_v26, 0.0  ;;  %v427_v33 = vadd.f32 %v2420_v48, %v426_v29  ;;  %v487_v36 = vadd.f32 %v2420_v48, %v486_v30 }
 0x124   :  { %v1504_v34 = vpop.eup %1503  ;;  %1136 = vst.msk [vmem:[%s2782_s3 + $0x128] sm:$0xff] %vm1098_vm2, %v1054_v31  ;;  %v890_v35 = vmul.f32 1.442695, %v751_v28  ;;  %vm691_vm3 = vcmp.gt.f32.partialorder %v2697_v26, 0.0 }
 0x125   :  { %v1506_v37 = vpop.eup %1505  ;;  %v1323_v38 = vadd.f32 -1.0, %v1504_v34  ;;  %v932_v39 = vmul.f32 1.442695, %v772_v32  ;;  %v712_v40 = vmin.f32 %v427_v33, 0.0  ;;  %v732_v42 = vmin.f32 %v487_v36, 0.0 }
 0x126   :  { %v1344_v41 = vadd.f32 -1.0, %v1506_v37  ;;  %1511 = vpow2.f32 %v890_v35  ;;  %vm631_vm4 = vcmp.gt.f32.partialorder %v427_v33, 0.0  ;;  %vm651_vm5 = vcmp.gt.f32.partialorder %v487_v36, 0.0 }
 0x127   :  { %v1508_v45 = vpop.eup %1507  ;;  %v1074_v43 = vsel %vm669_vm13, %v2646_v59, %v1323_v38  ;;  %1513 = vpow2.f32 %v932_v39  ;;  %v812_v46 = vmul.f32 1.442695, %v712_v40  ;;  %v546_v47 = vpop.f32.mrf.mxu2  ;;  %v852_v51 = vmul.f32 1.442695, %v732_v42 }
 0x128   :  { %v609_v44 = vpop.f32.mrf.mxu3  ;;  %v1510_v5 = vpop.eup %1509  ;;  %1156 = vst.msk [vmem:[%s2782_s3 + $0x1c8] sm:$0xff] %vm1098_vm2, %v1074_v43  ;;  %v1095_v49 = vsel %vm690_vm14, %v2653_v61, %v1344_v41  ;;  %v1284_v50 = vadd.f32 -1.0, %v1508_v45  ;;  %v547_v52 = vadd.f32 %v2420_v48, %v546_v47 }
 0x129   :  { %1177 = vst.msk [vmem:[%s2782_s3 + $0x270] sm:$0xff] %vm1098_vm2, %v1095_v49  ;;  %v1304_v53 = vadd.f32 -1.0, %v1510_v5  ;;  %1515 = vpow2.f32 %v812_v46  ;;  %v610_v54 = vadd.f32 %v2420_v48, %v609_v44 }
 0x12a   :  { %v1035_v55 = vsel %vm630_vm15, %v2668_v4, %v1284_v50  ;;  %1517 = vpow2.f32 %v852_v51  ;;  %v752_v56 = vmin.f32 %v547_v52, 0.0  ;;  %vm671_vm6 = vcmp.gt.f32.partialorder %v547_v52, 0.0 }
 0x12b   :  { %1117 = vst.msk [vmem:[%s2782_s3 + $0x90] sm:$0xff] %vm1098_vm2, %v1035_v55  ;;  %v1055_v57 = vsel %vm650_vm0, %v2676_v8, %v1304_v53  ;;  %v773_v58 = vmin.f32 %v610_v54, 0.0  ;;  %vm692_vm7 = vcmp.gt.f32.partialorder %v610_v54, 0.0 }
 0x12c   :  { %v1512_v59 = vpop.eup %1511  ;;  %1137 = vst.msk [vmem:[%s2782_s3 + $0x130] sm:$0xff] %vm1098_vm2, %v1055_v57  ;;  %v892_v60 = vmul.f32 1.442695, %v752_v56 }
 0x12d   :  { %v1514_v61 = vpop.eup %1513  ;;  %v1324_v62 = vadd.f32 -1.0, %v1512_v59  ;;  %v934_v63 = vmul.f32 1.442695, %v773_v58 }
 0x12e   :  { %v1345_v0 = vadd.f32 -1.0, %v1514_v61  ;;  %1519 = vpow2.f32 %v892_v60 }
 0x12f   :  { %v1516_v1 = vpop.eup %1515  ;;  %v1075_v2 = vsel %vm670_vm1, %v544_v24, %v1324_v62  ;;  %1521 = vpow2.f32 %v934_v63  ;;  %v549_v3 = vpop.f32.mrf.mxu2 }
 0x130   :  { %v1518_v4 = vpop.eup %1517  ;;  %1157 = vst.msk [vmem:[%s2782_s3 + $0x1d0] sm:$0xff] %vm1098_vm2, %v1075_v2  ;;  %v1096_v6 = vsel %vm691_vm3, %v2697_v26, %v1345_v0  ;;  %v1285_v7 = vadd.f32 -1.0, %v1516_v1  ;;  %v550_v8 = vadd.f32 %v2420_v48, %v549_v3 }
 0x131   :  { %1178 = vst.msk [vmem:[%s2782_s3 + $0x278] sm:$0xff] %vm1098_vm2, %v1096_v6  ;;  %v1305_v9 = vadd.f32 -1.0, %v1518_v4 }
 0x132   :  { %v1036_v10 = vsel %vm631_vm4, %v427_v33, %v1285_v7  ;;  %v753_v11 = vmin.f32 %v550_v8, 0.0  ;;  %vm672_vm8 = vcmp.gt.f32.partialorder %v550_v8, 0.0 }
 0x133   :  { %1118 = vst.msk [vmem:[%s2782_s3 + $0x98] sm:$0xff] %vm1098_vm2, %v1036_v10  ;;  %v1056_v12 = vsel %vm651_vm5, %v487_v36, %v1305_v9 }
 0x134   :  { %v1520_v13 = vpop.eup %1519  ;;  %1138 = vst.msk [vmem:[%s2782_s3 + $0x138] sm:$0xff] %vm1098_vm2, %v1056_v12  ;;  %v894_v48 = vmul.f32 1.442695, %v753_v11 }
 0x135   :  { %v1522_v14 = vpop.eup %1521  ;;  %v1325_v15 = vadd.f32 -1.0, %v1520_v13 }
 0x136   :  { %v1346_v16 = vadd.f32 -1.0, %v1522_v14  ;;  %1523 = vpow2.f32 %v894_v48 }
 0x137   :  { %v1076_v17 = vsel %vm671_vm6, %v547_v52, %v1325_v15 }
 0x138   :  { %1158 = vst.msk [vmem:[%s2782_s3 + $0x1d8] sm:$0xff] %vm1098_vm2, %v1076_v17  ;;  %v1097_v18 = vsel %vm692_vm7, %v610_v54, %v1346_v16 }
 0x139   :  { %1179 = vst.msk [vmem:[%s2782_s3 + $0x280] sm:$0xff] %vm1098_vm2, %v1097_v18 }
 0x13c   :  { %v1524_v19 = vpop.eup %1523 }
 0x13d   :  { %v1326_v20 = vadd.f32 -1.0, %v1524_v19 }
 0x13f   :  { %v1077_v21 = vsel %vm672_vm8, %v550_v8, %v1326_v20 }
 0x140   :  { %1159 = vst.msk [vmem:[%s2782_s3 + $0x1e0] sm:$0xff] %vm1098_vm2, %v1077_v21 }

// kernel: _lambda_.6
= control target key start
LH: loop header
LB: loop body
LE: loop exit
PB: predicated region body
PF: predicated region fallthrough
CT: control target
= control target key end

     0   :  { %vm195_vm0 = vcmask 523264   ;;  %s1688_s1 = inlined_call_operand.vmem [shape: f32[576,64], index: 1, kind: input, shape index: {}]   ;;  %s1689_s0 = inlined_call_operand.vmem [shape: f32[162,576], index: 0, kind: input, shape index: {}]   ;;  %s1690_s2 = inlined_call_operand.vmem [shape: f32[1,64], index: 2, kind: input, shape index: {}]   ;;  %s1691_s3 = inlined_call_operand.vmem [shape: f32[162,64], index: 3, kind: output, shape index: {}]  }
   0x1   :  { %v134_v0 = vld [vmem:[%s1688_s1 + $0x78] sm:$0xff]  ;;  %v133_v1 = vld [vmem:[%s1688_s1 + $0x70] sm:$0xff]  ;;  %v132_v2 = vld [vmem:[%s1688_s1 + $0x68] sm:$0xff] }
   0x2   :  { %853 = vmatpush.msra.mxu1 %v134_v0  ;;  %259 = vmatpush.msra.mxu0 %v134_v0  ;;  %v131_v3 = vld [vmem:[%s1688_s1 + $0x60] sm:$0xff]  ;;  %v130_v4 = vld [vmem:[%s1688_s1 + $0x58] sm:$0xff]  ;;  %v129_v5 = vld [vmem:[%s1688_s1 + $0x50] sm:$0xff] }
   0x3   :  { %855 = vmatpush.msra.mxu3 %v134_v0  ;;  %854 = vmatpush.msra.mxu2 %v134_v0  ;;  %v128_v6 = vld [vmem:[%s1688_s1 + $0x48] sm:$0xff]  ;;  %v127_v7 = vld [vmem:[%s1688_s1 + $0x40] sm:$0xff]  ;;  %v126_v8 = vld [vmem:[%s1688_s1 + $0x38] sm:$0xff] }
   0x4   :  { %856 = vmatpush.msra.mxu1 %v133_v1  ;;  %260 = vmatpush.msra.mxu0 %v133_v1  ;;  %v125_v9 = vld [vmem:[%s1688_s1 + $0x30] sm:$0xff]  ;;  %v124_v10 = vld [vmem:[%s1688_s1 + $0x28] sm:$0xff]  ;;  %v123_v11 = vld [vmem:[%s1688_s1 + $0x20] sm:$0xff] }
   0x5   :  { %858 = vmatpush.msra.mxu3 %v133_v1  ;;  %857 = vmatpush.msra.mxu2 %v133_v1  ;;  %v122_v12 = vld [vmem:[%s1688_s1 + $0x18] sm:$0xff]  ;;  %v121_v13 = vld [vmem:[%s1688_s1 + $0x10] sm:$0xff]  ;;  %v120_v14 = vld [vmem:[%s1688_s1 + $0x8] sm:$0xff] }
   0x6   :  { %859 = vmatpush.msra.mxu1 %v132_v2  ;;  %261 = vmatpush.msra.mxu0 %v132_v2  ;;  %v119_v15 = vld [vmem:[%s1688_s1] sm:$0xff]  ;;  %v44_v16 = vld [vmem:[%s1689_s0 + $0xf0] sm:$0xff]  ;;  %v150_v17 = vld [vmem:[%s1688_s1 + $0xf8] sm:$0xff] }
   0x7   :  { %861 = vmatpush.msra.mxu3 %v132_v2  ;;  %860 = vmatpush.msra.mxu2 %v132_v2  ;;  %v14_v18 = vld [vmem:[%s1689_s0] sm:$0xff]  ;;  %v190_v20 = vld [vmem:[%s1688_s1 + $0x238] sm:$0xff]  ;;  %v149_v21 = vld [vmem:[%s1688_s1 + $0xf0] sm:$0xff] }
   0x8   :  { %862 = vmatpush.msra.mxu1 %v131_v3  ;;  %262 = vmatpush.msra.mxu0 %v131_v3  ;;  %v94_v19 = vld [vmem:[%s1689_s0 + $0x280] sm:$0xff]  ;;  %v182_v22 = vld [vmem:[%s1688_s1 + $0x1f8] sm:$0xff]  ;;  %v189_v23 = vld [vmem:[%s1688_s1 + $0x230] sm:$0xff] }
   0x9   :  { %864 = vmatpush.msra.mxu3 %v131_v3  ;;  %863 = vmatpush.msra.mxu2 %v131_v3  ;;  %v148_v24 = vld [vmem:[%s1688_s1 + $0xe8] sm:$0xff]  ;;  %v181_v25 = vld [vmem:[%s1688_s1 + $0x1f0] sm:$0xff]  ;;  %v74_v26 = vld [vmem:[%s1689_s0 + $0x1e0] sm:$0xff] }
   0xa   :  { %865 = vmatpush.msra.mxu1 %v130_v4  ;;  %263 = vmatpush.msra.mxu0 %v130_v4  ;;  %v188_v27 = vld [vmem:[%s1688_s1 + $0x228] sm:$0xff]  ;;  %v147_v28 = vld [vmem:[%s1688_s1 + $0xe0] sm:$0xff]  ;;  %v49_v30 = vld [vmem:[%s1689_s0 + $0x118] sm:$0xff] }
   0xb   :  { %867 = vmatpush.msra.mxu3 %v130_v4  ;;  %866 = vmatpush.msra.mxu2 %v130_v4  ;;  %v180_v29 = vld [vmem:[%s1688_s1 + $0x1e8] sm:$0xff]  ;;  %v166_v31 = vld [vmem:[%s1688_s1 + $0x178] sm:$0xff]  ;;  %v165_v35 = vld [vmem:[%s1688_s1 + $0x170] sm:$0xff] }
   0xc   :  { %868 = vmatpush.msra.mxu1 %v129_v5  ;;  %264 = vmatpush.msra.mxu0 %v129_v5  ;;  %v146_v32 = vld [vmem:[%s1688_s1 + $0xd8] sm:$0xff]  ;;  %v19_v33 = vld [vmem:[%s1689_s0 + $0x28] sm:$0xff]  ;;  %v179_v36 = vld [vmem:[%s1688_s1 + $0x1e0] sm:$0xff] }
   0xd   :  { %870 = vmatpush.msra.mxu3 %v129_v5  ;;  %869 = vmatpush.msra.mxu2 %v129_v5  ;;  %v99_v34 = vld [vmem:[%s1689_s0 + $0x2a8] sm:$0xff]  ;;  %v145_v37 = vld [vmem:[%s1688_s1 + $0xd0] sm:$0xff]  ;;  %v187_v39 = vld [vmem:[%s1688_s1 + $0x220] sm:$0xff] }
   0xe   :  { %871 = vmatpush.msra.mxu1 %v128_v6  ;;  %265 = vmatpush.msra.mxu0 %v128_v6  ;;  %v164_v38 = vld [vmem:[%s1688_s1 + $0x168] sm:$0xff]  ;;  %v178_v40 = vld [vmem:[%s1688_s1 + $0x1d8] sm:$0xff]  ;;  %v163_v42 = vld [vmem:[%s1688_s1 + $0x160] sm:$0xff] }
   0xf   :  { %873 = vmatpush.msra.mxu3 %v128_v6  ;;  %872 = vmatpush.msra.mxu2 %v128_v6  ;;  %v144_v41 = vld [vmem:[%s1688_s1 + $0xc8] sm:$0xff]  ;;  %v186_v43 = vld [vmem:[%s1688_s1 + $0x218] sm:$0xff]  ;;  %v177_v44 = vld [vmem:[%s1688_s1 + $0x1d0] sm:$0xff] }
  0x10   :  { %874 = vmatpush.msra.mxu1 %v127_v7  ;;  %266 = vmatpush.msra.mxu0 %v127_v7  ;;  %v79_v45 = vld [vmem:[%s1689_s0 + $0x208] sm:$0xff]  ;;  %v54_v46 = vld [vmem:[%s1689_s0 + $0x140] sm:$0xff]  ;;  %v162_v47 = vld [vmem:[%s1688_s1 + $0x158] sm:$0xff] }
  0x11   :  { %876 = vmatpush.msra.mxu3 %v127_v7  ;;  %875 = vmatpush.msra.mxu2 %v127_v7  ;;  %v143_v48 = vld [vmem:[%s1688_s1 + $0xc0] sm:$0xff]  ;;  %v176_v49 = vld [vmem:[%s1688_s1 + $0x1c8] sm:$0xff]  ;;  %v24_v50 = vld [vmem:[%s1689_s0 + $0x50] sm:$0xff] }
  0x12   :  { %877 = vmatpush.msra.mxu1 %v126_v8  ;;  %267 = vmatpush.msra.mxu0 %v126_v8  ;;  %v104_v51 = vld [vmem:[%s1689_s0 + $0x2d0] sm:$0xff]  ;;  %v142_v53 = vld [vmem:[%s1688_s1 + $0xb8] sm:$0xff]  ;;  %v175_v54 = vld [vmem:[%s1688_s1 + $0x1c0] sm:$0xff] }
  0x13   :  { %879 = vmatpush.msra.mxu3 %v126_v8  ;;  %878 = vmatpush.msra.mxu2 %v126_v8  ;;  %v161_v52 = vld [vmem:[%s1688_s1 + $0x150] sm:$0xff]  ;;  %v160_v56 = vld [vmem:[%s1688_s1 + $0x148] sm:$0xff]  ;;  %v174_v58 = vld [vmem:[%s1688_s1 + $0x1b8] sm:$0xff] }
  0x14   :  { %880 = vmatpush.msra.mxu1 %v125_v9  ;;  %268 = vmatpush.msra.mxu0 %v125_v9  ;;  %v185_v55 = vld [vmem:[%s1688_s1 + $0x210] sm:$0xff]  ;;  %v184_v59 = vld [vmem:[%s1688_s1 + $0x208] sm:$0xff]  ;;  %v159_v60 = vld [vmem:[%s1688_s1 + $0x140] sm:$0xff] }
  0x15   :  { %882 = vmatpush.msra.mxu3 %v125_v9  ;;  %881 = vmatpush.msra.mxu2 %v125_v9  ;;  %v141_v57 = vld [vmem:[%s1688_s1 + $0xb0] sm:$0xff]  ;;  %v140_v61 = vld [vmem:[%s1688_s1 + $0xa8] sm:$0xff]  ;;  %v158_v0 = vld [vmem:[%s1688_s1 + $0x138] sm:$0xff] }
  0x16   :  { %883 = vmatpush.msra.mxu1 %v124_v10  ;;  %269 = vmatpush.msra.mxu0 %v124_v10  ;;  %v59_v62 = vld [vmem:[%s1689_s0 + $0x168] sm:$0xff]  ;;  %v84_v63 = vld [vmem:[%s1689_s0 + $0x230] sm:$0xff]  ;;  %v29_v2 = vld [vmem:[%s1689_s0 + $0x78] sm:$0xff] }
  0x17   :  { %885 = vmatpush.msra.mxu3 %v124_v10  ;;  %884 = vmatpush.msra.mxu2 %v124_v10  ;;  %v173_v1 = vld [vmem:[%s1688_s1 + $0x1b0] sm:$0xff]  ;;  %v109_v3 = vld [vmem:[%s1689_s0 + $0x2f8] sm:$0xff]  ;;  %v172_v5 = vld [vmem:[%s1688_s1 + $0x1a8] sm:$0xff] }
  0x18   :  { %886 = vmatpush.msra.mxu1 %v123_v11  ;;  %270 = vmatpush.msra.mxu0 %v123_v11  ;;  %v157_v4 = vld [vmem:[%s1688_s1 + $0x130] sm:$0xff]  ;;  %v139_v6 = vld [vmem:[%s1688_s1 + $0xa0] sm:$0xff]  ;;  %v156_v8 = vld [vmem:[%s1688_s1 + $0x128] sm:$0xff] }
  0x19   :  { %888 = vmatpush.msra.mxu3 %v123_v11  ;;  %887 = vmatpush.msra.mxu2 %v123_v11  ;;  %v183_v7 = vld [vmem:[%s1688_s1 + $0x200] sm:$0xff]  ;;  %v138_v10 = vld [vmem:[%s1688_s1 + $0x98] sm:$0xff] }
  0x1a   :  { %889 = vmatpush.msra.mxu1 %v122_v12  ;;  %271 = vmatpush.msra.mxu0 %v122_v12  ;;  %v171_v9 = vld [vmem:[%s1688_s1 + $0x1a0] sm:$0xff] }
  0x1b   :  { %891 = vmatpush.msra.mxu3 %v122_v12  ;;  %890 = vmatpush.msra.mxu2 %v122_v12  ;;  %v155_v11 = vld [vmem:[%s1688_s1 + $0x120] sm:$0xff]  ;;  %v170_v12 = vld [vmem:[%s1688_s1 + $0x198] sm:$0xff] }
  0x1c   :  { %892 = vmatpush.msra.mxu1 %v121_v13  ;;  %272 = vmatpush.msra.mxu0 %v121_v13 }
  0x1d   :  { %894 = vmatpush.msra.mxu3 %v121_v13  ;;  %893 = vmatpush.msra.mxu2 %v121_v13  ;;  %v64_v13 = vld [vmem:[%s1689_s0 + $0x190] sm:$0xff] }
  0x1e   :  { %895 = vmatpush.msra.mxu1 %v120_v14  ;;  %273 = vmatpush.msra.mxu0 %v120_v14 }
  0x1f   :  { %897 = vmatpush.msra.mxu3 %v120_v14  ;;  %896 = vmatpush.msra.mxu2 %v120_v14  ;;  %v89_v14 = vld [vmem:[%s1689_s0 + $0x258] sm:$0xff] }
  0x20   :  { %898 = vmatpush.msra.mxu1 %v119_v15  ;;  %274 = vmatpush.msra.mxu0 %v119_v15 }
  0x21   :  { %293 = vmatmul.f32.vlgmr.msra.gmra.mxu1 %v44_v16  ;;  %900 = vmatpush.msra.mxu3 %v119_v15  ;;  %v137_v16 = vld [vmem:[%s1688_s1 + $0x90] sm:$0xff] }
  0x22   :  { %339 = vmatpush.msrb.mxu1 %v150_v17  ;;  %275 = vmatmul.f32.vlgmr.msra.gmra.mxu0 %v14_v18  ;;  %v34_v17 = vld [vmem:[%s1689_s0 + $0xa0] sm:$0xff] }
  0x23   :  { %323 = vmatmul.f32.vlgmr.msra.gmra.mxu3 %v94_v19  ;;  %587 = vmatpush.msrb.mxu0 %v190_v20  ;;  %v114_v18 = vld [vmem:[%s1689_s0 + $0x320] sm:$0x3]  ;;  %v153_v19 = vld [vmem:[%s1688_s1 + $0x110] sm:$0xff] }
  0x24   :  { %340 = vmatpush.msrb.mxu1 %v149_v21  ;;  %499 = vmatpush.msrb.mxu3 %v182_v22  ;;  %v169_v20 = vld [vmem:[%s1688_s1 + $0x190] sm:$0xff]  ;;  %v136_v21 = vld [vmem:[%s1688_s1 + $0x88] sm:$0xff] }
  0x25   :  { %899 = vmatpush.msra.mxu2 %v119_v15  ;;  %588 = vmatpush.msrb.mxu0 %v189_v23  ;;  %v154_v15 = vld [vmem:[%s1688_s1 + $0x118] sm:$0xff]  ;;  %v152_v22 = vld [vmem:[%s1688_s1 + $0x108] sm:$0xff] }
  0x26   :  { %341 = vmatpush.msrb.mxu1 %v148_v24  ;;  %500 = vmatpush.msrb.mxu3 %v181_v25  ;;  %v168_v23 = vld [vmem:[%s1688_s1 + $0x188] sm:$0xff]  ;;  %v135_v24 = vld [vmem:[%s1688_s1 + $0x80] sm:$0xff] }
  0x27   :  { %311 = vmatmul.f32.vlgmr.msra.gmra.mxu2 %v74_v26  ;;  %589 = vmatpush.msrb.mxu0 %v188_v27  ;;  %v151_v25 = vld [vmem:[%s1688_s1 + $0x100] sm:$0xff]  ;;  %v69_v27 = vld [vmem:[%s1689_s0 + $0x1b8] sm:$0xff] }
  0x28   :  { %342 = vmatpush.msrb.mxu1 %v147_v28  ;;  %501 = vmatpush.msrb.mxu3 %v180_v29  ;;  %v167_v26 = vld [vmem:[%s1688_s1 + $0x180] sm:$0xff]  ;;  %v16_v28 = vld [vmem:[%s1689_s0 + $0x10] sm:$0xff]  ;;  %v39_v29 = vld [vmem:[%s1689_s0 + $0xc8] sm:$0xff] }
  0x29   :  { %296 = vmatmul.f32.gmra.mxu1 %v49_v30  ;;  %419 = vmatpush.msrb.mxu2 %v166_v31  ;;  %v17_v30 = vld [vmem:[%s1689_s0 + $0x18] sm:$0xff]  ;;  %v15_v31 = vld [vmem:[%s1689_s0 + $0x8] sm:$0xff] }
  0x2a   :  { %343 = vmatpush.msrb.mxu1 %v146_v32  ;;  %278 = vmatmul.f32.gmra.mxu0 %v19_v33  ;;  %v21_v32 = vld [vmem:[%s1689_s0 + $0x38] sm:$0xff]  ;;  %v22_v33 = vld [vmem:[%s1689_s0 + $0x40] sm:$0xff] }
  0x2b   :  { %326 = vmatmul.f32.gmra.mxu3 %v99_v34  ;;  %420 = vmatpush.msrb.mxu2 %v165_v35  ;;  %v18_v34 = vld [vmem:[%s1689_s0 + $0x20] sm:$0xff]  ;;  %v20_v35 = vld [vmem:[%s1689_s0 + $0x30] sm:$0xff] }
  0x2c   :  { %502 = vmatpush.msrb.mxu3 %v179_v36  ;;  %344 = vmatpush.msrb.mxu1 %v145_v37  ;;  %v26_v36 = vld [vmem:[%s1689_s0 + $0x60] sm:$0xff]  ;;  %v27_v37 = vld [vmem:[%s1689_s0 + $0x68] sm:$0xff] }
  0x2d   :  { %421 = vmatpush.msrb.mxu2 %v164_v38  ;;  %590 = vmatpush.msrb.mxu0 %v187_v39  ;;  %v23_v38 = vld [vmem:[%s1689_s0 + $0x48] sm:$0xff]  ;;  %v25_v39 = vld [vmem:[%s1689_s0 + $0x58] sm:$0xff] }
  0x2e   :  { %503 = vmatpush.msrb.mxu3 %v178_v40  ;;  %345 = vmatpush.msrb.mxu1 %v144_v41  ;;  %v31_v40 = vld [vmem:[%s1689_s0 + $0x88] sm:$0xff]  ;;  %v32_v41 = vld [vmem:[%s1689_s0 + $0x90] sm:$0xff] }
  0x2f   :  { %422 = vmatpush.msrb.mxu2 %v163_v42  ;;  %591 = vmatpush.msrb.mxu0 %v186_v43  ;;  %v28_v42 = vld [vmem:[%s1689_s0 + $0x70] sm:$0xff]  ;;  %v30_v43 = vld [vmem:[%s1689_s0 + $0x80] sm:$0xff] }
  0x30   :  { %504 = vmatpush.msrb.mxu3 %v177_v44  ;;  %314 = vmatmul.f32.gmra.mxu2 %v79_v45  ;;  %v36_v44 = vld [vmem:[%s1689_s0 + $0xb0] sm:$0xff]  ;;  %v37_v45 = vld [vmem:[%s1689_s0 + $0xb8] sm:$0xff] }
  0x31   :  { %299 = vmatmul.f32.gmra.mxu1 %v54_v46  ;;  %423 = vmatpush.msrb.mxu2 %v162_v47  ;;  %v33_v46 = vld [vmem:[%s1689_s0 + $0x98] sm:$0xff]  ;;  %v35_v47 = vld [vmem:[%s1689_s0 + $0xa8] sm:$0xff] }
  0x32   :  { %346 = vmatpush.msrb.mxu1 %v143_v48  ;;  %505 = vmatpush.msrb.mxu3 %v176_v49  ;;  %v41_v48 = vld [vmem:[%s1689_s0 + $0xd8] sm:$0xff]  ;;  %v42_v49 = vld [vmem:[%s1689_s0 + $0xe0] sm:$0xff] }
  0x33   :  { %281 = vmatmul.f32.gmra.mxu0 %v24_v50  ;;  %329 = vmatmul.f32.gmra.mxu3 %v104_v51  ;;  %v38_v50 = vld [vmem:[%s1689_s0 + $0xc0] sm:$0xff]  ;;  %v40_v51 = vld [vmem:[%s1689_s0 + $0xd0] sm:$0xff] }
  0x34   :  { %424 = vmatpush.msrb.mxu2 %v161_v52  ;;  %347 = vmatpush.msrb.mxu1 %v142_v53  ;;  %v46_v52 = vld [vmem:[%s1689_s0 + $0x100] sm:$0xff]  ;;  %v47_v53 = vld [vmem:[%s1689_s0 + $0x108] sm:$0xff] }
  0x35   :  { %506 = vmatpush.msrb.mxu3 %v175_v54  ;;  %592 = vmatpush.msrb.mxu0 %v185_v55  ;;  %v43_v54 = vld [vmem:[%s1689_s0 + $0xe8] sm:$0xff]  ;;  %v45_v55 = vld [vmem:[%s1689_s0 + $0xf8] sm:$0xff] }
  0x36   :  { %425 = vmatpush.msrb.mxu2 %v160_v56  ;;  %348 = vmatpush.msrb.mxu1 %v141_v57  ;;  %v51_v56 = vld [vmem:[%s1689_s0 + $0x128] sm:$0xff]  ;;  %v52_v57 = vld [vmem:[%s1689_s0 + $0x130] sm:$0xff] }
  0x37   :  { %507 = vmatpush.msrb.mxu3 %v174_v58  ;;  %593 = vmatpush.msrb.mxu0 %v184_v59  ;;  %v48_v58 = vld [vmem:[%s1689_s0 + $0x110] sm:$0xff]  ;;  %v50_v59 = vld [vmem:[%s1689_s0 + $0x120] sm:$0xff] }
  0x38   :  { %426 = vmatpush.msrb.mxu2 %v159_v60  ;;  %349 = vmatpush.msrb.mxu1 %v140_v61  ;;  %v56_v60 = vld [vmem:[%s1689_s0 + $0x150] sm:$0xff]  ;;  %v57_v61 = vld [vmem:[%s1689_s0 + $0x158] sm:$0xff] }
  0x39   :  { %302 = vmatmul.f32.gmra.mxu1 %v59_v62  ;;  %317 = vmatmul.f32.gmra.mxu2 %v84_v63  ;;  %v53_v62 = vld [vmem:[%s1689_s0 + $0x138] sm:$0xff]  ;;  %v55_v63 = vld [vmem:[%s1689_s0 + $0x148] sm:$0xff] }
  0x3a   :  { %427 = vmatpush.msrb.mxu2 %v158_v0  ;;  %508 = vmatpush.msrb.mxu3 %v173_v1  ;;  %v61_v0 = vld [vmem:[%s1689_s0 + $0x178] sm:$0xff]  ;;  %v62_v1 = vld [vmem:[%s1689_s0 + $0x180] sm:$0xff] }
  0x3b   :  { %284 = vmatmul.f32.gmra.mxu0 %v29_v2  ;;  %332 = vmatmul.f32.gmra.mxu3 %v109_v3  ;;  %v58_v2 = vld [vmem:[%s1689_s0 + $0x160] sm:$0xff]  ;;  %v60_v3 = vld [vmem:[%s1689_s0 + $0x170] sm:$0xff] }
  0x3c   :  { %428 = vmatpush.msrb.mxu2 %v157_v4  ;;  %509 = vmatpush.msrb.mxu3 %v172_v5  ;;  %v66_v4 = vld [vmem:[%s1689_s0 + $0x1a0] sm:$0xff]  ;;  %v67_v5 = vld [vmem:[%s1689_s0 + $0x1a8] sm:$0xff] }
  0x3d   :  { %350 = vmatpush.msrb.mxu1 %v139_v6  ;;  %594 = vmatpush.msrb.mxu0 %v183_v7  ;;  %v63_v6 = vld [vmem:[%s1689_s0 + $0x188] sm:$0xff] }
  0x3e   :  { %429 = vmatpush.msrb.mxu2 %v156_v8  ;;  %510 = vmatpush.msrb.mxu3 %v171_v9  ;;  %v65_v8 = vld [vmem:[%s1689_s0 + $0x198] sm:$0xff]  ;;  %v71_v9 = vld [vmem:[%s1689_s0 + $0x1c8] sm:$0xff] }
  0x3f   :  { %351 = vmatpush.msrb.mxu1 %v138_v10 }
  0x40   :  { %430 = vmatpush.msrb.mxu2 %v155_v11  ;;  %511 = vmatpush.msrb.mxu3 %v170_v12  ;;  %v72_v11 = vld [vmem:[%s1689_s0 + $0x1d0] sm:$0xff] }
  0x41   :  { %305 = vmatmul.f32.gmra.mxu1 %v64_v13  ;;  %320 = vmatmul.f32.gmra.mxu2 %v89_v14  ;;  %v68_v12 = vld [vmem:[%s1689_s0 + $0x1b0] sm:$0xff]  ;;  %v1399_v13 = vld [vmem:[%s1690_s2] ss:$0 sm:$0xff] }
  0x42   :  { %431 = vmatpush.msrb.mxu2 %v154_v15  ;;  %352 = vmatpush.msrb.mxu1 %v137_v16  ;;  %v70_v15 = vld [vmem:[%s1689_s0 + $0x1c0] sm:$0xff] }
  0x43   :  { %287 = vmatmul.f32.gmra.mxu0 %v34_v17  ;;  %335 = vmatmul.f32.gmra.mxu3 %v114_v18  ;;  %v76_v17 = vld [vmem:[%s1689_s0 + $0x1f0] sm:$0xff] }
  0x44   :  { %432 = vmatpush.msrb.mxu2 %v153_v19  ;;  %512 = vmatpush.msrb.mxu3 %v169_v20  ;;  %v77_v20 = vld [vmem:[%s1689_s0 + $0x1f8] sm:$0xff] }
  0x45   :  { %353 = vmatpush.msrb.mxu1 %v136_v21  ;;  %v73_v21 = vld [vmem:[%s1689_s0 + $0x1d8] sm:$0xff] }
  0x46   :  { %433 = vmatpush.msrb.mxu2 %v152_v22  ;;  %513 = vmatpush.msrb.mxu3 %v168_v23 }
  0x47   :  { %354 = vmatpush.msrb.mxu1 %v135_v24 }
  0x48   :  { %434 = vmatpush.msrb.mxu2 %v151_v25  ;;  %514 = vmatpush.msrb.mxu3 %v167_v26  ;;  %v75_v25 = vld [vmem:[%s1689_s0 + $0x1e8] sm:$0xff] }
  0x49   :  { %308 = vmatmul.f32.gmra.mxu1 %v69_v27  ;;  %435 = vmatmul.f32.vlgmr.msrb.gmra.mxu2 %v16_v28  ;;  %v81_v27 = vld [vmem:[%s1689_s0 + $0x218] sm:$0xff] }
  0x4b   :  { %290 = vmatmul.f32.gmra.mxu0 %v39_v29  ;;  %515 = vmatmul.f32.vlgmr.msrb.gmra.mxu3 %v17_v30  ;;  %v82_v30 = vld [vmem:[%s1689_s0 + $0x220] sm:$0xff] }
  0x51   :  { %355 = vmatmul.f32.vlgmr.msrb.gmra.mxu1 %v15_v31  ;;  %438 = vmatmul.f32.gmra.mxu2 %v21_v32  ;;  %v78_v31 = vld [vmem:[%s1689_s0 + $0x200] sm:$0xff] }
  0x53   :  { %518 = vmatmul.f32.gmra.mxu3 %v22_v33  ;;  %811 = vmatmul.msk.f32.vlgmr.msrb.gmra.mxu0 %vm195_vm0, %v18_v34 }
  0x59   :  { %358 = vmatmul.f32.gmra.mxu1 %v20_v35  ;;  %441 = vmatmul.f32.gmra.mxu2 %v26_v36  ;;  %v80_v35 = vld [vmem:[%s1689_s0 + $0x210] sm:$0xff] }
  0x5b   :  { %521 = vmatmul.f32.gmra.mxu3 %v27_v37  ;;  %812 = vmatmul.msk.f32.gmra.mxu0 %vm195_vm0, %v23_v38  ;;  %v86_v37 = vld [vmem:[%s1689_s0 + $0x240] sm:$0xff] }
  0x61   :  { %361 = vmatmul.f32.gmra.mxu1 %v25_v39  ;;  %444 = vmatmul.f32.gmra.mxu2 %v31_v40 }
  0x63   :  { %524 = vmatmul.f32.gmra.mxu3 %v32_v41  ;;  %813 = vmatmul.msk.f32.gmra.mxu0 %vm195_vm0, %v28_v42  ;;  %v87_v41 = vld [vmem:[%s1689_s0 + $0x248] sm:$0xff] }
  0x64   :  { %v83_v42 = vld [vmem:[%s1689_s0 + $0x228] sm:$0xff] }
  0x69   :  { %364 = vmatmul.f32.gmra.mxu1 %v30_v43  ;;  %447 = vmatmul.f32.gmra.mxu2 %v36_v44 }
  0x6b   :  { %527 = vmatmul.f32.gmra.mxu3 %v37_v45  ;;  %814 = vmatmul.msk.f32.gmra.mxu0 %vm195_vm0, %v33_v46  ;;  %v85_v46 = vld [vmem:[%s1689_s0 + $0x238] sm:$0xff] }
  0x71   :  { %367 = vmatmul.f32.gmra.mxu1 %v35_v47  ;;  %450 = vmatmul.f32.gmra.mxu2 %v41_v48  ;;  %v91_v48 = vld [vmem:[%s1689_s0 + $0x268] sm:$0xff] }
  0x73   :  { %530 = vmatmul.f32.gmra.mxu3 %v42_v49  ;;  %815 = vmatmul.msk.f32.gmra.mxu0 %vm195_vm0, %v38_v50 }
  0x79   :  { %370 = vmatmul.f32.gmra.mxu1 %v40_v51  ;;  %453 = vmatmul.f32.gmra.mxu2 %v46_v52  ;;  %v92_v52 = vld [vmem:[%s1689_s0 + $0x270] sm:$0xff] }
  0x7b   :  { %533 = vmatmul.f32.gmra.mxu3 %v47_v53  ;;  %816 = vmatmul.msk.f32.gmra.mxu0 %vm195_vm0, %v43_v54  ;;  %v88_v53 = vld [vmem:[%s1689_s0 + $0x250] sm:$0xff] }
  0x81   :  { %373 = vmatmul.f32.gmra.mxu1 %v45_v55  ;;  %456 = vmatmul.f32.gmra.mxu2 %v51_v56 }
  0x83   :  { %536 = vmatmul.f32.gmra.mxu3 %v52_v57  ;;  %817 = vmatmul.msk.f32.gmra.mxu0 %vm195_vm0, %v48_v58  ;;  %v90_v57 = vld [vmem:[%s1689_s0 + $0x260] sm:$0xff] }
  0x89   :  { %376 = vmatmul.f32.gmra.mxu1 %v50_v59  ;;  %459 = vmatmul.f32.gmra.mxu2 %v56_v60  ;;  %v96_v59 = vld [vmem:[%s1689_s0 + $0x290] sm:$0xff] }
  0x8b   :  { %539 = vmatmul.f32.gmra.mxu3 %v57_v61  ;;  %818 = vmatmul.msk.f32.gmra.mxu0 %vm195_vm0, %v53_v62 }
  0x91   :  { %379 = vmatmul.f32.gmra.mxu1 %v55_v63  ;;  %462 = vmatmul.f32.gmra.mxu2 %v61_v0  ;;  %v97_v63 = vld [vmem:[%s1689_s0 + $0x298] sm:$0xff] }
  0x92   :  { %v93_v0 = vld [vmem:[%s1689_s0 + $0x278] sm:$0xff] }
  0x93   :  { %542 = vmatmul.f32.gmra.mxu3 %v62_v1  ;;  %819 = vmatmul.msk.f32.gmra.mxu0 %vm195_vm0, %v58_v2 }
  0x99   :  { %382 = vmatmul.f32.gmra.mxu1 %v60_v3  ;;  %465 = vmatmul.f32.gmra.mxu2 %v66_v4  ;;  %v95_v4 = vld [vmem:[%s1689_s0 + $0x288] sm:$0xff] }
  0x9b   :  { %545 = vmatmul.f32.gmra.mxu3 %v67_v5  ;;  %820 = vmatmul.msk.f32.gmra.mxu0 %vm195_vm0, %v63_v6  ;;  %v101_v6 = vld [vmem:[%s1689_s0 + $0x2b8] sm:$0xff] }
  0x9e   :  { %v1379_v7 = vpop.f32.mrf.mxu1 }
  0x9f   :  { %v1387_v10 = vpop.f32.mrf.mxu0 }
  0xa0   :  { %v277_v2 = vadd.f32 %v1399_v13, %v1387_v10  ;;  %v98_v10 = vld [vmem:[%s1689_s0 + $0x2a0] sm:$0xff] }
  0xa1   :  { %385 = vmatmul.f32.gmra.mxu1 %v65_v8  ;;  %468 = vmatmul.f32.gmra.mxu2 %v71_v9 }
  0xa3   :  { %548 = vmatmul.f32.gmra.mxu3 %v72_v11  ;;  %821 = vmatmul.msk.f32.gmra.mxu0 %vm195_vm0, %v68_v12  ;;  %v102_v11 = vld [vmem:[%s1689_s0 + $0x2c0] sm:$0xff] }
  0xa6   :  { %v1401_v14 = vpop.f32.mrf.mxu1  ;;  %v324_v16 = vpop.f32.mrf.mxu3 }
  0xa7   :  { %v1410_v18 = vadd.f32 %v1399_v13, %v324_v16  ;;  %v1412_v19 = vpop.f32.mrf.mxu0 }
  0xa9   :  { %388 = vmatmul.f32.gmra.mxu1 %v70_v15  ;;  %471 = vmatmul.f32.gmra.mxu2 %v76_v17  ;;  %v280_v17 = vadd.f32 %v1399_v13, %v1412_v19  ;;  %v103_v19 = vld [vmem:[%s1689_s0 + $0x2c8] sm:$0xff] }
  0xaa   :  { %v312_v22 = vpop.f32.mrf.mxu2 }
  0xab   :  { %551 = vmatmul.f32.gmra.mxu3 %v77_v20  ;;  %822 = vmatmul.msk.f32.gmra.mxu0 %vm195_vm0, %v73_v21  ;;  %v1422_v23 = vadd.f32 %v1399_v13, %v312_v22  ;;  %v100_v22 = vld [vmem:[%s1689_s0 + $0x2b0] sm:$0xff] }
  0xae   :  { %v1424_v24 = vpop.f32.mrf.mxu1  ;;  %v327_v26 = vpop.f32.mrf.mxu3 }
  0xaf   :  { %v1433_v28 = vadd.f32 %v1399_v13, %v327_v26  ;;  %v106_v26 = vld [vmem:[%s1689_s0 + $0x2e0] sm:$0xff] }
  0xb0   :  { %v1435_v29 = vpop.f32.mrf.mxu0 }
  0xb1   :  { %391 = vmatmul.f32.gmra.mxu1 %v75_v25  ;;  %474 = vmatmul.f32.gmra.mxu2 %v81_v27 }
  0xb3   :  { %554 = vmatmul.f32.gmra.mxu3 %v82_v30  ;;  %823 = vmatmul.msk.f32.gmra.mxu0 %vm195_vm0, %v78_v31  ;;  %v315_v32 = vpop.f32.mrf.mxu2 }
  0xb4   :  { %v1445_v33 = vadd.f32 %v1399_v13, %v315_v32  ;;  %v107_v32 = vld [vmem:[%s1689_s0 + $0x2e8] sm:$0xff] }
  0xb6   :  { %v303_v34 = vpop.f32.mrf.mxu1  ;;  %v330_v36 = vpop.f32.mrf.mxu3 }
  0xb7   :  { %v1454_v38 = vadd.f32 %v1399_v13, %v303_v34  ;;  %v1457_v39 = vadd.f32 %v1399_v13, %v330_v36 }
  0xb8   :  { %v1459_v40 = vpop.f32.mrf.mxu0 }
  0xb9   :  { %394 = vmatmul.f32.gmra.mxu1 %v80_v35  ;;  %477 = vmatmul.f32.gmra.mxu2 %v86_v37 }
  0xbb   :  { %557 = vmatmul.f32.gmra.mxu3 %v87_v41  ;;  %824 = vmatmul.msk.f32.gmra.mxu0 %vm195_vm0, %v83_v42  ;;  %v283_v41 = vadd.f32 %v1399_v13, %v1435_v29  ;;  %v108_v29 = vld [vmem:[%s1689_s0 + $0x2f0] sm:$0xff] }
  0xbc   :  { %v318_v43 = vpop.f32.mrf.mxu2 }
  0xbd   :  { %v1469_v44 = vadd.f32 %v1399_v13, %v318_v43 }
  0xbe   :  { %v306_v45 = vpop.f32.mrf.mxu1  ;;  %v333_v47 = vpop.f32.mrf.mxu3 }
  0xbf   :  { %v1478_v49 = vadd.f32 %v1399_v13, %v306_v45  ;;  %v1481_v50 = vadd.f32 %v1399_v13, %v333_v47  ;;  %v105_v45 = vld [vmem:[%s1689_s0 + $0x2d8] sm:$0xff]  ;;  %v111_v47 = vld [vmem:[%s1689_s0 + $0x308] sm:$0xff] }
  0xc0   :  { %v1483_v51 = vpop.f32.mrf.mxu0 }
  0xc1   :  { %397 = vmatmul.f32.gmra.mxu1 %v85_v46  ;;  %480 = vmatmul.f32.gmra.mxu2 %v91_v48 }
  0xc3   :  { %560 = vmatmul.f32.gmra.mxu3 %v92_v52  ;;  %825 = vmatmul.msk.f32.gmra.mxu0 %vm195_vm0, %v88_v53 }
  0xc4   :  { %v321_v54 = vpop.f32.mrf.mxu2 }
  0xc5   :  { %v1493_v55 = vadd.f32 %v1399_v13, %v321_v54  ;;  %v112_v54 = vld [vmem:[%s1689_s0 + $0x310] sm:$0xff] }
  0xc6   :  { %v309_v56 = vpop.f32.mrf.mxu1  ;;  %v336_v58 = vpop.f32.mrf.mxu3 }
  0xc7   :  { %v1502_v60 = vadd.f32 %v1399_v13, %v309_v56  ;;  %v1505_v61 = vadd.f32 %v1399_v13, %v336_v58 }
  0xc8   :  { %v1507_v62 = vpop.f32.mrf.mxu0 }
  0xc9   :  { %400 = vmatmul.f32.gmra.mxu1 %v90_v57  ;;  %483 = vmatmul.f32.gmra.mxu2 %v96_v59 }
  0xcb   :  { %563 = vmatmul.f32.gmra.mxu3 %v97_v63  ;;  %826 = vmatmul.msk.f32.gmra.mxu0 %vm195_vm0, %v93_v0 }
  0xcc   :  { %v436_v1 = vpop.f32.mrf.mxu2 }
  0xce   :  { %v356_v3 = vpop.f32.mrf.mxu1  ;;  %v516_v5 = vpop.f32.mrf.mxu3 }
  0xcf   :  { %v357_v8 = vadd.f32 %v356_v3, %v277_v2  ;;  %v286_v2 = vadd.f32 %v1399_v13, %v1459_v40  ;;  %v117_v40 = vld [vmem:[%s1689_s0 + $0x338] sm:$0x3] }
  0xd0   :  { %v596_v9 = vpop.f32.mrf.mxu0 }
  0xd1   :  { %v437_v12 = vadd.f32 %v436_v1, %v357_v8  ;;  %403 = vmatmul.f32.gmra.mxu1 %v95_v4  ;;  %486 = vmatmul.f32.gmra.mxu2 %v101_v6  ;;  %v116_v8 = vld [vmem:[%s1689_s0 + $0x330] sm:$0x3] }
  0xd3   :  { %v517_v15 = vadd.f32 %v516_v5, %v437_v12  ;;  %566 = vmatmul.f32.gmra.mxu3 %v102_v11  ;;  %827 = vmatmul.msk.f32.gmra.mxu0 %vm195_vm0, %v98_v10  ;;  %v110_v5 = vld [vmem:[%s1689_s0 + $0x300] sm:$0xff]  ;;  %v113_v12 = vld [vmem:[%s1689_s0 + $0x318] sm:$0xff] }
  0xd4   :  { %v439_v16 = vpop.f32.mrf.mxu2 }
  0xd5   :  { %v597_v20 = vadd.f32 %v596_v9, %v517_v15 }
  0xd6   :  { %v359_v21 = vpop.f32.mrf.mxu1  ;;  %v519_v25 = vpop.f32.mrf.mxu3 }
  0xd7   :  { %v680_v27 = vmin.f32 %v597_v20, 0.0  ;;  %v360_v30 = vadd.f32 %v359_v21, %v280_v17  ;;  %vm659_vm1 = vcmp.gt.f32.partialorder %v597_v20, 0.0 }
  0xd8   :  { %v599_v31 = vpop.f32.mrf.mxu0 }
  0xd9   :  { %v701_v34 = vmul.f32 1.442695, %v680_v27  ;;  %v440_v35 = vadd.f32 %v439_v16, %v360_v30  ;;  %406 = vmatmul.f32.gmra.mxu1 %v100_v22  ;;  %489 = vmatmul.f32.gmra.mxu2 %v106_v26  ;;  %v289_v26 = vadd.f32 %v1399_v13, %v1483_v51 }
  0xdb   :  { %902 = vpow2.f32 %v701_v34  ;;  %v520_v36 = vadd.f32 %v519_v25, %v440_v35  ;;  %569 = vmatmul.f32.gmra.mxu3 %v107_v32  ;;  %828 = vmatmul.msk.f32.gmra.mxu0 %vm195_vm0, %v103_v19 }
  0xdc   :  { %v442_v37 = vpop.f32.mrf.mxu2 }
  0xdd   :  { %v600_v42 = vadd.f32 %v599_v31, %v520_v36  ;;  %v115_v31 = vld [vmem:[%s1689_s0 + $0x328] sm:$0x3]  ;;  %v118_v36 = vld [vmem:[%s1689_s0 + $0x340] sm:$0x3] }
  0xde   :  { %v362_v43 = vpop.f32.mrf.mxu1  ;;  %v522_v46 = vpop.f32.mrf.mxu3 }
  0xdf   :  { %v681_v48 = vmin.f32 %v600_v42, 0.0  ;;  %v363_v52 = vadd.f32 %v362_v43, %v283_v41  ;;  %vm660_vm2 = vcmp.gt.f32.partialorder %v600_v42, 0.0 }
  0xe0   :  { %v602_v53 = vpop.f32.mrf.mxu0 }
  0xe1   :  { %v903_v56 = vpop.eup %902  ;;  %v703_v57 = vmul.f32 1.442695, %v681_v48  ;;  %v443_v58 = vadd.f32 %v442_v37, %v363_v52  ;;  %409 = vmatmul.f32.gmra.mxu1 %v105_v45  ;;  %492 = vmatmul.f32.gmra.mxu2 %v111_v47  ;;  %v292_v47 = vadd.f32 %v1399_v13, %v1507_v62 }
  0xe2   :  { %v832_v59 = vadd.f32 -1.0, %v903_v56 }
  0xe3   :  { %904 = vpow2.f32 %v703_v57  ;;  %v523_v63 = vadd.f32 %v522_v46, %v443_v58  ;;  %572 = vmatmul.f32.gmra.mxu3 %v112_v54  ;;  %829 = vmatmul.msk.f32.gmra.mxu0 %vm195_vm0, %v108_v29 }
  0xe4   :  { %v764_v0 = vsel %vm659_vm1, %v597_v20, %v832_v59  ;;  %v445_v1 = vpop.f32.mrf.mxu2 }
  0xe5   :  { %785 = vst.msk [vmem:[%s1691_s3] sm:$0xff] %vm195_vm0, %v764_v0  ;;  %v603_v3 = vadd.f32 %v602_v53, %v523_v63 }
  0xe6   :  { %v365_v4 = vpop.f32.mrf.mxu1  ;;  %v525_v6 = vpop.f32.mrf.mxu3 }
  0xe7   :  { %v682_v9 = vmin.f32 %v603_v3, 0.0  ;;  %v366_v11 = vadd.f32 %v365_v4, %v286_v2  ;;  %vm661_vm3 = vcmp.gt.f32.partialorder %v603_v3, 0.0  ;;  %v295_v2 = vadd.f32 %v1399_v13, %v1379_v7 }
  0xe8   :  { %v605_v10 = vpop.f32.mrf.mxu0 }
  0xe9   :  { %v905_v15 = vpop.eup %904  ;;  %v705_v16 = vmul.f32 1.442695, %v682_v9  ;;  %v446_v17 = vadd.f32 %v445_v1, %v366_v11  ;;  %412 = vmatmul.f32.gmra.mxu1 %v110_v5  ;;  %495 = vmatmul.f32.gmra.mxu2 %v116_v8 }
  0xea   :  { %v833_v20 = vadd.f32 -1.0, %v905_v15 }
  0xeb   :  { %906 = vpow2.f32 %v705_v16  ;;  %v526_v21 = vadd.f32 %v525_v6, %v446_v17  ;;  %575 = vmatmul.f32.gmra.mxu3 %v117_v40  ;;  %830 = vmatmul.msk.f32.gmra.mxu0 %vm195_vm0, %v113_v12  ;;  %v298_v17 = vadd.f32 %v1399_v13, %v1401_v14 }
  0xec   :  { %v765_v22 = vsel %vm660_vm2, %v600_v42, %v833_v20  ;;  %v448_v25 = vpop.f32.mrf.mxu2 }
  0xed   :  { %786 = vst.msk [vmem:[%s1691_s3 + $0x8] sm:$0xff] %vm195_vm0, %v765_v22  ;;  %v606_v27 = vadd.f32 %v605_v10, %v526_v21 }
  0xee   :  { %v368_v30 = vpop.f32.mrf.mxu1  ;;  %v528_v32 = vpop.f32.mrf.mxu3 }
  0xef   :  { %v683_v19 = vmin.f32 %v606_v27, 0.0  ;;  %v369_v34 = vadd.f32 %v368_v30, %v289_v26  ;;  %vm662_vm4 = vcmp.gt.f32.partialorder %v606_v27, 0.0 }
  0xf0   :  { %v608_v35 = vpop.f32.mrf.mxu0 }
  0xf1   :  { %v907_v51 = vpop.eup %906  ;;  %v707_v37 = vmul.f32 1.442695, %v683_v19  ;;  %v449_v41 = vadd.f32 %v448_v25, %v369_v34  ;;  %415 = vmatmul.f32.gmra.mxu1 %v115_v31 }
  0xf2   :  { %v834_v42 = vadd.f32 -1.0, %v907_v51 }
  0xf3   :  { %908 = vpow2.f32 %v707_v37  ;;  %v529_v43 = vadd.f32 %v528_v32, %v449_v41  ;;  %831 = vmatmul.msk.f32.gmra.mxu0 %vm195_vm0, %v118_v36  ;;  %v301_v36 = vadd.f32 %v1399_v13, %v1424_v24 }
  0xf4   :  { %v766_v45 = vsel %vm661_vm3, %v603_v3, %v834_v42  ;;  %v451_v46 = vpop.f32.mrf.mxu2 }
  0xf5   :  { %787 = vst.msk [vmem:[%s1691_s3 + $0x10] sm:$0xff] %vm195_vm0, %v766_v45  ;;  %v609_v48 = vadd.f32 %v608_v35, %v529_v43 }
  0xf6   :  { %v371_v52 = vpop.f32.mrf.mxu1  ;;  %v531_v53 = vpop.f32.mrf.mxu3 }
  0xf7   :  { %v684_v54 = vmin.f32 %v609_v48, 0.0  ;;  %v372_v29 = vadd.f32 %v371_v52, %v292_v47  ;;  %vm663_vm5 = vcmp.gt.f32.partialorder %v609_v48, 0.0 }
  0xf8   :  { %v611_v56 = vpop.f32.mrf.mxu0 }
  0xf9   :  { %v909_v57 = vpop.eup %908  ;;  %v709_v58 = vmul.f32 1.442695, %v684_v54  ;;  %v452_v59 = vadd.f32 %v451_v46, %v372_v29 }
  0xfa   :  { %v835_v63 = vadd.f32 -1.0, %v909_v57 }
  0xfb   :  { %910 = vpow2.f32 %v709_v58  ;;  %v532_v0 = vadd.f32 %v531_v53, %v452_v59 }
  0xfc   :  { %v767_v1 = vsel %vm662_vm4, %v606_v27, %v835_v63  ;;  %v454_v62 = vpop.f32.mrf.mxu2 }
  0xfd   :  { %788 = vst.msk [vmem:[%s1691_s3 + $0x18] sm:$0xff] %vm195_vm0, %v767_v1  ;;  %v612_v3 = vadd.f32 %v611_v56, %v532_v0 }
  0xfe   :  { %v374_v4 = vpop.f32.mrf.mxu1  ;;  %v534_v5 = vpop.f32.mrf.mxu3 }
  0xff   :  { %v685_v6 = vmin.f32 %v612_v3, 0.0  ;;  %v375_v8 = vadd.f32 %v374_v4, %v295_v2  ;;  %vm664_vm6 = vcmp.gt.f32.partialorder %v612_v3, 0.0 }
 0x100   :  { %v614_v9 = vpop.f32.mrf.mxu0 }
 0x101   :  { %v911_v11 = vpop.eup %910  ;;  %v711_v10 = vmul.f32 1.442695, %v685_v6  ;;  %v455_v40 = vadd.f32 %v454_v62, %v375_v8 }
 0x102   :  { %v836_v12 = vadd.f32 -1.0, %v911_v11 }
 0x103   :  { %912 = vpow2.f32 %v711_v10  ;;  %v535_v15 = vadd.f32 %v534_v5, %v455_v40 }
 0x104   :  { %v768_v16 = vsel %vm663_vm5, %v609_v48, %v836_v12  ;;  %v457_v7 = vpop.f32.mrf.mxu2 }
 0x105   :  { %789 = vst.msk [vmem:[%s1691_s3 + $0x20] sm:$0xff] %vm195_vm0, %v768_v16  ;;  %v615_v20 = vadd.f32 %v614_v9, %v535_v15 }
 0x106   :  { %v377_v21 = vpop.f32.mrf.mxu1  ;;  %v537_v22 = vpop.f32.mrf.mxu3 }
 0x107   :  { %v686_v25 = vmin.f32 %v615_v20, 0.0  ;;  %v378_v26 = vadd.f32 %v377_v21, %v298_v17  ;;  %vm665_vm7 = vcmp.gt.f32.partialorder %v615_v20, 0.0 }
 0x108   :  { %v617_v27 = vpop.f32.mrf.mxu0 }
 0x109   :  { %v913_v30 = vpop.eup %912  ;;  %v713_v31 = vmul.f32 1.442695, %v686_v25  ;;  %v458_v32 = vadd.f32 %v457_v7, %v378_v26 }
 0x10a   :  { %v837_v19 = vadd.f32 -1.0, %v913_v30 }
 0x10b   :  { %914 = vpow2.f32 %v713_v31  ;;  %v538_v34 = vadd.f32 %v537_v22, %v458_v32 }
 0x10c   :  { %v769_v35 = vsel %vm664_vm6, %v612_v3, %v837_v19  ;;  %v460_v14 = vpop.f32.mrf.mxu2  ;;  %vm805_vm6 = vcmask 517120  }
 0x10d   :  { %790 = vst.msk [vmem:[%s1691_s3 + $0x28] sm:$0xff] %vm195_vm0, %v769_v35  ;;  %v618_v51 = vadd.f32 %v617_v27, %v538_v34 }
 0x10e   :  { %v380_v37 = vpop.f32.mrf.mxu1  ;;  %v540_v41 = vpop.f32.mrf.mxu3 }
 0x10f   :  { %v687_v42 = vmin.f32 %v618_v51, 0.0  ;;  %v381_v43 = vadd.f32 %v380_v37, %v301_v36  ;;  %vm666_vm8 = vcmp.gt.f32.partialorder %v618_v51, 0.0 }
 0x110   :  { %v620_v45 = vpop.f32.mrf.mxu0 }
 0x111   :  { %v915_v46 = vpop.eup %914  ;;  %v715_v47 = vmul.f32 1.442695, %v687_v42  ;;  %v461_v48 = vadd.f32 %v460_v14, %v381_v43 }
 0x112   :  { %v838_v52 = vadd.f32 -1.0, %v915_v46 }
 0x113   :  { %916 = vpow2.f32 %v715_v47  ;;  %v541_v53 = vadd.f32 %v540_v41, %v461_v48 }
 0x114   :  { %v770_v54 = vsel %vm665_vm7, %v615_v20, %v838_v52  ;;  %v463_v13 = vpop.f32.mrf.mxu2 }
 0x115   :  { %791 = vst.msk [vmem:[%s1691_s3 + $0x30] sm:$0xff] %vm195_vm0, %v770_v54  ;;  %v621_v24 = vadd.f32 %v620_v45, %v541_v53 }
 0x116   :  { %v383_v29 = vpop.f32.mrf.mxu1  ;;  %v543_v56 = vpop.f32.mrf.mxu3 }
 0x117   :  { %v688_v57 = vmin.f32 %v621_v24, 0.0  ;;  %v384_v58 = vadd.f32 %v383_v29, %v1454_v38  ;;  %vm667_vm9 = vcmp.gt.f32.partialorder %v621_v24, 0.0 }
 0x118   :  { %v623_v59 = vpop.f32.mrf.mxu0 }
 0x119   :  { %v917_v63 = vpop.eup %916  ;;  %v717_v0 = vmul.f32 1.442695, %v688_v57  ;;  %v464_v1 = vadd.f32 %v463_v13, %v384_v58 }
 0x11a   :  { %v839_v62 = vadd.f32 -1.0, %v917_v63 }
 0x11b   :  { %918 = vpow2.f32 %v717_v0  ;;  %v544_v2 = vadd.f32 %v543_v56, %v464_v1 }
 0x11c   :  { %v771_v3 = vsel %vm666_vm8, %v618_v51, %v839_v62  ;;  %v466_v4 = vpop.f32.mrf.mxu2 }
 0x11d   :  { %792 = vst.msk [vmem:[%s1691_s3 + $0x38] sm:$0xff] %vm195_vm0, %v771_v3  ;;  %v624_v5 = vadd.f32 %v623_v59, %v544_v2 }
 0x11e   :  { %v386_v6 = vpop.f32.mrf.mxu1  ;;  %v546_v8 = vpop.f32.mrf.mxu3 }
 0x11f   :  { %v689_v9 = vmin.f32 %v624_v5, 0.0  ;;  %v387_v38 = vadd.f32 %v386_v6, %v1478_v49  ;;  %vm668_vm10 = vcmp.gt.f32.partialorder %v624_v5, 0.0 }
 0x120   :  { %v626_v11 = vpop.f32.mrf.mxu0 }
 0x121   :  { %v919_v10 = vpop.eup %918  ;;  %v719_v40 = vmul.f32 1.442695, %v689_v9  ;;  %v467_v12 = vadd.f32 %v466_v4, %v387_v38 }
 0x122   :  { %v840_v15 = vadd.f32 -1.0, %v919_v10 }
 0x123   :  { %920 = vpow2.f32 %v719_v40  ;;  %v547_v16 = vadd.f32 %v546_v8, %v467_v12 }
 0x124   :  { %v772_v7 = vsel %vm667_vm9, %v621_v24, %v840_v15  ;;  %v469_v17 = vpop.f32.mrf.mxu2 }
 0x125   :  { %793 = vst.msk [vmem:[%s1691_s3 + $0x40] sm:$0xff] %vm195_vm0, %v772_v7  ;;  %v627_v20 = vadd.f32 %v626_v11, %v547_v16 }
 0x126   :  { %v389_v21 = vpop.f32.mrf.mxu1  ;;  %v549_v22 = vpop.f32.mrf.mxu3 }
 0x127   :  { %v690_v25 = vmin.f32 %v627_v20, 0.0  ;;  %v390_v49 = vadd.f32 %v389_v21, %v1502_v60  ;;  %vm669_vm11 = vcmp.gt.f32.partialorder %v627_v20, 0.0 }
 0x128   :  { %v629_v26 = vpop.f32.mrf.mxu0 }
 0x129   :  { %v921_v27 = vpop.eup %920  ;;  %v721_v30 = vmul.f32 1.442695, %v690_v25  ;;  %v470_v31 = vadd.f32 %v469_v17, %v390_v49 }
 0x12a   :  { %v841_v32 = vadd.f32 -1.0, %v921_v27 }
 0x12b   :  { %922 = vpow2.f32 %v721_v30  ;;  %v550_v19 = vadd.f32 %v549_v22, %v470_v31 }
 0x12c   :  { %v773_v34 = vsel %vm668_vm10, %v624_v5, %v841_v32  ;;  %v472_v35 = vpop.f32.mrf.mxu2 }
 0x12d   :  { %794 = vst.msk [vmem:[%s1691_s3 + $0x48] sm:$0xff] %vm195_vm0, %v773_v34  ;;  %v630_v14 = vadd.f32 %v629_v26, %v550_v19 }
 0x12e   :  { %v392_v36 = vpop.f32.mrf.mxu1  ;;  %v552_v51 = vpop.f32.mrf.mxu3 }
 0x12f   :  { %v691_v37 = vmin.f32 %v630_v14, 0.0  ;;  %v393_v60 = vadd.f32 %v392_v36, %v1422_v23  ;;  %vm670_vm12 = vcmp.gt.f32.partialorder %v630_v14, 0.0 }
 0x130   :  { %v632_v41 = vpop.f32.mrf.mxu0 }
 0x131   :  { %v923_v42 = vpop.eup %922  ;;  %v723_v43 = vmul.f32 1.442695, %v691_v37  ;;  %v473_v45 = vadd.f32 %v472_v35, %v393_v60 }
 0x132   :  { %v842_v46 = vadd.f32 -1.0, %v923_v42 }
 0x133   :  { %924 = vpow2.f32 %v723_v43  ;;  %v553_v47 = vadd.f32 %v552_v51, %v473_v45 }
 0x134   :  { %v774_v48 = vsel %vm669_vm11, %v627_v20, %v842_v46  ;;  %v475_v52 = vpop.f32.mrf.mxu2 }
 0x135   :  { %795 = vst.msk [vmem:[%s1691_s3 + $0x50] sm:$0xff] %vm195_vm0, %v774_v48  ;;  %v633_v53 = vadd.f32 %v632_v41, %v553_v47 }
 0x136   :  { %v395_v54 = vpop.f32.mrf.mxu1  ;;  %v555_v13 = vpop.f32.mrf.mxu3 }
 0x137   :  { %v692_v24 = vmin.f32 %v633_v53, 0.0  ;;  %v396_v23 = vadd.f32 %v395_v54, %v1445_v33  ;;  %vm671_vm13 = vcmp.gt.f32.partialorder %v633_v53, 0.0 }
 0x138   :  { %v635_v29 = vpop.f32.mrf.mxu0 }
 0x139   :  { %v925_v56 = vpop.eup %924  ;;  %v725_v57 = vmul.f32 1.442695, %v692_v24  ;;  %v476_v58 = vadd.f32 %v475_v52, %v396_v23 }
 0x13a   :  { %v843_v59 = vadd.f32 -1.0, %v925_v56 }
 0x13b   :  { %926 = vpow2.f32 %v725_v57  ;;  %v556_v63 = vadd.f32 %v555_v13, %v476_v58 }
 0x13c   :  { %v775_v0 = vsel %vm670_vm12, %v630_v14, %v843_v59  ;;  %v478_v1 = vpop.f32.mrf.mxu2 }
 0x13d   :  { %796 = vst.msk [vmem:[%s1691_s3 + $0x58] sm:$0xff] %vm195_vm0, %v775_v0  ;;  %v636_v62 = vadd.f32 %v635_v29, %v556_v63 }
 0x13e   :  { %v398_v2 = vpop.f32.mrf.mxu1  ;;  %v558_v3 = vpop.f32.mrf.mxu3 }
 0x13f   :  { %v693_v4 = vmin.f32 %v636_v62, 0.0  ;;  %v399_v33 = vadd.f32 %v398_v2, %v1469_v44  ;;  %vm672_vm14 = vcmp.gt.f32.partialorder %v636_v62, 0.0 }
 0x140   :  { %v638_v5 = vpop.f32.mrf.mxu0 }
 0x141   :  { %v927_v6 = vpop.eup %926  ;;  %v727_v8 = vmul.f32 1.442695, %v693_v4  ;;  %v479_v9 = vadd.f32 %v478_v1, %v399_v33 }
 0x142   :  { %v844_v38 = vadd.f32 -1.0, %v927_v6 }
 0x143   :  { %928 = vpow2.f32 %v727_v8  ;;  %v559_v11 = vadd.f32 %v558_v3, %v479_v9 }
 0x144   :  { %v776_v10 = vsel %vm671_vm13, %v633_v53, %v844_v38  ;;  %v481_v40 = vpop.f32.mrf.mxu2 }
 0x145   :  { %797 = vst.msk [vmem:[%s1691_s3 + $0x60] sm:$0xff] %vm195_vm0, %v776_v10  ;;  %v639_v12 = vadd.f32 %v638_v5, %v559_v11 }
 0x146   :  { %v401_v15 = vpop.f32.mrf.mxu1  ;;  %v561_v16 = vpop.f32.mrf.mxu3 }
 0x147   :  { %v694_v7 = vmin.f32 %v639_v12, 0.0  ;;  %v402_v44 = vadd.f32 %v401_v15, %v1493_v55  ;;  %vm673_vm15 = vcmp.gt.f32.partialorder %v639_v12, 0.0 }
 0x148   :  { %v641_v17 = vpop.f32.mrf.mxu0 }
 0x149   :  { %v929_v20 = vpop.eup %928  ;;  %v729_v21 = vmul.f32 1.442695, %v694_v7  ;;  %v482_v22 = vadd.f32 %v481_v40, %v402_v44 }
 0x14a   :  { %v845_v25 = vadd.f32 -1.0, %v929_v20 }
 0x14b   :  { %930 = vpow2.f32 %v729_v21  ;;  %v562_v49 = vadd.f32 %v561_v16, %v482_v22 }
 0x14c   :  { %v777_v26 = vsel %vm672_vm14, %v636_v62, %v845_v25  ;;  %v484_v27 = vpop.f32.mrf.mxu2 }
 0x14d   :  { %798 = vst.msk [vmem:[%s1691_s3 + $0x68] sm:$0xff] %vm195_vm0, %v777_v26  ;;  %v642_v30 = vadd.f32 %v641_v17, %v562_v49 }
 0x14e   :  { %v404_v31 = vpop.f32.mrf.mxu1  ;;  %v564_v32 = vpop.f32.mrf.mxu3 }
 0x14f   :  { %v695_v19 = vmin.f32 %v642_v30, 0.0  ;;  %v405_v55 = vadd.f32 %v404_v31, %v1410_v18  ;;  %vm674_vm1 = vcmp.gt.f32.partialorder %v642_v30, 0.0 }
 0x150   :  { %v644_v34 = vpop.f32.mrf.mxu0 }
 0x151   :  { %v931_v35 = vpop.eup %930  ;;  %v731_v14 = vmul.f32 1.442695, %v695_v19  ;;  %v485_v36 = vadd.f32 %v484_v27, %v405_v55 }
 0x152   :  { %v846_v51 = vadd.f32 -1.0, %v931_v35 }
 0x153   :  { %932 = vpow2.f32 %v731_v14  ;;  %v565_v37 = vadd.f32 %v564_v32, %v485_v36 }
 0x154   :  { %v778_v60 = vsel %vm673_vm15, %v639_v12, %v846_v51  ;;  %v487_v41 = vpop.f32.mrf.mxu2 }
 0x155   :  { %799 = vst.msk [vmem:[%s1691_s3 + $0x70] sm:$0xff] %vm195_vm0, %v778_v60  ;;  %v645_v42 = vadd.f32 %v644_v34, %v565_v37 }
 0x156   :  { %v407_v43 = vpop.f32.mrf.mxu1  ;;  %v567_v45 = vpop.f32.mrf.mxu3 }
 0x157   :  { %v696_v46 = vmin.f32 %v645_v42, 0.0  ;;  %v408_v18 = vadd.f32 %v407_v43, %v1433_v28  ;;  %vm675_vm2 = vcmp.gt.f32.partialorder %v645_v42, 0.0 }
 0x158   :  { %v647_v47 = vpop.f32.mrf.mxu0 }
 0x159   :  { %v933_v48 = vpop.eup %932  ;;  %v733_v52 = vmul.f32 1.442695, %v696_v46  ;;  %v488_v53 = vadd.f32 %v487_v41, %v408_v18 }
 0x15a   :  { %v847_v54 = vadd.f32 -1.0, %v933_v48 }
 0x15b   :  { %934 = vpow2.f32 %v733_v52  ;;  %v568_v13 = vadd.f32 %v567_v45, %v488_v53 }
 0x15c   :  { %v779_v24 = vsel %vm674_vm1, %v642_v30, %v847_v54  ;;  %v490_v23 = vpop.f32.mrf.mxu2 }
 0x15d   :  { %800 = vst.msk [vmem:[%s1691_s3 + $0x78] sm:$0xff] %vm195_vm0, %v779_v24  ;;  %v648_v29 = vadd.f32 %v647_v47, %v568_v13 }
 0x15e   :  { %v410_v56 = vpop.f32.mrf.mxu1  ;;  %v570_v57 = vpop.f32.mrf.mxu3 }
 0x15f   :  { %v697_v58 = vmin.f32 %v648_v29, 0.0  ;;  %v411_v28 = vadd.f32 %v410_v56, %v1457_v39  ;;  %vm676_vm3 = vcmp.gt.f32.partialorder %v648_v29, 0.0 }
 0x160   :  { %v650_v59 = vpop.f32.mrf.mxu0 }
 0x161   :  { %v935_v63 = vpop.eup %934  ;;  %v735_v0 = vmul.f32 1.442695, %v697_v58  ;;  %v491_v1 = vadd.f32 %v490_v23, %v411_v28 }
 0x162   :  { %v848_v62 = vadd.f32 -1.0, %v935_v63 }
 0x163   :  { %936 = vpow2.f32 %v735_v0  ;;  %v571_v2 = vadd.f32 %v570_v57, %v491_v1 }
 0x164   :  { %v780_v3 = vsel %vm675_vm2, %v645_v42, %v848_v62  ;;  %v493_v4 = vpop.f32.mrf.mxu2 }
 0x165   :  { %801 = vst.msk [vmem:[%s1691_s3 + $0x80] sm:$0xff] %vm195_vm0, %v780_v3  ;;  %v651_v33 = vadd.f32 %v650_v59, %v571_v2 }
 0x166   :  { %v413_v5 = vpop.f32.mrf.mxu1  ;;  %v573_v6 = vpop.f32.mrf.mxu3 }
 0x167   :  { %v698_v8 = vmin.f32 %v651_v33, 0.0  ;;  %v414_v39 = vadd.f32 %v413_v5, %v1481_v50  ;;  %vm677_vm4 = vcmp.gt.f32.partialorder %v651_v33, 0.0 }
 0x168   :  { %v653_v9 = vpop.f32.mrf.mxu0 }
 0x169   :  { %v937_v38 = vpop.eup %936  ;;  %v737_v11 = vmul.f32 1.442695, %v698_v8  ;;  %v494_v10 = vadd.f32 %v493_v4, %v414_v39 }
 0x16a   :  { %v849_v40 = vadd.f32 -1.0, %v937_v38 }
 0x16b   :  { %938 = vpow2.f32 %v737_v11  ;;  %v574_v12 = vadd.f32 %v573_v6, %v494_v10 }
 0x16c   :  { %v781_v15 = vsel %vm676_vm3, %v648_v29, %v849_v40  ;;  %v496_v44 = vpop.f32.mrf.mxu2 }
 0x16d   :  { %802 = vst.msk [vmem:[%s1691_s3 + $0x88] sm:$0xff] %vm195_vm0, %v781_v15  ;;  %v654_v16 = vadd.f32 %v653_v9, %v574_v12 }
 0x16e   :  { %v416_v7 = vpop.f32.mrf.mxu1  ;;  %v576_v20 = vpop.f32.mrf.mxu3 }
 0x16f   :  { %v699_v17 = vmin.f32 %v654_v16, 0.0  ;;  %v417_v50 = vadd.f32 %v416_v7, %v1505_v61  ;;  %vm678_vm5 = vcmp.gt.f32.partialorder %v654_v16, 0.0 }
 0x170   :  { %v656_v26 = vpop.f32.mrf.mxu0 }
 0x171   :  { %v939_v21 = vpop.eup %938  ;;  %v739_v22 = vmul.f32 1.442695, %v699_v17  ;;  %v497_v25 = vadd.f32 %v496_v44, %v417_v50 }
 0x172   :  { %v850_v49 = vadd.f32 -1.0, %v939_v21 }
 0x173   :  { %940 = vpow2.f32 %v739_v22  ;;  %v577_v27 = vadd.f32 %v576_v20, %v497_v25 }
 0x174   :  { %v782_v30 = vsel %vm677_vm4, %v651_v33, %v850_v49 }
 0x175   :  { %803 = vst.msk [vmem:[%s1691_s3 + $0x90] sm:$0xff] %vm195_vm0, %v782_v30  ;;  %v657_v31 = vadd.f32 %v656_v26, %v577_v27 }
 0x177   :  { %v700_v32 = vmin.f32 %v657_v31, 0.0  ;;  %vm679_vm7 = vcmp.gt.f32.partialorder %v657_v31, 0.0 }
 0x179   :  { %v941_v19 = vpop.eup %940  ;;  %v741_v55 = vmul.f32 1.442695, %v700_v32 }
 0x17a   :  { %v851_v61 = vadd.f32 -1.0, %v941_v19 }
 0x17b   :  { %942 = vpow2.f32 %v741_v55 }
 0x17c   :  { %v783_v34 = vsel %vm678_vm5, %v654_v16, %v851_v61 }
 0x17d   :  { %804 = vst.msk [vmem:[%s1691_s3 + $0x98] sm:$0xff] %vm195_vm0, %v783_v34 }
 0x181   :  { %v943_v35 = vpop.eup %942 }
 0x182   :  { %v852_v14 = vadd.f32 -1.0, %v943_v35 }
 0x184   :  { %v784_v36 = vsel %vm679_vm7, %v657_v31, %v852_v14 }
 0x185   :  { %806 = vst.msk [vmem:[%s1691_s3 + $0xa0] sm:$0x3] %vm805_vm6, %v784_v36 }

// kernel: _lambda_.7
= control target key start
LH: loop header
LB: loop body
LE: loop exit
PB: predicated region body
PF: predicated region fallthrough
CT: control target
= control target key end

     0   :  { %vm125_vm0 = vcmask 523264   ;;  %vm385_vm7 = vcmask 517120   ;;  %s845_s1 = inlined_call_operand.vmem [shape: f32[576,64], index: 1, kind: input, shape index: {}]   ;;  %s846_s2 = inlined_call_operand.vmem [shape: f32[1,64], index: 2, kind: input, shape index: {}]   ;;  %s847_s0 = inlined_call_operand.vmem [shape: f32[50,576], index: 0, kind: input, shape index: {}]   ;;  %s848_s3 = inlined_call_operand.vmem [shape: f32[50,64], index: 3, kind: output, shape index: {}]  }
   0x1   :  { %v64_v0 = vld [vmem:[%s845_s1 + $0x78] sm:$0xff]  ;;  %v63_v1 = vld [vmem:[%s845_s1 + $0x70] sm:$0xff]  ;;  %v62_v2 = vld [vmem:[%s845_s1 + $0x68] sm:$0xff] }
   0x2   :  { %405 = vmatpush.msra.mxu1 %v64_v0  ;;  %406 = vmatpush.msra.mxu2 %v64_v0  ;;  %v61_v3 = vld [vmem:[%s845_s1 + $0x60] sm:$0xff]  ;;  %v60_v4 = vld [vmem:[%s845_s1 + $0x58] sm:$0xff]  ;;  %v111_v6 = vld [vmem:[%s845_s1 + $0x1f0] sm:$0xff] }
   0x3   :  { %147 = vmatpush.msra.mxu0 %v64_v0  ;;  %v112_v5 = vld [vmem:[%s845_s1 + $0x1f8] sm:$0xff]  ;;  %v59_v7 = vld [vmem:[%s845_s1 + $0x50] sm:$0xff]  ;;  %v110_v8 = vld [vmem:[%s845_s1 + $0x1e8] sm:$0xff] }
   0x4   :  { %407 = vmatpush.msra.mxu1 %v63_v1  ;;  %408 = vmatpush.msra.mxu2 %v63_v1  ;;  %v58_v9 = vld [vmem:[%s845_s1 + $0x48] sm:$0xff]  ;;  %v109_v10 = vld [vmem:[%s845_s1 + $0x1e0] sm:$0xff]  ;;  %v108_v12 = vld [vmem:[%s845_s1 + $0x1d8] sm:$0xff] }
   0x5   :  { %148 = vmatpush.msra.mxu0 %v63_v1  ;;  %261 = vmatpush.msra.mxu3 %v112_v5  ;;  %v57_v11 = vld [vmem:[%s845_s1 + $0x40] sm:$0xff]  ;;  %v56_v13 = vld [vmem:[%s845_s1 + $0x38] sm:$0xff]  ;;  %v107_v14 = vld [vmem:[%s845_s1 + $0x1d0] sm:$0xff] }
   0x6   :  { %409 = vmatpush.msra.mxu1 %v62_v2  ;;  %410 = vmatpush.msra.mxu2 %v62_v2  ;;  %v55_v15 = vld [vmem:[%s845_s1 + $0x30] sm:$0xff]  ;;  %v106_v16 = vld [vmem:[%s845_s1 + $0x1c8] sm:$0xff]  ;;  %v105_v18 = vld [vmem:[%s845_s1 + $0x1c0] sm:$0xff] }
   0x7   :  { %149 = vmatpush.msra.mxu0 %v62_v2  ;;  %262 = vmatpush.msra.mxu3 %v111_v6  ;;  %v54_v17 = vld [vmem:[%s845_s1 + $0x28] sm:$0xff]  ;;  %v53_v19 = vld [vmem:[%s845_s1 + $0x20] sm:$0xff]  ;;  %v104_v20 = vld [vmem:[%s845_s1 + $0x1b8] sm:$0xff] }
   0x8   :  { %411 = vmatpush.msra.mxu1 %v61_v3  ;;  %412 = vmatpush.msra.mxu2 %v61_v3  ;;  %v52_v21 = vld [vmem:[%s845_s1 + $0x18] sm:$0xff]  ;;  %v103_v22 = vld [vmem:[%s845_s1 + $0x1b0] sm:$0xff]  ;;  %v102_v24 = vld [vmem:[%s845_s1 + $0x1a8] sm:$0xff] }
   0x9   :  { %150 = vmatpush.msra.mxu0 %v61_v3  ;;  %263 = vmatpush.msra.mxu3 %v110_v8  ;;  %v51_v23 = vld [vmem:[%s845_s1 + $0x10] sm:$0xff]  ;;  %v50_v25 = vld [vmem:[%s845_s1 + $0x8] sm:$0xff]  ;;  %v101_v26 = vld [vmem:[%s845_s1 + $0x1a0] sm:$0xff] }
   0xa   :  { %413 = vmatpush.msra.mxu1 %v60_v4  ;;  %414 = vmatpush.msra.mxu2 %v60_v4  ;;  %v49_v27 = vld [vmem:[%s845_s1] sm:$0xff]  ;;  %v24_v28 = vld [vmem:[%s847_s0 + $0x50] sm:$0xff]  ;;  %v96_v29 = vld [vmem:[%s845_s1 + $0x178] sm:$0xff] }
   0xb   :  { %151 = vmatpush.msra.mxu0 %v60_v4  ;;  %264 = vmatpush.msra.mxu3 %v109_v10  ;;  %v80_v30 = vld [vmem:[%s845_s1 + $0xf8] sm:$0xff]  ;;  %v44_v31 = vld [vmem:[%s847_s0 + $0xf0] sm:$0x3]  ;;  %v14_v34 = vld [vmem:[%s847_s0] sm:$0xff] }
   0xc   :  { %415 = vmatpush.msra.mxu1 %v59_v7  ;;  %416 = vmatpush.msra.mxu2 %v59_v7  ;;  %v95_v32 = vld [vmem:[%s845_s1 + $0x170] sm:$0xff]  ;;  %v94_v35 = vld [vmem:[%s845_s1 + $0x168] sm:$0xff]  ;;  %v120_v36 = vld [vmem:[%s845_s1 + $0x238] sm:$0xff] }
   0xd   :  { %152 = vmatpush.msra.mxu0 %v59_v7  ;;  %265 = vmatpush.msra.mxu3 %v108_v12  ;;  %v79_v33 = vld [vmem:[%s845_s1 + $0xf0] sm:$0xff]  ;;  %v78_v37 = vld [vmem:[%s845_s1 + $0xe8] sm:$0xff]  ;;  %v100_v38 = vld [vmem:[%s845_s1 + $0x198] sm:$0xff] }
   0xe   :  { %417 = vmatpush.msra.mxu1 %v58_v9  ;;  %418 = vmatpush.msra.mxu2 %v58_v9  ;;  %v93_v39 = vld [vmem:[%s845_s1 + $0x160] sm:$0xff]  ;;  %v119_v40 = vld [vmem:[%s845_s1 + $0x230] sm:$0xff]  ;;  %v29_v43 = vld [vmem:[%s847_s0 + $0x78] sm:$0xff] }
   0xf   :  { %153 = vmatpush.msra.mxu0 %v58_v9  ;;  %266 = vmatpush.msra.mxu3 %v107_v14  ;;  %v77_v41 = vld [vmem:[%s845_s1 + $0xe0] sm:$0xff]  ;;  %v99_v42 = vld [vmem:[%s845_s1 + $0x190] sm:$0xff]  ;;  %v92_v44 = vld [vmem:[%s845_s1 + $0x158] sm:$0xff] }
  0x10   :  { %419 = vmatpush.msra.mxu1 %v57_v11  ;;  %420 = vmatpush.msra.mxu2 %v57_v11  ;;  %v76_v45 = vld [vmem:[%s845_s1 + $0xd8] sm:$0xff]  ;;  %v118_v46 = vld [vmem:[%s845_s1 + $0x228] sm:$0xff]  ;;  %v91_v47 = vld [vmem:[%s845_s1 + $0x150] sm:$0xff] }
  0x11   :  { %154 = vmatpush.msra.mxu0 %v57_v11  ;;  %267 = vmatpush.msra.mxu3 %v106_v16  ;;  %v98_v48 = vld [vmem:[%s845_s1 + $0x188] sm:$0xff]  ;;  %v75_v49 = vld [vmem:[%s845_s1 + $0xd0] sm:$0xff]  ;;  %v117_v50 = vld [vmem:[%s845_s1 + $0x220] sm:$0xff] }
  0x12   :  { %421 = vmatpush.msra.mxu1 %v56_v13  ;;  %422 = vmatpush.msra.mxu2 %v56_v13  ;;  %v90_v51 = vld [vmem:[%s845_s1 + $0x148] sm:$0xff]  ;;  %v97_v52 = vld [vmem:[%s845_s1 + $0x180] sm:$0xff]  ;;  %v17_v56 = vld [vmem:[%s847_s0 + $0x18] sm:$0xff] }
  0x13   :  { %155 = vmatpush.msra.mxu0 %v56_v13  ;;  %268 = vmatpush.msra.mxu3 %v105_v18  ;;  %v74_v53 = vld [vmem:[%s845_s1 + $0xc8] sm:$0xff]  ;;  %v89_v55 = vld [vmem:[%s845_s1 + $0x140] sm:$0xff]  ;;  %v116_v58 = vld [vmem:[%s845_s1 + $0x218] sm:$0xff] }
  0x14   :  { %423 = vmatpush.msra.mxu1 %v55_v15  ;;  %424 = vmatpush.msra.mxu2 %v55_v15  ;;  %v19_v54 = vld [vmem:[%s847_s0 + $0x28] sm:$0xff]  ;;  %v73_v57 = vld [vmem:[%s845_s1 + $0xc0] sm:$0xff]  ;;  %v88_v60 = vld [vmem:[%s845_s1 + $0x138] sm:$0xff] }
  0x15   :  { %156 = vmatpush.msra.mxu0 %v55_v15  ;;  %269 = vmatpush.msra.mxu3 %v104_v20  ;;  %v34_v59 = vld [vmem:[%s847_s0 + $0xa0] sm:$0xff]  ;;  %v72_v61 = vld [vmem:[%s845_s1 + $0xb8] sm:$0xff]  ;;  %v115_v62 = vld [vmem:[%s845_s1 + $0x210] sm:$0xff] }
  0x16   :  { %425 = vmatpush.msra.mxu1 %v54_v17  ;;  %426 = vmatpush.msra.mxu2 %v54_v17  ;;  %v87_v63 = vld [vmem:[%s845_s1 + $0x130] sm:$0xff]  ;;  %v114_v1 = vld [vmem:[%s845_s1 + $0x208] sm:$0xff]  ;;  %v113_v4 = vld [vmem:[%s845_s1 + $0x200] sm:$0xff] }
  0x17   :  { %157 = vmatpush.msra.mxu0 %v54_v17  ;;  %270 = vmatpush.msra.mxu3 %v103_v22  ;;  %v71_v0 = vld [vmem:[%s845_s1 + $0xb0] sm:$0xff]  ;;  %v86_v2 = vld [vmem:[%s845_s1 + $0x128] sm:$0xff]  ;;  %v85_v5 = vld [vmem:[%s845_s1 + $0x120] sm:$0xff] }
  0x18   :  { %427 = vmatpush.msra.mxu1 %v53_v19  ;;  %428 = vmatpush.msra.mxu2 %v53_v19  ;;  %v70_v3 = vld [vmem:[%s845_s1 + $0xa8] sm:$0xff]  ;;  %v22_v6 = vld [vmem:[%s847_s0 + $0x40] sm:$0xff]  ;;  %v84_v10 = vld [vmem:[%s845_s1 + $0x118] sm:$0xff] }
  0x19   :  { %158 = vmatpush.msra.mxu0 %v53_v19  ;;  %271 = vmatpush.msra.mxu3 %v102_v24  ;;  %v69_v7 = vld [vmem:[%s845_s1 + $0xa0] sm:$0xff]  ;;  %v39_v9 = vld [vmem:[%s847_s0 + $0xc8] sm:$0xff]  ;;  %v68_v11 = vld [vmem:[%s845_s1 + $0x98] sm:$0xff] }
  0x1a   :  { %429 = vmatpush.msra.mxu1 %v52_v21  ;;  %430 = vmatpush.msra.mxu2 %v52_v21  ;;  %v18_v8 = vld [vmem:[%s847_s0 + $0x20] sm:$0xff]  ;;  %v83_v12 = vld [vmem:[%s845_s1 + $0x110] sm:$0xff]  ;;  %v82_v14 = vld [vmem:[%s845_s1 + $0x108] sm:$0xff] }
  0x1b   :  { %159 = vmatpush.msra.mxu0 %v52_v21  ;;  %272 = vmatpush.msra.mxu3 %v101_v26  ;;  %v67_v13 = vld [vmem:[%s845_s1 + $0x90] sm:$0xff]  ;;  %v66_v15 = vld [vmem:[%s845_s1 + $0x88] sm:$0xff]  ;;  %v81_v16 = vld [vmem:[%s845_s1 + $0x100] sm:$0xff] }
  0x1c   :  { %431 = vmatpush.msra.mxu1 %v51_v23  ;;  %432 = vmatpush.msra.mxu2 %v51_v23  ;;  %v27_v17 = vld [vmem:[%s847_s0 + $0x68] sm:$0xff]  ;;  %v65_v18 = vld [vmem:[%s845_s1 + $0x80] sm:$0xff]  ;;  %v16_v19 = vld [vmem:[%s847_s0 + $0x10] sm:$0xff] }
  0x1d   :  { %160 = vmatpush.msra.mxu0 %v51_v23  ;;  %273 = vmatpush.msra.mxu3 %v100_v38  ;;  %v15_v20 = vld [vmem:[%s847_s0 + $0x8] sm:$0xff]  ;;  %v32_v22 = vld [vmem:[%s847_s0 + $0x90] sm:$0xff]  ;;  %v21_v23 = vld [vmem:[%s847_s0 + $0x38] sm:$0xff] }
  0x1e   :  { %433 = vmatpush.msra.mxu1 %v50_v25  ;;  %434 = vmatpush.msra.mxu2 %v50_v25  ;;  %v23_v21 = vld [vmem:[%s847_s0 + $0x48] sm:$0xff]  ;;  %v20_v24 = vld [vmem:[%s847_s0 + $0x30] sm:$0xff]  ;;  %v37_v26 = vld [vmem:[%s847_s0 + $0xb8] sm:$0xff] }
  0x1f   :  { %161 = vmatpush.msra.mxu0 %v50_v25  ;;  %274 = vmatpush.msra.mxu3 %v99_v42  ;;  %v28_v25 = vld [vmem:[%s847_s0 + $0x70] sm:$0xff]  ;;  %v41_v38 = vld [vmem:[%s847_s0 + $0xd8] sm:$0xff] }
  0x20   :  { %435 = vmatpush.msra.mxu1 %v49_v27  ;;  %436 = vmatpush.msra.mxu2 %v49_v27  ;;  %v45_v42 = vld [vmem:[%s847_s0 + $0xf8] sm:$0x3] }
  0x21   :  { %169 = vmatmul.f32.vlgmr.msra.gmra.mxu1 %v24_v28  ;;  %181 = vmatmul.f32.vlgmr.msra.gmra.mxu2 %v44_v31  ;;  %v25_v28 = vld [vmem:[%s847_s0 + $0x58] sm:$0xff]  ;;  %v31_v31 = vld [vmem:[%s847_s0 + $0x88] sm:$0xff] }
  0x22   :  { %223 = vmatpush.msrb.mxu2 %v96_v29  ;;  %185 = vmatpush.msrb.mxu1 %v80_v30  ;;  %v33_v29 = vld [vmem:[%s847_s0 + $0x98] sm:$0xff]  ;;  %v42_v30 = vld [vmem:[%s847_s0 + $0xe0] sm:$0xff] }
  0x23   :  { %162 = vmatpush.msra.mxu0 %v49_v27  ;;  %275 = vmatpush.msra.mxu3 %v98_v48  ;;  %v26_v27 = vld [vmem:[%s847_s0 + $0x60] sm:$0xff] }
  0x24   :  { %224 = vmatpush.msrb.mxu2 %v95_v32  ;;  %186 = vmatpush.msrb.mxu1 %v79_v33  ;;  %v30_v32 = vld [vmem:[%s847_s0 + $0x80] sm:$0xff] }
  0x25   :  { %163 = vmatmul.f32.vlgmr.msra.gmra.mxu0 %v14_v34  ;;  %276 = vmatpush.msra.mxu3 %v97_v52  ;;  %v38_v33 = vld [vmem:[%s847_s0 + $0xc0] sm:$0xff]  ;;  %v47_v34 = vld [vmem:[%s847_s0 + $0x108] sm:$0x3] }
  0x26   :  { %225 = vmatpush.msrb.mxu2 %v94_v35  ;;  %307 = vmatpush.msrb.mxu0 %v120_v36  ;;  %v36_v35 = vld [vmem:[%s847_s0 + $0xb0] sm:$0xff]  ;;  %v35_v36 = vld [vmem:[%s847_s0 + $0xa8] sm:$0xff]  ;;  %v807_v52 = vld [vmem:[%s846_s2] ss:$0 sm:$0xff] }
  0x27   :  { %187 = vmatpush.msrb.mxu1 %v78_v37  ;;  %277 = vmatmul.f32.vlgmr.msra.gmra.mxu3 %v17_v56  ;;  %v43_v37 = vld [vmem:[%s847_s0 + $0xe8] sm:$0xff] }
  0x28   :  { %226 = vmatpush.msrb.mxu2 %v93_v39  ;;  %308 = vmatpush.msrb.mxu0 %v119_v40  ;;  %v40_v39 = vld [vmem:[%s847_s0 + $0xd0] sm:$0xff] }
  0x29   :  { %188 = vmatpush.msrb.mxu1 %v77_v41  ;;  %v48_v40 = vld [vmem:[%s847_s0 + $0x110] sm:$0x3]  ;;  %v46_v41 = vld [vmem:[%s847_s0 + $0x100] sm:$0x3] }
  0x2a   :  { %172 = vmatmul.f32.gmra.mxu1 %v29_v43  ;;  %227 = vmatpush.msrb.mxu2 %v92_v44 }
  0x2b   :  { %189 = vmatpush.msrb.mxu1 %v76_v45  ;;  %309 = vmatpush.msrb.mxu0 %v118_v46 }
  0x2c   :  { %228 = vmatpush.msrb.mxu2 %v91_v47 }
  0x2d   :  { %190 = vmatpush.msrb.mxu1 %v75_v49  ;;  %310 = vmatpush.msrb.mxu0 %v117_v50 }
  0x2e   :  { %229 = vmatpush.msrb.mxu2 %v90_v51  ;;  %166 = vmatmul.f32.gmra.mxu0 %v19_v54 }
  0x2f   :  { %191 = vmatpush.msrb.mxu1 %v74_v53  ;;  %311 = vmatpush.msrb.mxu0 %v116_v58 }
  0x30   :  { %230 = vmatpush.msrb.mxu2 %v89_v55  ;;  %280 = vmatmul.f32.gmra.mxu3 %v22_v6 }
  0x31   :  { %192 = vmatpush.msrb.mxu1 %v73_v57  ;;  %312 = vmatpush.msrb.mxu0 %v115_v62 }
  0x32   :  { %175 = vmatmul.f32.gmra.mxu1 %v34_v59  ;;  %231 = vmatpush.msrb.mxu2 %v88_v60 }
  0x33   :  { %193 = vmatpush.msrb.mxu1 %v72_v61  ;;  %313 = vmatpush.msrb.mxu0 %v114_v1 }
  0x34   :  { %232 = vmatpush.msrb.mxu2 %v87_v63 }
  0x35   :  { %194 = vmatpush.msrb.mxu1 %v71_v0  ;;  %314 = vmatpush.msrb.mxu0 %v113_v4 }
  0x36   :  { %233 = vmatpush.msrb.mxu2 %v86_v2  ;;  %391 = vmatmul.msk.f32.vlgmr.msrb.gmra.mxu0 %vm125_vm0, %v18_v8 }
  0x37   :  { %195 = vmatpush.msrb.mxu1 %v70_v3 }
  0x38   :  { %234 = vmatpush.msrb.mxu2 %v85_v5  ;;  %283 = vmatmul.f32.gmra.mxu3 %v27_v17 }
  0x39   :  { %196 = vmatpush.msrb.mxu1 %v69_v7 }
  0x3a   :  { %178 = vmatmul.f32.gmra.mxu1 %v39_v9  ;;  %235 = vmatpush.msrb.mxu2 %v84_v10 }
  0x3b   :  { %197 = vmatpush.msrb.mxu1 %v68_v11 }
  0x3c   :  { %236 = vmatpush.msrb.mxu2 %v83_v12 }
  0x3d   :  { %198 = vmatpush.msrb.mxu1 %v67_v13 }
  0x3e   :  { %237 = vmatpush.msrb.mxu2 %v82_v14  ;;  %392 = vmatmul.msk.f32.gmra.mxu0 %vm125_vm0, %v23_v21 }
  0x3f   :  { %199 = vmatpush.msrb.mxu1 %v66_v15 }
  0x40   :  { %238 = vmatpush.msrb.mxu2 %v81_v16  ;;  %286 = vmatmul.f32.gmra.mxu3 %v32_v22 }
  0x41   :  { %200 = vmatpush.msrb.mxu1 %v65_v18  ;;  %239 = vmatmul.f32.vlgmr.msrb.gmra.mxu2 %v16_v19 }
  0x42   :  { %201 = vmatmul.f32.vlgmr.msrb.gmra.mxu1 %v15_v20 }
  0x46   :  { %393 = vmatmul.msk.f32.gmra.mxu0 %vm125_vm0, %v28_v25 }
  0x48   :  { %289 = vmatmul.f32.gmra.mxu3 %v37_v26 }
  0x49   :  { %242 = vmatmul.f32.gmra.mxu2 %v21_v23 }
  0x4a   :  { %204 = vmatmul.f32.gmra.mxu1 %v20_v24 }
  0x4e   :  { %394 = vmatmul.msk.f32.gmra.mxu0 %vm125_vm0, %v33_v29 }
  0x50   :  { %292 = vmatmul.f32.gmra.mxu3 %v42_v30 }
  0x51   :  { %245 = vmatmul.f32.gmra.mxu2 %v26_v27 }
  0x52   :  { %207 = vmatmul.f32.gmra.mxu1 %v25_v28 }
  0x56   :  { %395 = vmatmul.msk.f32.gmra.mxu0 %vm125_vm0, %v38_v33 }
  0x58   :  { %295 = vmatmul.f32.gmra.mxu3 %v47_v34 }
  0x59   :  { %248 = vmatmul.f32.gmra.mxu2 %v31_v31 }
  0x5a   :  { %210 = vmatmul.f32.gmra.mxu1 %v30_v32 }
  0x5e   :  { %396 = vmatmul.msk.f32.gmra.mxu0 %vm125_vm0, %v43_v37 }
  0x61   :  { %251 = vmatmul.f32.gmra.mxu2 %v36_v35 }
  0x62   :  { %213 = vmatmul.f32.gmra.mxu1 %v35_v36 }
  0x66   :  { %397 = vmatmul.msk.f32.gmra.mxu0 %vm125_vm0, %v48_v40 }
  0x69   :  { %254 = vmatmul.f32.gmra.mxu2 %v41_v38 }
  0x6a   :  { %216 = vmatmul.f32.gmra.mxu1 %v40_v39 }
  0x71   :  { %257 = vmatmul.f32.gmra.mxu2 %v46_v41 }
  0x72   :  { %219 = vmatmul.f32.gmra.mxu1 %v45_v42 }
  0x9e   :  { %v170_v43 = vpop.f32.mrf.mxu1 }
  0x9f   :  { %v171_v9 = vadd.f32 %v807_v52, %v170_v43 }
  0xa2   :  { %v164_v44 = vpop.f32.mrf.mxu0 }
  0xa3   :  { %v165_v54 = vadd.f32 %v807_v52, %v164_v44 }
  0xa4   :  { %v802_v50 = vpop.f32.mrf.mxu2 }
  0xa7   :  { %v173_v45 = vpop.f32.mrf.mxu1 }
  0xa8   :  { %v174_v23 = vadd.f32 %v807_v52, %v173_v45 }
  0xaa   :  { %v278_v49 = vpop.f32.mrf.mxu3 }
  0xab   :  { %v167_v47 = vpop.f32.mrf.mxu0 }
  0xac   :  { %v168_v62 = vadd.f32 %v807_v52, %v167_v47 }
  0xaf   :  { %v176_v46 = vpop.f32.mrf.mxu1 }
  0xb0   :  { %v177_v36 = vadd.f32 %v807_v52, %v176_v46 }
  0xb3   :  { %v316_v51 = vpop.f32.mrf.mxu0  ;;  %v281_v55 = vpop.f32.mrf.mxu3 }
  0xb7   :  { %v800_v48 = vpop.f32.mrf.mxu1 }
  0xb8   :  { %v180_v46 = vadd.f32 %v807_v52, %v800_v48 }
  0xbb   :  { %v319_v58 = vpop.f32.mrf.mxu0  ;;  %v284_v3 = vpop.f32.mrf.mxu3 }
  0xbf   :  { %v202_v53 = vpop.f32.mrf.mxu1 }
  0xc0   :  { %v203_v56 = vadd.f32 %v202_v53, %v165_v54 }
  0xc3   :  { %v322_v6 = vpop.f32.mrf.mxu0  ;;  %v287_v18 = vpop.f32.mrf.mxu3 }
  0xc4   :  { %v240_v57 = vpop.f32.mrf.mxu2 }
  0xc5   :  { %v241_v59 = vadd.f32 %v240_v57, %v203_v56 }
  0xc7   :  { %v279_v60 = vadd.f32 %v278_v49, %v241_v59  ;;  %v205_v61 = vpop.f32.mrf.mxu1 }
  0xc8   :  { %v206_v0 = vadd.f32 %v205_v61, %v168_v62 }
  0xc9   :  { %v317_v63 = vadd.f32 %v316_v51, %v279_v60 }
  0xcb   :  { %v344_v1 = vmin.f32 %v317_v63, 0.0  ;;  %vm337_vm1 = vcmp.gt.f32.partialorder %v317_v63, 0.0  ;;  %v325_v22 = vpop.f32.mrf.mxu0  ;;  %v290_v35 = vpop.f32.mrf.mxu3 }
  0xcc   :  { %v243_v2 = vpop.f32.mrf.mxu2 }
  0xcd   :  { %v351_v4 = vmul.f32 1.442695, %v344_v1  ;;  %v244_v5 = vadd.f32 %v243_v2, %v206_v0  ;;  %v183_v1 = vadd.f32 %v807_v52, %v802_v50 }
  0xcf   :  { %438 = vpow2.f32 %v351_v4  ;;  %v282_v7 = vadd.f32 %v281_v55, %v244_v5  ;;  %v208_v8 = vpop.f32.mrf.mxu1 }
  0xd0   :  { %v209_v11 = vadd.f32 %v208_v8, %v171_v9 }
  0xd1   :  { %v320_v10 = vadd.f32 %v319_v58, %v282_v7 }
  0xd3   :  { %v345_v12 = vmin.f32 %v320_v10, 0.0  ;;  %vm338_vm2 = vcmp.gt.f32.partialorder %v320_v10, 0.0  ;;  %v328_v38 = vpop.f32.mrf.mxu0  ;;  %v293_v54 = vpop.f32.mrf.mxu3 }
  0xd4   :  { %v246_v13 = vpop.f32.mrf.mxu2 }
  0xd5   :  { %v439_v14 = vpop.eup %438  ;;  %v353_v15 = vmul.f32 1.442695, %v345_v12  ;;  %v247_v16 = vadd.f32 %v246_v13, %v209_v11 }
  0xd6   :  { %v398_v17 = vadd.f32 -1.0, %v439_v14 }
  0xd7   :  { %440 = vpow2.f32 %v353_v15  ;;  %v285_v19 = vadd.f32 %v284_v3, %v247_v16  ;;  %v211_v20 = vpop.f32.mrf.mxu1 }
  0xd8   :  { %v372_v21 = vsel %vm337_vm1, %v317_v63, %v398_v17  ;;  %v212_v25 = vadd.f32 %v211_v20, %v174_v23 }
  0xd9   :  { %379 = vst.msk [vmem:[%s848_s3] sm:$0xff] %vm125_vm0, %v372_v21  ;;  %v323_v24 = vadd.f32 %v322_v6, %v285_v19 }
  0xdb   :  { %v346_v26 = vmin.f32 %v323_v24, 0.0  ;;  %vm339_vm3 = vcmp.gt.f32.partialorder %v323_v24, 0.0  ;;  %v331_v58 = vpop.f32.mrf.mxu0  ;;  %v296_v6 = vpop.f32.mrf.mxu3 }
  0xdc   :  { %v249_v27 = vpop.f32.mrf.mxu2 }
  0xdd   :  { %v441_v28 = vpop.eup %440  ;;  %v355_v29 = vmul.f32 1.442695, %v346_v26  ;;  %v250_v30 = vadd.f32 %v249_v27, %v212_v25 }
  0xde   :  { %v399_v31 = vadd.f32 -1.0, %v441_v28 }
  0xdf   :  { %442 = vpow2.f32 %v355_v29  ;;  %v288_v32 = vadd.f32 %v287_v18, %v250_v30  ;;  %v214_v33 = vpop.f32.mrf.mxu1 }
  0xe0   :  { %v373_v34 = vsel %vm338_vm2, %v320_v10, %v399_v31  ;;  %v215_v39 = vadd.f32 %v214_v33, %v177_v36 }
  0xe1   :  { %380 = vst.msk [vmem:[%s848_s3 + $0x8] sm:$0xff] %vm125_vm0, %v373_v34  ;;  %v326_v37 = vadd.f32 %v325_v22, %v288_v32 }
  0xe3   :  { %v347_v40 = vmin.f32 %v326_v37, 0.0  ;;  %vm340_vm4 = vcmp.gt.f32.partialorder %v326_v37, 0.0  ;;  %v334_v11 = vpop.f32.mrf.mxu0 }
  0xe4   :  { %v252_v41 = vpop.f32.mrf.mxu2 }
  0xe5   :  { %v443_v42 = vpop.eup %442  ;;  %v357_v43 = vmul.f32 1.442695, %v347_v40  ;;  %v253_v44 = vadd.f32 %v252_v41, %v215_v39 }
  0xe6   :  { %v400_v45 = vadd.f32 -1.0, %v443_v42 }
  0xe7   :  { %444 = vpow2.f32 %v357_v43  ;;  %v291_v47 = vadd.f32 %v290_v35, %v253_v44  ;;  %v217_v49 = vpop.f32.mrf.mxu1 }
  0xe8   :  { %v374_v51 = vsel %vm339_vm3, %v323_v24, %v400_v45  ;;  %v218_v55 = vadd.f32 %v217_v49, %v180_v46 }
  0xe9   :  { %381 = vst.msk [vmem:[%s848_s3 + $0x10] sm:$0xff] %vm125_vm0, %v374_v51  ;;  %v329_v53 = vadd.f32 %v328_v38, %v291_v47 }
  0xeb   :  { %v348_v56 = vmin.f32 %v329_v53, 0.0  ;;  %vm341_vm5 = vcmp.gt.f32.partialorder %v329_v53, 0.0 }
  0xec   :  { %v255_v57 = vpop.f32.mrf.mxu2 }
  0xed   :  { %v445_v59 = vpop.eup %444  ;;  %v359_v60 = vmul.f32 1.442695, %v348_v56  ;;  %v256_v61 = vadd.f32 %v255_v57, %v218_v55 }
  0xee   :  { %v401_v62 = vadd.f32 -1.0, %v445_v59 }
  0xef   :  { %446 = vpow2.f32 %v359_v60  ;;  %v294_v63 = vadd.f32 %v293_v54, %v256_v61  ;;  %v220_v48 = vpop.f32.mrf.mxu1 }
  0xf0   :  { %v375_v0 = vsel %vm340_vm4, %v326_v37, %v401_v62  ;;  %v221_v3 = vadd.f32 %v220_v48, %v183_v1 }
  0xf1   :  { %382 = vst.msk [vmem:[%s848_s3 + $0x18] sm:$0xff] %vm125_vm0, %v375_v0  ;;  %v332_v2 = vadd.f32 %v331_v58, %v294_v63 }
  0xf3   :  { %v349_v4 = vmin.f32 %v332_v2, 0.0  ;;  %vm342_vm6 = vcmp.gt.f32.partialorder %v332_v2, 0.0 }
  0xf4   :  { %v258_v5 = vpop.f32.mrf.mxu2 }
  0xf5   :  { %v447_v7 = vpop.eup %446  ;;  %v361_v8 = vmul.f32 1.442695, %v349_v4  ;;  %v259_v9 = vadd.f32 %v258_v5, %v221_v3 }
  0xf6   :  { %v402_v10 = vadd.f32 -1.0, %v447_v7 }
  0xf7   :  { %448 = vpow2.f32 %v361_v8  ;;  %v297_v12 = vadd.f32 %v296_v6, %v259_v9 }
  0xf8   :  { %v376_v13 = vsel %vm341_vm5, %v329_v53, %v402_v10 }
  0xf9   :  { %383 = vst.msk [vmem:[%s848_s3 + $0x20] sm:$0xff] %vm125_vm0, %v376_v13  ;;  %v335_v50 = vadd.f32 %v334_v11, %v297_v12 }
  0xfb   :  { %v350_v52 = vmin.f32 %v335_v50, 0.0  ;;  %vm343_vm8 = vcmp.gt.f32.partialorder %v335_v50, 0.0 }
  0xfd   :  { %v449_v14 = vpop.eup %448  ;;  %v363_v15 = vmul.f32 1.442695, %v350_v52 }
  0xfe   :  { %v403_v16 = vadd.f32 -1.0, %v449_v14 }
  0xff   :  { %450 = vpow2.f32 %v363_v15 }
 0x100   :  { %v377_v17 = vsel %vm342_vm6, %v332_v2, %v403_v16 }
 0x101   :  { %384 = vst.msk [vmem:[%s848_s3 + $0x28] sm:$0xff] %vm125_vm0, %v377_v17 }
 0x105   :  { %v451_v18 = vpop.eup %450 }
 0x106   :  { %v404_v19 = vadd.f32 -1.0, %v451_v18 }
 0x108   :  { %v378_v20 = vsel %vm343_vm8, %v335_v50, %v404_v19 }
 0x109   :  { %386 = vst.msk [vmem:[%s848_s3 + $0x30] sm:$0x3] %vm385_vm7, %v378_v20 }

// kernel: _lambda_.8
= control target key start
LH: loop header
LB: loop body
LE: loop exit
PB: predicated region body
PF: predicated region fallthrough
CT: control target
= control target key end

     0   :  { %vm105_vm0 = vcmask 523264   ;;  %vm265_vm3 = vcmask 517120   ;;  %s598_s1 = inlined_call_operand.vmem [shape: f32[576,64], index: 1, kind: input, shape index: {}]   ;;  %s599_s0 = inlined_call_operand.vmem [shape: f32[18,576], index: 0, kind: input, shape index: {}]   ;;  %s600_s2 = inlined_call_operand.vmem [shape: f32[1,64], index: 2, kind: input, shape index: {}]   ;;  %s601_s3 = inlined_call_operand.vmem [shape: f32[18,64], index: 3, kind: output, shape index: {}]  }
   0x1   :  { %v44_v0 = vld [vmem:[%s598_s1 + $0x78] sm:$0xff]  ;;  %v43_v3 = vld [vmem:[%s598_s1 + $0x70] sm:$0xff]  ;;  %v42_v7 = vld [vmem:[%s598_s1 + $0x68] sm:$0xff] }
   0x2   :  { %v60_v1 = vld [vmem:[%s598_s1 + $0xf8] sm:$0xff]  ;;  %115 = vmatpush.msra.mxu0 %v44_v0  ;;  %v59_v4 = vld [vmem:[%s598_s1 + $0xf0] sm:$0xff]  ;;  %v58_v8 = vld [vmem:[%s598_s1 + $0xe8] sm:$0xff] }
   0x3   :  { %v76_v2 = vld [vmem:[%s598_s1 + $0x178] sm:$0xff]  ;;  %141 = vmatpush.msra.mxu1 %v60_v1  ;;  %v75_v5 = vld [vmem:[%s598_s1 + $0x170] sm:$0xff]  ;;  %v74_v9 = vld [vmem:[%s598_s1 + $0x168] sm:$0xff] }
   0x4   :  { %167 = vmatpush.msra.mxu2 %v76_v2  ;;  %v92_v6 = vld [vmem:[%s598_s1 + $0x1f8] sm:$0xff]  ;;  %116 = vmatpush.msra.mxu0 %v43_v3  ;;  %v91_v10 = vld [vmem:[%s598_s1 + $0x1f0] sm:$0xff]  ;;  %v41_v11 = vld [vmem:[%s598_s1 + $0x60] sm:$0xff] }
   0x5   :  { %142 = vmatpush.msra.mxu1 %v59_v4  ;;  %193 = vmatpush.msra.mxu3 %v92_v6  ;;  %v57_v12 = vld [vmem:[%s598_s1 + $0xe0] sm:$0xff]  ;;  %v90_v14 = vld [vmem:[%s598_s1 + $0x1e8] sm:$0xff]  ;;  %v40_v15 = vld [vmem:[%s598_s1 + $0x58] sm:$0xff] }
   0x6   :  { %168 = vmatpush.msra.mxu2 %v75_v5  ;;  %117 = vmatpush.msra.mxu0 %v42_v7  ;;  %v73_v13 = vld [vmem:[%s598_s1 + $0x160] sm:$0xff]  ;;  %v56_v16 = vld [vmem:[%s598_s1 + $0xd8] sm:$0xff]  ;;  %v39_v19 = vld [vmem:[%s598_s1 + $0x50] sm:$0xff] }
   0x7   :  { %143 = vmatpush.msra.mxu1 %v58_v8  ;;  %194 = vmatpush.msra.mxu3 %v91_v10  ;;  %v72_v17 = vld [vmem:[%s598_s1 + $0x158] sm:$0xff]  ;;  %v89_v18 = vld [vmem:[%s598_s1 + $0x1e0] sm:$0xff]  ;;  %v55_v20 = vld [vmem:[%s598_s1 + $0xd0] sm:$0xff] }
   0x8   :  { %169 = vmatpush.msra.mxu2 %v74_v9  ;;  %118 = vmatpush.msra.mxu0 %v41_v11  ;;  %v71_v21 = vld [vmem:[%s598_s1 + $0x150] sm:$0xff]  ;;  %v88_v22 = vld [vmem:[%s598_s1 + $0x1d8] sm:$0xff]  ;;  %v38_v23 = vld [vmem:[%s598_s1 + $0x48] sm:$0xff] }
   0x9   :  { %144 = vmatpush.msra.mxu1 %v57_v12  ;;  %195 = vmatpush.msra.mxu3 %v90_v14  ;;  %v54_v24 = vld [vmem:[%s598_s1 + $0xc8] sm:$0xff]  ;;  %v87_v26 = vld [vmem:[%s598_s1 + $0x1d0] sm:$0xff]  ;;  %v37_v27 = vld [vmem:[%s598_s1 + $0x40] sm:$0xff] }
   0xa   :  { %170 = vmatpush.msra.mxu2 %v73_v13  ;;  %119 = vmatpush.msra.mxu0 %v40_v15  ;;  %v70_v25 = vld [vmem:[%s598_s1 + $0x148] sm:$0xff]  ;;  %v53_v28 = vld [vmem:[%s598_s1 + $0xc0] sm:$0xff]  ;;  %v36_v31 = vld [vmem:[%s598_s1 + $0x38] sm:$0xff] }
   0xb   :  { %145 = vmatpush.msra.mxu1 %v56_v16  ;;  %196 = vmatpush.msra.mxu3 %v89_v18  ;;  %v69_v29 = vld [vmem:[%s598_s1 + $0x140] sm:$0xff]  ;;  %v86_v30 = vld [vmem:[%s598_s1 + $0x1c8] sm:$0xff]  ;;  %v52_v32 = vld [vmem:[%s598_s1 + $0xb8] sm:$0xff] }
   0xc   :  { %171 = vmatpush.msra.mxu2 %v72_v17  ;;  %120 = vmatpush.msra.mxu0 %v39_v19  ;;  %v68_v33 = vld [vmem:[%s598_s1 + $0x138] sm:$0xff]  ;;  %v85_v34 = vld [vmem:[%s598_s1 + $0x1c0] sm:$0xff]  ;;  %v35_v35 = vld [vmem:[%s598_s1 + $0x30] sm:$0xff] }
   0xd   :  { %146 = vmatpush.msra.mxu1 %v55_v20  ;;  %197 = vmatpush.msra.mxu3 %v88_v22  ;;  %v51_v36 = vld [vmem:[%s598_s1 + $0xb0] sm:$0xff]  ;;  %v84_v38 = vld [vmem:[%s598_s1 + $0x1b8] sm:$0xff]  ;;  %v34_v39 = vld [vmem:[%s598_s1 + $0x28] sm:$0xff] }
   0xe   :  { %172 = vmatpush.msra.mxu2 %v71_v21  ;;  %121 = vmatpush.msra.mxu0 %v38_v23  ;;  %v67_v37 = vld [vmem:[%s598_s1 + $0x130] sm:$0xff]  ;;  %v50_v40 = vld [vmem:[%s598_s1 + $0xa8] sm:$0xff]  ;;  %v33_v43 = vld [vmem:[%s598_s1 + $0x20] sm:$0xff] }
   0xf   :  { %147 = vmatpush.msra.mxu1 %v54_v24  ;;  %198 = vmatpush.msra.mxu3 %v87_v26  ;;  %v66_v41 = vld [vmem:[%s598_s1 + $0x128] sm:$0xff]  ;;  %v83_v42 = vld [vmem:[%s598_s1 + $0x1b0] sm:$0xff]  ;;  %v49_v44 = vld [vmem:[%s598_s1 + $0xa0] sm:$0xff] }
  0x10   :  { %173 = vmatpush.msra.mxu2 %v70_v25  ;;  %122 = vmatpush.msra.mxu0 %v37_v27  ;;  %v65_v45 = vld [vmem:[%s598_s1 + $0x120] sm:$0xff]  ;;  %v82_v46 = vld [vmem:[%s598_s1 + $0x1a8] sm:$0xff]  ;;  %v32_v47 = vld [vmem:[%s598_s1 + $0x18] sm:$0xff] }
  0x11   :  { %148 = vmatpush.msra.mxu1 %v53_v28  ;;  %199 = vmatpush.msra.mxu3 %v86_v30  ;;  %v48_v48 = vld [vmem:[%s598_s1 + $0x98] sm:$0xff]  ;;  %v81_v50 = vld [vmem:[%s598_s1 + $0x1a0] sm:$0xff]  ;;  %v31_v51 = vld [vmem:[%s598_s1 + $0x10] sm:$0xff] }
  0x12   :  { %174 = vmatpush.msra.mxu2 %v69_v29  ;;  %123 = vmatpush.msra.mxu0 %v36_v31  ;;  %v64_v49 = vld [vmem:[%s598_s1 + $0x118] sm:$0xff]  ;;  %v47_v52 = vld [vmem:[%s598_s1 + $0x90] sm:$0xff]  ;;  %v30_v55 = vld [vmem:[%s598_s1 + $0x8] sm:$0xff] }
  0x13   :  { %149 = vmatpush.msra.mxu1 %v52_v32  ;;  %200 = vmatpush.msra.mxu3 %v85_v34  ;;  %v63_v53 = vld [vmem:[%s598_s1 + $0x110] sm:$0xff]  ;;  %v80_v54 = vld [vmem:[%s598_s1 + $0x198] sm:$0xff]  ;;  %v46_v56 = vld [vmem:[%s598_s1 + $0x88] sm:$0xff] }
  0x14   :  { %175 = vmatpush.msra.mxu2 %v68_v33  ;;  %124 = vmatpush.msra.mxu0 %v35_v35  ;;  %v62_v57 = vld [vmem:[%s598_s1 + $0x108] sm:$0xff]  ;;  %v79_v58 = vld [vmem:[%s598_s1 + $0x190] sm:$0xff]  ;;  %v29_v59 = vld [vmem:[%s598_s1] sm:$0xff] }
  0x15   :  { %150 = vmatpush.msra.mxu1 %v51_v36  ;;  %201 = vmatpush.msra.mxu3 %v84_v38  ;;  %v45_v60 = vld [vmem:[%s598_s1 + $0x80] sm:$0xff]  ;;  %v78_v62 = vld [vmem:[%s598_s1 + $0x188] sm:$0xff]  ;;  %v16_v1 = vld [vmem:[%s599_s0 + $0x10] sm:$0xff] }
  0x16   :  { %176 = vmatpush.msra.mxu2 %v67_v37  ;;  %125 = vmatpush.msra.mxu0 %v34_v39  ;;  %v61_v61 = vld [vmem:[%s598_s1 + $0x100] sm:$0xff]  ;;  %v15_v0 = vld [vmem:[%s599_s0 + $0x8] sm:$0xff]  ;;  %v100_v3 = vld [vmem:[%s598_s1 + $0x238] sm:$0xff] }
  0x17   :  { %151 = vmatpush.msra.mxu1 %v50_v40  ;;  %202 = vmatpush.msra.mxu3 %v83_v42  ;;  %v14_v63 = vld [vmem:[%s599_s0] sm:$0xff]  ;;  %v17_v4 = vld [vmem:[%s599_s0 + $0x18] sm:$0xff]  ;;  %v99_v5 = vld [vmem:[%s598_s1 + $0x230] sm:$0xff] }
  0x18   :  { %177 = vmatpush.msra.mxu2 %v66_v41  ;;  %126 = vmatpush.msra.mxu0 %v33_v43  ;;  %v77_v2 = vld [vmem:[%s598_s1 + $0x180] sm:$0xff]  ;;  %v98_v6 = vld [vmem:[%s598_s1 + $0x228] sm:$0xff]  ;;  %v20_v8 = vld [vmem:[%s599_s0 + $0x30] sm:$0xff] }
  0x19   :  { %152 = vmatpush.msra.mxu1 %v49_v44  ;;  %203 = vmatpush.msra.mxu3 %v82_v46  ;;  %v19_v7 = vld [vmem:[%s599_s0 + $0x28] sm:$0xff]  ;;  %v21_v9 = vld [vmem:[%s599_s0 + $0x38] sm:$0xff]  ;;  %v97_v10 = vld [vmem:[%s598_s1 + $0x220] sm:$0xff] }
  0x1a   :  { %178 = vmatpush.msra.mxu2 %v65_v45  ;;  %127 = vmatpush.msra.mxu0 %v32_v47  ;;  %v22_v11 = vld [vmem:[%s599_s0 + $0x40] sm:$0xff]  ;;  %v96_v12 = vld [vmem:[%s598_s1 + $0x218] sm:$0xff]  ;;  %v95_v13 = vld [vmem:[%s598_s1 + $0x210] sm:$0xff] }
  0x1b   :  { %153 = vmatpush.msra.mxu1 %v48_v48  ;;  %204 = vmatpush.msra.mxu3 %v81_v50  ;;  %v94_v14 = vld [vmem:[%s598_s1 + $0x208] sm:$0xff]  ;;  %v24_v15 = vld [vmem:[%s599_s0 + $0x50] sm:$0x3]  ;;  %v25_v16 = vld [vmem:[%s599_s0 + $0x58] sm:$0x3] }
  0x1c   :  { %179 = vmatpush.msra.mxu2 %v64_v49  ;;  %128 = vmatpush.msra.mxu0 %v31_v51  ;;  %v26_v17 = vld [vmem:[%s599_s0 + $0x60] sm:$0x3]  ;;  %v27_v18 = vld [vmem:[%s599_s0 + $0x68] sm:$0x3]  ;;  %v28_v22 = vld [vmem:[%s599_s0 + $0x70] sm:$0x3] }
  0x1d   :  { %154 = vmatpush.msra.mxu1 %v47_v52  ;;  %205 = vmatpush.msra.mxu3 %v80_v54  ;;  %v93_v19 = vld [vmem:[%s598_s1 + $0x200] sm:$0xff]  ;;  %v23_v21 = vld [vmem:[%s599_s0 + $0x48] sm:$0xff] }
  0x1e   :  { %180 = vmatpush.msra.mxu2 %v63_v53  ;;  %129 = vmatpush.msra.mxu0 %v30_v55  ;;  %v18_v20 = vld [vmem:[%s599_s0 + $0x20] sm:$0xff] }
  0x1f   :  { %155 = vmatpush.msra.mxu1 %v46_v56  ;;  %206 = vmatpush.msra.mxu3 %v79_v58  ;;  %v293_v25 = vld [vmem:[%s600_s2] ss:$0 sm:$0xff] }
  0x20   :  { %181 = vmatpush.msra.mxu2 %v62_v57  ;;  %130 = vmatpush.msra.mxu0 %v29_v59 }
  0x21   :  { %156 = vmatpush.msra.mxu1 %v45_v60  ;;  %207 = vmatpush.msra.mxu3 %v78_v62 }
  0x22   :  { %182 = vmatpush.msra.mxu2 %v61_v61  ;;  %131 = vmatmul.f32.vlgmr.msra.gmra.mxu0 %v14_v63 }
  0x23   :  { %157 = vmatmul.f32.vlgmr.msra.gmra.mxu1 %v15_v0  ;;  %183 = vmatmul.f32.vlgmr.msra.gmra.mxu2 %v16_v1 }
  0x24   :  { %208 = vmatpush.msra.mxu3 %v77_v2  ;;  %278 = vmatpush.msrb.mxu2 %v100_v3 }
  0x25   :  { %209 = vmatmul.f32.vlgmr.msra.gmra.mxu3 %v17_v4  ;;  %227 = vmatpush.msrb.mxu0 %v100_v3 }
  0x26   :  { %277 = vmatpush.msrb.mxu1 %v100_v3  ;;  %280 = vmatpush.msrb.mxu2 %v99_v5 }
  0x27   :  { %228 = vmatpush.msrb.mxu0 %v99_v5 }
  0x28   :  { %279 = vmatpush.msrb.mxu1 %v99_v5  ;;  %282 = vmatpush.msrb.mxu2 %v98_v6 }
  0x29   :  { %229 = vmatpush.msrb.mxu0 %v98_v6 }
  0x2a   :  { %281 = vmatpush.msrb.mxu1 %v98_v6  ;;  %134 = vmatmul.f32.gmra.mxu0 %v19_v7 }
  0x2b   :  { %160 = vmatmul.f32.gmra.mxu1 %v20_v8  ;;  %186 = vmatmul.f32.gmra.mxu2 %v21_v9 }
  0x2c   :  { %230 = vmatpush.msrb.mxu0 %v97_v10  ;;  %284 = vmatpush.msrb.mxu2 %v97_v10 }
  0x2d   :  { %212 = vmatmul.f32.gmra.mxu3 %v22_v11  ;;  %283 = vmatpush.msrb.mxu1 %v97_v10 }
  0x2e   :  { %231 = vmatpush.msrb.mxu0 %v96_v12  ;;  %286 = vmatpush.msrb.mxu2 %v96_v12 }
  0x2f   :  { %285 = vmatpush.msrb.mxu1 %v96_v12 }
  0x30   :  { %232 = vmatpush.msrb.mxu0 %v95_v13  ;;  %288 = vmatpush.msrb.mxu2 %v95_v13 }
  0x31   :  { %287 = vmatpush.msrb.mxu1 %v95_v13 }
  0x32   :  { %233 = vmatpush.msrb.mxu0 %v94_v14  ;;  %290 = vmatpush.msrb.mxu2 %v94_v14 }
  0x33   :  { %137 = vmatmul.f32.gmra.mxu0 %v24_v15  ;;  %163 = vmatmul.f32.gmra.mxu1 %v25_v16 }
  0x34   :  { %189 = vmatmul.f32.gmra.mxu2 %v26_v17  ;;  %289 = vmatpush.msrb.mxu1 %v94_v14 }
  0x35   :  { %215 = vmatmul.f32.gmra.mxu3 %v27_v18  ;;  %234 = vmatpush.msrb.mxu0 %v93_v19 }
  0x36   :  { %291 = vmatpush.msrb.mxu1 %v93_v19  ;;  %292 = vmatpush.msrb.mxu2 %v93_v19 }
  0x3b   :  { %271 = vmatmul.msk.f32.vlgmr.msrb.gmra.mxu0 %vm105_vm0, %v18_v20  ;;  %272 = vmatmul.msk.f32.vlgmr.msrb.gmra.mxu1 %vm105_vm0, %v23_v21 }
  0x3c   :  { %273 = vmatmul.msk.f32.vlgmr.msrb.gmra.mxu2 %vm105_vm0, %v28_v22 }
  0x9f   :  { %v132_v23 = vpop.f32.mrf.mxu0 }
  0xa0   :  { %v158_v24 = vpop.f32.mrf.mxu1  ;;  %v133_v30 = vadd.f32 %v293_v25, %v132_v23 }
  0xa2   :  { %v159_v32 = vadd.f32 %v158_v24, %v133_v30 }
  0xa6   :  { %v184_v26 = vpop.f32.mrf.mxu2 }
  0xa7   :  { %v135_v27 = vpop.f32.mrf.mxu0  ;;  %v185_v39 = vadd.f32 %v184_v26, %v159_v32 }
  0xa8   :  { %v161_v28 = vpop.f32.mrf.mxu1  ;;  %v210_v29 = vpop.f32.mrf.mxu3  ;;  %v136_v31 = vadd.f32 %v293_v25, %v135_v27 }
  0xa9   :  { %v211_v42 = vadd.f32 %v210_v29, %v185_v39 }
  0xaa   :  { %v162_v33 = vadd.f32 %v161_v28, %v136_v31 }
  0xae   :  { %v187_v34 = vpop.f32.mrf.mxu2 }
  0xaf   :  { %v188_v40 = vadd.f32 %v187_v34, %v162_v33 }
  0xb0   :  { %v138_v35 = vpop.f32.mrf.mxu0  ;;  %v164_v36 = vpop.f32.mrf.mxu1 }
  0xb1   :  { %v213_v37 = vpop.f32.mrf.mxu3  ;;  %v139_v38 = vadd.f32 %v293_v25, %v138_v35 }
  0xb2   :  { %v214_v43 = vadd.f32 %v213_v37, %v188_v40 }
  0xb3   :  { %v165_v41 = vadd.f32 %v164_v36, %v139_v38 }
  0xb7   :  { %v190_v44 = vpop.f32.mrf.mxu2 }
  0xb8   :  { %v236_v45 = vpop.f32.mrf.mxu0  ;;  %v239_v46 = vpop.f32.mrf.mxu1  ;;  %v191_v49 = vadd.f32 %v190_v44, %v165_v41 }
  0xb9   :  { %v237_v47 = vadd.f32 %v236_v45, %v211_v42  ;;  %v240_v48 = vadd.f32 %v239_v46, %v214_v43  ;;  %v216_v50 = vpop.f32.mrf.mxu3 }
  0xba   :  { %v217_v55 = vadd.f32 %v216_v50, %v191_v49 }
  0xbb   :  { %v248_v51 = vmin.f32 %v237_v47, 0.0  ;;  %v249_v52 = vmin.f32 %v240_v48, 0.0  ;;  %vm245_vm1 = vcmp.gt.f32.partialorder %v237_v47, 0.0  ;;  %vm246_vm2 = vcmp.gt.f32.partialorder %v240_v48, 0.0 }
  0xbd   :  { %v251_v53 = vmul.f32 1.442695, %v248_v51  ;;  %v253_v54 = vmul.f32 1.442695, %v249_v52 }
  0xbf   :  { %294 = vpow2.f32 %v251_v53  ;;  %v242_v56 = vpop.f32.mrf.mxu2 }
  0xc0   :  { %296 = vpow2.f32 %v253_v54  ;;  %v243_v57 = vadd.f32 %v242_v56, %v217_v55 }
  0xc2   :  { %v250_v58 = vmin.f32 %v243_v57, 0.0  ;;  %vm247_vm4 = vcmp.gt.f32.partialorder %v243_v57, 0.0 }
  0xc4   :  { %v255_v59 = vmul.f32 1.442695, %v250_v58 }
  0xc5   :  { %v295_v60 = vpop.eup %294 }
  0xc6   :  { %v297_v61 = vpop.eup %296  ;;  %v274_v62 = vadd.f32 -1.0, %v295_v60  ;;  %298 = vpow2.f32 %v255_v59 }
  0xc7   :  { %v275_v63 = vadd.f32 -1.0, %v297_v61 }
  0xc8   :  { %v260_v0 = vsel %vm245_vm1, %v237_v47, %v274_v62 }
  0xc9   :  { %263 = vst.msk [vmem:[%s601_s3] sm:$0xff] %vm105_vm0, %v260_v0  ;;  %v261_v1 = vsel %vm246_vm2, %v240_v48, %v275_v63 }
  0xca   :  { %264 = vst.msk [vmem:[%s601_s3 + $0x8] sm:$0xff] %vm105_vm0, %v261_v1 }
  0xcc   :  { %v299_v2 = vpop.eup %298 }
  0xcd   :  { %v276_v3 = vadd.f32 -1.0, %v299_v2 }
  0xcf   :  { %v262_v4 = vsel %vm247_vm4, %v243_v57, %v276_v3 }
  0xd0   :  { %266 = vst.msk [vmem:[%s601_s3 + $0x10] sm:$0x3] %vm265_vm3, %v262_v4 }

// kernel: _lambda_.9
= control target key start
LH: loop header
LB: loop body
LE: loop exit
PB: predicated region body
PF: predicated region fallthrough
CT: control target
= control target key end

     0   :  { %17 = vsyncpa [#allocation3], 0  ;;  %vm494_vm0 = vcmask 261120   ;;  %s8017_s0 = inlined_call_operand.vmem [shape: f32[2,288], index: 0, kind: input, shape index: {}]   ;;  %s8018_s1 = inlined_call_operand.vmem [shape: f32[2,288], index: 1, kind: input, shape index: {}]   ;;  %s8019_s2 = inlined_call_operand.vmem [shape: bf16[288,512], index: 2, kind: input, shape index: {}]   ;;  %s8020_s3 = inlined_call_operand.vmem [shape: f32[1,512], index: 3, kind: input, shape index: {}, may-alias: {3,5,7,9}]   ;;  %s8021_s4 = inlined_call_operand.vmem [shape: bf16[512,512], index: 4, kind: input, shape index: {}]   ;;  %s8022_s5 = inlined_call_operand.vmem [shape: f32[1,512], index: 5, kind: input, shape index: {}, may-alias: {3,5,7,9}]   ;;  %s8023_s6 = inlined_call_operand.vmem [shape: bf16[512,512], index: 6, kind: input, shape index: {}]   ;;  %s8024_s7 = inlined_call_operand.vmem [shape: f32[1,512], index: 7, kind: input, shape index: {}, may-alias: {3,5,7,9}]   ;;  %s8025_s8 = inlined_call_operand.vmem [shape: bf16[288,512], index: 8, kind: input, shape index: {}]   ;;  %s8026_s9 = inlined_call_operand.vmem [shape: f32[1,512], index: 9, kind: input, shape index: {}, may-alias: {3,5,7,9}]   ;;  %s8027_s10 = inlined_call_operand.hbm [shape: f32[2,512], index: 10, kind: output, shape index: {0}]   ;;  %s8028_s11 = inlined_call_operand.hbm [shape: f32[2,512], index: 11, kind: output, shape index: {1}]  }
   0x1   :  { %v3428_v0 = vld [vmem:[%s8025_s8 + $0xe0] sm:$0xf]  ;;  %v4952_v1 = vld [vmem:[%s8025_s8 + $0xec] sm:$0xf0]  ;;  %v4982_v9 = vld [vmem:[%s8025_s8 + $0x1e4] sm:$0xf] }
   0x2   :  { %v3556_v2 = vld [vmem:[%s8025_s8 + $0x1e0] sm:$0xf]  ;;  %v3429_v3 = vor.u32 %v4952_v1, %v3428_v0  ;;  %v4984_v4 = vld [vmem:[%s8025_s8 + $0x1ec] sm:$0xf0]  ;;  %v3558_v10 = vld [vmem:[%s8025_s8 + $0x1f0] sm:$0xf0] }
   0x3   :  { %v3588_v5 = vld [vmem:[%s8025_s8 + $0x220] sm:$0xf]  ;;  %v4992_v6 = vld [vmem:[%s8025_s8 + $0x22c] sm:$0xf0]  ;;  %v3557_v7 = vor.u32 %v4984_v4, %v3556_v2  ;;  %v3561_v12 = vor.u32 %v4982_v9, %v3558_v10  ;;  %v4978_v20 = vld [vmem:[%s8025_s8 + $0x1c4] sm:$0xf] }
   0x4   :  { %v3589_v8 = vor.u32 %v4992_v6, %v3588_v5  ;;  %v3412_v11 = vld [vmem:[%s8025_s8 + $0xc0] sm:$0xf]  ;;  %498 = vmatpush.bf16.msra.mxu0 %v3429_v3  ;;  %v4948_v13 = vld [vmem:[%s8025_s8 + $0xcc] sm:$0xf0]  ;;  %v3542_v22 = vld [vmem:[%s8025_s8 + $0x1d0] sm:$0xf0] }
   0x5   :  { %v3540_v14 = vld [vmem:[%s8025_s8 + $0x1c0] sm:$0xf]  ;;  %v4980_v15 = vld [vmem:[%s8025_s8 + $0x1cc] sm:$0xf0]  ;;  %511 = vmatpush.bf16.msra.mxu1 %v3557_v7  ;;  %v3413_v16 = vor.u32 %v4948_v13, %v3412_v11  ;;  %550 = vmatpush.bf16.msra.mxu2 %v3561_v12  ;;  %v4950_v23 = vld [vmem:[%s8025_s8 + $0xe4] sm:$0xf]  ;;  %v3545_v25 = vor.u32 %v4978_v20, %v3542_v22 }
   0x6   :  { %530 = vmatpush.bf16.msra.mxu3 %v3589_v8  ;;  %v3541_v17 = vor.u32 %v4980_v15, %v3540_v14  ;;  %v3572_v18 = vld [vmem:[%s8025_s8 + $0x200] sm:$0xf]  ;;  %v4988_v19 = vld [vmem:[%s8025_s8 + $0x20c] sm:$0xf0]  ;;  %v3430_v24 = vld [vmem:[%s8025_s8 + $0xf0] sm:$0xf0] }
   0x7   :  { %v3573_v21 = vor.u32 %v4988_v19, %v3572_v18  ;;  %v3433_v26 = vor.u32 %v4950_v23, %v3430_v24  ;;  %v3396_v27 = vld [vmem:[%s8025_s8 + $0xa0] sm:$0xf]  ;;  %v4944_v28 = vld [vmem:[%s8025_s8 + $0xac] sm:$0xf0]  ;;  %v4974_v32 = vld [vmem:[%s8025_s8 + $0x1a4] sm:$0xf] }
   0x8   :  { %v3524_v29 = vld [vmem:[%s8025_s8 + $0x1a0] sm:$0xf]  ;;  %499 = vmatpush.bf16.msra.mxu0 %v3413_v16  ;;  %v3397_v30 = vor.u32 %v4944_v28, %v3396_v27  ;;  %v4976_v31 = vld [vmem:[%s8025_s8 + $0x1ac] sm:$0xf0]  ;;  %v3526_v33 = vld [vmem:[%s8025_s8 + $0x1b0] sm:$0xf0] }
   0x9   :  { %512 = vmatpush.bf16.msra.mxu1 %v3541_v17  ;;  %v3525_v34 = vor.u32 %v4976_v31, %v3524_v29  ;;  %v4946_v35 = vld [vmem:[%s8025_s8 + $0xc4] sm:$0xf]  ;;  %v3414_v36 = vld [vmem:[%s8025_s8 + $0xd0] sm:$0xf0]  ;;  %v3380_v37 = vld [vmem:[%s8025_s8 + $0x80] sm:$0xf]  ;;  %551 = vmatpush.bf16.msra.mxu2 %v3545_v25  ;;  %v3529_v38 = vor.u32 %v4974_v32, %v3526_v33 }
   0xa   :  { %531 = vmatpush.bf16.msra.mxu3 %v3573_v21  ;;  %v3417_v39 = vor.u32 %v4946_v35, %v3414_v36  ;;  %v4940_v40 = vld [vmem:[%s8025_s8 + $0x8c] sm:$0xf0]  ;;  %v3508_v41 = vld [vmem:[%s8025_s8 + $0x180] sm:$0xf]  ;;  %v4970_v43 = vld [vmem:[%s8025_s8 + $0x184] sm:$0xf] }
   0xb   :  { %v4972_v42 = vld [vmem:[%s8025_s8 + $0x18c] sm:$0xf0]  ;;  %v3510_v44 = vld [vmem:[%s8025_s8 + $0x190] sm:$0xf0]  ;;  %v4942_v45 = vld [vmem:[%s8025_s8 + $0xa4] sm:$0xf]  ;;  %v3381_v46 = vor.u32 %v4940_v40, %v3380_v37 }
   0xc   :  { %500 = vmatpush.bf16.msra.mxu0 %v3397_v30  ;;  %v3398_v47 = vld [vmem:[%s8025_s8 + $0xb0] sm:$0xf0]  ;;  %v3509_v48 = vor.u32 %v4972_v42, %v3508_v41  ;;  %v3364_v49 = vld [vmem:[%s8025_s8 + $0x60] sm:$0xf]  ;;  %v4936_v50 = vld [vmem:[%s8025_s8 + $0x6c] sm:$0xf0]  ;;  %v3513_v51 = vor.u32 %v4970_v43, %v3510_v44 }
   0xd   :  { %513 = vmatpush.bf16.msra.mxu1 %v3525_v34  ;;  %552 = vmatpush.bf16.msra.mxu2 %v3529_v38  ;;  %v3401_v52 = vor.u32 %v4942_v45, %v3398_v47  ;;  %v3492_v53 = vld [vmem:[%s8025_s8 + $0x160] sm:$0xf]  ;;  %v4968_v54 = vld [vmem:[%s8025_s8 + $0x16c] sm:$0xf0]  ;;  %v4966_v55 = vld [vmem:[%s8025_s8 + $0x164] sm:$0xf]  ;;  %v3365_v59 = vor.u32 %v4936_v50, %v3364_v49 }
   0xe   :  { %537 = vmatpush.bf16.msrb.mxu3 %v3433_v26  ;;  %v3494_v56 = vld [vmem:[%s8025_s8 + $0x170] sm:$0xf0]  ;;  %v4938_v57 = vld [vmem:[%s8025_s8 + $0x84] sm:$0xf]  ;;  %v3493_v61 = vor.u32 %v4968_v54, %v3492_v53  ;;  %v3348_v62 = vld [vmem:[%s8025_s8 + $0x40] sm:$0xf] }
   0xf   :  { %v3382_v58 = vld [vmem:[%s8025_s8 + $0x90] sm:$0xf0]  ;;  %v40_v60 = vld [vmem:[%s8018_s1] sm:$0x3f]  ;;  %v4932_v63 = vld [vmem:[%s8025_s8 + $0x4c] sm:$0xf0]  ;;  %v3497_v0 = vor.u32 %v4966_v55, %v3494_v56 }
  0x10   :  { %501 = vmatpush.bf16.msra.mxu0 %v3381_v46  ;;  %42 = vst [vmem:[#allocation1] ss:$4 sm:$0xff] %v40_v60  ;;  %v3385_v1 = vor.u32 %v4938_v57, %v3382_v58  ;;  %v3476_v2 = vld [vmem:[%s8025_s8 + $0x140] sm:$0xf]  ;;  %v4964_v3 = vld [vmem:[%s8025_s8 + $0x14c] sm:$0xf0]  ;;  %v3349_v8 = vor.u32 %v4932_v63, %v3348_v62 }
  0x11   :  { %514 = vmatpush.bf16.msra.mxu1 %v3509_v48  ;;  %553 = vmatpush.bf16.msra.mxu2 %v3513_v51  ;;  %v4962_v4 = vld [vmem:[%s8025_s8 + $0x144] sm:$0xf]  ;;  %v3478_v5 = vld [vmem:[%s8025_s8 + $0x150] sm:$0xf0]  ;;  %v3332_v9 = vld [vmem:[%s8025_s8 + $0x20] sm:$0xf]  ;;  %v3477_v10 = vor.u32 %v4964_v3, %v3476_v2 }
  0x12   :  { %538 = vmatpush.bf16.msrb.mxu3 %v3417_v39  ;;  %v4934_v6 = vld [vmem:[%s8025_s8 + $0x64] sm:$0xf]  ;;  %v3366_v7 = vld [vmem:[%s8025_s8 + $0x70] sm:$0xf0]  ;;  %v4928_v11 = vld [vmem:[%s8025_s8 + $0x2c] sm:$0xf0]  ;;  %v3481_v14 = vor.u32 %v4962_v4, %v3478_v5 }
  0x13   :  { %v3460_v12 = vld [vmem:[%s8025_s8 + $0x120] sm:$0xf]  ;;  %v4960_v13 = vld [vmem:[%s8025_s8 + $0x12c] sm:$0xf0]  ;;  %v3369_v15 = vor.u32 %v4934_v6, %v3366_v7  ;;  %v4958_v16 = vld [vmem:[%s8025_s8 + $0x124] sm:$0xf]  ;;  %v3333_v23 = vor.u32 %v4928_v11, %v3332_v9 }
  0x14   :  { %502 = vmatpush.bf16.msra.mxu0 %v3365_v59  ;;  %v3462_v17 = vld [vmem:[%s8025_s8 + $0x130] sm:$0xf0]  ;;  %v4930_v18 = vld [vmem:[%s8025_s8 + $0x44] sm:$0xf]  ;;  %v3316_v20 = vld [vmem:[%s8025_s8] sm:$0xf]  ;;  %v3461_v27 = vor.u32 %v4960_v13, %v3460_v12 }
  0x15   :  { %515 = vmatpush.bf16.msra.mxu1 %v3493_v61  ;;  %554 = vmatpush.bf16.msra.mxu2 %v3497_v0  ;;  %v3350_v19 = vld [vmem:[%s8025_s8 + $0x50] sm:$0xf0]  ;;  %v4924_v21 = vld [vmem:[%s8025_s8 + $0xc] sm:$0xf0]  ;;  %v3444_v24 = vld [vmem:[%s8025_s8 + $0x100] sm:$0xf]  ;;  %v3465_v34 = vor.u32 %v4958_v16, %v3462_v17 }
  0x16   :  { %539 = vmatpush.bf16.msrb.mxu3 %v3401_v52  ;;  %v4956_v25 = vld [vmem:[%s8025_s8 + $0x10c] sm:$0xf0]  ;;  %v4954_v28 = vld [vmem:[%s8025_s8 + $0x104] sm:$0xf]  ;;  %v3446_v29 = vld [vmem:[%s8025_s8 + $0x110] sm:$0xf0]  ;;  %v3353_v35 = vor.u32 %v4930_v18, %v3350_v19  ;;  %v3317_v41 = vor.u32 %v4924_v21, %v3316_v20 }
  0x17   :  { %v45_v22 = vld.sshfl [vmem:[#allocation1 + $0x10] sm:$0xff pattern:$0x73625140]  ;;  %v4926_v30 = vld [vmem:[%s8025_s8 + $0x24] sm:$0xf]  ;;  %v3445_v44 = vor.u32 %v4956_v25, %v3444_v24  ;;  %v3449_v48 = vor.u32 %v4954_v28, %v3446_v29 }
  0x18   :  { %503 = vmatpush.bf16.msra.mxu0 %v3349_v8  ;;  %v5627_v26 = vpack.c.bf16 %v45_v22, %v45_v22  ;;  %v3334_v31 = vld [vmem:[%s8025_s8 + $0x30] sm:$0xf0]  ;;  %v4990_v32 = vld [vmem:[%s8025_s8 + $0x224] sm:$0xf]  ;;  %v3436_v36 = vld [vmem:[%s8025_s8 + $0xe8] sm:$0xf] }
  0x19   :  { %516 = vmatpush.bf16.msra.mxu1 %v3477_v10  ;;  %v3590_v33 = vld [vmem:[%s8025_s8 + $0x230] sm:$0xf0]  ;;  %555 = vmatpush.bf16.msra.mxu2 %v3481_v14  ;;  %v4953_v37 = vld [vmem:[%s8025_s8 + $0xf4] sm:$0xf0]  ;;  %v669_v38 = vld [vmem:[%s8017_s0] sm:$0x3f]  ;;  %v3337_v49 = vor.u32 %v4926_v30, %v3334_v31 }
  0x1a   :  { %540 = vmatpush.bf16.msrb.mxu3 %v3385_v1  ;;  %v43_v39 = vld.sshfl [vmem:[#allocation1] sm:$0xff pattern:$0x73625140]  ;;  %v44_v40 = vld.sshfl [vmem:[#allocation1 + $0x8] sm:$0xff pattern:$0x73625140]  ;;  %v3593_v45 = vor.u32 %v4990_v32, %v3590_v33  ;;  %v3437_v53 = vor.u32 %v4953_v37, %v3436_v36 }
  0x1b   :  { %3602 = vmatmul.msk.bf16.vlgmr.msra.gmra.mxu3 %vm494_vm0, %v5627_v26  ;;  %v3596_v42 = vld [vmem:[%s8025_s8 + $0x228] sm:$0xf]  ;;  %v4993_v43 = vld [vmem:[%s8025_s8 + $0x234] sm:$0xf0]  ;;  %671 = vst [vmem:[#allocation1] ss:$4 sm:$0xff] %v669_v38  ;;  %v5688_v58 = vpack.c.bf16 %v43_v39, %v43_v39  ;;  %v5699_v62 = vpack.c.bf16 %v44_v40, %v44_v40 }
  0x1c   :  { %504 = vmatpush.bf16.msra.mxu0 %v3333_v23  ;;  %v4922_v46 = vld [vmem:[%s8025_s8 + $0x4] sm:$0xf]  ;;  %v3318_v47 = vld [vmem:[%s8025_s8 + $0x10] sm:$0xf0]  ;;  %v3420_v52 = vld [vmem:[%s8025_s8 + $0xc8] sm:$0xf]  ;;  %v3597_v54 = vor.u32 %v4993_v43, %v3596_v42 }
  0x1d   :  { %517 = vmatpush.bf16.msra.mxu1 %v3461_v27  ;;  %556 = vmatpush.bf16.msra.mxu2 %v3465_v34  ;;  %v4986_v50 = vld [vmem:[%s8025_s8 + $0x204] sm:$0xf]  ;;  %v3574_v51 = vld [vmem:[%s8025_s8 + $0x210] sm:$0xf0]  ;;  %v4949_v55 = vld [vmem:[%s8025_s8 + $0xd4] sm:$0xf0]  ;;  %v3321_v3 = vor.u32 %v4922_v46, %v3318_v47 }
  0x1e   :  { %541 = vmatpush.bf16.msrb.mxu3 %v3369_v15  ;;  %v3580_v56 = vld [vmem:[%s8025_s8 + $0x208] sm:$0xf]  ;;  %v4951_v57 = vld [vmem:[%s8025_s8 + $0xec] sm:$0xf]  ;;  %v4989_v59 = vld [vmem:[%s8025_s8 + $0x214] sm:$0xf0]  ;;  %v3577_v63 = vor.u32 %v4986_v50, %v3574_v51  ;;  %v3421_v5 = vor.u32 %v4949_v55, %v3420_v52 }
  0x1f   :  { %v3564_v60 = vld [vmem:[%s8025_s8 + $0x1e8] sm:$0xf]  ;;  %v3438_v61 = vld [vmem:[%s8025_s8 + $0xf8] sm:$0xf0]  ;;  %v4985_v0 = vld [vmem:[%s8025_s8 + $0x1f4] sm:$0xf0]  ;;  %v3581_v6 = vor.u32 %v4989_v59, %v3580_v56 }
  0x20   :  { %505 = vmatpush.bf16.msra.mxu0 %v3317_v41  ;;  %v4983_v1 = vld [vmem:[%s8025_s8 + $0x1ec] sm:$0xf]  ;;  %v3566_v2 = vld [vmem:[%s8025_s8 + $0x1f8] sm:$0xf0]  ;;  %v3441_v4 = vor.u32 %v4951_v57, %v3438_v61  ;;  %v3565_v9 = vor.u32 %v4985_v0, %v3564_v60  ;;  %v3404_v11 = vld [vmem:[%s8025_s8 + $0xa8] sm:$0xf] }
  0x21   :  { %518 = vmatpush.bf16.msra.mxu1 %v3445_v44  ;;  %557 = vmatpush.bf16.msra.mxu2 %v3449_v48  ;;  %v4947_v7 = vld [vmem:[%s8025_s8 + $0xcc] sm:$0xf]  ;;  %v3422_v8 = vld [vmem:[%s8025_s8 + $0xd8] sm:$0xf0]  ;;  %v3569_v10 = vor.u32 %v4983_v1, %v3566_v2  ;;  %v4945_v12 = vld [vmem:[%s8025_s8 + $0xb4] sm:$0xf0] }
  0x22   :  { %542 = vmatpush.bf16.msrb.mxu3 %v3353_v35  ;;  %v3548_v13 = vld [vmem:[%s8025_s8 + $0x1c8] sm:$0xf]  ;;  %v4981_v14 = vld [vmem:[%s8025_s8 + $0x1d4] sm:$0xf0]  ;;  %v4979_v15 = vld [vmem:[%s8025_s8 + $0x1cc] sm:$0xf]  ;;  %v3425_v17 = vor.u32 %v4947_v7, %v3422_v8  ;;  %v3405_v18 = vor.u32 %v4945_v12, %v3404_v11 }
  0x23   :  { %506 = vmatmul.bf16.vlgmr.msra.gmra.mxu0 %v5688_v58  ;;  %v3550_v16 = vld [vmem:[%s8025_s8 + $0x1d8] sm:$0xf0]  ;;  %v4943_v19 = vld [vmem:[%s8025_s8 + $0xac] sm:$0xf]  ;;  %v3549_v21 = vor.u32 %v4981_v14, %v3548_v13  ;;  %v3388_v23 = vld [vmem:[%s8025_s8 + $0x88] sm:$0xf] }
  0x24   :  { %569 = vmatpush.bf16.msrb.mxu0 %v3593_v45  ;;  %519 = vmatmul.bf16.vlgmr.msra.gmra.mxu1 %v5699_v62  ;;  %v3406_v20 = vld [vmem:[%s8025_s8 + $0xb8] sm:$0xf0]  ;;  %v3553_v22 = vor.u32 %v4979_v15, %v3550_v16  ;;  %v4941_v24 = vld [vmem:[%s8025_s8 + $0x94] sm:$0xf0]  ;;  %v3532_v25 = vld [vmem:[%s8025_s8 + $0x1a8] sm:$0xf] }
  0x25   :  { %576 = vmatpush.bf16.msrb.mxu1 %v3437_v53  ;;  %608 = vmatpush.bf16.msrb.mxu2 %v3597_v54  ;;  %v4977_v27 = vld [vmem:[%s8025_s8 + $0x1b4] sm:$0xf0]  ;;  %v4975_v28 = vld [vmem:[%s8025_s8 + $0x1ac] sm:$0xf]  ;;  %v3534_v29 = vld [vmem:[%s8025_s8 + $0x1b8] sm:$0xf0]  ;;  %v3409_v30 = vor.u32 %v4943_v19, %v3406_v20  ;;  %v3389_v31 = vor.u32 %v4941_v24, %v3388_v23 }
  0x26   :  { %543 = vmatpush.bf16.msrb.mxu3 %v3337_v49  ;;  %558 = vmatmul.bf16.vlgmr.msra.gmra.mxu2 %v5699_v62  ;;  %v4939_v32 = vld [vmem:[%s8025_s8 + $0x8c] sm:$0xf]  ;;  %v3390_v33 = vld [vmem:[%s8025_s8 + $0x98] sm:$0xf0]  ;;  %v3533_v34 = vor.u32 %v4977_v27, %v3532_v25  ;;  %v3537_v35 = vor.u32 %v4975_v28, %v3534_v29  ;;  %v3372_v36 = vld [vmem:[%s8025_s8 + $0x68] sm:$0xf] }
  0x27   :  { %v4937_v37 = vld [vmem:[%s8025_s8 + $0x74] sm:$0xf0]  ;;  %v3516_v38 = vld [vmem:[%s8025_s8 + $0x188] sm:$0xf]  ;;  %v4971_v40 = vld [vmem:[%s8025_s8 + $0x18c] sm:$0xf]  ;;  %v3393_v42 = vor.u32 %v4939_v32, %v3390_v33 }
  0x28   :  { %570 = vmatpush.bf16.msrb.mxu0 %v3577_v63  ;;  %v4973_v39 = vld [vmem:[%s8025_s8 + $0x194] sm:$0xf0]  ;;  %v3518_v41 = vld [vmem:[%s8025_s8 + $0x198] sm:$0xf0]  ;;  %v3373_v43 = vor.u32 %v4937_v37, %v3372_v36  ;;  %v4935_v44 = vld [vmem:[%s8025_s8 + $0x6c] sm:$0xf] }
  0x29   :  { %577 = vmatpush.bf16.msrb.mxu1 %v3421_v5  ;;  %609 = vmatpush.bf16.msrb.mxu2 %v3581_v6  ;;  %v3374_v45 = vld [vmem:[%s8025_s8 + $0x78] sm:$0xf0]  ;;  %v3517_v46 = vor.u32 %v4973_v39, %v3516_v38  ;;  %v3521_v47 = vor.u32 %v4971_v40, %v3518_v41  ;;  %v3356_v48 = vld [vmem:[%s8025_s8 + $0x48] sm:$0xf]  ;;  %v4933_v49 = vld [vmem:[%s8025_s8 + $0x54] sm:$0xf0] }
  0x2a   :  { %544 = vmatpush.bf16.msrb.mxu3 %v3321_v3  ;;  %v3500_v50 = vld [vmem:[%s8025_s8 + $0x168] sm:$0xf]  ;;  %v4969_v51 = vld [vmem:[%s8025_s8 + $0x174] sm:$0xf0]  ;;  %v4967_v52 = vld [vmem:[%s8025_s8 + $0x16c] sm:$0xf]  ;;  %v3377_v54 = vor.u32 %v4935_v44, %v3374_v45  ;;  %v3357_v55 = vor.u32 %v4933_v49, %v3356_v48 }
  0x2b   :  { %v3502_v53 = vld [vmem:[%s8025_s8 + $0x178] sm:$0xf0]  ;;  %v4931_v56 = vld [vmem:[%s8025_s8 + $0x4c] sm:$0xf]  ;;  %v3501_v59 = vor.u32 %v4969_v51, %v3500_v50  ;;  %v3340_v61 = vld [vmem:[%s8025_s8 + $0x28] sm:$0xf] }
  0x2c   :  { %615 = vmatpush.bf16.msra.mxu0 %v3441_v4  ;;  %v3358_v57 = vld [vmem:[%s8025_s8 + $0x58] sm:$0xf0]  ;;  %v3505_v60 = vor.u32 %v4967_v52, %v3502_v53  ;;  %v4929_v63 = vld [vmem:[%s8025_s8 + $0x34] sm:$0xf0]  ;;  %v3484_v0 = vld [vmem:[%s8025_s8 + $0x148] sm:$0xf] }
  0x2d   :  { %628 = vmatpush.bf16.msra.mxu2 %v3569_v10  ;;  %545 = vmatmul.bf16.vlgmr.msrb.gmra.mxu3 %v5688_v58  ;;  %v4965_v1 = vld [vmem:[%s8025_s8 + $0x154] sm:$0xf0]  ;;  %v4963_v2 = vld [vmem:[%s8025_s8 + $0x14c] sm:$0xf]  ;;  %v3486_v3 = vld [vmem:[%s8025_s8 + $0x158] sm:$0xf0]  ;;  %v3361_v4 = vor.u32 %v4931_v56, %v3358_v57  ;;  %v3341_v5 = vor.u32 %v4929_v63, %v3340_v61 }
  0x2e   :  { %589 = vmatpush.bf16.msra.mxu3 %v3565_v9  ;;  %578 = vmatpush.bf16.msrb.mxu1 %v3405_v18  ;;  %v4927_v6 = vld [vmem:[%s8025_s8 + $0x2c] sm:$0xf]  ;;  %v3342_v7 = vld [vmem:[%s8025_s8 + $0x38] sm:$0xf0]  ;;  %v3485_v8 = vor.u32 %v4965_v1, %v3484_v0  ;;  %v3489_v9 = vor.u32 %v4963_v2, %v3486_v3  ;;  %v3324_v10 = vld [vmem:[%s8025_s8 + $0x8] sm:$0xf] }
  0x2f   :  { %v4925_v11 = vld [vmem:[%s8025_s8 + $0x14] sm:$0xf0]  ;;  %v3468_v12 = vld [vmem:[%s8025_s8 + $0x128] sm:$0xf]  ;;  %v4959_v14 = vld [vmem:[%s8025_s8 + $0x12c] sm:$0xf]  ;;  %v3345_v16 = vor.u32 %v4927_v6, %v3342_v7 }
  0x30   :  { %616 = vmatpush.bf16.msra.mxu0 %v3425_v17  ;;  %v4961_v13 = vld [vmem:[%s8025_s8 + $0x134] sm:$0xf0]  ;;  %v3470_v15 = vld [vmem:[%s8025_s8 + $0x138] sm:$0xf0]  ;;  %v4991_v17 = vld [vmem:[%s8025_s8 + $0x22c] sm:$0xf]  ;;  %v3325_v19 = vor.u32 %v4925_v11, %v3324_v10 }
  0x31   :  { %629 = vmatpush.bf16.msra.mxu2 %v3553_v22  ;;  %v3598_v18 = vld [vmem:[%s8025_s8 + $0x238] sm:$0xf0]  ;;  %v3452_v20 = vld [vmem:[%s8025_s8 + $0x108] sm:$0xf]  ;;  %v3469_v23 = vor.u32 %v4961_v13, %v3468_v12  ;;  %v3473_v24 = vor.u32 %v4959_v14, %v3470_v15  ;;  %v4957_v25 = vld [vmem:[%s8025_s8 + $0x114] sm:$0xf0] }
  0x32   :  { %590 = vmatpush.bf16.msra.mxu3 %v3549_v21  ;;  %579 = vmatpush.bf16.msrb.mxu1 %v3389_v31  ;;  %v4923_v21 = vld [vmem:[%s8025_s8 + $0xc] sm:$0xf]  ;;  %v3326_v22 = vld [vmem:[%s8025_s8 + $0x18] sm:$0xf0]  ;;  %v3848_v27 = vld [vmem:[%s8019_s2 + $0x1e0] sm:$0xf]  ;;  %v3601_v32 = vor.u32 %v4991_v17, %v3598_v18  ;;  %v3453_v40 = vor.u32 %v4957_v25, %v3452_v20 }
  0x33   :  { %3603 = vmatmul.msk.bf16.vlgmr.msrb.gmra.mxu0 %vm494_vm0, %v5627_v26  ;;  %v5056_v28 = vld [vmem:[%s8019_s2 + $0x1ec] sm:$0xf0]  ;;  %v4955_v29 = vld [vmem:[%s8025_s8 + $0x10c] sm:$0xf]  ;;  %v3720_v31 = vld [vmem:[%s8019_s2 + $0xe0] sm:$0xf]  ;;  %v3329_v33 = vor.u32 %v4923_v21, %v3326_v22 }
  0x34   :  { %617 = vmatpush.bf16.msra.mxu0 %v3409_v30  ;;  %v3454_v30 = vld [vmem:[%s8025_s8 + $0x118] sm:$0xf0]  ;;  %v3722_v36 = vld [vmem:[%s8019_s2 + $0xf0] sm:$0xf0]  ;;  %v3849_v37 = vor.u32 %v5056_v28, %v3848_v27  ;;  %v4987_v38 = vld [vmem:[%s8025_s8 + $0x20c] sm:$0xf] }
  0x35   :  { %630 = vmatpush.bf16.msra.mxu2 %v3537_v35  ;;  %v5022_v35 = vld [vmem:[%s8019_s2 + $0xe4] sm:$0xf]  ;;  %v3582_v39 = vld [vmem:[%s8025_s8 + $0x218] sm:$0xf0]  ;;  %v3457_v41 = vor.u32 %v4955_v29, %v3454_v30  ;;  %v5064_v48 = vld [vmem:[%s8019_s2 + $0x22c] sm:$0xf0] }
  0x36   :  { %591 = vmatpush.bf16.msra.mxu3 %v3533_v34  ;;  %580 = vmatpush.bf16.msrb.mxu1 %v3373_v43  ;;  %v5024_v34 = vld [vmem:[%s8019_s2 + $0xec] sm:$0xf0]  ;;  %v3725_v45 = vor.u32 %v5022_v35, %v3722_v36  ;;  %v5018_v50 = vld [vmem:[%s8019_s2 + $0xc4] sm:$0xf]  ;;  %v3706_v51 = vld [vmem:[%s8019_s2 + $0xd0] sm:$0xf0]  ;;  %v3585_v52 = vor.u32 %v4987_v38, %v3582_v39 }
  0x37   :  { %3604 = vmatmul.msk.bf16.vlgmr.msrb.gmra.mxu2 %vm494_vm0, %v5627_v26  ;;  %v5052_v43 = vld [vmem:[%s8019_s2 + $0x1cc] sm:$0xf0]  ;;  %v3721_v44 = vor.u32 %v5024_v34, %v3720_v31  ;;  %v3864_v61 = vld [vmem:[%s8019_s2 + $0x200] sm:$0xf]  ;;  %v5014_v1 = vld [vmem:[%s8019_s2 + $0xa4] sm:$0xf] }
  0x38   :  { %618 = vmatpush.bf16.msra.mxu0 %v3393_v42  ;;  %v3832_v42 = vld [vmem:[%s8019_s2 + $0x1c0] sm:$0xf]  ;;  %v5020_v49 = vld [vmem:[%s8019_s2 + $0xcc] sm:$0xf0]  ;;  %v3690_v2 = vld [vmem:[%s8019_s2 + $0xb0] sm:$0xf0] }
  0x39   :  { %631 = vmatpush.bf16.msra.mxu2 %v3521_v47  ;;  %v3880_v47 = vld [vmem:[%s8019_s2 + $0x220] sm:$0xf]  ;;  %v3833_v53 = vor.u32 %v5052_v43, %v3832_v42  ;;  %v5060_v63 = vld [vmem:[%s8019_s2 + $0x20c] sm:$0xf0]  ;;  %v3674_v10 = vld [vmem:[%s8019_s2 + $0x90] sm:$0xf0] }
  0x3a   :  { %592 = vmatpush.bf16.msra.mxu3 %v3517_v46  ;;  %581 = vmatpush.bf16.msrb.mxu1 %v3357_v55  ;;  %v3704_v46 = vld [vmem:[%s8019_s2 + $0xc0] sm:$0xf]  ;;  %v5048_v55 = vld [vmem:[%s8019_s2 + $0x1ac] sm:$0xf0]  ;;  %v3881_v56 = vor.u32 %v5064_v48, %v3880_v47  ;;  %v3865_v6 = vor.u32 %v5060_v63, %v3864_v61  ;;  %v5054_v12 = vld [vmem:[%s8019_s2 + $0x1e4] sm:$0xf] }
  0x3b   :  { %v3705_v57 = vor.u32 %v5020_v49, %v3704_v46  ;;  %v5016_v0 = vld [vmem:[%s8019_s2 + $0xac] sm:$0xf0]  ;;  %v3850_v13 = vld [vmem:[%s8019_s2 + $0x1f0] sm:$0xf0]  ;;  %v3784_v14 = vld [vmem:[%s8019_s2 + $0x160] sm:$0xf] }
  0x3c   :  { %619 = vmatpush.bf16.msra.mxu0 %v3377_v54  ;;  %v3816_v54 = vld [vmem:[%s8019_s2 + $0x1a0] sm:$0xf]  ;;  %v5040_v15 = vld [vmem:[%s8019_s2 + $0x16c] sm:$0xf0]  ;;  %v5006_v20 = vld [vmem:[%s8019_s2 + $0x64] sm:$0xf]  ;;  %v3853_v22 = vor.u32 %v5054_v12, %v3850_v13 }
  0x3d   :  { %632 = vmatpush.bf16.msra.mxu2 %v3505_v60  ;;  %v3688_v60 = vld [vmem:[%s8019_s2 + $0xa0] sm:$0xf]  ;;  %v3817_v3 = vor.u32 %v5048_v55, %v3816_v54  ;;  %v3658_v21 = vld [vmem:[%s8019_s2 + $0x70] sm:$0xf0]  ;;  %v5036_v28 = vld [vmem:[%s8019_s2 + $0x14c] sm:$0xf0] }
  0x3e   :  { %593 = vmatpush.bf16.msra.mxu3 %v3501_v59  ;;  %582 = vmatpush.bf16.msrb.mxu1 %v3341_v5  ;;  %v3709_v59 = vor.u32 %v5018_v50, %v3706_v51  ;;  %v5044_v5 = vld [vmem:[%s8019_s2 + $0x18c] sm:$0xf0]  ;;  %v3689_v7 = vor.u32 %v5016_v0, %v3688_v60  ;;  %v3656_v18 = vld [vmem:[%s8019_s2 + $0x60] sm:$0xf]  ;;  %v3834_v25 = vld [vmem:[%s8019_s2 + $0x1d0] sm:$0xf0]  ;;  %v3661_v30 = vor.u32 %v5006_v20, %v3658_v21 }
  0x3f   :  { %v3768_v27 = vld [vmem:[%s8019_s2 + $0x140] sm:$0xf]  ;;  %v3642_v34 = vld [vmem:[%s8019_s2 + $0x50] sm:$0xf0]  ;;  %v5032_v39 = vld [vmem:[%s8019_s2 + $0x12c] sm:$0xf0] }
  0x40   :  { %620 = vmatpush.bf16.msra.mxu0 %v3361_v4  ;;  %v3800_v4 = vld [vmem:[%s8019_s2 + $0x180] sm:$0xf]  ;;  %v3769_v36 = vor.u32 %v5036_v28, %v3768_v27  ;;  %v5000_v43 = vld [vmem:[%s8019_s2 + $0x2c] sm:$0xf0]  ;;  %v5042_v48 = vld [vmem:[%s8019_s2 + $0x184] sm:$0xf] }
  0x41   :  { %633 = vmatpush.bf16.msra.mxu2 %v3489_v9  ;;  %v5010_v9 = vld [vmem:[%s8019_s2 + $0x84] sm:$0xf]  ;;  %v3801_v11 = vor.u32 %v5044_v5, %v3800_v4  ;;  %v3640_v31 = vld [vmem:[%s8019_s2 + $0x40] sm:$0xf]  ;;  %v3802_v49 = vld [vmem:[%s8019_s2 + $0x190] sm:$0xf0] }
  0x42   :  { %594 = vmatpush.bf16.msra.mxu3 %v3485_v8  ;;  %583 = vmatpush.bf16.msrb.mxu1 %v3325_v19  ;;  %v3672_v8 = vld [vmem:[%s8019_s2 + $0x80] sm:$0xf]  ;;  %v3677_v17 = vor.u32 %v5010_v9, %v3674_v10  ;;  %v5008_v19 = vld [vmem:[%s8019_s2 + $0x6c] sm:$0xf0]  ;;  %v3610_v60 = vld [vmem:[%s8019_s2 + $0x10] sm:$0xf0]  ;;  %v3805_v63 = vor.u32 %v5042_v48, %v3802_v49 }
  0x43   :  { %v3657_v29 = vor.u32 %v5008_v19, %v3656_v18  ;;  %v3752_v38 = vld [vmem:[%s8019_s2 + $0x120] sm:$0xf]  ;;  %v4996_v51 = vld [vmem:[%s8019_s2 + $0xc] sm:$0xf0]  ;;  %v3786_v4 = vld [vmem:[%s8019_s2 + $0x170] sm:$0xf0] }
  0x44   :  { %621 = vmatpush.bf16.msra.mxu0 %v3345_v16  ;;  %v3624_v42 = vld [vmem:[%s8019_s2 + $0x20] sm:$0xf]  ;;  %v3753_v47 = vor.u32 %v5032_v39, %v3752_v38  ;;  %v674_v61 = vld.sshfl [vmem:[#allocation1 + $0x10] sm:$0xff pattern:$0x73625140] }
  0x45   :  { %634 = vmatpush.bf16.msra.mxu2 %v3473_v24  ;;  %584 = vmatmul.bf16.vlgmr.msrb.gmra.mxu1 %v5688_v58  ;;  %v5050_v24 = vld [vmem:[%s8019_s2 + $0x1c4] sm:$0xf]  ;;  %v3608_v50 = vld [vmem:[%s8019_s2] sm:$0xf]  ;;  %v3625_v54 = vor.u32 %v5000_v43, %v3624_v42  ;;  %v6102_v9 = vpack.c.bf16 %v674_v61, %v674_v61  ;;  %v3770_v12 = vld [vmem:[%s8019_s2 + $0x150] sm:$0xf0] }
  0x46   :  { %595 = vmatpush.bf16.msra.mxu3 %v3469_v23  ;;  %647 = vmatpush.bf16.msra.mxu1 %v3601_v32  ;;  %v3785_v23 = vor.u32 %v5040_v15, %v3784_v14  ;;  %v5004_v32 = vld [vmem:[%s8019_s2 + $0x4c] sm:$0xf0]  ;;  %v3837_v35 = vor.u32 %v5050_v24, %v3834_v25  ;;  %v5058_v13 = vld [vmem:[%s8019_s2 + $0x204] sm:$0xf]  ;;  %v3712_v14 = vld [vmem:[%s8019_s2 + $0xc8] sm:$0xf] }
  0x47   :  { %v5021_v15 = vld [vmem:[%s8019_s2 + $0xd4] sm:$0xf0]  ;;  %v3866_v18 = vld [vmem:[%s8019_s2 + $0x210] sm:$0xf0]  ;;  %v3872_v21 = vld [vmem:[%s8019_s2 + $0x208] sm:$0xf] }
  0x48   :  { %622 = vmatpush.bf16.msra.mxu0 %v3329_v33  ;;  %v5002_v33 = vld [vmem:[%s8019_s2 + $0x44] sm:$0xf]  ;;  %v673_v19 = vld.sshfl [vmem:[#allocation1 + $0x8] sm:$0xff pattern:$0x73625140]  ;;  %v3713_v24 = vor.u32 %v5021_v15, %v3712_v14 }
  0x49   :  { %635 = vmatpush.bf16.msra.mxu2 %v3457_v41  ;;  %v3645_v41 = vor.u32 %v5002_v33, %v3642_v34  ;;  %v5057_v25 = vld [vmem:[%s8019_s2 + $0x1f4] sm:$0xf0]  ;;  %v5055_v27 = vld [vmem:[%s8019_s2 + $0x1ec] sm:$0xf]  ;;  %v3858_v28 = vld [vmem:[%s8019_s2 + $0x1f8] sm:$0xf0] }
  0x4a   :  { %596 = vmatpush.bf16.msra.mxu3 %v3453_v40  ;;  %648 = vmatpush.bf16.msra.mxu1 %v3585_v52  ;;  %v3641_v40 = vor.u32 %v5004_v32, %v3640_v31  ;;  %v3736_v52 = vld [vmem:[%s8019_s2 + $0x100] sm:$0xf]  ;;  %v3696_v31 = vld [vmem:[%s8019_s2 + $0xa8] sm:$0xf]  ;;  %v5017_v32 = vld [vmem:[%s8019_s2 + $0xb4] sm:$0xf0] }
  0x4b   :  { %623 = vmatmul.bf16.vlgmr.msra.gmra.mxu0 %v5688_v58  ;;  %v3693_v58 = vor.u32 %v5014_v1, %v3690_v2  ;;  %v5038_v1 = vld [vmem:[%s8019_s2 + $0x164] sm:$0xf] }
  0x4c   :  { %1139 = vmatpush.bf16.msrb.mxu0 %v3849_v37  ;;  %636 = vmatmul.bf16.vlgmr.msra.gmra.mxu2 %v5699_v62  ;;  %v3818_v37 = vld [vmem:[%s8019_s2 + $0x1b0] sm:$0xf0]  ;;  %v5062_v2 = vld [vmem:[%s8019_s2 + $0x224] sm:$0xf] }
  0x4d   :  { %1165 = vmatpush.bf16.msrb.mxu2 %v3725_v45  ;;  %597 = vmatmul.bf16.vlgmr.msra.gmra.mxu3 %v5699_v62  ;;  %v5012_v62 = vld [vmem:[%s8019_s2 + $0x8c] sm:$0xf0]  ;;  %v3626_v45 = vld [vmem:[%s8019_s2 + $0x30] sm:$0xf0] }
  0x4e   :  { %1126 = vmatpush.bf16.msrb.mxu3 %v3721_v44  ;;  %1158 = vmatpush.bf16.msrb.mxu1 %v3881_v56  ;;  %v3673_v16 = vor.u32 %v5012_v62, %v3672_v8  ;;  %v4998_v44 = vld [vmem:[%s8019_s2 + $0x24] sm:$0xf] }
  0x4f   :  { %v3629_v55 = vor.u32 %v4998_v44, %v3626_v45  ;;  %v4994_v56 = vld [vmem:[%s8019_s2 + $0x4] sm:$0xf] }
  0x50   :  { %1140 = vmatpush.bf16.msrb.mxu0 %v3833_v53  ;;  %v5028_v53 = vld [vmem:[%s8019_s2 + $0x10c] sm:$0xf0]  ;;  %v3613_v8 = vor.u32 %v4994_v56, %v3610_v60  ;;  %v672_v62 = vld.sshfl [vmem:[#allocation1] sm:$0xff pattern:$0x73625140] }
  0x51   :  { %1166 = vmatpush.bf16.msrb.mxu2 %v3709_v59  ;;  %v5025_v59 = vld [vmem:[%s8019_s2 + $0xf4] sm:$0xf0]  ;;  %v3737_v0 = vor.u32 %v5028_v53, %v3736_v52  ;;  %v6122_v20 = vpack.c.bf16 %v672_v62, %v672_v62 }
  0x52   :  { %1127 = vmatpush.bf16.msrb.mxu3 %v3705_v57  ;;  %1159 = vmatpush.bf16.msrb.mxu1 %v3865_v6  ;;  %v3728_v57 = vld [vmem:[%s8019_s2 + $0xe8] sm:$0xf] }
  0x53   :  { %v3729_v5 = vor.u32 %v5025_v59, %v3728_v57  ;;  %v3888_v6 = vld [vmem:[%s8019_s2 + $0x228] sm:$0xf] }
  0x54   :  { %1141 = vmatpush.bf16.msrb.mxu0 %v3817_v3  ;;  %v3882_v3 = vld [vmem:[%s8019_s2 + $0x230] sm:$0xf0] }
  0x55   :  { %1167 = vmatpush.bf16.msrb.mxu2 %v3693_v58  ;;  %3605 = vmatmul.msk.bf16.vlgmr.msra.gmra.mxu1 %vm494_vm0, %v5627_v26  ;;  %v5046_v26 = vld [vmem:[%s8019_s2 + $0x1a4] sm:$0xf]  ;;  %v3609_v58 = vor.u32 %v4996_v51, %v3608_v50  ;;  %v3885_v10 = vor.u32 %v5062_v2, %v3882_v3 }
  0x56   :  { %1128 = vmatpush.bf16.msrb.mxu3 %v3689_v7  ;;  %1178 = vmatpush.bf16.msra.mxu1 %v3853_v22  ;;  %v3821_v46 = vor.u32 %v5046_v26, %v3818_v37  ;;  %v5065_v7 = vld [vmem:[%s8019_s2 + $0x234] sm:$0xf0] }
  0x57   :  { %v5061_v22 = vld [vmem:[%s8019_s2 + $0x214] sm:$0xf0] }
  0x58   :  { %1142 = vmatpush.bf16.msrb.mxu0 %v3801_v11  ;;  %v5034_v11 = vld [vmem:[%s8019_s2 + $0x144] sm:$0xf]  ;;  %v3873_v34 = vor.u32 %v5061_v22, %v3872_v21 }
  0x59   :  { %1168 = vmatpush.bf16.msrb.mxu2 %v3677_v17  ;;  %v3889_v17 = vor.u32 %v5065_v7, %v3888_v6  ;;  %v3773_v33 = vor.u32 %v5034_v11, %v3770_v12 }
  0x5a   :  { %1129 = vmatpush.bf16.msrb.mxu3 %v3673_v16  ;;  %1179 = vmatpush.bf16.msra.mxu1 %v3837_v35  ;;  %v3789_v16 = vor.u32 %v5038_v1, %v3786_v4 }
  0x5c   :  { %1143 = vmatpush.bf16.msrb.mxu0 %v3785_v23  ;;  %v3856_v23 = vld [vmem:[%s8019_s2 + $0x1e8] sm:$0xf] }
  0x5d   :  { %1169 = vmatpush.bf16.msrb.mxu2 %v3661_v30  ;;  %v6144_v30 = vpack.c.bf16 %v673_v19, %v673_v19 }
  0x5e   :  { %1130 = vmatpush.bf16.msrb.mxu3 %v3657_v29  ;;  %1180 = vmatpush.bf16.msra.mxu1 %v3821_v46  ;;  %v3869_v29 = vor.u32 %v5058_v13, %v3866_v18 }
  0x60   :  { %1144 = vmatpush.bf16.msrb.mxu0 %v3769_v36 }
  0x61   :  { %1170 = vmatpush.bf16.msrb.mxu2 %v3645_v41 }
  0x62   :  { %1131 = vmatpush.bf16.msrb.mxu3 %v3641_v40  ;;  %1181 = vmatpush.bf16.msra.mxu1 %v3805_v63 }
  0x64   :  { %1145 = vmatpush.bf16.msrb.mxu0 %v3753_v47 }
  0x65   :  { %1171 = vmatpush.bf16.msrb.mxu2 %v3629_v55  ;;  %3894 = vmatmul.msk.bf16.vlgmr.msrb.gmra.mxu1 %vm494_vm0, %v6102_v9 }
  0x66   :  { %1132 = vmatpush.bf16.msrb.mxu3 %v3625_v54  ;;  %1182 = vmatpush.bf16.msra.mxu1 %v3789_v16 }
  0x68   :  { %1146 = vmatpush.bf16.msrb.mxu0 %v3737_v0 }
  0x69   :  { %1172 = vmatpush.bf16.msrb.mxu2 %v3613_v8 }
  0x6a   :  { %1133 = vmatpush.bf16.msrb.mxu3 %v3609_v58 }
  0x6c   :  { %1204 = vmatpush.bf16.msra.mxu0 %v3729_v5 }
  0x6d   :  { %1236 = vmatpush.bf16.msra.mxu2 %v3889_v17 }
  0x6e   :  { %1197 = vmatpush.bf16.msra.mxu3 %v3885_v10 }
  0x6f   :  { %18 = vsyncpa [#allocation5], 0  ;;  %1134 = vmatmul.bf16.vlgmr.msrb.gmra.mxu3 %v6122_v20  ;;  %1173 = vmatmul.bf16.vlgmr.msrb.gmra.mxu2 %v6122_v20  ;;  %v3857_v35 = vor.u32 %v5057_v25, %v3856_v23  ;;  %v3861_v36 = vor.u32 %v5055_v27, %v3858_v28  ;;  %v5030_v26 = vld [vmem:[%s8019_s2 + $0x124] sm:$0xf]  ;;  %v3754_v37 = vld [vmem:[%s8019_s2 + $0x130] sm:$0xf0]  ;;  %v3697_v39 = vor.u32 %v5017_v32, %v3696_v31 }
  0x70   :  { %v3840_v38 = vld [vmem:[%s8019_s2 + $0x1c8] sm:$0xf]  ;;  %1205 = vmatpush.bf16.msra.mxu0 %v3713_v24  ;;  %v5053_v40 = vld [vmem:[%s8019_s2 + $0x1d4] sm:$0xf0]  ;;  %v5051_v41 = vld [vmem:[%s8019_s2 + $0x1cc] sm:$0xf]  ;;  %1183 = vmatpush.bf16.msra.mxu1 %v3773_v33  ;;  %v3757_v45 = vor.u32 %v5030_v26, %v3754_v37 }
  0x71   :  { %v3842_v42 = vld [vmem:[%s8019_s2 + $0x1d8] sm:$0xf0]  ;;  %1147 = vmatmul.bf16.vlgmr.msrb.gmra.mxu0 %v6144_v30  ;;  %v3680_v43 = vld [vmem:[%s8019_s2 + $0x88] sm:$0xf]  ;;  %v5013_v44 = vld [vmem:[%s8019_s2 + $0x94] sm:$0xf0]  ;;  %1237 = vmatpush.bf16.msra.mxu2 %v3873_v34  ;;  %v3841_v47 = vor.u32 %v5053_v40, %v3840_v38 }
  0x72   :  { %1198 = vmatpush.bf16.msra.mxu3 %v3869_v29  ;;  %v5026_v46 = vld [vmem:[%s8019_s2 + $0x104] sm:$0xf]  ;;  %v3845_v48 = vor.u32 %v5051_v41, %v3842_v42  ;;  %v3738_v49 = vld [vmem:[%s8019_s2 + $0x110] sm:$0xf0]  ;;  %v3824_v50 = vld [vmem:[%s8019_s2 + $0x1a8] sm:$0xf]  ;;  %v3681_v52 = vor.u32 %v5013_v44, %v3680_v43 }
  0x73   :  { %v5049_v51 = vld [vmem:[%s8019_s2 + $0x1b4] sm:$0xf0]  ;;  %v5023_v53 = vld [vmem:[%s8019_s2 + $0xec] sm:$0xf]  ;;  %v3730_v54 = vld [vmem:[%s8019_s2 + $0xf8] sm:$0xf0]  ;;  %v3741_v60 = vor.u32 %v5026_v46, %v3738_v49 }
  0x74   :  { %1206 = vmatpush.bf16.msra.mxu0 %v3697_v39  ;;  %v5047_v55 = vld [vmem:[%s8019_s2 + $0x1ac] sm:$0xf]  ;;  %v3826_v56 = vld [vmem:[%s8019_s2 + $0x1b8] sm:$0xf0]  ;;  %v3664_v57 = vld [vmem:[%s8019_s2 + $0x68] sm:$0xf]  ;;  %1184 = vmatpush.bf16.msra.mxu1 %v3757_v45  ;;  %v3825_v61 = vor.u32 %v5049_v51, %v3824_v50  ;;  %v3733_v63 = vor.u32 %v5023_v53, %v3730_v54 }
  0x75   :  { %1256 = vmatpush.bf16.msrb.mxu2 %v3861_v36  ;;  %v5009_v59 = vld [vmem:[%s8019_s2 + $0x74] sm:$0xf0]  ;;  %v3808_v0 = vld [vmem:[%s8019_s2 + $0x188] sm:$0xf]  ;;  %v3829_v1 = vor.u32 %v5047_v55, %v3826_v56  ;;  %v5019_v4 = vld [vmem:[%s8019_s2 + $0xcc] sm:$0xf] }
  0x76   :  { %1217 = vmatpush.bf16.msrb.mxu3 %v3857_v35  ;;  %v3665_v2 = vor.u32 %v5009_v59, %v3664_v57  ;;  %v5045_v3 = vld [vmem:[%s8019_s2 + $0x194] sm:$0xf0]  ;;  %v3714_v5 = vld [vmem:[%s8019_s2 + $0xd8] sm:$0xf0]  ;;  %v5043_v6 = vld [vmem:[%s8019_s2 + $0x18c] sm:$0xf] }
  0x77   :  { %v3810_v7 = vld [vmem:[%s8019_s2 + $0x198] sm:$0xf0]  ;;  %v3648_v58 = vld [vmem:[%s8019_s2 + $0x48] sm:$0xf]  ;;  %v5005_v8 = vld [vmem:[%s8019_s2 + $0x54] sm:$0xf0]  ;;  %v3809_v62 = vor.u32 %v5045_v3, %v3808_v0  ;;  %v3717_v10 = vor.u32 %v5019_v4, %v3714_v5 }
  0x78   :  { %1207 = vmatpush.bf16.msra.mxu0 %v3681_v52  ;;  %1185 = vmatpush.bf16.msra.mxu1 %v3741_v60  ;;  %v3792_v11 = vld [vmem:[%s8019_s2 + $0x168] sm:$0xf]  ;;  %v3813_v12 = vor.u32 %v5043_v6, %v3810_v7  ;;  %v5041_v13 = vld [vmem:[%s8019_s2 + $0x174] sm:$0xf0]  ;;  %v5015_v14 = vld [vmem:[%s8019_s2 + $0xac] sm:$0xf]  ;;  %v3649_v16 = vor.u32 %v5005_v8, %v3648_v58 }
  0x79   :  { %1257 = vmatpush.bf16.msrb.mxu2 %v3845_v48  ;;  %v3698_v15 = vld [vmem:[%s8019_s2 + $0xb8] sm:$0xf0]  ;;  %v5039_v17 = vld [vmem:[%s8019_s2 + $0x16c] sm:$0xf]  ;;  %v3632_v19 = vld [vmem:[%s8019_s2 + $0x28] sm:$0xf]  ;;  %v3793_v22 = vor.u32 %v5041_v13, %v3792_v11 }
  0x7a   :  { %1218 = vmatpush.bf16.msrb.mxu3 %v3841_v47  ;;  %v3794_v18 = vld [vmem:[%s8019_s2 + $0x178] sm:$0xf0]  ;;  %v5001_v21 = vld [vmem:[%s8019_s2 + $0x34] sm:$0xf0]  ;;  %v3701_v23 = vor.u32 %v5015_v14, %v3698_v15  ;;  %v3776_v24 = vld [vmem:[%s8019_s2 + $0x148] sm:$0xf] }
  0x7b   :  { %1186 = vmatmul.bf16.vlgmr.msra.gmra.mxu1 %v6144_v30  ;;  %v3797_v25 = vor.u32 %v5039_v17, %v3794_v18  ;;  %v5037_v27 = vld [vmem:[%s8019_s2 + $0x154] sm:$0xf0]  ;;  %v5011_v28 = vld [vmem:[%s8019_s2 + $0x8c] sm:$0xf]  ;;  %v3682_v29 = vld [vmem:[%s8019_s2 + $0x98] sm:$0xf0]  ;;  %v3633_v31 = vor.u32 %v5001_v21, %v3632_v19 }
  0x7c   :  { %1243 = vmatpush.bf16.msrb.mxu1 %v3733_v63  ;;  %1208 = vmatpush.bf16.msra.mxu0 %v3665_v2  ;;  %v5035_v32 = vld [vmem:[%s8019_s2 + $0x14c] sm:$0xf]  ;;  %v3778_v33 = vld [vmem:[%s8019_s2 + $0x158] sm:$0xf0]  ;;  %v3616_v34 = vld [vmem:[%s8019_s2 + $0x8] sm:$0xf]  ;;  %v3777_v36 = vor.u32 %v5037_v27, %v3776_v24  ;;  %v3685_v26 = vor.u32 %v5011_v28, %v3682_v29 }
  0x7d   :  { %1258 = vmatpush.bf16.msrb.mxu2 %v3829_v1  ;;  %v4997_v35 = vld [vmem:[%s8019_s2 + $0x14] sm:$0xf0]  ;;  %v3760_v37 = vld [vmem:[%s8019_s2 + $0x128] sm:$0xf]  ;;  %v5063_v38 = vld [vmem:[%s8019_s2 + $0x22c] sm:$0xf]  ;;  %v3781_v40 = vor.u32 %v5035_v32, %v3778_v33 }
  0x7e   :  { %1219 = vmatpush.bf16.msrb.mxu3 %v3825_v61  ;;  %v3890_v39 = vld [vmem:[%s8019_s2 + $0x238] sm:$0xf0]  ;;  %v5033_v41 = vld [vmem:[%s8019_s2 + $0x134] sm:$0xf0]  ;;  %v5007_v42 = vld [vmem:[%s8019_s2 + $0x6c] sm:$0xf]  ;;  %v3617_v44 = vor.u32 %v4997_v35, %v3616_v34 }
  0x7f   :  { %3895 = vmatmul.msk.bf16.vlgmr.msra.gmra.mxu3 %vm494_vm0, %v6102_v9  ;;  %3896 = vmatmul.msk.bf16.vlgmr.msra.gmra.mxu2 %vm494_vm0, %v6102_v9  ;;  %v3666_v43 = vld [vmem:[%s8019_s2 + $0x78] sm:$0xf0]  ;;  %v5031_v45 = vld [vmem:[%s8019_s2 + $0x12c] sm:$0xf]  ;;  %v3893_v47 = vor.u32 %v5063_v38, %v3890_v39  ;;  %v3761_v48 = vor.u32 %v5033_v41, %v3760_v37  ;;  %v3744_v50 = vld [vmem:[%s8019_s2 + $0x108] sm:$0xf] }
  0x80   :  { %1244 = vmatpush.bf16.msrb.mxu1 %v3717_v10  ;;  %1209 = vmatpush.bf16.msra.mxu0 %v3649_v16  ;;  %v3762_v46 = vld [vmem:[%s8019_s2 + $0x138] sm:$0xf0]  ;;  %v3669_v49 = vor.u32 %v5007_v42, %v3666_v43  ;;  %v5059_v51 = vld [vmem:[%s8019_s2 + $0x20c] sm:$0xf]  ;;  %v5029_v54 = vld [vmem:[%s8019_s2 + $0x114] sm:$0xf0] }
  0x81   :  { %1259 = vmatpush.bf16.msrb.mxu2 %v3813_v12  ;;  %v3874_v52 = vld [vmem:[%s8019_s2 + $0x218] sm:$0xf0]  ;;  %v3765_v53 = vor.u32 %v5031_v45, %v3762_v46  ;;  %v5003_v55 = vld [vmem:[%s8019_s2 + $0x4c] sm:$0xf]  ;;  %v3745_v61 = vor.u32 %v5029_v54, %v3744_v50  ;;  %v4012_v7 = vld [vmem:[%s8021_s4 + $0xe0] sm:$0xf] }
  0x82   :  { %1220 = vmatpush.bf16.msrb.mxu3 %v3809_v62  ;;  %v3650_v56 = vld [vmem:[%s8019_s2 + $0x58] sm:$0xf0]  ;;  %v5027_v57 = vld [vmem:[%s8019_s2 + $0x10c] sm:$0xf]  ;;  %v3877_v60 = vor.u32 %v5059_v51, %v3874_v52  ;;  %v5096_v58 = vld [vmem:[%s8021_s4 + $0xec] sm:$0xf0] }
  0x83   :  { %v3746_v59 = vld [vmem:[%s8019_s2 + $0x118] sm:$0xf0]  ;;  %v3653_v63 = vor.u32 %v5003_v55, %v3650_v56  ;;  %v4999_v1 = vld [vmem:[%s8019_s2 + $0x2c] sm:$0xf]  ;;  %v4013_v8 = vor.u32 %v5096_v58, %v4012_v7  ;;  %v3980_v10 = vld [vmem:[%s8021_s4 + $0xa0] sm:$0xf] }
  0x84   :  { %1245 = vmatpush.bf16.msrb.mxu1 %v3701_v23  ;;  %1210 = vmatpush.bf16.msra.mxu0 %v3633_v31  ;;  %v3749_v0 = vor.u32 %v5027_v57, %v3746_v59  ;;  %v3634_v2 = vld [vmem:[%s8019_s2 + $0x38] sm:$0xf0]  ;;  %v4995_v4 = vld [vmem:[%s8019_s2 + $0xc] sm:$0xf]  ;;  %v5088_v11 = vld [vmem:[%s8021_s4 + $0xac] sm:$0xf0] }
  0x85   :  { %1260 = vmatpush.bf16.msrb.mxu2 %v3797_v25  ;;  %v3637_v3 = vor.u32 %v4999_v1, %v3634_v2  ;;  %v3618_v5 = vld [vmem:[%s8019_s2 + $0x18] sm:$0xf0]  ;;  %v3981_v12 = vor.u32 %v5088_v11, %v3980_v10  ;;  %v3964_v13 = vld [vmem:[%s8021_s4 + $0x80] sm:$0xf]  ;;  %v5084_v14 = vld [vmem:[%s8021_s4 + $0x8c] sm:$0xf0] }
  0x86   :  { %1221 = vmatpush.bf16.msrb.mxu3 %v3793_v22  ;;  %v3621_v6 = vor.u32 %v4995_v4, %v3618_v5  ;;  %v4140_v15 = vld [vmem:[%s8021_s4 + $0x1e0] sm:$0xf]  ;;  %v5128_v18 = vld [vmem:[%s8021_s4 + $0x1ec] sm:$0xf0]  ;;  %v3965_v19 = vor.u32 %v5084_v14, %v3964_v13  ;;  %v4014_v54 = vld [vmem:[%s8021_s4 + $0xf0] sm:$0xf0] }
  0x87   :  { %v4141_v21 = vor.u32 %v5128_v18, %v4140_v15  ;;  %v3948_v23 = vld [vmem:[%s8021_s4 + $0x60] sm:$0xf]  ;;  %v5080_v24 = vld [vmem:[%s8021_s4 + $0x6c] sm:$0xf0]  ;;  %v5090_v2 = vld [vmem:[%s8021_s4 + $0xc4] sm:$0xf] }
  0x88   :  { %1246 = vmatpush.bf16.msrb.mxu1 %v3685_v26  ;;  %1211 = vmatpush.bf16.msra.mxu0 %v3617_v44  ;;  %v4124_v25 = vld [vmem:[%s8021_s4 + $0x1c0] sm:$0xf]  ;;  %v3949_v28 = vor.u32 %v5080_v24, %v3948_v23  ;;  %v5124_v29 = vld [vmem:[%s8021_s4 + $0x1cc] sm:$0xf0]  ;;  %v5086_v13 = vld [vmem:[%s8021_s4 + $0xa4] sm:$0xf] }
  0x89   :  { %1261 = vmatpush.bf16.msrb.mxu2 %v3781_v40  ;;  %v4125_v33 = vor.u32 %v5124_v29, %v4124_v25  ;;  %v3932_v34 = vld [vmem:[%s8021_s4 + $0x40] sm:$0xf]  ;;  %v5076_v35 = vld [vmem:[%s8021_s4 + $0x4c] sm:$0xf0]  ;;  %v3982_v14 = vld [vmem:[%s8021_s4 + $0xb0] sm:$0xf0] }
  0x8a   :  { %1222 = vmatpush.bf16.msrb.mxu3 %v3777_v36  ;;  %v4108_v36 = vld [vmem:[%s8021_s4 + $0x1a0] sm:$0xf]  ;;  %v3933_v26 = vor.u32 %v5076_v35, %v3932_v34  ;;  %v5120_v37 = vld [vmem:[%s8021_s4 + $0x1ac] sm:$0xf0]  ;;  %v3985_v15 = vor.u32 %v5086_v13, %v3982_v14  ;;  %vm661_vm1 = vcmask 1041408   ;;  %vm663_vm2 = vcmask 1045508  }
  0x8b   :  { %1212 = vmatmul.bf16.vlgmr.msra.gmra.mxu0 %v6122_v20  ;;  %v4109_v38 = vor.u32 %v5120_v37, %v4108_v36  ;;  %v3916_v40 = vld [vmem:[%s8021_s4 + $0x20] sm:$0xf]  ;;  %v5072_v41 = vld [vmem:[%s8021_s4 + $0x2c] sm:$0xf0]  ;;  %v5082_v36 = vld [vmem:[%s8021_s4 + $0x84] sm:$0xf] }
  0x8c   :  { %1275 = vmatpush.bf16.msrb.mxu0 %v3893_v47  ;;  %1247 = vmatpush.bf16.msrb.mxu1 %v3669_v49  ;;  %v4092_v42 = vld [vmem:[%s8021_s4 + $0x180] sm:$0xf]  ;;  %v3917_v44 = vor.u32 %v5072_v41, %v3916_v40  ;;  %v5116_v45 = vld [vmem:[%s8021_s4 + $0x18c] sm:$0xf0]  ;;  %v5126_v37 = vld [vmem:[%s8021_s4 + $0x1e4] sm:$0xf] }
  0x8d   :  { %1262 = vmatpush.bf16.msrb.mxu2 %v3765_v53  ;;  %v4093_v46 = vor.u32 %v5116_v45, %v4092_v42  ;;  %v5068_v49 = vld [vmem:[%s8021_s4 + $0xc] sm:$0xf0]  ;;  %v4076_v50 = vld [vmem:[%s8021_s4 + $0x160] sm:$0xf]  ;;  %v5094_v53 = vld [vmem:[%s8021_s4 + $0xe4] sm:$0xf] }
  0x8e   :  { %1223 = vmatpush.bf16.msrb.mxu3 %v3761_v48  ;;  %v3900_v48 = vld [vmem:[%s8021_s4] sm:$0xf]  ;;  %v5112_v52 = vld [vmem:[%s8021_s4 + $0x16c] sm:$0xf0]  ;;  %v4017_v56 = vor.u32 %v5094_v53, %v4014_v54  ;;  %v4142_v40 = vld [vmem:[%s8021_s4 + $0x1f0] sm:$0xf0] }
  0x8f   :  { %v3901_v51 = vor.u32 %v5068_v49, %v3900_v48  ;;  %v4077_v55 = vor.u32 %v5112_v52, %v4076_v50  ;;  %v4060_v59 = vld [vmem:[%s8021_s4 + $0x140] sm:$0xf]  ;;  %v5160_v1 = vld [vmem:[%s8021_s4 + $0x2ec] sm:$0xf0]  ;;  %v4145_v45 = vor.u32 %v5126_v37, %v4142_v40  ;;  %v5078_v50 = vld [vmem:[%s8021_s4 + $0x64] sm:$0xf] }
  0x90   :  { %1276 = vmatpush.bf16.msrb.mxu0 %v3877_v60  ;;  %1248 = vmatpush.bf16.msrb.mxu1 %v3653_v63  ;;  %v5108_v60 = vld [vmem:[%s8021_s4 + $0x14c] sm:$0xf0]  ;;  %v4252_v58 = vld [vmem:[%s8021_s4 + $0x2c0] sm:$0xf]  ;;  %v5122_v52 = vld [vmem:[%s8021_s4 + $0x1c4] sm:$0xf] }
  0x91   :  { %1263 = vmatpush.bf16.msrb.mxu2 %v3749_v0  ;;  %v4061_v0 = vor.u32 %v5108_v60, %v4060_v59  ;;  %v5104_v7 = vld [vmem:[%s8021_s4 + $0x12c] sm:$0xf0]  ;;  %v124_v18 = vld [vmem:[%s8026_s9] sm:$0xf]  ;;  %v4126_v53 = vld [vmem:[%s8021_s4 + $0x1d0] sm:$0xf0] }
  0x92   :  { %1224 = vmatpush.bf16.msrb.mxu3 %v3745_v61  ;;  %v4268_v61 = vld [vmem:[%s8021_s4 + $0x2e0] sm:$0xf]  ;;  %v5100_v24 = vld [vmem:[%s8021_s4 + $0x10c] sm:$0xf0]  ;;  %v126_v54 = vperm.slane %v124_v18, 0  ;;  %vm665_vm3 = vcmask 1043456  }
  0x93   :  { %v4269_v4 = vor.u32 %v5160_v1, %v4268_v61  ;;  %v4028_v23 = vld [vmem:[%s8021_s4 + $0x100] sm:$0xf]  ;;  %v5148_v42 = vld [vmem:[%s8021_s4 + $0x28c] sm:$0xf0]  ;;  %v5066_v40 = vld [vmem:[%s8021_s4 + $0x4] sm:$0xf] }
  0x94   :  { %1264 = vmatmul.bf16.vlgmr.msrb.gmra.mxu2 %v6144_v30  ;;  %1249 = vmatpush.bf16.msrb.mxu1 %v3637_v3  ;;  %v3998_v3 = vld [vmem:[%s8021_s4 + $0xd0] sm:$0xf0]  ;;  %v4236_v25 = vld [vmem:[%s8021_s4 + $0x2a0] sm:$0xf]  ;;  %v4029_v29 = vor.u32 %v5100_v24, %v4028_v23  ;;  %v5184_v49 = vld [vmem:[%s8021_s4 + $0x3ac] sm:$0xf0] }
  0x95   :  { %1225 = vmatmul.bf16.vlgmr.msrb.gmra.mxu3 %v6144_v30  ;;  %v3996_v30 = vld [vmem:[%s8021_s4 + $0xc0] sm:$0xf]  ;;  %2081 = vmatpush.bf16.msra.mxu0 %v4141_v21  ;;  %v4001_v5 = vor.u32 %v5090_v2, %v3998_v3  ;;  %v129_v21 = vperm.slane %v124_v18, 3  ;;  %v3918_v23 = vld [vmem:[%s8021_s4 + $0x30] sm:$0xf0]  ;;  %s5376_s17 = smov [#allocation4]  }
  0x96   :  { %2068 = vmatpush.bf16.msra.mxu3 %v4013_v8  ;;  %v5156_v8 = vld [vmem:[%s8021_s4 + $0x2cc] sm:$0xf0]  ;;  %v4220_v41 = vld [vmem:[%s8021_s4 + $0x280] sm:$0xf]  ;;  %s3298_s18 = sshll.u32 %s5376_s17, 4  ;;  %s3300_s21 = sshll.u32 %s8028_s11, 4  ;;  %s3299_s18 = int_to_ptr.vmem [resolvable:$true] %s3298_s18  ;;  %s3301_s21 = int_to_ptr.hbm [resolvable:$true] %s3300_s21 }
  0x97   :  { %v4253_v11 = vor.u32 %v5156_v8, %v4252_v58  ;;  %v4364_v48 = vld [vmem:[%s8021_s4 + $0x3a0] sm:$0xf]  ;;  %v5118_v8 = vld [vmem:[%s8021_s4 + $0x1a4] sm:$0xf]  ;;  %s3289_s8 = sshll.u32 %s8027_s10, 4  ;;  %s3290_s8 = int_to_ptr.hbm [resolvable:$true] %s3289_s8 }
  0x98   :  { %1250 = vmatpush.bf16.msrb.mxu1 %v3621_v6  ;;  %v4044_v6 = vld [vmem:[%s8021_s4 + $0x120] sm:$0xf] }
  0x99   :  { %2082 = vmatpush.bf16.msra.mxu0 %v4125_v33  ;;  %v4045_v10 = vor.u32 %v5104_v7, %v4044_v6  ;;  %v5188_v33 = vld [vmem:[%s8021_s4 + $0x3cc] sm:$0xf0]  ;;  %v4204_v61 = vld [vmem:[%s8021_s4 + $0x260] sm:$0xf] }
  0x9a   :  { %v4348_v1 = vld [vmem:[%s8021_s4 + $0x380] sm:$0xf] }
  0x9b   :  { %1251 = vmatmul.bf16.vlgmr.msrb.gmra.mxu1 %v6122_v20  ;;  %3897 = vmatmul.msk.bf16.vlgmr.msrb.gmra.mxu0 %vm494_vm0, %v6102_v9  ;;  %v5092_v20 = vld [vmem:[%s8021_s4 + $0xcc] sm:$0xf0] }
  0x9c   :  { %v3997_v62 = vor.u32 %v5092_v20, %v3996_v30  ;;  %v4396_v20 = vld [vmem:[%s8021_s4 + $0x3e0] sm:$0xf]  ;;  %2094 = vmatpush.bf16.msra.mxu1 %v4269_v4  ;;  %v5074_v4 = vld [vmem:[%s8021_s4 + $0x44] sm:$0xf] }
  0x9d   :  { %2083 = vmatpush.bf16.msra.mxu0 %v4109_v38 }
  0x9e   :  { %v6364_v9 = vpop.f32.mrf.mxu3  ;;  %2069 = vmatpush.bf16.msra.mxu3 %v3997_v62  ;;  %v5192_v62 = vld [vmem:[%s8021_s4 + $0x3ec] sm:$0xf0] }
  0xa0   :  { %v6381_v16 = vpop.f32.mrf.mxu0  ;;  %2095 = vmatpush.bf16.msra.mxu1 %v4253_v11 }
  0xa1   :  { %v6383_v17 = vpop.f32.mrf.mxu1  ;;  %2084 = vmatpush.bf16.msra.mxu0 %v4093_v46  ;;  %v4221_v46 = vor.u32 %v5148_v42, %v4220_v41  ;;  %v508_v6 = vadd.f32 %v6381_v16, %v126_v54  ;;  %v4188_v16 = vld [vmem:[%s8021_s4 + $0x240] sm:$0xf] }
  0xa2   :  { %2070 = vmatpush.bf16.msra.mxu3 %v3981_v12  ;;  %v4397_v12 = vor.u32 %v5192_v62, %v4396_v20  ;;  %v4110_v20 = vld [vmem:[%s8021_s4 + $0x1b0] sm:$0xf0] }
  0xa3   :  { %v521_v24 = vadd.f32 %v6383_v17, %v508_v6  ;;  %v4172_v17 = vld [vmem:[%s8021_s4 + $0x220] sm:$0xf]  ;;  %v5164_v6 = vld [vmem:[%s8021_s4 + $0x30c] sm:$0xf0] }
  0xa4   :  { %2107 = vmatpush.bf16.msra.mxu2 %v4397_v12 }
  0xa5   :  { %2085 = vmatpush.bf16.msra.mxu0 %v4077_v55  ;;  %v128_v55 = vperm.slane %v124_v18, 2  ;;  %v534_v41 = vadd.f32 %v6364_v9, %v521_v24 }
  0xa6   :  { %v535_v22 = vpop.f32.mrf.mxu3  ;;  %2071 = vmatpush.bf16.msra.mxu3 %v3965_v19  ;;  %v127_v19 = vperm.slane %v124_v18, 1  ;;  %v4332_v18 = vld [vmem:[%s8021_s4 + $0x360] sm:$0xf] }
  0xa8   :  { %v509_v31 = vpop.f32.mrf.mxu0 }
  0xa9   :  { %v6397_v27 = vpop.f32.mrf.mxu2  ;;  %v522_v32 = vpop.f32.mrf.mxu1  ;;  %2086 = vmatpush.bf16.msra.mxu0 %v4061_v0  ;;  %v5152_v31 = vld [vmem:[%s8021_s4 + $0x2ac] sm:$0xf0] }
  0xaa   :  { %2072 = vmatpush.bf16.msra.mxu3 %v3949_v28  ;;  %v4380_v32 = vld [vmem:[%s8021_s4 + $0x3c0] sm:$0xf]  ;;  %v4237_v34 = vor.u32 %v5152_v31, %v4236_v25  ;;  %v5144_v0 = vld [vmem:[%s8021_s4 + $0x26c] sm:$0xf0]  ;;  %v4094_v31 = vld [vmem:[%s8021_s4 + $0x190] sm:$0xf0] }
  0xab   :  { %v4381_v35 = vor.u32 %v5188_v33, %v4380_v32  ;;  %v4205_v3 = vor.u32 %v5144_v0, %v4204_v61 }
  0xac   :  { %2096 = vmatpush.bf16.msra.mxu1 %v4237_v34 }
  0xad   :  { %2087 = vmatpush.bf16.msra.mxu0 %v4045_v10  ;;  %2108 = vmatpush.bf16.msra.mxu2 %v4381_v35  ;;  %v4113_v10 = vor.u32 %v5118_v8, %v4110_v20  ;;  %v5154_v8 = vld [vmem:[%s8021_s4 + $0x2c4] sm:$0xf] }
  0xae   :  { %2073 = vmatpush.bf16.msra.mxu3 %v3933_v26  ;;  %v3966_v26 = vld [vmem:[%s8021_s4 + $0x90] sm:$0xf0] }
  0xaf   :  { %v3969_v38 = vor.u32 %v5082_v36, %v3966_v26  ;;  %v5136_v36 = vld [vmem:[%s8021_s4 + $0x22c] sm:$0xf0] }
  0xb0   :  { %v6414_v39 = vpop.f32.mrf.mxu3  ;;  %v6428_v47 = vpop.f32.mrf.mxu0  ;;  %2097 = vmatpush.bf16.msra.mxu1 %v4221_v46  ;;  %v4173_v37 = vor.u32 %v5136_v36, %v4172_v17  ;;  %v5142_v36 = vld [vmem:[%s8021_s4 + $0x264] sm:$0xf] }
  0xb1   :  { %v561_v43 = vpop.f32.mrf.mxu2  ;;  %2088 = vmatpush.bf16.msra.mxu0 %v4029_v29  ;;  %v5114_v29 = vld [vmem:[%s8021_s4 + $0x184] sm:$0xf] }
  0xb2   :  { %2074 = vmatpush.bf16.msra.mxu3 %v3917_v44  ;;  %v547_v43 = vadd.f32 %v6414_v39, %v127_v19  ;;  %v4365_v39 = vor.u32 %v5184_v49, %v4364_v48  ;;  %v4097_v33 = vor.u32 %v5114_v29, %v4094_v31  ;;  %v4222_v29 = vld [vmem:[%s8021_s4 + $0x290] sm:$0xf0]  ;;  %v5182_v31 = vld [vmem:[%s8021_s4 + $0x3a4] sm:$0xf] }
  0xb4   :  { %v560_v59 = vadd.f32 %v6397_v27, %v547_v43  ;;  %2109 = vmatpush.bf16.msra.mxu2 %v4365_v39  ;;  %v5180_v27 = vld [vmem:[%s8021_s4 + $0x38c] sm:$0xf0]  ;;  %2098 = vmatpush.bf16.msra.mxu1 %v4205_v3  ;;  %v3902_v43 = vld [vmem:[%s8021_s4 + $0x10] sm:$0xf0] }
  0xb5   :  { %2133 = vmatpush.bf16.msrb.mxu0 %v4145_v45  ;;  %v4349_v58 = vor.u32 %v5180_v27, %v4348_v1  ;;  %v4078_v45 = vld [vmem:[%s8021_s4 + $0x170] sm:$0xf0]  ;;  %v5158_v1 = vld [vmem:[%s8021_s4 + $0x2e4] sm:$0xf] }
  0xb6   :  { %2075 = vmatpush.bf16.msra.mxu3 %v3901_v51  ;;  %v3950_v51 = vld [vmem:[%s8021_s4 + $0x70] sm:$0xf0]  ;;  %v573_v11 = vadd.f32 %v6428_v47, %v560_v59  ;;  %v5106_v59 = vld [vmem:[%s8021_s4 + $0x144] sm:$0xf] }
  0xb8   :  { %v548_v57 = vpop.f32.mrf.mxu3  ;;  %v574_v30 = vpop.f32.mrf.mxu0  ;;  %2110 = vmatpush.bf16.msra.mxu2 %v4349_v58  ;;  %v658_v34 = vrot.slane %v573_v11, 6  ;;  %v5102_v58 = vld [vmem:[%s8021_s4 + $0x124] sm:$0xf]  ;;  %v4398_v11 = vld [vmem:[%s8021_s4 + $0x3f0] sm:$0xf0] }
  0xb9   :  { %v4129_v57 = vor.u32 %v5122_v52, %v4126_v53  ;;  %v5132_v52 = vld [vmem:[%s8021_s4 + $0x20c] sm:$0xf0]  ;;  %v4300_v53 = vld [vmem:[%s8021_s4 + $0x320] sm:$0xf] }
  0xba   :  { %2120 = vmatpush.bf16.msrb.mxu3 %v4017_v56  ;;  %v6457_v63 = vpop.f32.mrf.mxu2  ;;  %v3953_v56 = vor.u32 %v5078_v50, %v3950_v51  ;;  %v3905_v50 = vor.u32 %v5066_v40, %v3902_v43  ;;  %v4156_v51 = vld [vmem:[%s8021_s4 + $0x200] sm:$0xf]  ;;  %v662_v54 = vsel %vm661_vm1, %v534_v41, %v658_v34 }
  0xbb   :  { %2134 = vmatpush.bf16.msrb.mxu0 %v4129_v57  ;;  %v5168_v57 = vld [vmem:[%s8021_s4 + $0x32c] sm:$0xf0] }
  0xbc   :  { %v4301_v61 = vor.u32 %v5168_v57, %v4300_v53 }
  0xbe   :  { %2121 = vmatpush.bf16.msrb.mxu3 %v4001_v5  ;;  %v3934_v5 = vld [vmem:[%s8021_s4 + $0x50] sm:$0xf0] }
  0xbf   :  { %v3937_v30 = vor.u32 %v5074_v4, %v3934_v5  ;;  %2135 = vmatpush.bf16.msrb.mxu0 %v4113_v10  ;;  %v4284_v5 = vld [vmem:[%s8021_s4 + $0x300] sm:$0xf]  ;;  %v5190_v10 = vld [vmem:[%s8021_s4 + $0x3e4] sm:$0xf] }
  0xc2   :  { %v585_v22 = vpop.f32.mrf.mxu1  ;;  %v613_v28 = vpop.f32.mrf.mxu2  ;;  %2122 = vmatpush.bf16.msrb.mxu3 %v3985_v15  ;;  %v5140_v15 = vld [vmem:[%s8021_s4 + $0x24c] sm:$0xf0] }
  0xc3   :  { %v586_v7 = vadd.f32 %v585_v22, %v128_v55  ;;  %v4189_v47 = vor.u32 %v5140_v15, %v4188_v16  ;;  %v5070_v22 = vld [vmem:[%s8021_s4 + $0x24] sm:$0xf]  ;;  %2136 = vmatpush.bf16.msrb.mxu0 %v4097_v33  ;;  %v4030_v16 = vld [vmem:[%s8021_s4 + $0x110] sm:$0xf0] }
  0xc4   :  { %v3921_v28 = vor.u32 %v5070_v22, %v3918_v23  ;;  %v5150_v15 = vld [vmem:[%s8021_s4 + $0x2a4] sm:$0xf]  ;;  %v4366_v33 = vld [vmem:[%s8021_s4 + $0x3b0] sm:$0xf0] }
  0xc5   :  { %2099 = vmatpush.bf16.msra.mxu1 %v4189_v47  ;;  %v5186_v47 = vld [vmem:[%s8021_s4 + $0x3c4] sm:$0xf]  ;;  %v4369_v34 = vor.u32 %v5182_v31, %v4366_v33  ;;  %v4148_v31 = vld [vmem:[%s8021_s4 + $0x1e8] sm:$0xf] }
  0xc6   :  { %2123 = vmatpush.bf16.msrb.mxu3 %v3969_v38  ;;  %v5172_v38 = vld [vmem:[%s8021_s4 + $0x34c] sm:$0xf0] }
  0xc8   :  { %v624_v44 = vpop.f32.mrf.mxu0 }
  0xc9   :  { %v625_v2 = vadd.f32 %v624_v44, %v129_v21  ;;  %v5176_v21 = vld [vmem:[%s8021_s4 + $0x36c] sm:$0xf0]  ;;  %v5110_v44 = vld [vmem:[%s8021_s4 + $0x164] sm:$0xf]  ;;  %2100 = vmatpush.bf16.msra.mxu1 %v4173_v37 }
  0xca   :  { %v587_v60 = vpop.f32.mrf.mxu1  ;;  %2124 = vmatpush.bf16.msrb.mxu3 %v3953_v56  ;;  %v4333_v25 = vor.u32 %v5176_v21, %v4332_v18  ;;  %v4081_v39 = vor.u32 %v5110_v44, %v4078_v45  ;;  %v4157_v56 = vor.u32 %v5132_v52, %v4156_v51  ;;  %v4382_v21 = vld [vmem:[%s8021_s4 + $0x3d0] sm:$0xf0]  ;;  %v5178_v37 = vld [vmem:[%s8021_s4 + $0x384] sm:$0xf]  ;;  %v4020_v52 = vld [vmem:[%s8021_s4 + $0xe8] sm:$0xf] }
  0xcb   :  { %v4062_v60 = vld [vmem:[%s8021_s4 + $0x150] sm:$0xf0]  ;;  %v4385_v23 = vor.u32 %v5186_v47, %v4382_v21  ;;  %v5138_v45 = vld [vmem:[%s8021_s4 + $0x244] sm:$0xf] }
  0xcc   :  { %2111 = vmatpush.bf16.msra.mxu2 %v4333_v25  ;;  %2137 = vmatpush.bf16.msrb.mxu0 %v4081_v39  ;;  %v4065_v0 = vor.u32 %v5106_v59, %v4062_v60  ;;  %v6700_v25 = vld [vmem:[%s8020_s3] sm:$0xf]  ;;  %v5170_v59 = vld [vmem:[%s8021_s4 + $0x344] sm:$0xf]  ;;  %v4318_v60 = vld [vmem:[%s8021_s4 + $0x350] sm:$0xf0] }
  0xcd   :  { %2101 = vmatpush.bf16.msra.mxu1 %v4157_v56  ;;  %v4174_v56 = vld [vmem:[%s8021_s4 + $0x230] sm:$0xf0] }
  0xce   :  { %2125 = vmatpush.bf16.msrb.mxu3 %v3937_v30  ;;  %v4046_v30 = vld [vmem:[%s8021_s4 + $0x130] sm:$0xf0] }
  0xcf   :  { %v637_v13 = vpop.f32.mrf.mxu2  ;;  %v4049_v20 = vor.u32 %v5102_v58, %v4046_v30  ;;  %v5130_v58 = vld [vmem:[%s8021_s4 + $0x204] sm:$0xf]  ;;  %v4158_v30 = vld [vmem:[%s8021_s4 + $0x210] sm:$0xf0] }
  0xd0   :  { %v598_v62 = vpop.f32.mrf.mxu3  ;;  %v626_v14 = vpop.f32.mrf.mxu0  ;;  %v638_v19 = vadd.f32 %v637_v13, %v625_v2  ;;  %v4270_v2 = vld [vmem:[%s8021_s4 + $0x2f0] sm:$0xf0]  ;;  %2138 = vmatpush.bf16.msrb.mxu0 %v4065_v0  ;;  %v4401_v13 = vor.u32 %v5190_v10, %v4398_v11  ;;  %v4321_v0 = vor.u32 %v5170_v59, %v4318_v60  ;;  %v3908_v59 = vld [vmem:[%s8021_s4 + $0x8] sm:$0xf]  ;;  %v5069_v60 = vld [vmem:[%s8021_s4 + $0x14] sm:$0xf0] }
  0xd1   :  { %v599_v12 = vadd.f32 %v598_v62, %v586_v7  ;;  %v4273_v27 = vor.u32 %v5158_v1, %v4270_v2  ;;  %v4285_v7 = vor.u32 %v5164_v6, %v4284_v5  ;;  %v4254_v62 = vld [vmem:[%s8021_s4 + $0x2d0] sm:$0xf0]  ;;  %v5098_v14 = vld [vmem:[%s8021_s4 + $0x104] sm:$0xf]  ;;  %v756_v1 = vperm.slane %v6700_v25, 1 }
  0xd2   :  { %v650_v35 = vpop.f32.mrf.mxu1  ;;  %2126 = vmatpush.bf16.msrb.mxu3 %v3921_v28  ;;  %v4033_v18 = vor.u32 %v5098_v14, %v4030_v16  ;;  %v5146_v28 = vld [vmem:[%s8021_s4 + $0x284] sm:$0xf]  ;;  %v5093_v5 = vld [vmem:[%s8021_s4 + $0xd4] sm:$0xf0] }
  0xd3   :  { %v612_v32 = vadd.f32 %v6457_v63, %v599_v12  ;;  %v651_v26 = vadd.f32 %v650_v35, %v638_v19  ;;  %v4316_v63 = vld [vmem:[%s8021_s4 + $0x340] sm:$0xf]  ;;  %2146 = vmatpush.bf16.msrb.mxu1 %v4273_v27  ;;  %v4257_v12 = vor.u32 %v5154_v8, %v4254_v62  ;;  %v4238_v19 = vld [vmem:[%s8021_s4 + $0x2b0] sm:$0xf0]  ;;  %v755_v35 = vperm.slane %v6700_v25, 0 }
  0xd4   :  { %v4317_v42 = vor.u32 %v5172_v38, %v4316_v63  ;;  %2139 = vmatpush.bf16.msrb.mxu0 %v4049_v20  ;;  %v4241_v22 = vor.u32 %v5150_v15, %v4238_v19  ;;  %v4350_v38 = vld [vmem:[%s8021_s4 + $0x390] sm:$0xf0]  ;;  %v5166_v8 = vld [vmem:[%s8021_s4 + $0x324] sm:$0xf]  ;;  %v4161_v20 = vor.u32 %v5130_v58, %v4158_v30  ;;  %v5089_v14 = vld [vmem:[%s8021_s4 + $0xb4] sm:$0xf0] }
  0xd5   :  { %v659_v46 = vrot.slane %v612_v32, 4  ;;  %v660_v48 = vrot.slane %v651_v26, 2  ;;  %v4225_v32 = vor.u32 %v5146_v28, %v4222_v29  ;;  %v4206_v26 = vld [vmem:[%s8021_s4 + $0x270] sm:$0xf0]  ;;  %v4353_v40 = vor.u32 %v5178_v37, %v4350_v38  ;;  %v5162_v16 = vld [vmem:[%s8021_s4 + $0x304] sm:$0xf] }
  0xd6   :  { %2112 = vmatpush.bf16.msra.mxu2 %v4317_v42  ;;  %2127 = vmatpush.bf16.msrb.mxu3 %v3905_v50  ;;  %v4209_v63 = vor.u32 %v5142_v36, %v4206_v26  ;;  %v4334_v50 = vld [vmem:[%s8021_s4 + $0x370] sm:$0xf0]  ;;  %v5081_v36 = vld [vmem:[%s8021_s4 + $0x74] sm:$0xf0]  ;;  %v4132_v37 = vld [vmem:[%s8021_s4 + $0x1c8] sm:$0xf] }
  0xd7   :  { %v639_v9 = vpop.f32.mrf.mxu2  ;;  %v664_v55 = vsel %vm663_vm2, %v659_v46, %v660_v48  ;;  %2147 = vmatpush.bf16.msrb.mxu1 %v4257_v12  ;;  %v4190_v46 = vld [vmem:[%s8021_s4 + $0x250] sm:$0xf0]  ;;  %v5174_v48 = vld [vmem:[%s8021_s4 + $0x364] sm:$0xf] }
  0xd8   :  { %v600_v49 = vpop.f32.mrf.mxu3  ;;  %v666_v3 = vsel %vm665_vm3, %v662_v54, %v664_v55  ;;  %2140 = vmatpush.bf16.msrb.mxu0 %v4033_v18  ;;  %v4337_v9 = vor.u32 %v5174_v48, %v4334_v50  ;;  %v5097_v54 = vld [vmem:[%s8021_s4 + $0xf4] sm:$0xf0]  ;;  %v5134_v55 = vld [vmem:[%s8021_s4 + $0x224] sm:$0xf]  ;;  %v4302_v62 = vld [vmem:[%s8021_s4 + $0x330] sm:$0xf0] }
  0xd9   :  { %668 = vst [vmem:[#allocation4] sm:$0xff] %v666_v3  ;;  %v4193_v49 = vor.u32 %v5138_v45, %v4190_v46  ;;  %v4177_v57 = vor.u32 %v5134_v55, %v4174_v56  ;;  %v4021_v27 = vor.u32 %v5097_v54, %v4020_v52  ;;  %v4305_v10 = vor.u32 %v5166_v8, %v4302_v62  ;;  %v4286_v15 = vld [vmem:[%s8021_s4 + $0x310] sm:$0xf0]  ;;  %v4116_v46 = vld [vmem:[%s8021_s4 + $0x1a8] sm:$0xf] }
  0xda   :  { %v652_v4 = vpop.f32.mrf.mxu1  ;;  %2113 = vmatpush.bf16.msra.mxu2 %v4301_v61  ;;  %v4289_v18 = vor.u32 %v5162_v16, %v4286_v15  ;;  %v5121_v48 = vld [vmem:[%s8021_s4 + $0x1b4] sm:$0xf0]  ;;  %v4100_v52 = vld [vmem:[%s8021_s4 + $0x188] sm:$0xf]  ;;  %v758_v56 = vperm.slane %v6700_v25, 3 }
  0xdb   :  { %2148 = vmatpush.bf16.msrb.mxu1 %v4241_v22  ;;  %v4004_v4 = vld [vmem:[%s8021_s4 + $0xc8] sm:$0xf]  ;;  %v4117_v50 = vor.u32 %v5121_v48, %v4116_v46  ;;  %v4006_v16 = vld [vmem:[%s8021_s4 + $0xd8] sm:$0xf0]  ;;  %v5153_v48 = vld [vmem:[%s8021_s4 + $0x2b4] sm:$0xf0] }
  0xdc   :  { %v4005_v12 = vor.u32 %v5093_v5, %v4004_v4  ;;  %v3909_v5 = vor.u32 %v5069_v60, %v3908_v59  ;;  %v4068_v8 = vld [vmem:[%s8021_s4 + $0x148] sm:$0xf]  ;;  %v5149_v60 = vld [vmem:[%s8021_s4 + $0x294] sm:$0xf0]  ;;  %3303 = dma.vmem_to_hbm [thread:$0]  %s3299_s18, 128, %s3301_s21, [#allocation5]  }
  0xdd   :  { %v4244_v46 = vld [vmem:[%s8021_s4 + $0x2a8] sm:$0xf] }
  0xde   :  { %2114 = vmatpush.bf16.msra.mxu2 %v4285_v7  ;;  %v4228_v59 = vld [vmem:[%s8021_s4 + $0x288] sm:$0xf] }
  0xdf   :  { %2149 = vmatpush.bf16.msrb.mxu1 %v4225_v32  ;;  %v5129_v32 = vld [vmem:[%s8021_s4 + $0x1f4] sm:$0xf0] }
  0xe2   :  { %2159 = vmatpush.bf16.msrb.mxu2 %v4401_v13  ;;  %v1161_v24 = vpop.f32.mrf.mxu1  ;;  %v3988_v13 = vld [vmem:[%s8021_s4 + $0xa8] sm:$0xf] }
  0xe3   :  { %2150 = vmatpush.bf16.msrb.mxu1 %v4209_v63  ;;  %v3989_v47 = vor.u32 %v5089_v14, %v3988_v13  ;;  %v5125_v63 = vld [vmem:[%s8021_s4 + $0x1d4] sm:$0xf0]  ;;  %v5091_v14 = vld [vmem:[%s8021_s4 + $0xcc] sm:$0xf] }
  0xe6   :  { %2160 = vmatpush.bf16.msrb.mxu2 %v4385_v23  ;;  %v3972_v23 = vld [vmem:[%s8021_s4 + $0x88] sm:$0xf] }
  0xe7   :  { %2151 = vmatpush.bf16.msrb.mxu1 %v4193_v49 }
  0xea   :  { %2161 = vmatpush.bf16.msrb.mxu2 %v4369_v34  ;;  %v1163_v42 = vpop.f32.mrf.mxu1 }
  0xeb   :  { %2152 = vmatpush.bf16.msrb.mxu1 %v4177_v57  ;;  %v4133_v42 = vor.u32 %v5125_v63, %v4132_v37 }
  0xee   :  { %v1148_v17 = vpop.f32.mrf.mxu0  ;;  %2162 = vmatpush.bf16.msrb.mxu2 %v4353_v40 }
  0xef   :  { %2153 = vmatpush.bf16.msrb.mxu1 %v4161_v20 }
  0xf2   :  { %v1135_v41 = vpop.f32.mrf.mxu3  ;;  %v1174_v44 = vpop.f32.mrf.mxu2  ;;  %2163 = vmatpush.bf16.msrb.mxu2 %v4337_v9  ;;  %v5073_v9 = vld [vmem:[%s8021_s4 + $0x34] sm:$0xf0] }
  0xf3   :  { %v1136_v43 = vadd.f32 %v1135_v41, %v755_v35  ;;  %v1175_v11 = vadd.f32 %v1174_v44, %v756_v1  ;;  %v4149_v35 = vor.u32 %v5129_v32, %v4148_v31  ;;  %v5077_v44 = vld [vmem:[%s8021_s4 + $0x54] sm:$0xf0]  ;;  %v4404_v32 = vld [vmem:[%s8021_s4 + $0x3e8] sm:$0xf] }
  0xf4   :  { %v5113_v1 = vld [vmem:[%s8021_s4 + $0x174] sm:$0xf0] }
  0xf5   :  { %v1149_v39 = vadd.f32 %v1148_v17, %v1136_v43  ;;  %v3956_v17 = vld [vmem:[%s8021_s4 + $0x68] sm:$0xf]  ;;  %v5157_v31 = vld [vmem:[%s8021_s4 + $0x2d4] sm:$0xf0] }
  0xf6   :  { %v1150_v51 = vpop.f32.mrf.mxu0  ;;  %2164 = vmatpush.bf16.msrb.mxu2 %v4321_v0  ;;  %v3957_v40 = vor.u32 %v5081_v36, %v3956_v17  ;;  %v3940_v43 = vld [vmem:[%s8021_s4 + $0x48] sm:$0xf]  ;;  %v3990_v17 = vld [vmem:[%s8021_s4 + $0xb8] sm:$0xf0] }
  0xf7   :  { %v1162_v53 = vadd.f32 %v1161_v24, %v1149_v39  ;;  %v5085_v24 = vld [vmem:[%s8021_s4 + $0x94] sm:$0xf0]  ;;  %v3941_v49 = vor.u32 %v5077_v44, %v3940_v43  ;;  %v3924_v39 = vld [vmem:[%s8021_s4 + $0x28] sm:$0xf]  ;;  %v757_v51 = vperm.slane %v6700_v25, 2 }
  0xf8   :  { %v1187_v3 = vpop.f32.mrf.mxu1  ;;  %v3973_v34 = vor.u32 %v5085_v24, %v3972_v23  ;;  %v3925_v55 = vor.u32 %v5073_v9, %v3924_v39  ;;  %v5095_v25 = vld [vmem:[%s8021_s4 + $0xec] sm:$0xf]  ;;  %v5189_v39 = vld [vmem:[%s8021_s4 + $0x3d4] sm:$0xf0] }
  0xf9   :  { %v1282_v61 = vmax.f32 %v1162_v53, 0.0  ;;  %v1188_v19 = vadd.f32 %v1187_v3, %v1175_v11  ;;  %v5117_v53 = vld [vmem:[%s8021_s4 + $0x194] sm:$0xf0]  ;;  %v4276_v11 = vld [vmem:[%s8021_s4 + $0x2e8] sm:$0xf] }
  0xfa   :  { %v1137_v2 = vpop.f32.mrf.mxu3  ;;  %v1176_v7 = vpop.f32.mrf.mxu2  ;;  %2165 = vmatpush.bf16.msrb.mxu2 %v4305_v10  ;;  %v4101_v57 = vor.u32 %v5117_v53, %v4100_v52  ;;  %v5109_v10 = vld [vmem:[%s8021_s4 + $0x154] sm:$0xf0]  ;;  %v5083_v9 = vld [vmem:[%s8021_s4 + $0x8c] sm:$0xf]  ;;  %v4150_v53 = vld [vmem:[%s8021_s4 + $0x1f8] sm:$0xf0] }
  0xfb   :  { %v6764_v6 = vpack.c.bf16 %v1282_v61, %v1282_v61  ;;  %v4084_v61 = vld [vmem:[%s8021_s4 + $0x168] sm:$0xf]  ;;  %v4022_v2 = vld [vmem:[%s8021_s4 + $0xf8] sm:$0xf0]  ;;  %v5127_v52 = vld [vmem:[%s8021_s4 + $0x1ec] sm:$0xf] }
  0xfc   :  { %v4085_v58 = vor.u32 %v5113_v1, %v4084_v61  ;;  %v4025_v30 = vor.u32 %v5095_v25, %v4022_v2  ;;  %v4372_v61 = vld [vmem:[%s8021_s4 + $0x3a8] sm:$0xf]  ;;  %v5185_v1 = vld [vmem:[%s8021_s4 + $0x3b4] sm:$0xf0]  ;;  %v5079_v25 = vld [vmem:[%s8021_s4 + $0x6c] sm:$0xf] }
  0xfd   :  { %2076 = vmatmul.bf16.vlgmr.msra.gmra.mxu3 %v6764_v6  ;;  %v3958_v2 = vld [vmem:[%s8021_s4 + $0x78] sm:$0xf0] }
  0xfe   :  { %2172 = vmatpush.bf16.msra.mxu3 %v4021_v27  ;;  %2166 = vmatpush.bf16.msrb.mxu2 %v4289_v18 }
 0x100   :  { %v1189_v21 = vpop.f32.mrf.mxu1 }
 0x101   :  { %v4052_v21 = vld [vmem:[%s8021_s4 + $0x128] sm:$0xf] }
 0x102   :  { %2173 = vmatpush.bf16.msra.mxu3 %v4005_v12  ;;  %v1200_v22 = vpop.f32.mrf.mxu3  ;;  %v1239_v29 = vpop.f32.mrf.mxu2  ;;  %v5161_v12 = vld [vmem:[%s8021_s4 + $0x2f4] sm:$0xf0] }
 0x103   :  { %v1201_v28 = vadd.f32 %v1200_v22, %v1188_v19  ;;  %v4069_v19 = vor.u32 %v5109_v10, %v4068_v8  ;;  %v5105_v22 = vld [vmem:[%s8021_s4 + $0x134] sm:$0xf0]  ;;  %v4356_v8 = vld [vmem:[%s8021_s4 + $0x388] sm:$0xf]  ;;  %v5075_v10 = vld [vmem:[%s8021_s4 + $0x4c] sm:$0xf] }
 0x105   :  { %v1283_v33 = vmax.f32 %v1201_v28, 0.0  ;;  %v4009_v28 = vor.u32 %v5091_v14, %v4006_v16 }
 0x106   :  { %2174 = vmatpush.bf16.msra.mxu3 %v3989_v47  ;;  %v4277_v47 = vor.u32 %v5161_v12, %v4276_v11  ;;  %v3942_v11 = vld [vmem:[%s8021_s4 + $0x58] sm:$0xf0]  ;;  %v5119_v12 = vld [vmem:[%s8021_s4 + $0x1ac] sm:$0xf] }
 0x107   :  { %v6809_v26 = vpack.c.bf16 %v1283_v33, %v1283_v33 }
 0x108   :  { %v1213_v38 = vpop.f32.mrf.mxu0 }
 0x109   :  { %2089 = vmatmul.bf16.vlgmr.msra.gmra.mxu0 %v6809_v26  ;;  %v1214_v0 = vadd.f32 %v1213_v38, %v757_v51  ;;  %v4053_v38 = vor.u32 %v5105_v22, %v4052_v21  ;;  %v3974_v51 = vld [vmem:[%s8021_s4 + $0x98] sm:$0xf0]  ;;  %v5177_v22 = vld [vmem:[%s8021_s4 + $0x374] sm:$0xf0] }
 0x10a   :  { %2175 = vmatpush.bf16.msra.mxu3 %v3973_v34  ;;  %2185 = vmatpush.bf16.msra.mxu0 %v4149_v35  ;;  %v1202_v41 = vpop.f32.mrf.mxu3  ;;  %v1241_v45 = vpop.f32.mrf.mxu2  ;;  %v5193_v34 = vld [vmem:[%s8021_s4 + $0x3f4] sm:$0xf0]  ;;  %v5087_v35 = vld [vmem:[%s8021_s4 + $0xac] sm:$0xf] }
 0x10b   :  { %v4036_v41 = vld [vmem:[%s8021_s4 + $0x108] sm:$0xf]  ;;  %v4405_v44 = vor.u32 %v5193_v34, %v4404_v32  ;;  %v3993_v45 = vor.u32 %v5087_v35, %v3990_v17  ;;  %v5137_v17 = vld [vmem:[%s8021_s4 + $0x234] sm:$0xf0] }
 0x10c   :  { %v4180_v35 = vld [vmem:[%s8021_s4 + $0x228] sm:$0xf] }
 0x10d   :  { %2128 = vmatmul.bf16.vlgmr.msrb.gmra.mxu3 %v6764_v6 }
 0x10e   :  { %2176 = vmatpush.bf16.msra.mxu3 %v3957_v40  ;;  %2186 = vmatpush.bf16.msra.mxu0 %v4133_v42  ;;  %v5101_v42 = vld [vmem:[%s8021_s4 + $0x114] sm:$0xf0] }
 0x110   :  { %v1215_v54 = vpop.f32.mrf.mxu0 }
 0x111   :  { %v4037_v54 = vor.u32 %v5101_v42, %v4036_v41  ;;  %v5111_v41 = vld [vmem:[%s8021_s4 + $0x16c] sm:$0xf]  ;;  %v4086_v42 = vld [vmem:[%s8021_s4 + $0x178] sm:$0xf0] }
 0x112   :  { %2177 = vmatpush.bf16.msra.mxu3 %v3941_v49  ;;  %2187 = vmatpush.bf16.msra.mxu0 %v4117_v50  ;;  %v4388_v49 = vld [vmem:[%s8021_s4 + $0x3c8] sm:$0xf] }
 0x116   :  { %2178 = vmatpush.bf16.msra.mxu3 %v3925_v55  ;;  %2188 = vmatpush.bf16.msra.mxu0 %v4101_v57  ;;  %v4245_v55 = vor.u32 %v5153_v48, %v4244_v46  ;;  %v3977_v57 = vor.u32 %v5083_v9, %v3974_v51  ;;  %v4164_v48 = vld [vmem:[%s8021_s4 + $0x208] sm:$0xf]  ;;  %v5169_v9 = vld [vmem:[%s8021_s4 + $0x334] sm:$0xf0]  ;;  %v5159_v51 = vld [vmem:[%s8021_s4 + $0x2ec] sm:$0xf] }
 0x117   :  { %v1265_v4 = vpop.f32.mrf.mxu2 }
 0x118   :  { %v1226_v3 = vpop.f32.mrf.mxu3  ;;  %v1252_v7 = vpop.f32.mrf.mxu1 }
 0x119   :  { %v1227_v27 = vadd.f32 %v1226_v3, %v1214_v0  ;;  %v1253_v62 = vadd.f32 %v1252_v7, %v758_v56  ;;  %v1278_v13 = vpop.f32.mrf.mxu0  ;;  %2141 = vmatmul.bf16.vlgmr.msrb.gmra.mxu0 %v6809_v26  ;;  %v4389_v56 = vor.u32 %v5189_v39, %v4388_v49  ;;  %v4153_v0 = vor.u32 %v5127_v52, %v4150_v53  ;;  %v5123_v3 = vld [vmem:[%s8021_s4 + $0x1cc] sm:$0xf]  ;;  %v5133_v49 = vld [vmem:[%s8021_s4 + $0x214] sm:$0xf0]  ;;  %v4278_v52 = vld [vmem:[%s8021_s4 + $0x2f8] sm:$0xf0] }
 0x11a   :  { %2179 = vmatpush.bf16.msra.mxu3 %v3909_v5  ;;  %2189 = vmatpush.bf16.msra.mxu0 %v4085_v58  ;;  %v4373_v5 = vor.u32 %v5185_v1, %v4372_v61  ;;  %v3961_v7 = vor.u32 %v5079_v25, %v3958_v2  ;;  %v4212_v58 = vld [vmem:[%s8021_s4 + $0x268] sm:$0xf]  ;;  %v4089_v39 = vor.u32 %v5111_v41, %v4086_v42  ;;  %v5107_v53 = vld [vmem:[%s8021_s4 + $0x14c] sm:$0xf]  ;;  %v4262_v25 = vld [vmem:[%s8021_s4 + $0x2d8] sm:$0xf0] }
 0x11b   :  { %v1240_v20 = vadd.f32 %v1239_v29, %v1227_v27  ;;  %v1266_v18 = vadd.f32 %v1265_v4, %v1253_v62  ;;  %v4260_v29 = vld [vmem:[%s8021_s4 + $0x2c8] sm:$0xf]  ;;  %v4134_v27 = vld [vmem:[%s8021_s4 + $0x1d8] sm:$0xf0]  ;;  %v4229_v4 = vor.u32 %v5149_v60, %v4228_v59  ;;  %v5181_v62 = vld [vmem:[%s8021_s4 + $0x394] sm:$0xf0] }
 0x11c   :  { %v4261_v40 = vor.u32 %v5157_v31, %v4260_v29  ;;  %v4357_v16 = vor.u32 %v5181_v62, %v4356_v8  ;;  %v5115_v29 = vld [vmem:[%s8021_s4 + $0x18c] sm:$0xf]  ;;  %v4102_v31 = vld [vmem:[%s8021_s4 + $0x198] sm:$0xf0]  ;;  %v4292_v59 = vld [vmem:[%s8021_s4 + $0x308] sm:$0xf] }
 0x11d   :  { %v1284_v15 = vmax.f32 %v1240_v20, 0.0  ;;  %v1279_v24 = vadd.f32 %v1278_v13, %v1266_v18  ;;  %2180 = vmatmul.bf16.vlgmr.msra.gmra.mxu3 %v6764_v6  ;;  %v4137_v20 = vor.u32 %v5123_v3, %v4134_v27  ;;  %v4118_v13 = vld [vmem:[%s8021_s4 + $0x1b8] sm:$0xf0]  ;;  %v4196_v18 = vld [vmem:[%s8021_s4 + $0x248] sm:$0xf] }
 0x11e   :  { %2224 = vmatpush.bf16.msrb.mxu3 %v4025_v30  ;;  %2190 = vmatpush.bf16.msra.mxu0 %v4069_v19  ;;  %v5145_v30 = vld [vmem:[%s8021_s4 + $0x274] sm:$0xf0]  ;;  %v4121_v21 = vor.u32 %v5119_v12, %v4118_v13  ;;  %v5155_v1 = vld [vmem:[%s8021_s4 + $0x2cc] sm:$0xf]  ;;  %v4054_v2 = vld [vmem:[%s8021_s4 + $0x138] sm:$0xf0] }
 0x11f   :  { %v6888_v23 = vpack.c.bf16 %v1284_v15, %v1284_v15  ;;  %v1285_v36 = vmax.f32 %v1279_v24, 0.0  ;;  %v1267_v37 = vpop.f32.mrf.mxu2  ;;  %v4213_v14 = vor.u32 %v5145_v30, %v4212_v58  ;;  %v3945_v15 = vor.u32 %v5075_v10, %v3942_v11  ;;  %v5141_v19 = vld [vmem:[%s8021_s4 + $0x254] sm:$0xf0]  ;;  %v5071_v24 = vld [vmem:[%s8021_s4 + $0x2c] sm:$0xf] }
 0x120   :  { %v1228_v33 = vpop.f32.mrf.mxu3  ;;  %v1254_v63 = vpop.f32.mrf.mxu1  ;;  %v4197_v32 = vor.u32 %v5141_v19, %v4196_v18  ;;  %v4105_v37 = vor.u32 %v5115_v29, %v4102_v31  ;;  %v5165_v60 = vld [vmem:[%s8021_s4 + $0x314] sm:$0xf0]  ;;  %v5191_v3 = vld [vmem:[%s8021_s4 + $0x3ec] sm:$0xf]  ;;  %v4406_v27 = vld [vmem:[%s8021_s4 + $0x3f8] sm:$0xf0] }
 0x121   :  { %2102 = vmatmul.bf16.vlgmr.msra.gmra.mxu1 %v6888_v23  ;;  %v6916_v43 = vpack.c.bf16 %v1285_v36, %v1285_v36  ;;  %v1280_v50 = vpop.f32.mrf.mxu0  ;;  %v4324_v36 = vld [vmem:[%s8021_s4 + $0x348] sm:$0xf]  ;;  %v5173_v63 = vld [vmem:[%s8021_s4 + $0x354] sm:$0xf0]  ;;  %v4409_v58 = vor.u32 %v5191_v3, %v4406_v27  ;;  %v5099_v30 = vld [vmem:[%s8021_s4 + $0x10c] sm:$0xf] }
 0x122   :  { %2198 = vmatpush.bf16.msra.mxu1 %v4277_v47  ;;  %2225 = vmatpush.bf16.msrb.mxu3 %v4009_v28  ;;  %v4340_v47 = vld [vmem:[%s8021_s4 + $0x368] sm:$0xf]  ;;  %v3926_v28 = vld [vmem:[%s8021_s4 + $0x38] sm:$0xf0]  ;;  %v5151_v8 = vld [vmem:[%s8021_s4 + $0x2ac] sm:$0xf] }
 0x123   :  { %2115 = vmatmul.bf16.vlgmr.msra.gmra.mxu2 %v6916_v43  ;;  %2191 = vmatpush.bf16.msra.mxu0 %v4053_v38  ;;  %v4341_v33 = vor.u32 %v5177_v22, %v4340_v47  ;;  %v3929_v34 = vor.u32 %v5071_v24, %v3926_v28  ;;  %v5067_v38 = vld [vmem:[%s8021_s4 + $0xc] sm:$0xf]  ;;  %v4308_v50 = vld [vmem:[%s8021_s4 + $0x328] sm:$0xf]  ;;  %v4390_v10 = vld [vmem:[%s8021_s4 + $0x3d8] sm:$0xf0] }
 0x124   :  { %2211 = vmatpush.bf16.msra.mxu2 %v4405_v44  ;;  %v4181_v44 = vor.u32 %v5137_v17, %v4180_v35  ;;  %v5187_v62 = vld [vmem:[%s8021_s4 + $0x3cc] sm:$0xf]  ;;  %v4524_v12 = vld [vmem:[%s8023_s6 + $0xe0] sm:$0xf]  ;;  %v5224_v13 = vld [vmem:[%s8023_s6 + $0xec] sm:$0xf0] }
 0x125   :  { %v5147_v18 = vld [vmem:[%s8021_s4 + $0x28c] sm:$0xf]  ;;  %v4230_v19 = vld [vmem:[%s8021_s4 + $0x298] sm:$0xf0]  ;;  %v4525_v47 = vor.u32 %v5224_v13, %v4524_v12  ;;  %v4492_v31 = vld [vmem:[%s8023_s6 + $0xa0] sm:$0xf] }
 0x126   :  { %2199 = vmatpush.bf16.msra.mxu1 %v4261_v40  ;;  %2226 = vmatpush.bf16.msrb.mxu3 %v3993_v45  ;;  %v3910_v40 = vld [vmem:[%s8021_s4 + $0x18] sm:$0xf0]  ;;  %v4325_v45 = vor.u32 %v5173_v63, %v4324_v36  ;;  %v5183_v22 = vld [vmem:[%s8021_s4 + $0x3ac] sm:$0xf]  ;;  %v4233_v29 = vor.u32 %v5147_v18, %v4230_v19  ;;  %v4652_v3 = vld [vmem:[%s8023_s6 + $0x1e0] sm:$0xf] }
 0x127   :  { %2192 = vmatpush.bf16.msra.mxu0 %v4037_v54  ;;  %v3913_v46 = vor.u32 %v5067_v38, %v3910_v40  ;;  %v4070_v54 = vld [vmem:[%s8021_s4 + $0x158] sm:$0xf0]  ;;  %v5179_v17 = vld [vmem:[%s8021_s4 + $0x38c] sm:$0xf]  ;;  %v4476_v38 = vld [vmem:[%s8023_s6 + $0x80] sm:$0xf] }
 0x128   :  { %2212 = vmatpush.bf16.msra.mxu2 %v4389_v56  ;;  %v4309_v56 = vor.u32 %v5169_v9, %v4308_v50  ;;  %v4073_v61 = vor.u32 %v5107_v53, %v4070_v54  ;;  %v4374_v24 = vld [vmem:[%s8021_s4 + $0x3b8] sm:$0xf0]  ;;  %v5212_v40 = vld [vmem:[%s8023_s6 + $0x8c] sm:$0xf0]  ;;  %v5139_v42 = vld [vmem:[%s8021_s4 + $0x24c] sm:$0xf] }
 0x129   :  { %v4214_v35 = vld [vmem:[%s8021_s4 + $0x278] sm:$0xf0]  ;;  %v5135_v50 = vld [vmem:[%s8021_s4 + $0x22c] sm:$0xf]  ;;  %v4412_v12 = vld [vmem:[%s8023_s6] sm:$0xf] }
 0x12a   :  { %2200 = vmatpush.bf16.msra.mxu1 %v4245_v55  ;;  %2227 = vmatpush.bf16.msrb.mxu3 %v3977_v57  ;;  %v4165_v55 = vor.u32 %v5133_v49, %v4164_v48  ;;  %v4281_v57 = vor.u32 %v5159_v51, %v4278_v52  ;;  %v4358_v36 = vld [vmem:[%s8021_s4 + $0x398] sm:$0xf0]  ;;  %v5171_v9 = vld [vmem:[%s8021_s4 + $0x34c] sm:$0xf]  ;;  %v5196_v13 = vld [vmem:[%s8023_s6 + $0xc] sm:$0xf0] }
 0x12b   :  { %2237 = vmatpush.bf16.msrb.mxu0 %v4153_v0  ;;  %v5103_v0 = vld [vmem:[%s8021_s4 + $0x12c] sm:$0xf]  ;;  %v4361_v41 = vor.u32 %v5179_v17, %v4358_v36  ;;  %v4326_v51 = vld [vmem:[%s8021_s4 + $0x358] sm:$0xf0]  ;;  %v4413_v18 = vor.u32 %v5196_v13, %v4412_v12  ;;  %v4572_v36 = vld [vmem:[%s8023_s6 + $0x140] sm:$0xf] }
 0x12c   :  { %2193 = vmatmul.bf16.vlgmr.msra.gmra.mxu0 %v6809_v26  ;;  %2213 = vmatpush.bf16.msra.mxu2 %v4373_v5  ;;  %v4265_v5 = vor.u32 %v5155_v1, %v4262_v25  ;;  %v4329_v53 = vor.u32 %v5171_v9, %v4326_v51  ;;  %v5131_v54 = vld [vmem:[%s8021_s4 + $0x20c] sm:$0xf]  ;;  %v4460_v25 = vld [vmem:[%s8023_s6 + $0x60] sm:$0xf]  ;;  %v5210_v9 = vld [vmem:[%s8023_s6 + $0x84] sm:$0xf] }
 0x12d   :  { %v4478_v51 = vld [vmem:[%s8023_s6 + $0x90] sm:$0xf0]  ;;  %v5246_v12 = vld [vmem:[%s8023_s6 + $0x1a4] sm:$0xf] }
 0x12e   :  { %2201 = vmatpush.bf16.msra.mxu1 %v4229_v4  ;;  %2228 = vmatpush.bf16.msrb.mxu3 %v3961_v7  ;;  %v4293_v4 = vor.u32 %v5165_v60, %v4292_v59  ;;  %v4057_v7 = vor.u32 %v5103_v0, %v4054_v2  ;;  %v4294_v0 = vld [vmem:[%s8021_s4 + $0x318] sm:$0xf0]  ;;  %v5208_v2 = vld [vmem:[%s8023_s6 + $0x6c] sm:$0xf0] }
 0x12f   :  { %2238 = vmatpush.bf16.msrb.mxu0 %v4137_v20  ;;  %v4246_v20 = vld [vmem:[%s8021_s4 + $0x2b8] sm:$0xf0]  ;;  %v4461_v27 = vor.u32 %v5208_v2, %v4460_v25  ;;  %v4654_v25 = vld [vmem:[%s8023_s6 + $0x1f0] sm:$0xf0] }
 0x130   :  { %2214 = vmatpush.bf16.msra.mxu2 %v4357_v16  ;;  %v4249_v11 = vor.u32 %v5151_v8, %v4246_v20  ;;  %v4428_v20 = vld [vmem:[%s8023_s6 + $0x20] sm:$0xf] }
 0x131   :  { %2154 = vmatmul.bf16.vlgmr.msrb.gmra.mxu1 %v6888_v23 }
 0x132   :  { %2202 = vmatpush.bf16.msra.mxu1 %v4213_v14  ;;  %2229 = vmatpush.bf16.msrb.mxu3 %v3945_v15  ;;  %v4508_v14 = vld [vmem:[%s8023_s6 + $0xc0] sm:$0xf]  ;;  %v4393_v15 = vor.u32 %v5187_v62, %v4390_v10 }
 0x133   :  { %2239 = vmatpush.bf16.msrb.mxu0 %v4121_v21  ;;  %2167 = vmatmul.bf16.vlgmr.msrb.gmra.mxu2 %v6916_v43  ;;  %v5220_v21 = vld [vmem:[%s8023_s6 + $0xcc] sm:$0xf0]  ;;  %v4620_v62 = vld [vmem:[%s8023_s6 + $0x1a0] sm:$0xf] }
 0x134   :  { %2215 = vmatpush.bf16.msra.mxu2 %v4341_v33  ;;  %v4509_v28 = vor.u32 %v5220_v21, %v4508_v14  ;;  %v4377_v33 = vor.u32 %v5183_v22, %v4374_v24  ;;  %v4526_v21 = vld [vmem:[%s8023_s6 + $0xf0] sm:$0xf0]  ;;  %v4588_v24 = vld [vmem:[%s8023_s6 + $0x160] sm:$0xf] }
 0x136   :  { %2203 = vmatpush.bf16.msra.mxu1 %v4197_v32  ;;  %2230 = vmatpush.bf16.msrb.mxu3 %v3929_v34  ;;  %v5216_v32 = vld [vmem:[%s8023_s6 + $0xac] sm:$0xf0]  ;;  %v5143_v34 = vld [vmem:[%s8021_s4 + $0x26c] sm:$0xf] }
 0x137   :  { %2240 = vmatpush.bf16.msrb.mxu0 %v4105_v37  ;;  %v4493_v37 = vor.u32 %v5216_v32, %v4492_v31  ;;  %v4217_v63 = vor.u32 %v5143_v34, %v4214_v35  ;;  %v5288_v32 = vld [vmem:[%s8023_s6 + $0x2ec] sm:$0xf0]  ;;  %v4510_v34 = vld [vmem:[%s8023_s6 + $0xd0] sm:$0xf0] }
 0x138   :  { %2216 = vmatpush.bf16.msra.mxu2 %v4325_v45  ;;  %v4342_v45 = vld [vmem:[%s8021_s4 + $0x378] sm:$0xf0] }
 0x13a   :  { %2204 = vmatpush.bf16.msra.mxu1 %v4181_v44  ;;  %2231 = vmatpush.bf16.msrb.mxu3 %v3913_v46  ;;  %v5175_v44 = vld [vmem:[%s8021_s4 + $0x36c] sm:$0xf]  ;;  %v4477_v46 = vor.u32 %v5212_v40, %v4476_v38  ;;  %v5284_v38 = vld [vmem:[%s8023_s6 + $0x2cc] sm:$0xf0] }
 0x13b   :  { %2241 = vmatpush.bf16.msrb.mxu0 %v4089_v39  ;;  %v4345_v49 = vor.u32 %v5175_v44, %v4342_v45  ;;  %v4182_v39 = vld [vmem:[%s8021_s4 + $0x238] sm:$0xf0]  ;;  %v4556_v45 = vld [vmem:[%s8023_s6 + $0x120] sm:$0xf] }
 0x13c   :  { %2217 = vmatpush.bf16.msra.mxu2 %v4309_v56  ;;  %v4185_v52 = vor.u32 %v5135_v50, %v4182_v39  ;;  %v5167_v56 = vld [vmem:[%s8021_s4 + $0x32c] sm:$0xf]  ;;  %v5280_v50 = vld [vmem:[%s8023_s6 + $0x2ac] sm:$0xf0] }
 0x13d   :  { %2232 = vmatmul.bf16.vlgmr.msrb.gmra.mxu3 %v6764_v6  ;;  %v4038_v6 = vld [vmem:[%s8021_s4 + $0x118] sm:$0xf0] }
 0x13e   :  { %2205 = vmatpush.bf16.msra.mxu1 %v4165_v55  ;;  %v4041_v16 = vor.u32 %v5099_v30, %v4038_v6  ;;  %3062 = vmatpush.bf16.msra.mxu3 %v4525_v47  ;;  %v4166_v55 = vld [vmem:[%s8021_s4 + $0x218] sm:$0xf0]  ;;  %v5200_v6 = vld [vmem:[%s8023_s6 + $0x2c] sm:$0xf0]  ;;  %v5222_v47 = vld [vmem:[%s8023_s6 + $0xe4] sm:$0xf] }
 0x13f   :  { %2242 = vmatpush.bf16.msrb.mxu0 %v4073_v61  ;;  %v4169_v59 = vor.u32 %v5131_v54, %v4166_v55  ;;  %v5163_v61 = vld [vmem:[%s8021_s4 + $0x30c] sm:$0xf]  ;;  %v4429_v10 = vor.u32 %v5200_v6, %v4428_v20  ;;  %v4529_v22 = vor.u32 %v5222_v47, %v4526_v21  ;;  %v5228_v54 = vld [vmem:[%s8023_s6 + $0x10c] sm:$0xf0]  ;;  %v4732_v55 = vld [vmem:[%s8023_s6 + $0x280] sm:$0xf] }
 0x140   :  { %2218 = vmatpush.bf16.msra.mxu2 %v4293_v4  ;;  %v4297_v1 = vor.u32 %v5163_v61, %v4294_v0  ;;  %v5204_v4 = vld [vmem:[%s8023_s6 + $0x4c] sm:$0xf0]  ;;  %v4462_v61 = vld [vmem:[%s8023_s6 + $0x70] sm:$0xf0]  ;;  %v5254_v0 = vld [vmem:[%s8023_s6 + $0x1e4] sm:$0xf] }
 0x141   :  { %2206 = vmatmul.bf16.vlgmr.msra.gmra.mxu1 %v6888_v23  ;;  %v4700_v20 = vld [vmem:[%s8023_s6 + $0x240] sm:$0xf]  ;;  %v5268_v6 = vld [vmem:[%s8023_s6 + $0x24c] sm:$0xf0] }
 0x142   :  { %2250 = vmatpush.bf16.msrb.mxu1 %v4281_v57  ;;  %3063 = vmatpush.bf16.msra.mxu3 %v4509_v28  ;;  %v4310_v57 = vld [vmem:[%s8021_s4 + $0x338] sm:$0xf0]  ;;  %v5240_v28 = vld [vmem:[%s8023_s6 + $0x16c] sm:$0xf0] }
 0x143   :  { %2243 = vmatpush.bf16.msrb.mxu0 %v4057_v7  ;;  %2219 = vmatmul.bf16.vlgmr.msra.gmra.mxu2 %v6916_v43  ;;  %v4313_v60 = vor.u32 %v5167_v56, %v4310_v57  ;;  %v4636_v7 = vld [vmem:[%s8023_s6 + $0x1c0] sm:$0xf]  ;;  %v4589_v31 = vor.u32 %v5240_v28, %v4588_v24  ;;  %v5276_v57 = vld [vmem:[%s8023_s6 + $0x28c] sm:$0xf0]  ;;  %v4414_v24 = vld [vmem:[%s8023_s6 + $0x10] sm:$0xf0] }
 0x144   :  { %2263 = vmatpush.bf16.msrb.mxu2 %v4409_v58  ;;  %v5252_v58 = vld [vmem:[%s8023_s6 + $0x1cc] sm:$0xf0]  ;;  %v5242_v28 = vld [vmem:[%s8023_s6 + $0x184] sm:$0xf] }
 0x145   :  { %v4637_v8 = vor.u32 %v5252_v58, %v4636_v7  ;;  %v5250_v7 = vld [vmem:[%s8023_s6 + $0x1c4] sm:$0xf]  ;;  %v5264_v47 = vld [vmem:[%s8023_s6 + $0x22c] sm:$0xf0] }
 0x146   :  { %2251 = vmatpush.bf16.msrb.mxu1 %v4265_v5  ;;  %3064 = vmatpush.bf16.msra.mxu3 %v4493_v37  ;;  %v5236_v37 = vld [vmem:[%s8023_s6 + $0x14c] sm:$0xf0] }
 0x147   :  { %2244 = vmatpush.bf16.msrb.mxu0 %v4041_v16  ;;  %v4604_v16 = vld [vmem:[%s8023_s6 + $0x180] sm:$0xf]  ;;  %v4573_v40 = vor.u32 %v5236_v37, %v4572_v36  ;;  %v5320_v36 = vld [vmem:[%s8023_s6 + $0x3ec] sm:$0xf0]  ;;  %v5238_v37 = vld [vmem:[%s8023_s6 + $0x164] sm:$0xf] }
 0x148   :  { %2264 = vmatpush.bf16.msrb.mxu2 %v4393_v15  ;;  %v5244_v15 = vld [vmem:[%s8023_s6 + $0x18c] sm:$0xf0] }
 0x149   :  { %v4605_v19 = vor.u32 %v5244_v15, %v4604_v16  ;;  %v4622_v16 = vld [vmem:[%s8023_s6 + $0x1b0] sm:$0xf0] }
 0x14a   :  { %2252 = vmatpush.bf16.msrb.mxu1 %v4249_v11  ;;  %2245 = vmatmul.bf16.vlgmr.msrb.gmra.mxu0 %v6809_v26  ;;  %v4198_v26 = vld [vmem:[%s8021_s4 + $0x258] sm:$0xf0]  ;;  %v5248_v11 = vld [vmem:[%s8023_s6 + $0x1ac] sm:$0xf0] }
 0x14b   :  { %v4201_v48 = vor.u32 %v5139_v42, %v4198_v26  ;;  %3065 = vmatpush.bf16.msra.mxu3 %v4477_v46  ;;  %v4621_v14 = vor.u32 %v5248_v11, %v4620_v62  ;;  %v5214_v42 = vld [vmem:[%s8023_s6 + $0xa4] sm:$0xf]  ;;  %v4494_v26 = vld [vmem:[%s8023_s6 + $0xb0] sm:$0xf0]  ;;  %v5232_v46 = vld [vmem:[%s8023_s6 + $0x12c] sm:$0xf0]  ;;  %v4701_v62 = vor.u32 %v5268_v6, %v4700_v20 }
 0x14c   :  { %2265 = vmatpush.bf16.msrb.mxu2 %v4377_v33  ;;  %v5218_v33 = vld [vmem:[%s8023_s6 + $0xc4] sm:$0xf]  ;;  %v4497_v44 = vor.u32 %v5214_v42, %v4494_v26  ;;  %v4430_v11 = vld [vmem:[%s8023_s6 + $0x30] sm:$0xf0] }
 0x14d   :  { %v4513_v17 = vor.u32 %v5218_v33, %v4510_v34  ;;  %v4668_v33 = vld [vmem:[%s8023_s6 + $0x200] sm:$0xf]  ;;  %v5260_v34 = vld [vmem:[%s8023_s6 + $0x20c] sm:$0xf0]  ;;  %v5286_v42 = vld [vmem:[%s8023_s6 + $0x2e4] sm:$0xf] }
 0x14e   :  { %2253 = vmatpush.bf16.msrb.mxu1 %v4233_v29  ;;  %v4780_v29 = vld [vmem:[%s8023_s6 + $0x2e0] sm:$0xf]  ;;  %v4782_v26 = vld [vmem:[%s8023_s6 + $0x2f0] sm:$0xf0] }
 0x14f   :  { %3066 = vmatpush.bf16.msra.mxu3 %v4461_v27  ;;  %v4781_v35 = vor.u32 %v5288_v32, %v4780_v29  ;;  %v4716_v27 = vld [vmem:[%s8023_s6 + $0x260] sm:$0xf]  ;;  %v4734_v20 = vld [vmem:[%s8023_s6 + $0x290] sm:$0xf0] }
 0x150   :  { %2266 = vmatpush.bf16.msrb.mxu2 %v4361_v41 }
 0x152   :  { %2254 = vmatpush.bf16.msrb.mxu1 %v4217_v63  ;;  %v4764_v63 = vld [vmem:[%s8023_s6 + $0x2c0] sm:$0xf] }
 0x153   :  { %v4765_v41 = vor.u32 %v5284_v38, %v4764_v63  ;;  %v4590_v63 = vld [vmem:[%s8023_s6 + $0x170] sm:$0xf0] }
 0x154   :  { %2267 = vmatpush.bf16.msrb.mxu2 %v4345_v49  ;;  %v4557_v49 = vor.u32 %v5232_v46, %v4556_v45  ;;  %v4785_v45 = vor.u32 %v5286_v42, %v4782_v26  ;;  %v4892_v46 = vld [vmem:[%s8023_s6 + $0x3c0] sm:$0xf] }
 0x156   :  { %2255 = vmatpush.bf16.msrb.mxu1 %v4201_v48  ;;  %v4748_v48 = vld [vmem:[%s8023_s6 + $0x2a0] sm:$0xf] }
 0x157   :  { %v4749_v39 = vor.u32 %v5280_v50, %v4748_v48  ;;  %v5316_v48 = vld [vmem:[%s8023_s6 + $0x3cc] sm:$0xf0]  ;;  %v5234_v50 = vld [vmem:[%s8023_s6 + $0x144] sm:$0xf] }
 0x158   :  { %2268 = vmatpush.bf16.msrb.mxu2 %v4329_v53  ;;  %v4540_v53 = vld [vmem:[%s8023_s6 + $0x100] sm:$0xf] }
 0x159   :  { %v4541_v56 = vor.u32 %v5228_v54, %v4540_v53  ;;  %v4876_v54 = vld [vmem:[%s8023_s6 + $0x3a0] sm:$0xf] }
 0x15a   :  { %2256 = vmatpush.bf16.msrb.mxu1 %v4185_v52  ;;  %v4481_v52 = vor.u32 %v5210_v9, %v4478_v51  ;;  %v5282_v9 = vld [vmem:[%s8023_s6 + $0x2c4] sm:$0xf] }
 0x15c   :  { %2269 = vmatpush.bf16.msrb.mxu2 %v4313_v60  ;;  %v5206_v60 = vld [vmem:[%s8023_s6 + $0x64] sm:$0xf] }
 0x15e   :  { %2257 = vmatpush.bf16.msrb.mxu1 %v4169_v59  ;;  %v4733_v59 = vor.u32 %v5276_v57, %v4732_v55  ;;  %v5312_v55 = vld [vmem:[%s8023_s6 + $0x3ac] sm:$0xf0]  ;;  %v5230_v57 = vld [vmem:[%s8023_s6 + $0x124] sm:$0xf] }
 0x160   :  { %2270 = vmatpush.bf16.msrb.mxu2 %v4297_v1  ;;  %v4465_v1 = vor.u32 %v5206_v60, %v4462_v61  ;;  %v5278_v60 = vld [vmem:[%s8023_s6 + $0x2a4] sm:$0xf] }
 0x161   :  { %2258 = vmatmul.bf16.vlgmr.msrb.gmra.mxu1 %v6888_v23  ;;  %v5256_v23 = vld [vmem:[%s8023_s6 + $0x1ec] sm:$0xf0] }
 0x162   :  { %v4653_v5 = vor.u32 %v5256_v23, %v4652_v3  ;;  %3088 = vmatpush.bf16.msra.mxu1 %v4781_v35  ;;  %v4657_v3 = vor.u32 %v5254_v0, %v4654_v25  ;;  %v5272_v23 = vld [vmem:[%s8023_s6 + $0x26c] sm:$0xf0]  ;;  %v4908_v35 = vld [vmem:[%s8023_s6 + $0x3e0] sm:$0xf] }
 0x163   :  { %2271 = vmatmul.bf16.vlgmr.msrb.gmra.mxu2 %v6916_v43  ;;  %v4444_v43 = vld [vmem:[%s8023_s6 + $0x40] sm:$0xf] }
 0x164   :  { %v4445_v30 = vor.u32 %v5204_v4, %v4444_v43  ;;  %3075 = vmatpush.bf16.msra.mxu0 %v4653_v5  ;;  %v4717_v43 = vor.u32 %v5272_v23, %v4716_v27  ;;  %v5202_v4 = vld [vmem:[%s8023_s6 + $0x44] sm:$0xf]  ;;  %v4446_v5 = vld [vmem:[%s8023_s6 + $0x50] sm:$0xf0]  ;;  %v7461_v27 = vld [vmem:[%s8022_s5] sm:$0xf] }
 0x165   :  { %v4449_v58 = vor.u32 %v5202_v4, %v4446_v5  ;;  %v4860_v23 = vld [vmem:[%s8023_s6 + $0x380] sm:$0xf]  ;;  %v5226_v5 = vld [vmem:[%s8023_s6 + $0x104] sm:$0xf]  ;;  %v1420_v6 = vperm.slane %v7461_v27, 0 }
 0x166   :  { %3067 = vmatpush.bf16.msra.mxu3 %v4445_v30  ;;  %3089 = vmatpush.bf16.msra.mxu1 %v4765_v41  ;;  %v4638_v30 = vld [vmem:[%s8023_s6 + $0x1d0] sm:$0xf0]  ;;  %v4593_v41 = vor.u32 %v5238_v37, %v4590_v63  ;;  %v5225_v37 = vld [vmem:[%s8023_s6 + $0xf4] sm:$0xf0] }
 0x168   :  { %3076 = vmatpush.bf16.msra.mxu0 %v4637_v8  ;;  %v4641_v8 = vor.u32 %v5250_v7, %v4638_v30  ;;  %v4542_v7 = vld [vmem:[%s8023_s6 + $0x110] sm:$0xf0] }
 0x16a   :  { %3068 = vmatpush.bf16.msra.mxu3 %v4429_v10  ;;  %3090 = vmatpush.bf16.msra.mxu1 %v4749_v39  ;;  %v5198_v10 = vld [vmem:[%s8023_s6 + $0x24] sm:$0xf]  ;;  %v4574_v39 = vld [vmem:[%s8023_s6 + $0x150] sm:$0xf0] }
 0x16b   :  { %v4577_v51 = vor.u32 %v5234_v50, %v4574_v39  ;;  %v4796_v50 = vld [vmem:[%s8023_s6 + $0x300] sm:$0xf]  ;;  %v5292_v39 = vld [vmem:[%s8023_s6 + $0x30c] sm:$0xf0] }
 0x16c   :  { %3077 = vmatpush.bf16.msra.mxu0 %v4621_v14  ;;  %v4433_v14 = vor.u32 %v5198_v10, %v4430_v11  ;;  %v4844_v10 = vld [vmem:[%s8023_s6 + $0x360] sm:$0xf]  ;;  %v5304_v11 = vld [vmem:[%s8023_s6 + $0x36c] sm:$0xf0] }
 0x16e   :  { %3069 = vmatpush.bf16.msra.mxu3 %v4413_v18  ;;  %3091 = vmatpush.bf16.msra.mxu1 %v4733_v59  ;;  %v4625_v18 = vor.u32 %v5246_v12, %v4622_v16  ;;  %v4558_v59 = vld [vmem:[%s8023_s6 + $0x130] sm:$0xf0]  ;;  %v4845_v12 = vor.u32 %v5304_v11, %v4844_v10 }
 0x16f   :  { %v4561_v0 = vor.u32 %v5230_v57, %v4558_v59  ;;  %v4718_v16 = vld [vmem:[%s8023_s6 + $0x270] sm:$0xf0]  ;;  %v1421_v59 = vperm.slane %v7461_v27, 1 }
 0x170   :  { %3078 = vmatpush.bf16.msra.mxu0 %v4605_v19  ;;  %v4684_v19 = vld [vmem:[%s8023_s6 + $0x220] sm:$0xf]  ;;  %v4910_v57 = vld [vmem:[%s8023_s6 + $0x3f0] sm:$0xf0] }
 0x171   :  { %v4685_v21 = vor.u32 %v5264_v47, %v4684_v19 }
 0x172   :  { %3114 = vmatpush.bf16.msrb.mxu3 %v4529_v22  ;;  %3092 = vmatpush.bf16.msra.mxu1 %v4717_v43  ;;  %v5194_v22 = vld [vmem:[%s8023_s6 + $0x4] sm:$0xf]  ;;  %v5308_v43 = vld [vmem:[%s8023_s6 + $0x38c] sm:$0xf0] }
 0x173   :  { %v4417_v29 = vor.u32 %v5194_v22, %v4414_v24  ;;  %v4861_v4 = vor.u32 %v5308_v43, %v4860_v23  ;;  %v5300_v22 = vld [vmem:[%s8023_s6 + $0x34c] sm:$0xf0]  ;;  %v5314_v23 = vld [vmem:[%s8023_s6 + $0x3c4] sm:$0xf]  ;;  %v4894_v43 = vld [vmem:[%s8023_s6 + $0x3d0] sm:$0xf0] }
 0x174   :  { %3079 = vmatpush.bf16.msra.mxu0 %v4589_v31  ;;  %v4606_v31 = vld [vmem:[%s8023_s6 + $0x190] sm:$0xf0] }
 0x175   :  { %v4609_v32 = vor.u32 %v5242_v28, %v4606_v31 }
 0x176   :  { %3115 = vmatpush.bf16.msrb.mxu3 %v4513_v17  ;;  %3093 = vmatpush.bf16.msra.mxu1 %v4701_v62  ;;  %v4669_v17 = vor.u32 %v5260_v34, %v4668_v33 }
 0x178   :  { %3080 = vmatpush.bf16.msra.mxu0 %v4573_v40  ;;  %v4909_v40 = vor.u32 %v5320_v36, %v4908_v35  ;;  %v4532_v35 = vld [vmem:[%s8023_s6 + $0xe8] sm:$0xf] }
 0x17a   :  { %3116 = vmatpush.bf16.msrb.mxu3 %v4497_v44  ;;  %3094 = vmatpush.bf16.msra.mxu1 %v4685_v21  ;;  %v4828_v21 = vld [vmem:[%s8023_s6 + $0x340] sm:$0xf] }
 0x17b   :  { %3101 = vmatpush.bf16.msra.mxu2 %v4909_v40  ;;  %v4829_v28 = vor.u32 %v5300_v22, %v4828_v21  ;;  %v4686_v40 = vld [vmem:[%s8023_s6 + $0x230] sm:$0xf0]  ;;  %v5306_v21 = vld [vmem:[%s8023_s6 + $0x384] sm:$0xf] }
 0x17c   :  { %3081 = vmatpush.bf16.msra.mxu0 %v4557_v49  ;;  %v4893_v49 = vor.u32 %v5316_v48, %v4892_v46  ;;  %v4516_v46 = vld [vmem:[%s8023_s6 + $0xc8] sm:$0xf]  ;;  %v4533_v48 = vor.u32 %v5225_v37, %v4532_v35  ;;  %v4862_v22 = vld [vmem:[%s8023_s6 + $0x390] sm:$0xf0]  ;;  %v5253_v35 = vld [vmem:[%s8023_s6 + $0x1d4] sm:$0xf0] }
 0x17e   :  { %3117 = vmatpush.bf16.msrb.mxu3 %v4481_v52  ;;  %3095 = vmatpush.bf16.msra.mxu1 %v4669_v17  ;;  %v4766_v52 = vld [vmem:[%s8023_s6 + $0x2d0] sm:$0xf0]  ;;  %v5296_v17 = vld [vmem:[%s8023_s6 + $0x32c] sm:$0xf0] }
 0x17f   :  { %v4769_v53 = vor.u32 %v5282_v9, %v4766_v52  ;;  %3102 = vmatpush.bf16.msra.mxu2 %v4893_v49  ;;  %v5221_v49 = vld [vmem:[%s8023_s6 + $0xd4] sm:$0xf0]  ;;  %v5258_v52 = vld [vmem:[%s8023_s6 + $0x204] sm:$0xf] }
 0x180   :  { %v7336_v2 = vpop.f32.mrf.mxu3  ;;  %3082 = vmatpush.bf16.msra.mxu0 %v4541_v56  ;;  %v4877_v56 = vor.u32 %v5312_v55, %v4876_v54  ;;  %v5318_v54 = vld [vmem:[%s8023_s6 + $0x3e4] sm:$0xf] }
 0x181   :  { %v2078_v19 = vadd.f32 %v7336_v2, %v1420_v6  ;;  %v4702_v2 = vld [vmem:[%s8023_s6 + $0x250] sm:$0xf0]  ;;  %v5310_v6 = vld [vmem:[%s8023_s6 + $0x3a4] sm:$0xf] }
 0x182   :  { %3118 = vmatpush.bf16.msrb.mxu3 %v4465_v1  ;;  %3140 = vmatpush.bf16.msrb.mxu1 %v4785_v45  ;;  %v4750_v1 = vld [vmem:[%s8023_s6 + $0x2b0] sm:$0xf0] }
 0x183   :  { %3103 = vmatpush.bf16.msra.mxu2 %v4877_v56 }
 0x184   :  { %3127 = vmatpush.bf16.msrb.mxu0 %v4657_v3  ;;  %v4753_v3 = vor.u32 %v5278_v60, %v4750_v1  ;;  %v4913_v60 = vor.u32 %v5318_v54, %v4910_v57  ;;  %v4517_v1 = vor.u32 %v5221_v49, %v4516_v46  ;;  %v4628_v46 = vld [vmem:[%s8023_s6 + $0x1a8] sm:$0xf]  ;;  %v5249_v49 = vld [vmem:[%s8023_s6 + $0x1b4] sm:$0xf0] }
 0x185   :  { %v4629_v54 = vor.u32 %v5249_v49, %v4628_v46  ;;  %v4612_v57 = vld [vmem:[%s8023_s6 + $0x188] sm:$0xf] }
 0x186   :  { %3119 = vmatpush.bf16.msrb.mxu3 %v4449_v58  ;;  %v7371_v13 = vpop.f32.mrf.mxu0  ;;  %3141 = vmatpush.bf16.msrb.mxu1 %v4769_v53  ;;  %v5274_v58 = vld [vmem:[%s8023_s6 + $0x284] sm:$0xf]  ;;  %v4670_v53 = vld [vmem:[%s8023_s6 + $0x210] sm:$0xf0]  ;;  %v4548_v49 = vld [vmem:[%s8023_s6 + $0x108] sm:$0xf] }
 0x187   :  { %v4737_v62 = vor.u32 %v5274_v58, %v4734_v20  ;;  %3104 = vmatpush.bf16.msra.mxu2 %v4861_v4  ;;  %v2091_v24 = vadd.f32 %v7371_v13, %v2078_v19  ;;  %v4812_v13 = vld [vmem:[%s8023_s6 + $0x320] sm:$0xf]  ;;  %v4673_v56 = vor.u32 %v5258_v52, %v4670_v53  ;;  %v5213_v20 = vld [vmem:[%s8023_s6 + $0x94] sm:$0xf0] }
 0x188   :  { %3128 = vmatpush.bf16.msrb.mxu0 %v4641_v8  ;;  %v2079_v15 = vpop.f32.mrf.mxu3  ;;  %v4545_v8 = vor.u32 %v5226_v5, %v4542_v7  ;;  %v4813_v63 = vor.u32 %v5296_v17, %v4812_v13  ;;  %v4897_v5 = vor.u32 %v5314_v23, %v4894_v43  ;;  %v5257_v19 = vld [vmem:[%s8023_s6 + $0x1f4] sm:$0xf0]  ;;  %v5302_v13 = vld [vmem:[%s8023_s6 + $0x364] sm:$0xf]  ;;  %v4846_v17 = vld [vmem:[%s8023_s6 + $0x370] sm:$0xf0] }
 0x189   :  { %v4849_v37 = vor.u32 %v5302_v13, %v4846_v17 }
 0x18a   :  { %3120 = vmatpush.bf16.msrb.mxu3 %v4433_v14  ;;  %3142 = vmatpush.bf16.msrb.mxu1 %v4753_v3  ;;  %v5270_v14 = vld [vmem:[%s8023_s6 + $0x264] sm:$0xf]  ;;  %v5217_v3 = vld [vmem:[%s8023_s6 + $0xb4] sm:$0xf0] }
 0x18b   :  { %3105 = vmatpush.bf16.msra.mxu2 %v4845_v12 }
 0x18c   :  { %3129 = vmatpush.bf16.msrb.mxu0 %v4625_v18  ;;  %v4721_v18 = vor.u32 %v5270_v14, %v4718_v16  ;;  %v5209_v16 = vld [vmem:[%s8023_s6 + $0x74] sm:$0xf0] }
 0x18e   :  { %3121 = vmatpush.bf16.msrb.mxu3 %v4417_v29  ;;  %v2092_v38 = vpop.f32.mrf.mxu0  ;;  %3143 = vmatpush.bf16.msrb.mxu1 %v4737_v62  ;;  %v5266_v29 = vld [vmem:[%s8023_s6 + $0x244] sm:$0xf] }
 0x18f   :  { %3106 = vmatpush.bf16.msra.mxu2 %v4829_v28  ;;  %v5262_v38 = vld [vmem:[%s8023_s6 + $0x224] sm:$0xf] }
 0x190   :  { %3130 = vmatpush.bf16.msrb.mxu0 %v4609_v32  ;;  %v7418_v44 = vpop.f32.mrf.mxu3  ;;  %v4705_v32 = vor.u32 %v5266_v29, %v4702_v2  ;;  %v4689_v42 = vor.u32 %v5262_v38, %v4686_v40 }
 0x191   :  { %v2130_v7 = vadd.f32 %v7418_v44, %v1421_v59  ;;  %v4878_v44 = vld [vmem:[%s8023_s6 + $0x3b0] sm:$0xf0]  ;;  %v5294_v59 = vld [vmem:[%s8023_s6 + $0x324] sm:$0xf] }
 0x192   :  { %3144 = vmatpush.bf16.msrb.mxu1 %v4721_v18  ;;  %v4881_v10 = vor.u32 %v5310_v6, %v4878_v44  ;;  %v4788_v6 = vld [vmem:[%s8023_s6 + $0x2e8] sm:$0xf]  ;;  %v5290_v44 = vld [vmem:[%s8023_s6 + $0x304] sm:$0xf] }
 0x193   :  { %3107 = vmatpush.bf16.msra.mxu2 %v4813_v63  ;;  %v1422_v63 = vperm.slane %v7461_v27, 2 }
 0x194   :  { %3131 = vmatpush.bf16.msrb.mxu0 %v4593_v41 }
 0x196   :  { %v7453_v61 = vpop.f32.mrf.mxu0  ;;  %3145 = vmatpush.bf16.msrb.mxu1 %v4705_v32  ;;  %v5205_v32 = vld [vmem:[%s8023_s6 + $0x54] sm:$0xf0] }
 0x198   :  { %3132 = vmatpush.bf16.msrb.mxu0 %v4577_v51  ;;  %v2131_v25 = vpop.f32.mrf.mxu3  ;;  %v4797_v51 = vor.u32 %v5292_v39, %v4796_v50  ;;  %v5298_v50 = vld [vmem:[%s8023_s6 + $0x344] sm:$0xf]  ;;  %v4830_v39 = vld [vmem:[%s8023_s6 + $0x350] sm:$0xf0] }
 0x199   :  { %v4500_v25 = vld [vmem:[%s8023_s6 + $0xa8] sm:$0xf] }
 0x19a   :  { %3146 = vmatpush.bf16.msrb.mxu1 %v4689_v42  ;;  %3108 = vmatpush.bf16.msra.mxu2 %v4797_v51  ;;  %v4501_v58 = vor.u32 %v5217_v3, %v4500_v25  ;;  %v4833_v51 = vor.u32 %v5298_v50, %v4830_v39  ;;  %v5223_v25 = vld [vmem:[%s8023_s6 + $0xec] sm:$0xf]  ;;  %v4534_v3 = vld [vmem:[%s8023_s6 + $0xf8] sm:$0xf0]  ;;  %v5229_v50 = vld [vmem:[%s8023_s6 + $0x114] sm:$0xf0] }
 0x19b   :  { %v4740_v39 = vld [vmem:[%s8023_s6 + $0x288] sm:$0xf] }
 0x19c   :  { %3133 = vmatpush.bf16.msrb.mxu0 %v4561_v0 }
 0x19e   :  { %v2103_v30 = vpop.f32.mrf.mxu1  ;;  %v2144_v15 = vpop.f32.mrf.mxu0  ;;  %3147 = vmatpush.bf16.msrb.mxu1 %v4673_v56  ;;  %3153 = vmatpush.bf16.msrb.mxu2 %v4913_v60  ;;  %v5197_v56 = vld [vmem:[%s8023_s6 + $0x14] sm:$0xf0]  ;;  %v4814_v60 = vld [vmem:[%s8023_s6 + $0x330] sm:$0xf0] }
 0x19f   :  { %v2104_v33 = vadd.f32 %v2103_v30, %v2091_v24  ;;  %v4484_v30 = vld [vmem:[%s8023_s6 + $0x88] sm:$0xf]  ;;  %v4865_v24 = vor.u32 %v5306_v21, %v4862_v22  ;;  %v4817_v23 = vor.u32 %v5294_v59, %v4814_v60  ;;  %v5237_v22 = vld [vmem:[%s8023_s6 + $0x154] sm:$0xf0] }
 0x1a0   :  { %3134 = vmatpush.bf16.msrb.mxu0 %v4545_v8  ;;  %v7495_v47 = vpop.f32.mrf.mxu3  ;;  %v2143_v8 = vadd.f32 %v7453_v61, %v2130_v7  ;;  %v4485_v14 = vor.u32 %v5213_v20, %v4484_v30  ;;  %v4468_v61 = vld [vmem:[%s8023_s6 + $0x68] sm:$0xf]  ;;  %v4537_v20 = vor.u32 %v5223_v25, %v4534_v3  ;;  %v4454_v25 = vld [vmem:[%s8023_s6 + $0x58] sm:$0xf0] }
 0x1a1   :  { %v4660_v15 = vld [vmem:[%s8023_s6 + $0x1e8] sm:$0xf]  ;;  %v4469_v29 = vor.u32 %v5209_v16, %v4468_v61  ;;  %v2182_v52 = vadd.f32 %v7495_v47, %v1422_v63  ;;  %v5245_v47 = vld [vmem:[%s8023_s6 + $0x194] sm:$0xf0] }
 0x1a2   :  { %3154 = vmatpush.bf16.msrb.mxu2 %v4897_v5  ;;  %v4661_v2 = vor.u32 %v5257_v19, %v4660_v15  ;;  %v4613_v7 = vor.u32 %v5245_v47, %v4612_v57  ;;  %v4580_v21 = vld [vmem:[%s8023_s6 + $0x148] sm:$0xf] }
 0x1a3   :  { %v4756_v63 = vld [vmem:[%s8023_s6 + $0x2a8] sm:$0xf] }
 0x1a4   :  { %v4724_v59 = vld [vmem:[%s8023_s6 + $0x268] sm:$0xf] }
 0x1a6   :  { %v2105_v31 = vpop.f32.mrf.mxu1  ;;  %v2116_v34 = vpop.f32.mrf.mxu2  ;;  %3155 = vmatpush.bf16.msrb.mxu2 %v4881_v10 }
 0x1a7   :  { %v2117_v36 = vadd.f32 %v2116_v34, %v2104_v33  ;;  %v4452_v31 = vld [vmem:[%s8023_s6 + $0x48] sm:$0xf] }
 0x1a8   :  { %v2183_v45 = vpop.f32.mrf.mxu3  ;;  %v4644_v33 = vld [vmem:[%s8023_s6 + $0x1c8] sm:$0xf]  ;;  %v4453_v40 = vor.u32 %v5205_v32, %v4452_v31  ;;  %v4502_v31 = vld [vmem:[%s8023_s6 + $0xb8] sm:$0xf0] }
 0x1a9   :  { %v7528_v41 = vpop.f32.mrf.mxu0  ;;  %v2276_v26 = vmax.f32 %v2117_v36, 0.0  ;;  %v4645_v42 = vor.u32 %v5253_v35, %v4644_v33  ;;  %v5201_v45 = vld [vmem:[%s8023_s6 + $0x34] sm:$0xf0]  ;;  %v4581_v33 = vor.u32 %v5237_v22, %v4580_v21  ;;  %v4614_v21 = vld [vmem:[%s8023_s6 + $0x198] sm:$0xf0] }
 0x1aa   :  { %3156 = vmatpush.bf16.msrb.mxu2 %v4865_v24  ;;  %v4772_v24 = vld [vmem:[%s8023_s6 + $0x2c8] sm:$0xf] }
 0x1ab   :  { %v7542_v9 = vpack.c.bf16 %v2276_v26, %v2276_v26  ;;  %v4436_v26 = vld [vmem:[%s8023_s6 + $0x28] sm:$0xf] }
 0x1ac   :  { %v4437_v53 = vor.u32 %v5201_v45, %v4436_v26 }
 0x1ad   :  { %3070 = vmatmul.bf16.vlgmr.msra.gmra.mxu3 %v7542_v9 }
 0x1ae   :  { %v2155_v55 = vpop.f32.mrf.mxu1  ;;  %3166 = vmatpush.bf16.msra.mxu3 %v4533_v48  ;;  %v2118_v0 = vpop.f32.mrf.mxu2  ;;  %3157 = vmatpush.bf16.msrb.mxu2 %v4849_v37  ;;  %v5233_v37 = vld [vmem:[%s8023_s6 + $0x134] sm:$0xf0] }
 0x1af   :  { %v2156_v11 = vadd.f32 %v2155_v55, %v2143_v8  ;;  %v4420_v55 = vld [vmem:[%s8023_s6 + $0x8] sm:$0xf]  ;;  %v2195_v0 = vadd.f32 %v7528_v41, %v2182_v52  ;;  %v5207_v52 = vld [vmem:[%s8023_s6 + $0x6c] sm:$0xf] }
 0x1b0   :  { %v4421_v5 = vor.u32 %v5197_v56, %v4420_v55  ;;  %v4596_v41 = vld [vmem:[%s8023_s6 + $0x168] sm:$0xf]  ;;  %v4662_v55 = vld [vmem:[%s8023_s6 + $0x1f8] sm:$0xf0]  ;;  %v4549_v56 = vor.u32 %v5229_v50, %v4548_v49  ;;  %v5317_v50 = vld [vmem:[%s8023_s6 + $0x3d4] sm:$0xf0] }
 0x1b1   :  { %v2196_v4 = vpop.f32.mrf.mxu0 }
 0x1b2   :  { %3167 = vmatpush.bf16.msra.mxu3 %v4517_v1  ;;  %3158 = vmatpush.bf16.msrb.mxu2 %v4833_v51  ;;  %v5277_v51 = vld [vmem:[%s8023_s6 + $0x294] sm:$0xf0] }
 0x1b3   :  { %v4741_v57 = vor.u32 %v5277_v51, %v4740_v39  ;;  %v5235_v39 = vld [vmem:[%s8023_s6 + $0x14c] sm:$0xf]  ;;  %v4582_v51 = vld [vmem:[%s8023_s6 + $0x158] sm:$0xf0] }
 0x1b6   :  { %v2157_v62 = vpop.f32.mrf.mxu1  ;;  %3168 = vmatpush.bf16.msra.mxu3 %v4501_v58  ;;  %v2168_v12 = vpop.f32.mrf.mxu2  ;;  %v5241_v58 = vld [vmem:[%s8023_s6 + $0x174] sm:$0xf0]  ;;  %3159 = vmatpush.bf16.msrb.mxu2 %v4817_v23  ;;  %v5251_v23 = vld [vmem:[%s8023_s6 + $0x1cc] sm:$0xf] }
 0x1b7   :  { %v2169_v18 = vadd.f32 %v2168_v12, %v2156_v11  ;;  %v4798_v62 = vld [vmem:[%s8023_s6 + $0x310] sm:$0xf0]  ;;  %v5289_v11 = vld [vmem:[%s8023_s6 + $0x2f4] sm:$0xf0]  ;;  %v5219_v12 = vld [vmem:[%s8023_s6 + $0xcc] sm:$0xf]  ;;  %v4597_v15 = vor.u32 %v5241_v58, %v4596_v41 }
 0x1b8   :  { %v4801_v61 = vor.u32 %v5290_v44, %v4798_v62  ;;  %v4708_v58 = vld [vmem:[%s8023_s6 + $0x248] sm:$0xf]  ;;  %v4630_v44 = vld [vmem:[%s8023_s6 + $0x1b8] sm:$0xf0] }
 0x1b9   :  { %v2277_v28 = vmax.f32 %v2169_v18, 0.0  ;;  %v4789_v18 = vor.u32 %v5289_v11, %v4788_v6  ;;  %v5247_v6 = vld [vmem:[%s8023_s6 + $0x1ac] sm:$0xf] }
 0x1ba   :  { %3169 = vmatpush.bf16.msra.mxu3 %v4485_v14  ;;  %v4518_v14 = vld [vmem:[%s8023_s6 + $0xd8] sm:$0xf0]  ;;  %3160 = vmatpush.bf16.msrb.mxu2 %v4801_v61  ;;  %v5265_v61 = vld [vmem:[%s8023_s6 + $0x234] sm:$0xf0] }
 0x1bb   :  { %v7611_v34 = vpack.c.bf16 %v2277_v28, %v2277_v28  ;;  %v4521_v19 = vor.u32 %v5219_v12, %v4518_v14  ;;  %v4692_v12 = vld [vmem:[%s8023_s6 + $0x228] sm:$0xf]  ;;  %v4633_v14 = vor.u32 %v5247_v6, %v4630_v44  ;;  %v5305_v44 = vld [vmem:[%s8023_s6 + $0x374] sm:$0xf0] }
 0x1bc   :  { %v4852_v6 = vld [vmem:[%s8023_s6 + $0x368] sm:$0xf] }
 0x1bd   :  { %3083 = vmatmul.bf16.vlgmr.msra.gmra.mxu0 %v7611_v34  ;;  %3122 = vmatmul.bf16.vlgmr.msrb.gmra.mxu3 %v7542_v9 }
 0x1be   :  { %v2207_v36 = vpop.f32.mrf.mxu1  ;;  %3170 = vmatpush.bf16.msra.mxu3 %v4469_v29  ;;  %3179 = vmatpush.bf16.msra.mxu0 %v4661_v2  ;;  %v2170_v38 = vpop.f32.mrf.mxu2  ;;  %v5285_v29 = vld [vmem:[%s8023_s6 + $0x2d4] sm:$0xf0]  ;;  %v5215_v2 = vld [vmem:[%s8023_s6 + $0xac] sm:$0xf] }
 0x1bf   :  { %v2208_v43 = vadd.f32 %v2207_v36, %v2195_v0  ;;  %v4773_v13 = vor.u32 %v5285_v29, %v4772_v24  ;;  %v4505_v17 = vor.u32 %v5215_v2, %v4502_v31  ;;  %v4564_v36 = vld [vmem:[%s8023_s6 + $0x128] sm:$0xf]  ;;  %v5281_v38 = vld [vmem:[%s8023_s6 + $0x2b4] sm:$0xf0]  ;;  %v4693_v24 = vor.u32 %v5265_v61, %v4692_v12 }
 0x1c0   :  { %v7634_v48 = vpop.f32.mrf.mxu3  ;;  %v4565_v26 = vor.u32 %v5233_v37, %v4564_v36  ;;  %v4757_v45 = vor.u32 %v5281_v38, %v4756_v63  ;;  %v5273_v0 = vld [vmem:[%s8023_s6 + $0x274] sm:$0xf0]  ;;  %v4598_v36 = vld [vmem:[%s8023_s6 + $0x178] sm:$0xf0]  ;;  %v5287_v37 = vld [vmem:[%s8023_s6 + $0x2ec] sm:$0xf] }
 0x1c1   :  { %v4790_v63 = vld [vmem:[%s8023_s6 + $0x2f8] sm:$0xf0]  ;;  %v5301_v61 = vld [vmem:[%s8023_s6 + $0x354] sm:$0xf0] }
 0x1c2   :  { %3171 = vmatpush.bf16.msra.mxu3 %v4453_v40  ;;  %3180 = vmatpush.bf16.msra.mxu0 %v4645_v42  ;;  %v5211_v40 = vld [vmem:[%s8023_s6 + $0x8c] sm:$0xf]  ;;  %v4486_v42 = vld [vmem:[%s8023_s6 + $0x98] sm:$0xf0]  ;;  %v4793_v49 = vor.u32 %v5287_v37, %v4790_v63 }
 0x1c3   :  { %v4489_v46 = vor.u32 %v5211_v40, %v4486_v42  ;;  %v5315_v37 = vld [vmem:[%s8023_s6 + $0x3cc] sm:$0xf]  ;;  %v4902_v63 = vld [vmem:[%s8023_s6 + $0x3d8] sm:$0xf0] }
 0x1c6   :  { %v2209_v1 = vpop.f32.mrf.mxu1  ;;  %3172 = vmatpush.bf16.msra.mxu3 %v4437_v53  ;;  %3181 = vmatpush.bf16.msra.mxu0 %v4629_v54  ;;  %v2220_v30 = vpop.f32.mrf.mxu2  ;;  %v4470_v53 = vld [vmem:[%s8023_s6 + $0x78] sm:$0xf0]  ;;  %v5255_v54 = vld [vmem:[%s8023_s6 + $0x1ec] sm:$0xf] }
 0x1c7   :  { %v7671_v4 = vpop.f32.mrf.mxu0  ;;  %v2221_v10 = vadd.f32 %v2220_v30, %v2208_v43  ;;  %v4473_v47 = vor.u32 %v5207_v52, %v4470_v53  ;;  %v4665_v60 = vor.u32 %v5255_v54, %v4662_v55  ;;  %v5203_v1 = vld [vmem:[%s8023_s6 + $0x4c] sm:$0xf]  ;;  %v4646_v43 = vld [vmem:[%s8023_s6 + $0x1d8] sm:$0xf0] }
 0x1c8   :  { %v2235_v8 = vpop.f32.mrf.mxu3  ;;  %v4457_v41 = vor.u32 %v5203_v1, %v4454_v25  ;;  %v4649_v30 = vor.u32 %v5251_v23, %v4646_v43  ;;  %v5283_v52 = vld [vmem:[%s8023_s6 + $0x2cc] sm:$0xf]  ;;  %v4774_v53 = vld [vmem:[%s8023_s6 + $0x2d8] sm:$0xf0]  ;;  %v4868_v23 = vld [vmem:[%s8023_s6 + $0x388] sm:$0xf] }
 0x1c9   :  { %v2278_v16 = vmax.f32 %v2221_v10, 0.0  ;;  %v5269_v8 = vld [vmem:[%s8023_s6 + $0x254] sm:$0xf0]  ;;  %v4758_v1 = vld [vmem:[%s8023_s6 + $0x2b8] sm:$0xf0] }
 0x1ca   :  { %3173 = vmatpush.bf16.msra.mxu3 %v4421_v5  ;;  %3182 = vmatpush.bf16.msra.mxu0 %v4613_v7  ;;  %v1423_v5 = vperm.slane %v7461_v27, 3  ;;  %v4725_v7 = vor.u32 %v5273_v0, %v4724_v59  ;;  %v4438_v27 = vld [vmem:[%s8023_s6 + $0x38] sm:$0xf0]  ;;  %v4709_v10 = vor.u32 %v5269_v8, %v4708_v58  ;;  %v5231_v59 = vld [vmem:[%s8023_s6 + $0x12c] sm:$0xf] }
 0x1cb   :  { %v7706_v28 = vpack.c.bf16 %v2278_v16, %v2278_v16  ;;  %v5195_v16 = vld [vmem:[%s8023_s6 + $0xc] sm:$0xf] }
 0x1cc   :  { %v2234_v62 = vadd.f32 %v7634_v48, %v1423_v5  ;;  %v4422_v48 = vld [vmem:[%s8023_s6 + $0x18] sm:$0xf0]  ;;  %v5279_v0 = vld [vmem:[%s8023_s6 + $0x2ac] sm:$0xf]  ;;  %v5309_v5 = vld [vmem:[%s8023_s6 + $0x394] sm:$0xf0] }
 0x1cd   :  { %3135 = vmatmul.bf16.vlgmr.msrb.gmra.mxu0 %v7611_v34  ;;  %3174 = vmatmul.bf16.vlgmr.msra.gmra.mxu3 %v7542_v9  ;;  %v4425_v29 = vor.u32 %v5195_v16, %v4422_v48  ;;  %v4761_v43 = vor.u32 %v5279_v0, %v4758_v1  ;;  %v5275_v58 = vld [vmem:[%s8023_s6 + $0x28c] sm:$0xf]  ;;  %v4869_v8 = vor.u32 %v5309_v5, %v4868_v23  ;;  %v4710_v48 = vld [vmem:[%s8023_s6 + $0x258] sm:$0xf0]  ;;  %v2412_v0 = vld [vmem:[%s8024_s7] sm:$0xf] }
 0x1ce   :  { %3218 = vmatpush.bf16.msrb.mxu3 %v4537_v20  ;;  %3096 = vmatmul.bf16.vlgmr.msra.gmra.mxu1 %v7706_v28  ;;  %v2222_v35 = vpop.f32.mrf.mxu2  ;;  %v5199_v20 = vld [vmem:[%s8023_s6 + $0x2c] sm:$0xf]  ;;  %v2414_v1 = vperm.slane %v2412_v0, 0 }
 0x1cf   :  { %v2248_v32 = vpop.f32.mrf.mxu0  ;;  %3183 = vmatpush.bf16.msra.mxu0 %v4597_v15  ;;  %3192 = vmatpush.bf16.msra.mxu1 %v4789_v18  ;;  %v4441_v11 = vor.u32 %v5199_v20, %v4438_v27  ;;  %v2247_v15 = vadd.f32 %v7671_v4, %v2234_v62  ;;  %v4676_v4 = vld [vmem:[%s8023_s6 + $0x208] sm:$0xf]  ;;  %v5271_v62 = vld [vmem:[%s8023_s6 + $0x26c] sm:$0xf] }
 0x1d0   :  { %v5261_v32 = vld [vmem:[%s8023_s6 + $0x214] sm:$0xf0]  ;;  %v5267_v16 = vld [vmem:[%s8023_s6 + $0x24c] sm:$0xf] }
 0x1d1   :  { %v4677_v40 = vor.u32 %v5261_v32, %v4676_v4  ;;  %v5259_v4 = vld [vmem:[%s8023_s6 + $0x20c] sm:$0xf]  ;;  %v4678_v32 = vld [vmem:[%s8023_s6 + $0x218] sm:$0xf0] }
 0x1d2   :  { %3219 = vmatpush.bf16.msrb.mxu3 %v4521_v19  ;;  %v5243_v19 = vld [vmem:[%s8023_s6 + $0x18c] sm:$0xf] }
 0x1d3   :  { %3184 = vmatpush.bf16.msra.mxu0 %v4581_v33  ;;  %3193 = vmatpush.bf16.msra.mxu1 %v4773_v13  ;;  %v4617_v31 = vor.u32 %v5243_v19, %v4614_v21  ;;  %v4916_v33 = vld [vmem:[%s8023_s6 + $0x3e8] sm:$0xf]  ;;  %v5321_v13 = vld [vmem:[%s8023_s6 + $0x3f4] sm:$0xf0] }
 0x1d4   :  { %v4917_v42 = vor.u32 %v5321_v13, %v4916_v33  ;;  %v4820_v19 = vld [vmem:[%s8023_s6 + $0x328] sm:$0xf]  ;;  %v5297_v21 = vld [vmem:[%s8023_s6 + $0x334] sm:$0xf0]  ;;  %v5319_v33 = vld [vmem:[%s8023_s6 + $0x3ec] sm:$0xf] }
 0x1d6   :  { %3220 = vmatpush.bf16.msrb.mxu3 %v4505_v17  ;;  %v5239_v17 = vld [vmem:[%s8023_s6 + $0x16c] sm:$0xf] }
 0x1d7   :  { %3185 = vmatpush.bf16.msra.mxu0 %v4565_v26  ;;  %3194 = vmatpush.bf16.msra.mxu1 %v4757_v45  ;;  %v4601_v26 = vor.u32 %v5239_v17, %v4598_v36  ;;  %v4900_v45 = vld [vmem:[%s8023_s6 + $0x3c8] sm:$0xf]  ;;  %v4681_v17 = vor.u32 %v5259_v4, %v4678_v32 }
 0x1d8   :  { %v4901_v55 = vor.u32 %v5317_v50, %v4900_v45  ;;  %v5307_v45 = vld [vmem:[%s8023_s6 + $0x38c] sm:$0xf] }
 0x1da   :  { %3221 = vmatpush.bf16.msrb.mxu3 %v4489_v46 }
 0x1db   :  { %3186 = vmatpush.bf16.msra.mxu0 %v4549_v56  ;;  %3195 = vmatpush.bf16.msra.mxu1 %v4741_v57  ;;  %v4585_v56 = vor.u32 %v5235_v39, %v4582_v51  ;;  %v4777_v57 = vor.u32 %v5283_v52, %v4774_v53  ;;  %v5303_v39 = vld [vmem:[%s8023_s6 + $0x36c] sm:$0xf]  ;;  %v4838_v53 = vld [vmem:[%s8023_s6 + $0x358] sm:$0xf0] }
 0x1dc   :  { %v5299_v52 = vld [vmem:[%s8023_s6 + $0x34c] sm:$0xf] }
 0x1de   :  { %v2259_v3 = vpop.f32.mrf.mxu1  ;;  %3222 = vmatpush.bf16.msrb.mxu3 %v4473_v47  ;;  %3187 = vmatmul.bf16.vlgmr.msra.gmra.mxu0 %v7611_v34  ;;  %v5313_v47 = vld [vmem:[%s8023_s6 + $0x3b4] sm:$0xf0] }
 0x1df   :  { %3231 = vmatpush.bf16.msrb.mxu0 %v4665_v60  ;;  %3148 = vmatmul.bf16.vlgmr.msrb.gmra.mxu1 %v7706_v28  ;;  %v2260_v22 = vadd.f32 %v2259_v3, %v2247_v15  ;;  %v4566_v60 = vld [vmem:[%s8023_s6 + $0x138] sm:$0xf0] }
 0x1e0   :  { %3196 = vmatpush.bf16.msra.mxu1 %v4725_v7  ;;  %v4569_v3 = vor.u32 %v5231_v59, %v4566_v60  ;;  %v5227_v7 = vld [vmem:[%s8023_s6 + $0x10c] sm:$0xf] }
 0x1e2   :  { %3223 = vmatpush.bf16.msrb.mxu3 %v4457_v41  ;;  %v4550_v41 = vld [vmem:[%s8023_s6 + $0x118] sm:$0xf0] }
 0x1e3   :  { %3232 = vmatpush.bf16.msrb.mxu0 %v4649_v30  ;;  %v4742_v30 = vld [vmem:[%s8023_s6 + $0x298] sm:$0xf0]  ;;  %v4553_v20 = vor.u32 %v5227_v7, %v4550_v41  ;;  %v2415_v7 = vperm.slane %v2412_v0, 1 }
 0x1e4   :  { %3197 = vmatpush.bf16.msra.mxu1 %v4709_v10  ;;  %v4745_v27 = vor.u32 %v5275_v58, %v4742_v30  ;;  %v4726_v10 = vld [vmem:[%s8023_s6 + $0x278] sm:$0xf0] }
 0x1e5   :  { %v4729_v12 = vor.u32 %v5271_v62, %v4726_v10  ;;  %v2416_v10 = vperm.slane %v2412_v0, 2 }
 0x1e6   :  { %v2261_v18 = vpop.f32.mrf.mxu1  ;;  %3224 = vmatpush.bf16.msrb.mxu3 %v4441_v11  ;;  %v2272_v2 = vpop.f32.mrf.mxu2  ;;  %v4853_v11 = vor.u32 %v5305_v44, %v4852_v6 }
 0x1e7   :  { %3233 = vmatpush.bf16.msrb.mxu0 %v4633_v14  ;;  %v2273_v35 = vadd.f32 %v2272_v2, %v2260_v22  ;;  %v4836_v14 = vld [vmem:[%s8023_s6 + $0x348] sm:$0xf]  ;;  %v4713_v18 = vor.u32 %v5267_v16, %v4710_v48  ;;  %v5263_v22 = vld [vmem:[%s8023_s6 + $0x22c] sm:$0xf] }
 0x1e8   :  { %3198 = vmatpush.bf16.msra.mxu1 %v4693_v24  ;;  %v4837_v15 = vor.u32 %v5301_v61, %v4836_v14  ;;  %v4821_v24 = vor.u32 %v5297_v21, %v4820_v19  ;;  %v4804_v2 = vld [vmem:[%s8023_s6 + $0x308] sm:$0xf] }
 0x1e9   :  { %v2279_v38 = vmax.f32 %v2273_v35, 0.0  ;;  %v4918_v35 = vld [vmem:[%s8023_s6 + $0x3f8] sm:$0xf0] }
 0x1ea   :  { %3225 = vmatpush.bf16.msrb.mxu3 %v4425_v29  ;;  %v4921_v36 = vor.u32 %v5319_v33, %v4918_v35 }
 0x1eb   :  { %3234 = vmatpush.bf16.msrb.mxu0 %v4617_v31  ;;  %v7848_v46 = vpack.c.bf16 %v2279_v38, %v2279_v38  ;;  %v5293_v31 = vld [vmem:[%s8023_s6 + $0x314] sm:$0xf0]  ;;  %v4905_v38 = vor.u32 %v5315_v37, %v4902_v63 }
 0x1ec   :  { %3199 = vmatpush.bf16.msra.mxu1 %v4677_v40  ;;  %v4805_v13 = vor.u32 %v5293_v31, %v4804_v2  ;;  %v5311_v40 = vld [vmem:[%s8023_s6 + $0x3ac] sm:$0xf] }
 0x1ed   :  { %3226 = vmatmul.bf16.vlgmr.msrb.gmra.mxu3 %v7542_v9  ;;  %3109 = vmatmul.bf16.vlgmr.msra.gmra.mxu2 %v7848_v46  ;;  %v4884_v9 = vld [vmem:[%s8023_s6 + $0x3a8] sm:$0xf] }
 0x1ee   :  { %3205 = vmatpush.bf16.msra.mxu2 %v4917_v42  ;;  %v2274_v54 = vpop.f32.mrf.mxu2  ;;  %v4885_v25 = vor.u32 %v5313_v47, %v4884_v9  ;;  %v4886_v42 = vld [vmem:[%s8023_s6 + $0x3b8] sm:$0xf0] }
 0x1ef   :  { %3235 = vmatpush.bf16.msrb.mxu0 %v4601_v26  ;;  %3200 = vmatmul.bf16.vlgmr.msra.gmra.mxu1 %v7706_v28  ;;  %v4889_v26 = vor.u32 %v5311_v40, %v4886_v42  ;;  %v4841_v54 = vor.u32 %v5299_v52, %v4838_v53  ;;  %v4806_v47 = vld [vmem:[%s8023_s6 + $0x318] sm:$0xf0]  ;;  %v2417_v40 = vperm.slane %v2412_v0, 3 }
 0x1f0   :  { %3244 = vmatpush.bf16.msrb.mxu1 %v4793_v49  ;;  %v4870_v49 = vld [vmem:[%s8023_s6 + $0x398] sm:$0xf0] }
 0x1f1   :  { %v4873_v50 = vor.u32 %v5307_v45, %v4870_v49 }
 0x1f2   :  { %3206 = vmatpush.bf16.msra.mxu2 %v4901_v55  ;;  %v5295_v55 = vld [vmem:[%s8023_s6 + $0x32c] sm:$0xf] }
 0x1f3   :  { %3236 = vmatpush.bf16.msrb.mxu0 %v4585_v56  ;;  %v4822_v56 = vld [vmem:[%s8023_s6 + $0x338] sm:$0xf0] }
 0x1f4   :  { %3245 = vmatpush.bf16.msrb.mxu1 %v4777_v57  ;;  %v4825_v9 = vor.u32 %v5295_v55, %v4822_v56  ;;  %v5291_v57 = vld [vmem:[%s8023_s6 + $0x30c] sm:$0xf] }
 0x1f5   :  { %v4809_v59 = vor.u32 %v5291_v57, %v4806_v47 }
 0x1f6   :  { %3207 = vmatpush.bf16.msra.mxu2 %v4885_v25 }
 0x1f7   :  { %3237 = vmatpush.bf16.msrb.mxu0 %v4569_v3 }
 0x1f8   :  { %3246 = vmatpush.bf16.msrb.mxu1 %v4761_v43 }
 0x1fa   :  { %3208 = vmatpush.bf16.msra.mxu2 %v4869_v8 }
 0x1fb   :  { %3238 = vmatpush.bf16.msrb.mxu0 %v4553_v20 }
 0x1fc   :  { %3247 = vmatpush.bf16.msrb.mxu1 %v4745_v27 }
 0x1fd   :  { %3161 = vmatmul.bf16.vlgmr.msrb.gmra.mxu2 %v7848_v46 }
 0x1fe   :  { %3239 = vmatmul.bf16.vlgmr.msrb.gmra.mxu0 %v7611_v34  ;;  %3209 = vmatpush.bf16.msra.mxu2 %v4853_v11  ;;  %v4694_v34 = vld [vmem:[%s8023_s6 + $0x238] sm:$0xf0] }
 0x1ff   :  { %v4697_v29 = vor.u32 %v5263_v22, %v4694_v34 }
 0x200   :  { %3248 = vmatpush.bf16.msrb.mxu1 %v4729_v12 }
 0x202   :  { %3210 = vmatpush.bf16.msra.mxu2 %v4837_v15 }
 0x204   :  { %3249 = vmatpush.bf16.msrb.mxu1 %v4713_v18 }
 0x206   :  { %3211 = vmatpush.bf16.msra.mxu2 %v4821_v24 }
 0x208   :  { %3250 = vmatpush.bf16.msrb.mxu1 %v4697_v29 }
 0x20a   :  { %3212 = vmatpush.bf16.msra.mxu2 %v4805_v13 }
 0x20c   :  { %3251 = vmatpush.bf16.msrb.mxu1 %v4681_v17 }
 0x20d   :  { %3213 = vmatmul.bf16.vlgmr.msra.gmra.mxu2 %v7848_v46 }
 0x20e   :  { %3257 = vmatpush.bf16.msrb.mxu2 %v4921_v36 }
 0x20f   :  { %3252 = vmatmul.bf16.vlgmr.msrb.gmra.mxu1 %v7706_v28  ;;  %v4854_v28 = vld [vmem:[%s8023_s6 + $0x378] sm:$0xf0]  ;;  %s5377_s6 = smov [#allocation2]  }
 0x210   :  { %v4857_v51 = vor.u32 %v5303_v39, %v4854_v28  ;;  %s3287_s7 = sshll.u32 %s5377_s6, 4  ;;  %s3288_s7 = int_to_ptr.vmem [resolvable:$true] %s3287_s7 }
 0x212   :  { %3258 = vmatpush.bf16.msrb.mxu2 %v4905_v38 }
 0x216   :  { %3259 = vmatpush.bf16.msrb.mxu2 %v4889_v26 }
 0x21a   :  { %3260 = vmatpush.bf16.msrb.mxu2 %v4873_v50 }
 0x21e   :  { %3261 = vmatpush.bf16.msrb.mxu2 %v4857_v51 }
 0x222   :  { %3262 = vmatpush.bf16.msrb.mxu2 %v4841_v54 }
 0x226   :  { %3263 = vmatpush.bf16.msrb.mxu2 %v4825_v9 }
 0x22a   :  { %3264 = vmatpush.bf16.msrb.mxu2 %v4809_v59 }
 0x22d   :  { %3265 = vmatmul.bf16.vlgmr.msrb.gmra.mxu2 %v7848_v46 }
 0x230   :  { %v3071_v60 = vpop.f32.mrf.mxu3 }
 0x231   :  { %v3072_v3 = vadd.f32 %v3071_v60, %v2414_v1 }
 0x238   :  { %v3073_v25 = vpop.f32.mrf.mxu3 }
 0x23a   :  { %v3084_v23 = vpop.f32.mrf.mxu0 }
 0x23b   :  { %v3085_v43 = vadd.f32 %v3084_v23, %v3072_v3 }
 0x240   :  { %v3123_v46 = vpop.f32.mrf.mxu3 }
 0x241   :  { %v3124_v58 = vadd.f32 %v3123_v46, %v2415_v7 }
 0x242   :  { %v3086_v5 = vpop.f32.mrf.mxu0 }
 0x248   :  { %v3125_v41 = vpop.f32.mrf.mxu3 }
 0x24a   :  { %v3136_v30 = vpop.f32.mrf.mxu0 }
 0x24b   :  { %v3097_v8 = vpop.f32.mrf.mxu1  ;;  %v3137_v20 = vadd.f32 %v3136_v30, %v3124_v58 }
 0x24c   :  { %v3098_v27 = vadd.f32 %v3097_v8, %v3085_v43 }
 0x250   :  { %v3175_v6 = vpop.f32.mrf.mxu3 }
 0x251   :  { %v3176_v12 = vadd.f32 %v3175_v6, %v2416_v10 }
 0x252   :  { %v3138_v44 = vpop.f32.mrf.mxu0 }
 0x253   :  { %v3099_v62 = vpop.f32.mrf.mxu1 }
 0x258   :  { %v3177_v11 = vpop.f32.mrf.mxu3 }
 0x25b   :  { %v3188_v14 = vpop.f32.mrf.mxu0 }
 0x25c   :  { %v3149_v61 = vpop.f32.mrf.mxu1  ;;  %v3189_v16 = vadd.f32 %v3188_v14, %v3176_v12 }
 0x25d   :  { %v3150_v48 = vadd.f32 %v3149_v61, %v3137_v20 }
 0x263   :  { %v3190_v15 = vpop.f32.mrf.mxu0 }
 0x264   :  { %v3151_v18 = vpop.f32.mrf.mxu1 }
 0x26c   :  { %v3201_v19 = vpop.f32.mrf.mxu1 }
 0x26d   :  { %v3202_v26 = vadd.f32 %v3201_v19, %v3189_v16 }
 0x270   :  { %v3227_v21 = vpop.f32.mrf.mxu3  ;;  %v3110_v22 = vpop.f32.mrf.mxu2 }
 0x271   :  { %v3111_v33 = vadd.f32 %v3110_v22, %v3098_v27  ;;  %v3228_v42 = vadd.f32 %v3227_v21, %v2417_v40 }
 0x274   :  { %v3203_v34 = vpop.f32.mrf.mxu1 }
 0x278   :  { %v3229_v24 = vpop.f32.mrf.mxu3  ;;  %v3112_v29 = vpop.f32.mrf.mxu2 }
 0x27b   :  { %v3240_v2 = vpop.f32.mrf.mxu0 }
 0x27c   :  { %v3241_v45 = vadd.f32 %v3240_v2, %v3228_v42 }
 0x280   :  { %v3162_v31 = vpop.f32.mrf.mxu2 }
 0x281   :  { %v3163_v4 = vadd.f32 %v3162_v31, %v3150_v48 }
 0x283   :  { %v3242_v32 = vpop.f32.mrf.mxu0  ;;  %v3274_v35 = vrot.slane %v3163_v4, 6 }
 0x285   :  { %v3277_v13 = vsel %vm661_vm1, %v3111_v33, %v3274_v35 }
 0x288   :  { %v3164_v17 = vpop.f32.mrf.mxu2 }
 0x28c   :  { %v3253_v36 = vpop.f32.mrf.mxu1 }
 0x28d   :  { %v3254_v49 = vadd.f32 %v3253_v36, %v3241_v45 }
 0x290   :  { %v3214_v37 = vpop.f32.mrf.mxu2 }
 0x291   :  { %v3215_v50 = vadd.f32 %v3214_v37, %v3202_v26 }
 0x293   :  { %v3275_v51 = vrot.slane %v3215_v50, 4 }
 0x294   :  { %v3255_v63 = vpop.f32.mrf.mxu1 }
 0x298   :  { %v3216_v38 = vpop.f32.mrf.mxu2 }
 0x2b0   :  { %v3266_v39 = vpop.f32.mrf.mxu2 }
 0x2b1   :  { %v3267_v28 = vadd.f32 %v3266_v39, %v3254_v49 }
 0x2b3   :  { %v3276_v52 = vrot.slane %v3267_v28, 2 }
 0x2b5   :  { %v3278_v53 = vsel %vm663_vm2, %v3275_v51, %v3276_v52 }
 0x2b6   :  { %v3279_v54 = vsel %vm665_vm3, %v3277_v13, %v3278_v53 }
 0x2b7   :  { %3281 = vst [vmem:[#allocation2] sm:$0xff] %v3279_v54 }
 0x2b8   :  { %v3268_v55 = vpop.f32.mrf.mxu2  ;;  %3292 = dma.vmem_to_hbm [thread:$0]  %s3288_s7, 128, %s3290_s8, [#allocation3]  }
 0x2b9   :  { %5372 = dma.done.wait [#allocation3], 128  }
 0x2ba   :  { %5373 = vsyncadd [#allocation3], 4294967168 }
 0x2bb   :  { %5374 = dma.done.wait [#allocation5], 128  }
 0x2bc   :  { %5375 = vsyncadd [#allocation5], 4294967168 }
 0x2bd   :  { %3312 = vsyncpa [#allocation3], 1 }
 0x2be   :  { %3313 = vsyncpa [#allocation5], 1 }

</bundles_post_ra>
